<compile_context>
chip_gen: v7x
topology: tpu7x:2x2x1
jax: 0.10.0
libtpu: 0.0.40
codegen_flags: <defaults>
</compile_context>

<pallas_src>
import functools

import jax
import jax.numpy as jnp
import numpy as np
from jax.experimental import pallas as pl
from jax.experimental.pallas import tpu as pltpu

_EPS = 1e-5
_LANES = 128


# ----------------------------------------------------------------------------
# Fused whole-network kernel.
# Activation layout inside the kernel: (R, 128) f32 with R = NB*(H+2) rows
# (per-sample: [halo, H image rows, halo]); lane = w*C + c, zero in pad lanes.
# ----------------------------------------------------------------------------
def _sigmoid(v):
    return pl.reciprocal(1.0 + jnp.exp(-v), approx=True)


def _fused_autoencoder_kernel(
        x_ref,
        dw1_ref, db1_ref, dw2_ref, db2_ref, ds_ref, dt_ref,
        we_ref, be_ref, wd_ref, dbias_ref,
        uw1_ref, ub1_ref, uw2_ref, ub2_ref, us_ref, ut_ref,
        fw_ref, fb_ref,
        cmask_ref, emask_ref,
        dec_ref, enc_ref,
        *, H, NB, n_down, n_up):
    Hp = H + 2
    R = NB * Hp
    M = R - 2
    L = _LANES
    f32 = jnp.float32

    conv_mask = cmask_ref[...]          # (M,1): 1 where dest row i+1 is an image row
    enc_mask = emask_ref[...]           # (R,1): 1 on rows that carry the encoding

    zrow = jnp.zeros((1, L), f32)

    def with_halo(y):                   # (M, L) -> (R, L), zero halo rows
        return jnp.concatenate([zrow, y, zrow], axis=0)

    def conv(xfull, wband):
        # single matmul per conv: the 3 dy-shifted row windows are concatenated
        # along K (lane offsets 0/128/256 -> cheap vreg placement).
        op = jnp.concatenate(
            [xfull[0:M, :], xfull[1:1 + M, :], xfull[2:2 + M, :]], axis=1)
        return jnp.dot(op, wband, preferred_element_type=f32)

    def shift_up(a, k):                 # out[j] = a[j + k]
        if k == 0:
            return a
        return jnp.concatenate([a[k:, :], jnp.zeros((k, L), f32)], axis=0)

    def shift_down(a, k):               # out[j] = a[j - k]
        if k == 0:
            return a
        return jnp.concatenate([jnp.zeros((k, L), f32), a[:R - k, :]], axis=0)

    x = x_ref[...]                      # (R, 128): halo rows / pad lanes already zero

    # ---------------- encoder: fused Down blocks ----------------
    for i in range(n_down):
        a1 = conv(x, dw1_ref[i]) + db1_ref[i]                 # conv1 + bias
        mid = with_halo(jnp.maximum(a1, 0.0) * conv_mask)     # ReLU
        a2 = conv(mid, dw2_ref[i])                            # conv2 (even || odd cols)
        y = jnp.maximum(a2[:, :L], a2[:, L:]) + db2_ref[i]    # MaxPool(1,2) folded
        y = jnp.maximum(y, 0.0) * ds_ref[i] + dt_ref[i]       # ReLU + eval BatchNorm2d
        x = with_halo(y * conv_mask)

    # ---------------- latent ----------------
    # Flatten folded into the Linear: K-concat of the H row-shifted views.
    op_e = jnp.concatenate([shift_up(x, h) for h in range(H)], axis=1)   # (R, H*128)
    z = jnp.dot(op_e, we_ref[...], preferred_element_type=f32) + be_ref[...]
    enc_full = _sigmoid(z)                                    # Linear + BN1d + Sigmoid
    enc_ref[...] = jnp.concatenate(
        [enc_full[n * Hp + 1:n * Hp + 2, :] for n in range(NB)], axis=0)

    enc_m = enc_full * enc_mask                               # keep only encoding rows
    op_d = jnp.concatenate([shift_down(enc_m, h) for h in range(H)], axis=1)
    dbias = dbias_ref[...]
    if NB > 1:
        dbias = jnp.concatenate([dbias] * NB, axis=0)
    yd = jnp.dot(op_d, wd_ref[...], preferred_element_type=f32) + dbias
    x = jnp.maximum(yd, 0.0)                                  # Linear + BN1d + ReLU

    # ---------------- decoder: fused Up blocks ----------------
    for i in range(n_up):
        a1 = conv(x, uw1_ref[i]) + ub1_ref[i]                 # convT1 (as conv) + bias
        mid = with_halo(jnp.maximum(a1, 0.0) * conv_mask)     # ReLU
        a2 = conv(mid, uw2_ref[i]) + ub2_ref[i]               # convT2, Upsample folded
        y = jnp.maximum(a2, 0.0) * us_ref[i] + ut_ref[i]      # ReLU + eval BatchNorm2d
        x = with_halo(y * conv_mask)

    # ---------------- final ConvTranspose + Sigmoid ----------------
    a = conv(x, fw_ref[...]) + fb_ref[...]
    dec_ref[...] = with_halo(_sigmoid(a))


# ----------------------------------------------------------------------------
# pallas_call wrapper (1 launch + tiny XLA layout glue)
# ----------------------------------------------------------------------------
def _full_spec(arr):
    nd = arr.ndim
    return pl.BlockSpec(tuple(arr.shape), lambda g, _nd=nd: (0,) * _nd)


def autoencoder_forward(prep, x_nchw, num_chunks=2):
    N, C0, H, W0 = x_nchw.shape
    assert H == prep["H"] and W0 == prep["W0"] and C0 == prep["C0"]
    Hp = H + 2
    G = num_chunks if (num_chunks > 0 and N % num_chunks == 0) else 1
    NB = N // G
    R = NB * Hp

    # input glue: NCHW -> stacked padded-row layout (G, NB*Hp, 128)
    xr = jnp.transpose(x_nchw, (0, 2, 3, 1)).reshape(N, H, W0 * C0)
    xr = jnp.pad(xr, ((0, 0), (1, 1), (0, _LANES - W0 * C0)))
    x_lay = xr.reshape(G, R, _LANES)

    # row masks (trace-time numpy constants, depend only on static shapes)
    cmask = jnp.asarray(((np.arange(R - 2) % Hp) < H).astype(np.float32).reshape(R - 2, 1))
    emask = jnp.asarray(((np.arange(R) % Hp) == 1).astype(np.float32).reshape(R, 1))

    w = prep["w"]
    ins = (x_lay, w["dw1"], w["db1"], w["dw2"], w["db2"], w["ds"], w["dt"],
           w["we"], w["be"], w["wd"], w["dbias_pat"],
           w["uw1"], w["ub1"], w["uw2"], w["ub2"], w["us"], w["ut"],
           w["fw"], w["fb"], cmask, emask)

    kernel = functools.partial(_fused_autoencoder_kernel, H=H, NB=NB,
                               n_down=prep["n_down"], n_up=prep["n_up"])
    dec_lay, enc_lay = pl.pallas_call(
        kernel,
        out_shape=(jax.ShapeDtypeStruct((G, R, _LANES), jnp.float32),
                   jax.ShapeDtypeStruct((G, NB, _LANES), jnp.float32)),
        grid=(G,),
        in_specs=[pl.BlockSpec((None, R, _LANES), lambda g: (g, 0, 0))]
                 + [_full_spec(a) for a in ins[1:]],
        out_specs=(pl.BlockSpec((None, R, _LANES), lambda g: (g, 0, 0)),
                   pl.BlockSpec((None, NB, _LANES), lambda g: (g, 0, 0))),
        compiler_params=pltpu.CompilerParams(
            dimension_semantics=("parallel",),
            vmem_limit_bytes=32 * 1024 * 1024),
    )(*ins)

    # output glue
    dec = dec_lay.reshape(N, Hp, _LANES)[:, 1:1 + H, :W0 * C0]
    decoded = jnp.transpose(dec.reshape(N, H, W0, C0), (0, 3, 1, 2))
    encoded = enc_lay.reshape(N, _LANES)[:, :prep["E"]]
    return decoded, encoded


# ----------------------------------------------------------------------------
# One-time parameter preparation (BN folds, K-merged banded conv matrices, ...)
# ----------------------------------------------------------------------------
def _np(a):
    return np.asarray(a, dtype=np.float32)


def _bn_fold(bn):
    s = _np(bn["weight"]) / np.sqrt(_np(bn["var"]) + _EPS)
    t = _np(bn["bias"]) - _np(bn["mean"]) * s
    return s, t


def _convT_to_conv(wT):
    # ConvTranspose2d(k=3,s=1,p=1) weight (Cin,Cout,kh,kw) -> equivalent 'same'
    # Conv2d weight (Cout,Cin,kh,kw): flip spatially, swap channel axes.
    return np.ascontiguousarray(np.transpose(wT[:, :, ::-1, ::-1], (1, 0, 2, 3)))


def _band3(w_conv, w_in, out_map):
    """3x3 'same' conv as a single (3*128, 128) band matrix.

    Operand layout: lanes [dy*128 + x_in*Cin + cin] (the kernel concatenates the
    three dy row-windows along lanes).  out_map[x_out] lists the output column
    positions the conv output at x_out is written to (folds pool / upsample).
    """
    cout, cin = w_conv.shape[0], w_conv.shape[1]
    assert w_in * cin <= _LANES
    wb = np.zeros((3 * _LANES, _LANES), np.float32)
    for dy in range(3):
        for dx in range(3):
            blk = w_conv[:, :, dy, dx].T            # (cin, cout)
            for x_out, cols in enumerate(out_map):
                x_in = x_out + dx - 1
                if 0 <= x_in < w_in:
                    r0 = dy * _LANES + x_in * cin
                    for col in cols:
                        c0 = col * cout
                        assert c0 + cout <= _LANES
                        wb[r0:r0 + cin, c0:c0 + cout] += blk
    return wb


def _tile_vec(vec, n_pos):
    c = vec.shape[0]
    out = np.zeros((1, _LANES), np.float32)
    for p in range(n_pos):
        out[0, p * c:(p + 1) * c] = vec
    return out


def _prep_down(p, w_in):
    w1, b1 = _np(p["w1"]), _np(p["b1"])
    w2, b2 = _np(p["w2"]), _np(p["b2"])
    band1 = _band3(w1, w_in, [[x] for x in range(w_in)])
    w_out = w_in // 2
    even = [[x // 2] if x % 2 == 0 else [] for x in range(w_in)]
    odd = [[x // 2] if x % 2 == 1 else [] for x in range(w_in)]
    band2 = np.concatenate([_band3(w2, w_in, even), _band3(w2, w_in, odd)], axis=1)
    s, t = _bn_fold(p["bn"])
    blk = dict(w1=band1, b1=_tile_vec(b1, w_in),
               w2=band2, b2=_tile_vec(b2, w_out),
               s=_tile_vec(s, w_out), t=_tile_vec(t, w_out))
    return blk, w_out


def _prep_up(p, w_in):
    w1, b1 = _convT_to_conv(_np(p["w1"])), _np(p["b1"])
    w2, b2 = _convT_to_conv(_np(p["w2"])), _np(p["b2"])
    band1 = _band3(w1, w_in, [[x] for x in range(w_in)])
    w_out = 2 * w_in
    ups = [[2 * x, 2 * x + 1] for x in range(w_in)]        # nearest Upsample(1,2)
    band2 = _band3(w2, w_in, ups)
    s, t = _bn_fold(p["bn"])
    blk = dict(w1=band1, b1=_tile_vec(b1, w_in),
               w2=band2, b2=_tile_vec(b2, w_out),
               s=_tile_vec(s, w_out), t=_tile_vec(t, w_out))
    return blk, w_out


def _prep_final(wT, b, w_in):
    wc = _convT_to_conv(_np(wT))
    band = _band3(wc, w_in, [[x] for x in range(w_in)])
    return dict(w=band, b=_tile_vec(_np(b), w_in))


def _prep_latent(params, latent_shape, enc_dim):
    C, Hl, Wl = latent_shape
    # encoder Linear (+BatchNorm1d folded), torch flatten order (c, h, w)
    s_e, t_e = _bn_fold(params["bn_enc"])
    we = _np(params["lin_enc_w"]) * s_e[:, None]           # (E, flat)
    be = _np(params["lin_enc_b"]) * s_e + t_e
    we_cat = np.zeros((Hl * _LANES, _LANES), np.float32)
    for h in range(Hl):
        for w in range(Wl):
            for c in range(C):
                we_cat[h * _LANES + w * C + c, :enc_dim] = we[:, c * Hl * Wl + h * Wl + w]
    be_row = np.zeros((1, _LANES), np.float32)
    be_row[0, :enc_dim] = be
    # decoder Linear (+BatchNorm1d folded), output scattered back to (h, w, c) rows
    s_d, t_d = _bn_fold(params["bn_dec"])
    wd = _np(params["lin_dec_w"]) * s_d[:, None]           # (flat, E)
    bd = _np(params["lin_dec_b"]) * s_d + t_d
    wd_cat = np.zeros((Hl * _LANES, _LANES), np.float32)
    dbias_pat = np.zeros((Hl + 2, _LANES), np.float32)
    for h in range(Hl):
        for w in range(Wl):
            for c in range(C):
                idx = c * Hl * Wl + h * Wl + w
                wd_cat[h * _LANES:h * _LANES + enc_dim, w * C + c] = wd[idx, :]
                dbias_pat[1 + h, w * C + c] = bd[idx]
    return dict(we=we_cat, be=be_row, wd=wd_cat, dbias_pat=dbias_pat)


def prepare_params(params, *, ny, nx, channel_list, latent_shape, encoding_dim):
    down, W = [], nx
    for p in params["enc_down"]:
        blk, W = _prep_down(p, W)
        down.append(blk)
    assert W == latent_shape[2]
    up, W = [], latent_shape[2]
    for p in params["dec_up"]:
        blk, W = _prep_up(p, W)
        up.append(blk)
    assert W == nx
    fin = _prep_final(params["final_w"], params["final_b"], W)
    lat = _prep_latent(params, latent_shape, encoding_dim)

    w = dict(
        dw1=jnp.asarray(np.stack([b["w1"] for b in down])),
        db1=jnp.asarray(np.stack([b["b1"] for b in down])),
        dw2=jnp.asarray(np.stack([b["w2"] for b in down])),
        db2=jnp.asarray(np.stack([b["b2"] for b in down])),
        ds=jnp.asarray(np.stack([b["s"] for b in down])),
        dt=jnp.asarray(np.stack([b["t"] for b in down])),
        we=jnp.asarray(lat["we"]), be=jnp.asarray(lat["be"]),
        wd=jnp.asarray(lat["wd"]), dbias_pat=jnp.asarray(lat["dbias_pat"]),
        uw1=jnp.asarray(np.stack([b["w1"] for b in up])),
        ub1=jnp.asarray(np.stack([b["b1"] for b in up])),
        uw2=jnp.asarray(np.stack([b["w2"] for b in up])),
        ub2=jnp.asarray(np.stack([b["b2"] for b in up])),
        us=jnp.asarray(np.stack([b["s"] for b in up])),
        ut=jnp.asarray(np.stack([b["t"] for b in up])),
        fw=jnp.asarray(fin["w"]), fb=jnp.asarray(fin["b"]),
    )
    return dict(w=w, H=ny, W0=nx, C0=channel_list[0], E=encoding_dim,
                n_down=len(down), n_up=len(up))


# ----------------------------------------------------------------------------
# Pure-JAX reference (same math as the PyTorch module in eval mode)
# ----------------------------------------------------------------------------
_HI = jax.lax.Precision.HIGHEST


def reference_forward(params, x_nchw, latent_shape):
    def conv(v, w, b):
        h, wdt = v.shape[1], v.shape[2]
        vp = jnp.pad(v, ((0, 0), (1, 1), (1, 1), (0, 0)))
        acc = jnp.zeros(v.shape[:3] + (w.shape[0],), jnp.float32)
        for dy in range(3):
            for dx in range(3):
                acc = acc + jnp.einsum("nhwc,cd->nhwd",
                                       vp[:, dy:dy + h, dx:dx + wdt, :],
                                       w[:, :, dy, dx].T, precision=_HI)
        return acc + b

    def convT(v, wT, b):
        return conv(v, jnp.transpose(wT[:, :, ::-1, ::-1], (1, 0, 2, 3)), b)

    def bn(v, p):
        s = p["weight"] / jnp.sqrt(p["var"] + _EPS)
        return (v - p["mean"]) * s + p["bias"]

    relu = lambda v: jnp.maximum(v, 0.0)
    sigmoid = lambda v: 1.0 / (1.0 + jnp.exp(-v))

    x = jnp.transpose(x_nchw, (0, 2, 3, 1))
    for p in params["enc_down"]:
        x = relu(conv(x, p["w1"], p["b1"]))
        x = relu(conv(x, p["w2"], p["b2"]))
        x = jnp.maximum(x[:, :, 0::2, :], x[:, :, 1::2, :])       # MaxPool(1,2)
        x = bn(x, p["bn"])
    N = x.shape[0]
    flat = jnp.transpose(x, (0, 3, 1, 2)).reshape(N, -1)
    z = jnp.dot(flat, params["lin_enc_w"].T, precision=_HI) + params["lin_enc_b"]
    encoded = sigmoid(bn(z, params["bn_enc"]))
    y = jnp.dot(encoded, params["lin_dec_w"].T, precision=_HI) + params["lin_dec_b"]
    y = relu(bn(y, params["bn_dec"]))
    C, Hl, Wl = latent_shape
    y = jnp.transpose(y.reshape(N, C, Hl, Wl), (0, 2, 3, 1))
    for p in params["dec_up"]:
        y = relu(convT(y, p["w1"], p["b1"]))
        y = relu(convT(y, p["w2"], p["b2"]))
        y = jnp.repeat(y, 2, axis=2)                              # Upsample(1,2) nearest
        y = bn(y, p["bn"])
    y = sigmoid(convT(y, params["final_w"], params["final_b"]))
    return jnp.transpose(y, (0, 3, 1, 2)), encoded


# ----------------------------------------------------------------------------
# Deterministic synthetic parameters (torch layouts)
# ----------------------------------------------------------------------------
def _key_stream(key):
    while True:
        key, sub = jax.random.split(key)
        yield sub


def _winit(ks, shape, scale=0.1):
    return scale * jax.random.normal(next(ks), shape, jnp.float32)


def _bn_init(ks, c):
    return dict(
        weight=1.0 + 0.1 * jax.random.normal(next(ks), (c,), jnp.float32),
        bias=0.1 * jax.random.normal(next(ks), (c,), jnp.float32),
        mean=0.1 * jax.random.normal(next(ks), (c,), jnp.float32),
        var=jax.random.uniform(next(ks), (c,), jnp.float32, 0.5, 1.5),
    )


def init_params(key, *, nx, ny, nfields, encoding_dim, size_factor):
    ks = _key_stream(key)
    channel_list = [nfields] + [int(size_factor * 2 ** i) for i in range(4)]
    latent_shape = (channel_list[-1], ny, nx // 2 ** 4)
    flat_dim = latent_shape[0] * latent_shape[1] * latent_shape[2]

    enc_down = []
    for i in range(4):
        cin, cout = channel_list[i], channel_list[i + 1]
        enc_down.append(dict(
            w1=_winit(ks, (cin, cin, 3, 3)), b1=_winit(ks, (cin,)),
            w2=_winit(ks, (cout, cin, 3, 3)), b2=_winit(ks, (cout,)),
            bn=_bn_init(ks, cout),
        ))

    rev = channel_list[::-1]
    dec_up = []
    for i in range(4):
        cin, cout = rev[i], rev[i + 1]
        dec_up.append(dict(
            w1=_winit(ks, (cin, cin, 3, 3)), b1=_winit(ks, (cin,)),   # ConvT (in,out,kh,kw)
            w2=_winit(ks, (cin, cout, 3, 3)), b2=_winit(ks, (cout,)),
            bn=_bn_init(ks, cout),
        ))

    params = dict(
        enc_down=enc_down,
        lin_enc_w=_winit(ks, (encoding_dim, flat_dim)), lin_enc_b=_winit(ks, (encoding_dim,)),
        bn_enc=_bn_init(ks, encoding_dim),
        lin_dec_w=_winit(ks, (flat_dim, encoding_dim)), lin_dec_b=_winit(ks, (flat_dim,)),
        bn_dec=_bn_init(ks, flat_dim),
        dec_up=dec_up,
        final_w=_winit(ks, (nfields, nfields, 3, 3)), final_b=_winit(ks, (nfields,)),
    )
    return params, latent_shape, channel_list


# ----------------------------------------------------------------------------
if __name__ == "__main__":
    # small config consistent with the module: nx=32, ny=8, 3 fields, enc=16
    NX, NY, NFIELDS, ENC, SF = 32, 8, 3, 16, 4
    key = jax.random.PRNGKey(0)
    pkey, xkey = jax.random.split(key)

    params, latent_shape, channel_list = init_params(
        pkey, nx=NX, ny=NY, nfields=NFIELDS, encoding_dim=ENC, size_factor=SF)
    prep = prepare_params(params, ny=NY, nx=NX, channel_list=channel_list,
                          latent_shape=latent_shape, encoding_dim=ENC)

    # input in PyTorch NCHW convention: (N, nfields, ny, nx)
    x = jax.random.normal(xkey, (2, NFIELDS, NY, NX), jnp.float32)

    # two-chunk variant: one batch chunk per grid step ("parallel" -> both v7x TCs)
    fwd2 = jax.jit(lambda v: autoencoder_forward(prep, v, num_chunks=2))
    decoded, encoded = fwd2(x)
    jax.block_until_ready((decoded, encoded))

    assert decoded.shape == (2, NFIELDS, NY, NX), decoded.shape
    assert encoded.shape == (2, ENC), encoded.shape
    assert bool(jnp.all(jnp.isfinite(decoded))) and bool(jnp.all(jnp.isfinite(encoded)))
    assert bool(jnp.all(decoded >= -1e-3)) and bool(jnp.all(decoded <= 1.0 + 1e-3))

    # numerics check against a plain-JAX implementation of the same module
    ref_fwd = jax.jit(functools.partial(reference_forward, params, latent_shape=latent_shape))
    ref_dec, ref_enc = ref_fwd(x)
    err_d = float(jnp.max(jnp.abs(decoded - ref_dec)))
    err_e = float(jnp.max(jnp.abs(encoded - ref_enc)))
    assert err_d < 5e-2 and err_e < 5e-2, (err_d, err_e)

    # single-chunk variant: whole batch folded into the matmul M dimension
    fwd1 = jax.jit(lambda v: autoencoder_forward(prep, v, num_chunks=1))
    dec1, enc1 = fwd1(x)
    jax.block_until_ready((dec1, enc1))
    err_d1 = float(jnp.max(jnp.abs(dec1 - ref_dec)))
    err_e1 = float(jnp.max(jnp.abs(enc1 - ref_enc)))
    assert err_d1 < 5e-2 and err_e1 < 5e-2, (err_d1, err_e1)

    print("KERNEL_OK")
</pallas_src>

<mosaic_0001>
module attributes {stable_mosaic.version = 11 : i64} {
  func.func @_fused_autoencoder_kernel(%arg0: i32, %arg1: memref<1x10x128xf32, #tpu.memory_space<vmem>>, %arg2: memref<4x384x128xf32, #tpu.memory_space<vmem>>, %arg3: memref<4x1x128xf32, #tpu.memory_space<vmem>>, %arg4: memref<4x384x256xf32, #tpu.memory_space<vmem>>, %arg5: memref<4x1x128xf32, #tpu.memory_space<vmem>>, %arg6: memref<4x1x128xf32, #tpu.memory_space<vmem>>, %arg7: memref<4x1x128xf32, #tpu.memory_space<vmem>>, %arg8: memref<1024x128xf32, #tpu.memory_space<vmem>>, %arg9: memref<1x128xf32, #tpu.memory_space<vmem>>, %arg10: memref<1024x128xf32, #tpu.memory_space<vmem>>, %arg11: memref<10x128xf32, #tpu.memory_space<vmem>>, %arg12: memref<4x384x128xf32, #tpu.memory_space<vmem>>, %arg13: memref<4x1x128xf32, #tpu.memory_space<vmem>>, %arg14: memref<4x384x128xf32, #tpu.memory_space<vmem>>, %arg15: memref<4x1x128xf32, #tpu.memory_space<vmem>>, %arg16: memref<4x1x128xf32, #tpu.memory_space<vmem>>, %arg17: memref<4x1x128xf32, #tpu.memory_space<vmem>>, %arg18: memref<384x128xf32, #tpu.memory_space<vmem>>, %arg19: memref<1x128xf32, #tpu.memory_space<vmem>>, %arg20: memref<8x1xf32, #tpu.memory_space<vmem>>, %arg21: memref<10x1xf32, #tpu.memory_space<vmem>>, %arg22: memref<1x10x128xf32, #tpu.memory_space<vmem>>, %arg23: memref<1x1x128xf32, #tpu.memory_space<vmem>>) attributes {dimension_semantics = [#tpu.dimension_semantics<parallel>], iteration_bounds = array<i64: 2>, scalar_prefetch = 0 : i64, scratch_operands = 0 : i64, tpu.core_type = #tpu.core_type<tc>, window_params = [{transform_indices = @transform_0, window_bounds = array<i64: 1, 10, 128>}, {pipeline_mode = #tpu.pipeline_mode<synchronous>, transform_indices = @transform_1, window_bounds = array<i64: 4, 384, 128>}, {pipeline_mode = #tpu.pipeline_mode<synchronous>, transform_indices = @transform_2, window_bounds = array<i64: 4, 1, 128>}, {pipeline_mode = #tpu.pipeline_mode<synchronous>, transform_indices = @transform_3, window_bounds = array<i64: 4, 384, 256>}, {pipeline_mode = #tpu.pipeline_mode<synchronous>, transform_indices = @transform_4, window_bounds = array<i64: 4, 1, 128>}, {pipeline_mode = #tpu.pipeline_mode<synchronous>, transform_indices = @transform_5, window_bounds = array<i64: 4, 1, 128>}, {pipeline_mode = #tpu.pipeline_mode<synchronous>, transform_indices = @transform_6, window_bounds = array<i64: 4, 1, 128>}, {pipeline_mode = #tpu.pipeline_mode<synchronous>, transform_indices = @transform_7, window_bounds = array<i64: 1024, 128>}, {pipeline_mode = #tpu.pipeline_mode<synchronous>, transform_indices = @transform_8, window_bounds = array<i64: 1, 128>}, {pipeline_mode = #tpu.pipeline_mode<synchronous>, transform_indices = @transform_9, window_bounds = array<i64: 1024, 128>}, {pipeline_mode = #tpu.pipeline_mode<synchronous>, transform_indices = @transform_10, window_bounds = array<i64: 10, 128>}, {pipeline_mode = #tpu.pipeline_mode<synchronous>, transform_indices = @transform_11, window_bounds = array<i64: 4, 384, 128>}, {pipeline_mode = #tpu.pipeline_mode<synchronous>, transform_indices = @transform_12, window_bounds = array<i64: 4, 1, 128>}, {pipeline_mode = #tpu.pipeline_mode<synchronous>, transform_indices = @transform_13, window_bounds = array<i64: 4, 384, 128>}, {pipeline_mode = #tpu.pipeline_mode<synchronous>, transform_indices = @transform_14, window_bounds = array<i64: 4, 1, 128>}, {pipeline_mode = #tpu.pipeline_mode<synchronous>, transform_indices = @transform_15, window_bounds = array<i64: 4, 1, 128>}, {pipeline_mode = #tpu.pipeline_mode<synchronous>, transform_indices = @transform_16, window_bounds = array<i64: 4, 1, 128>}, {pipeline_mode = #tpu.pipeline_mode<synchronous>, transform_indices = @transform_17, window_bounds = array<i64: 384, 128>}, {pipeline_mode = #tpu.pipeline_mode<synchronous>, transform_indices = @transform_18, window_bounds = array<i64: 1, 128>}, {pipeline_mode = #tpu.pipeline_mode<synchronous>, transform_indices = @transform_19, window_bounds = array<i64: 8, 1>}, {pipeline_mode = #tpu.pipeline_mode<synchronous>, transform_indices = @transform_20, window_bounds = array<i64: 10, 1>}, {transform_indices = @transform_21, window_bounds = array<i64: 1, 10, 128>}, {transform_indices = @transform_22, window_bounds = array<i64: 1, 1, 128>}]} {
    %c0 = arith.constant 0 : index
    %c0_0 = arith.constant 0 : index
    %0 = vector.load %arg20[%c0, %c0_0] : memref<8x1xf32, #tpu.memory_space<vmem>>, vector<8x1xf32>
    %c0_1 = arith.constant 0 : index
    %c0_2 = arith.constant 0 : index
    %1 = vector.load %arg21[%c0_1, %c0_2] : memref<10x1xf32, #tpu.memory_space<vmem>>, vector<10x1xf32>
    %cst = arith.constant 0.000000e+00 : f32
    %2 = vector.broadcast %cst : f32 to vector<1x128xf32>
    %c0_3 = arith.constant 0 : index
    %c0_4 = arith.constant 0 : index
    %c0_5 = arith.constant 0 : index
    %3 = vector.load %arg1[%c0_3, %c0_4, %c0_5] : memref<1x10x128xf32, #tpu.memory_space<vmem>>, vector<1x10x128xf32>
    %4 = vector.shape_cast %3 : vector<1x10x128xf32> to vector<10x128xf32>
    %c0_6 = arith.constant 0 : index
    %c0_7 = arith.constant 0 : index
    %c0_8 = arith.constant 0 : index
    %5 = vector.load %arg2[%c0_6, %c0_7, %c0_8] : memref<4x384x128xf32, #tpu.memory_space<vmem>>, vector<1x384x128xf32>
    %6 = vector.shape_cast %5 : vector<1x384x128xf32> to vector<384x128xf32>
    %7 = vector.extract_strided_slice %4 {offsets = [0, 0], sizes = [8, 128], strides = [1, 1]} : vector<10x128xf32> to vector<8x128xf32>
    %8 = vector.extract_strided_slice %4 {offsets = [1, 0], sizes = [8, 128], strides = [1, 1]} : vector<10x128xf32> to vector<8x128xf32>
    %9 = vector.extract_strided_slice %4 {offsets = [2, 0], sizes = [8, 128], strides = [1, 1]} : vector<10x128xf32> to vector<8x128xf32>
    %10 = tpu.concatenate %7, %8, %9 in 1 : vector<8x128xf32>, vector<8x128xf32>, vector<8x128xf32> -> vector<8x384xf32>
    %cst_9 = arith.constant dense<0.000000e+00> : vector<8x128xf32>
    %11 = tpu.matmul %10, %6, %cst_9 {dimension_numbers = #tpu.dot_dimension_numbers<[1], [0], [0], [1], [0, 0, 1, 1], [], []>} : vector<8x384xf32>, vector<384x128xf32>, vector<8x128xf32> -> vector<8x128xf32>
    %c0_10 = arith.constant 0 : index
    %c0_11 = arith.constant 0 : index
    %c0_12 = arith.constant 0 : index
    %12 = vector.load %arg3[%c0_10, %c0_11, %c0_12] : memref<4x1x128xf32, #tpu.memory_space<vmem>>, vector<1x1x128xf32>
    %13 = vector.shape_cast %12 : vector<1x1x128xf32> to vector<1x128xf32>
    %14 = vector.broadcast %13 : vector<1x128xf32> to vector<8x128xf32>
    %15 = arith.addf %11, %14 : vector<8x128xf32>
    %cst_13 = arith.constant 0.000000e+00 : f32
    %16 = vector.broadcast %cst_13 : f32 to vector<8x128xf32>
    %17 = arith.maximumf %15, %16 : vector<8x128xf32>
    %18 = vector.broadcast %0 : vector<8x1xf32> to vector<8x128xf32>
    %19 = arith.mulf %17, %18 : vector<8x128xf32>
    %20 = tpu.concatenate %2, %19, %2 in 0 : vector<1x128xf32>, vector<8x128xf32>, vector<1x128xf32> -> vector<10x128xf32>
    %c0_14 = arith.constant 0 : index
    %c0_15 = arith.constant 0 : index
    %c0_16 = arith.constant 0 : index
    %21 = vector.load %arg4[%c0_14, %c0_15, %c0_16] : memref<4x384x256xf32, #tpu.memory_space<vmem>>, vector<1x384x256xf32>
    %22 = vector.shape_cast %21 : vector<1x384x256xf32> to vector<384x256xf32>
    %23 = vector.extract_strided_slice %20 {offsets = [0, 0], sizes = [8, 128], strides = [1, 1]} : vector<10x128xf32> to vector<8x128xf32>
    %24 = vector.extract_strided_slice %20 {offsets = [1, 0], sizes = [8, 128], strides = [1, 1]} : vector<10x128xf32> to vector<8x128xf32>
    %25 = vector.extract_strided_slice %20 {offsets = [2, 0], sizes = [8, 128], strides = [1, 1]} : vector<10x128xf32> to vector<8x128xf32>
    %26 = tpu.concatenate %23, %24, %25 in 1 : vector<8x128xf32>, vector<8x128xf32>, vector<8x128xf32> -> vector<8x384xf32>
    %cst_17 = arith.constant dense<0.000000e+00> : vector<8x256xf32>
    %27 = tpu.matmul %26, %22, %cst_17 {dimension_numbers = #tpu.dot_dimension_numbers<[1], [0], [0], [1], [0, 0, 1, 1], [], []>} : vector<8x384xf32>, vector<384x256xf32>, vector<8x256xf32> -> vector<8x256xf32>
    %28 = vector.extract_strided_slice %27 {offsets = [0, 0], sizes = [8, 128], strides = [1, 1]} : vector<8x256xf32> to vector<8x128xf32>
    %29 = vector.extract_strided_slice %27 {offsets = [0, 128], sizes = [8, 128], strides = [1, 1]} : vector<8x256xf32> to vector<8x128xf32>
    %30 = arith.maximumf %28, %29 : vector<8x128xf32>
    %c0_18 = arith.constant 0 : index
    %c0_19 = arith.constant 0 : index
    %c0_20 = arith.constant 0 : index
    %31 = vector.load %arg5[%c0_18, %c0_19, %c0_20] : memref<4x1x128xf32, #tpu.memory_space<vmem>>, vector<1x1x128xf32>
    %32 = vector.shape_cast %31 : vector<1x1x128xf32> to vector<1x128xf32>
    %33 = vector.broadcast %32 : vector<1x128xf32> to vector<8x128xf32>
    %34 = arith.addf %30, %33 : vector<8x128xf32>
    %cst_21 = arith.constant 0.000000e+00 : f32
    %35 = vector.broadcast %cst_21 : f32 to vector<8x128xf32>
    %36 = arith.maximumf %34, %35 : vector<8x128xf32>
    %c0_22 = arith.constant 0 : index
    %c0_23 = arith.constant 0 : index
    %c0_24 = arith.constant 0 : index
    %37 = vector.load %arg6[%c0_22, %c0_23, %c0_24] : memref<4x1x128xf32, #tpu.memory_space<vmem>>, vector<1x1x128xf32>
    %38 = vector.shape_cast %37 : vector<1x1x128xf32> to vector<1x128xf32>
    %39 = vector.broadcast %38 : vector<1x128xf32> to vector<8x128xf32>
    %40 = arith.mulf %36, %39 : vector<8x128xf32>
    %c0_25 = arith.constant 0 : index
    %c0_26 = arith.constant 0 : index
    %c0_27 = arith.constant 0 : index
    %41 = vector.load %arg7[%c0_25, %c0_26, %c0_27] : memref<4x1x128xf32, #tpu.memory_space<vmem>>, vector<1x1x128xf32>
    %42 = vector.shape_cast %41 : vector<1x1x128xf32> to vector<1x128xf32>
    %43 = vector.broadcast %42 : vector<1x128xf32> to vector<8x128xf32>
    %44 = arith.addf %40, %43 : vector<8x128xf32>
    %45 = vector.broadcast %0 : vector<8x1xf32> to vector<8x128xf32>
    %46 = arith.mulf %44, %45 : vector<8x128xf32>
    %47 = tpu.concatenate %2, %46, %2 in 0 : vector<1x128xf32>, vector<8x128xf32>, vector<1x128xf32> -> vector<10x128xf32>
    %c1 = arith.constant 1 : index
    %c0_28 = arith.constant 0 : index
    %c0_29 = arith.constant 0 : index
    %48 = vector.load %arg2[%c1, %c0_28, %c0_29] : memref<4x384x128xf32, #tpu.memory_space<vmem>>, vector<1x384x128xf32>
    %49 = vector.shape_cast %48 : vector<1x384x128xf32> to vector<384x128xf32>
    %50 = vector.extract_strided_slice %47 {offsets = [0, 0], sizes = [8, 128], strides = [1, 1]} : vector<10x128xf32> to vector<8x128xf32>
    %51 = vector.extract_strided_slice %47 {offsets = [1, 0], sizes = [8, 128], strides = [1, 1]} : vector<10x128xf32> to vector<8x128xf32>
    %52 = vector.extract_strided_slice %47 {offsets = [2, 0], sizes = [8, 128], strides = [1, 1]} : vector<10x128xf32> to vector<8x128xf32>
    %53 = tpu.concatenate %50, %51, %52 in 1 : vector<8x128xf32>, vector<8x128xf32>, vector<8x128xf32> -> vector<8x384xf32>
    %cst_30 = arith.constant dense<0.000000e+00> : vector<8x128xf32>
    %54 = tpu.matmul %53, %49, %cst_30 {dimension_numbers = #tpu.dot_dimension_numbers<[1], [0], [0], [1], [0, 0, 1, 1], [], []>} : vector<8x384xf32>, vector<384x128xf32>, vector<8x128xf32> -> vector<8x128xf32>
    %c1_31 = arith.constant 1 : index
    %c0_32 = arith.constant 0 : index
    %c0_33 = arith.constant 0 : index
    %55 = vector.load %arg3[%c1_31, %c0_32, %c0_33] : memref<4x1x128xf32, #tpu.memory_space<vmem>>, vector<1x1x128xf32>
    %56 = vector.shape_cast %55 : vector<1x1x128xf32> to vector<1x128xf32>
    %57 = vector.broadcast %56 : vector<1x128xf32> to vector<8x128xf32>
    %58 = arith.addf %54, %57 : vector<8x128xf32>
    %cst_34 = arith.constant 0.000000e+00 : f32
    %59 = vector.broadcast %cst_34 : f32 to vector<8x128xf32>
    %60 = arith.maximumf %58, %59 : vector<8x128xf32>
    %61 = vector.broadcast %0 : vector<8x1xf32> to vector<8x128xf32>
    %62 = arith.mulf %60, %61 : vector<8x128xf32>
    %63 = tpu.concatenate %2, %62, %2 in 0 : vector<1x128xf32>, vector<8x128xf32>, vector<1x128xf32> -> vector<10x128xf32>
    %c1_35 = arith.constant 1 : index
    %c0_36 = arith.constant 0 : index
    %c0_37 = arith.constant 0 : index
    %64 = vector.load %arg4[%c1_35, %c0_36, %c0_37] : memref<4x384x256xf32, #tpu.memory_space<vmem>>, vector<1x384x256xf32>
    %65 = vector.shape_cast %64 : vector<1x384x256xf32> to vector<384x256xf32>
    %66 = vector.extract_strided_slice %63 {offsets = [0, 0], sizes = [8, 128], strides = [1, 1]} : vector<10x128xf32> to vector<8x128xf32>
    %67 = vector.extract_strided_slice %63 {offsets = [1, 0], sizes = [8, 128], strides = [1, 1]} : vector<10x128xf32> to vector<8x128xf32>
    %68 = vector.extract_strided_slice %63 {offsets = [2, 0], sizes = [8, 128], strides = [1, 1]} : vector<10x128xf32> to vector<8x128xf32>
    %69 = tpu.concatenate %66, %67, %68 in 1 : vector<8x128xf32>, vector<8x128xf32>, vector<8x128xf32> -> vector<8x384xf32>
    %cst_38 = arith.constant dense<0.000000e+00> : vector<8x256xf32>
    %70 = tpu.matmul %69, %65, %cst_38 {dimension_numbers = #tpu.dot_dimension_numbers<[1], [0], [0], [1], [0, 0, 1, 1], [], []>} : vector<8x384xf32>, vector<384x256xf32>, vector<8x256xf32> -> vector<8x256xf32>
    %71 = vector.extract_strided_slice %70 {offsets = [0, 0], sizes = [8, 128], strides = [1, 1]} : vector<8x256xf32> to vector<8x128xf32>
    %72 = vector.extract_strided_slice %70 {offsets = [0, 128], sizes = [8, 128], strides = [1, 1]} : vector<8x256xf32> to vector<8x128xf32>
    %73 = arith.maximumf %71, %72 : vector<8x128xf32>
    %c1_39 = arith.constant 1 : index
    %c0_40 = arith.constant 0 : index
    %c0_41 = arith.constant 0 : index
    %74 = vector.load %arg5[%c1_39, %c0_40, %c0_41] : memref<4x1x128xf32, #tpu.memory_space<vmem>>, vector<1x1x128xf32>
    %75 = vector.shape_cast %74 : vector<1x1x128xf32> to vector<1x128xf32>
    %76 = vector.broadcast %75 : vector<1x128xf32> to vector<8x128xf32>
    %77 = arith.addf %73, %76 : vector<8x128xf32>
    %cst_42 = arith.constant 0.000000e+00 : f32
    %78 = vector.broadcast %cst_42 : f32 to vector<8x128xf32>
    %79 = arith.maximumf %77, %78 : vector<8x128xf32>
    %c1_43 = arith.constant 1 : index
    %c0_44 = arith.constant 0 : index
    %c0_45 = arith.constant 0 : index
    %80 = vector.load %arg6[%c1_43, %c0_44, %c0_45] : memref<4x1x128xf32, #tpu.memory_space<vmem>>, vector<1x1x128xf32>
    %81 = vector.shape_cast %80 : vector<1x1x128xf32> to vector<1x128xf32>
    %82 = vector.broadcast %81 : vector<1x128xf32> to vector<8x128xf32>
    %83 = arith.mulf %79, %82 : vector<8x128xf32>
    %c1_46 = arith.constant 1 : index
    %c0_47 = arith.constant 0 : index
    %c0_48 = arith.constant 0 : index
    %84 = vector.load %arg7[%c1_46, %c0_47, %c0_48] : memref<4x1x128xf32, #tpu.memory_space<vmem>>, vector<1x1x128xf32>
    %85 = vector.shape_cast %84 : vector<1x1x128xf32> to vector<1x128xf32>
    %86 = vector.broadcast %85 : vector<1x128xf32> to vector<8x128xf32>
    %87 = arith.addf %83, %86 : vector<8x128xf32>
    %88 = vector.broadcast %0 : vector<8x1xf32> to vector<8x128xf32>
    %89 = arith.mulf %87, %88 : vector<8x128xf32>
    %90 = tpu.concatenate %2, %89, %2 in 0 : vector<1x128xf32>, vector<8x128xf32>, vector<1x128xf32> -> vector<10x128xf32>
    %c2 = arith.constant 2 : index
    %c0_49 = arith.constant 0 : index
    %c0_50 = arith.constant 0 : index
    %91 = vector.load %arg2[%c2, %c0_49, %c0_50] : memref<4x384x128xf32, #tpu.memory_space<vmem>>, vector<1x384x128xf32>
    %92 = vector.shape_cast %91 : vector<1x384x128xf32> to vector<384x128xf32>
    %93 = vector.extract_strided_slice %90 {offsets = [0, 0], sizes = [8, 128], strides = [1, 1]} : vector<10x128xf32> to vector<8x128xf32>
    %94 = vector.extract_strided_slice %90 {offsets = [1, 0], sizes = [8, 128], strides = [1, 1]} : vector<10x128xf32> to vector<8x128xf32>
    %95 = vector.extract_strided_slice %90 {offsets = [2, 0], sizes = [8, 128], strides = [1, 1]} : vector<10x128xf32> to vector<8x128xf32>
    %96 = tpu.concatenate %93, %94, %95 in 1 : vector<8x128xf32>, vector<8x128xf32>, vector<8x128xf32> -> vector<8x384xf32>
    %cst_51 = arith.constant dense<0.000000e+00> : vector<8x128xf32>
    %97 = tpu.matmul %96, %92, %cst_51 {dimension_numbers = #tpu.dot_dimension_numbers<[1], [0], [0], [1], [0, 0, 1, 1], [], []>} : vector<8x384xf32>, vector<384x128xf32>, vector<8x128xf32> -> vector<8x128xf32>
    %c2_52 = arith.constant 2 : index
    %c0_53 = arith.constant 0 : index
    %c0_54 = arith.constant 0 : index
    %98 = vector.load %arg3[%c2_52, %c0_53, %c0_54] : memref<4x1x128xf32, #tpu.memory_space<vmem>>, vector<1x1x128xf32>
    %99 = vector.shape_cast %98 : vector<1x1x128xf32> to vector<1x128xf32>
    %100 = vector.broadcast %99 : vector<1x128xf32> to vector<8x128xf32>
    %101 = arith.addf %97, %100 : vector<8x128xf32>
    %cst_55 = arith.constant 0.000000e+00 : f32
    %102 = vector.broadcast %cst_55 : f32 to vector<8x128xf32>
    %103 = arith.maximumf %101, %102 : vector<8x128xf32>
    %104 = vector.broadcast %0 : vector<8x1xf32> to vector<8x128xf32>
    %105 = arith.mulf %103, %104 : vector<8x128xf32>
    %106 = tpu.concatenate %2, %105, %2 in 0 : vector<1x128xf32>, vector<8x128xf32>, vector<1x128xf32> -> vector<10x128xf32>
    %c2_56 = arith.constant 2 : index
    %c0_57 = arith.constant 0 : index
    %c0_58 = arith.constant 0 : index
    %107 = vector.load %arg4[%c2_56, %c0_57, %c0_58] : memref<4x384x256xf32, #tpu.memory_space<vmem>>, vector<1x384x256xf32>
    %108 = vector.shape_cast %107 : vector<1x384x256xf32> to vector<384x256xf32>
    %109 = vector.extract_strided_slice %106 {offsets = [0, 0], sizes = [8, 128], strides = [1, 1]} : vector<10x128xf32> to vector<8x128xf32>
    %110 = vector.extract_strided_slice %106 {offsets = [1, 0], sizes = [8, 128], strides = [1, 1]} : vector<10x128xf32> to vector<8x128xf32>
    %111 = vector.extract_strided_slice %106 {offsets = [2, 0], sizes = [8, 128], strides = [1, 1]} : vector<10x128xf32> to vector<8x128xf32>
    %112 = tpu.concatenate %109, %110, %111 in 1 : vector<8x128xf32>, vector<8x128xf32>, vector<8x128xf32> -> vector<8x384xf32>
    %cst_59 = arith.constant dense<0.000000e+00> : vector<8x256xf32>
    %113 = tpu.matmul %112, %108, %cst_59 {dimension_numbers = #tpu.dot_dimension_numbers<[1], [0], [0], [1], [0, 0, 1, 1], [], []>} : vector<8x384xf32>, vector<384x256xf32>, vector<8x256xf32> -> vector<8x256xf32>
    %114 = vector.extract_strided_slice %113 {offsets = [0, 0], sizes = [8, 128], strides = [1, 1]} : vector<8x256xf32> to vector<8x128xf32>
    %115 = vector.extract_strided_slice %113 {offsets = [0, 128], sizes = [8, 128], strides = [1, 1]} : vector<8x256xf32> to vector<8x128xf32>
    %116 = arith.maximumf %114, %115 : vector<8x128xf32>
    %c2_60 = arith.constant 2 : index
    %c0_61 = arith.constant 0 : index
    %c0_62 = arith.constant 0 : index
    %117 = vector.load %arg5[%c2_60, %c0_61, %c0_62] : memref<4x1x128xf32, #tpu.memory_space<vmem>>, vector<1x1x128xf32>
    %118 = vector.shape_cast %117 : vector<1x1x128xf32> to vector<1x128xf32>
    %119 = vector.broadcast %118 : vector<1x128xf32> to vector<8x128xf32>
    %120 = arith.addf %116, %119 : vector<8x128xf32>
    %cst_63 = arith.constant 0.000000e+00 : f32
    %121 = vector.broadcast %cst_63 : f32 to vector<8x128xf32>
    %122 = arith.maximumf %120, %121 : vector<8x128xf32>
    %c2_64 = arith.constant 2 : index
    %c0_65 = arith.constant 0 : index
    %c0_66 = arith.constant 0 : index
    %123 = vector.load %arg6[%c2_64, %c0_65, %c0_66] : memref<4x1x128xf32, #tpu.memory_space<vmem>>, vector<1x1x128xf32>
    %124 = vector.shape_cast %123 : vector<1x1x128xf32> to vector<1x128xf32>
    %125 = vector.broadcast %124 : vector<1x128xf32> to vector<8x128xf32>
    %126 = arith.mulf %122, %125 : vector<8x128xf32>
    %c2_67 = arith.constant 2 : index
    %c0_68 = arith.constant 0 : index
    %c0_69 = arith.constant 0 : index
    %127 = vector.load %arg7[%c2_67, %c0_68, %c0_69] : memref<4x1x128xf32, #tpu.memory_space<vmem>>, vector<1x1x128xf32>
    %128 = vector.shape_cast %127 : vector<1x1x128xf32> to vector<1x128xf32>
    %129 = vector.broadcast %128 : vector<1x128xf32> to vector<8x128xf32>
    %130 = arith.addf %126, %129 : vector<8x128xf32>
    %131 = vector.broadcast %0 : vector<8x1xf32> to vector<8x128xf32>
    %132 = arith.mulf %130, %131 : vector<8x128xf32>
    %133 = tpu.concatenate %2, %132, %2 in 0 : vector<1x128xf32>, vector<8x128xf32>, vector<1x128xf32> -> vector<10x128xf32>
    %c3 = arith.constant 3 : index
    %c0_70 = arith.constant 0 : index
    %c0_71 = arith.constant 0 : index
    %134 = vector.load %arg2[%c3, %c0_70, %c0_71] : memref<4x384x128xf32, #tpu.memory_space<vmem>>, vector<1x384x128xf32>
    %135 = vector.shape_cast %134 : vector<1x384x128xf32> to vector<384x128xf32>
    %136 = vector.extract_strided_slice %133 {offsets = [0, 0], sizes = [8, 128], strides = [1, 1]} : vector<10x128xf32> to vector<8x128xf32>
    %137 = vector.extract_strided_slice %133 {offsets = [1, 0], sizes = [8, 128], strides = [1, 1]} : vector<10x128xf32> to vector<8x128xf32>
    %138 = vector.extract_strided_slice %133 {offsets = [2, 0], sizes = [8, 128], strides = [1, 1]} : vector<10x128xf32> to vector<8x128xf32>
    %139 = tpu.concatenate %136, %137, %138 in 1 : vector<8x128xf32>, vector<8x128xf32>, vector<8x128xf32> -> vector<8x384xf32>
    %cst_72 = arith.constant dense<0.000000e+00> : vector<8x128xf32>
    %140 = tpu.matmul %139, %135, %cst_72 {dimension_numbers = #tpu.dot_dimension_numbers<[1], [0], [0], [1], [0, 0, 1, 1], [], []>} : vector<8x384xf32>, vector<384x128xf32>, vector<8x128xf32> -> vector<8x128xf32>
    %c3_73 = arith.constant 3 : index
    %c0_74 = arith.constant 0 : index
    %c0_75 = arith.constant 0 : index
    %141 = vector.load %arg3[%c3_73, %c0_74, %c0_75] : memref<4x1x128xf32, #tpu.memory_space<vmem>>, vector<1x1x128xf32>
    %142 = vector.shape_cast %141 : vector<1x1x128xf32> to vector<1x128xf32>
    %143 = vector.broadcast %142 : vector<1x128xf32> to vector<8x128xf32>
    %144 = arith.addf %140, %143 : vector<8x128xf32>
    %cst_76 = arith.constant 0.000000e+00 : f32
    %145 = vector.broadcast %cst_76 : f32 to vector<8x128xf32>
    %146 = arith.maximumf %144, %145 : vector<8x128xf32>
    %147 = vector.broadcast %0 : vector<8x1xf32> to vector<8x128xf32>
    %148 = arith.mulf %146, %147 : vector<8x128xf32>
    %149 = tpu.concatenate %2, %148, %2 in 0 : vector<1x128xf32>, vector<8x128xf32>, vector<1x128xf32> -> vector<10x128xf32>
    %c3_77 = arith.constant 3 : index
    %c0_78 = arith.constant 0 : index
    %c0_79 = arith.constant 0 : index
    %150 = vector.load %arg4[%c3_77, %c0_78, %c0_79] : memref<4x384x256xf32, #tpu.memory_space<vmem>>, vector<1x384x256xf32>
    %151 = vector.shape_cast %150 : vector<1x384x256xf32> to vector<384x256xf32>
    %152 = vector.extract_strided_slice %149 {offsets = [0, 0], sizes = [8, 128], strides = [1, 1]} : vector<10x128xf32> to vector<8x128xf32>
    %153 = vector.extract_strided_slice %149 {offsets = [1, 0], sizes = [8, 128], strides = [1, 1]} : vector<10x128xf32> to vector<8x128xf32>
    %154 = vector.extract_strided_slice %149 {offsets = [2, 0], sizes = [8, 128], strides = [1, 1]} : vector<10x128xf32> to vector<8x128xf32>
    %155 = tpu.concatenate %152, %153, %154 in 1 : vector<8x128xf32>, vector<8x128xf32>, vector<8x128xf32> -> vector<8x384xf32>
    %cst_80 = arith.constant dense<0.000000e+00> : vector<8x256xf32>
    %156 = tpu.matmul %155, %151, %cst_80 {dimension_numbers = #tpu.dot_dimension_numbers<[1], [0], [0], [1], [0, 0, 1, 1], [], []>} : vector<8x384xf32>, vector<384x256xf32>, vector<8x256xf32> -> vector<8x256xf32>
    %157 = vector.extract_strided_slice %156 {offsets = [0, 0], sizes = [8, 128], strides = [1, 1]} : vector<8x256xf32> to vector<8x128xf32>
    %158 = vector.extract_strided_slice %156 {offsets = [0, 128], sizes = [8, 128], strides = [1, 1]} : vector<8x256xf32> to vector<8x128xf32>
    %159 = arith.maximumf %157, %158 : vector<8x128xf32>
    %c3_81 = arith.constant 3 : index
    %c0_82 = arith.constant 0 : index
    %c0_83 = arith.constant 0 : index
    %160 = vector.load %arg5[%c3_81, %c0_82, %c0_83] : memref<4x1x128xf32, #tpu.memory_space<vmem>>, vector<1x1x128xf32>
    %161 = vector.shape_cast %160 : vector<1x1x128xf32> to vector<1x128xf32>
    %162 = vector.broadcast %161 : vector<1x128xf32> to vector<8x128xf32>
    %163 = arith.addf %159, %162 : vector<8x128xf32>
    %cst_84 = arith.constant 0.000000e+00 : f32
    %164 = vector.broadcast %cst_84 : f32 to vector<8x128xf32>
    %165 = arith.maximumf %163, %164 : vector<8x128xf32>
    %c3_85 = arith.constant 3 : index
    %c0_86 = arith.constant 0 : index
    %c0_87 = arith.constant 0 : index
    %166 = vector.load %arg6[%c3_85, %c0_86, %c0_87] : memref<4x1x128xf32, #tpu.memory_space<vmem>>, vector<1x1x128xf32>
    %167 = vector.shape_cast %166 : vector<1x1x128xf32> to vector<1x128xf32>
    %168 = vector.broadcast %167 : vector<1x128xf32> to vector<8x128xf32>
    %169 = arith.mulf %165, %168 : vector<8x128xf32>
    %c3_88 = arith.constant 3 : index
    %c0_89 = arith.constant 0 : index
    %c0_90 = arith.constant 0 : index
    %170 = vector.load %arg7[%c3_88, %c0_89, %c0_90] : memref<4x1x128xf32, #tpu.memory_space<vmem>>, vector<1x1x128xf32>
    %171 = vector.shape_cast %170 : vector<1x1x128xf32> to vector<1x128xf32>
    %172 = vector.broadcast %171 : vector<1x128xf32> to vector<8x128xf32>
    %173 = arith.addf %169, %172 : vector<8x128xf32>
    %174 = vector.broadcast %0 : vector<8x1xf32> to vector<8x128xf32>
    %175 = arith.mulf %173, %174 : vector<8x128xf32>
    %176 = tpu.concatenate %2, %175, %2 in 0 : vector<1x128xf32>, vector<8x128xf32>, vector<1x128xf32> -> vector<10x128xf32>
    %177 = vector.extract_strided_slice %176 {offsets = [1, 0], sizes = [9, 128], strides = [1, 1]} : vector<10x128xf32> to vector<9x128xf32>
    %cst_91 = arith.constant 0.000000e+00 : f32
    %178 = vector.broadcast %cst_91 : f32 to vector<1x128xf32>
    %179 = tpu.concatenate %177, %178 in 0 : vector<9x128xf32>, vector<1x128xf32> -> vector<10x128xf32>
    %180 = vector.extract_strided_slice %176 {offsets = [2, 0], sizes = [8, 128], strides = [1, 1]} : vector<10x128xf32> to vector<8x128xf32>
    %cst_92 = arith.constant 0.000000e+00 : f32
    %181 = vector.broadcast %cst_92 : f32 to vector<2x128xf32>
    %182 = tpu.concatenate %180, %181 in 0 : vector<8x128xf32>, vector<2x128xf32> -> vector<10x128xf32>
    %183 = vector.extract_strided_slice %176 {offsets = [3, 0], sizes = [7, 128], strides = [1, 1]} : vector<10x128xf32> to vector<7x128xf32>
    %cst_93 = arith.constant 0.000000e+00 : f32
    %184 = vector.broadcast %cst_93 : f32 to vector<3x128xf32>
    %185 = tpu.concatenate %183, %184 in 0 : vector<7x128xf32>, vector<3x128xf32> -> vector<10x128xf32>
    %186 = vector.extract_strided_slice %176 {offsets = [4, 0], sizes = [6, 128], strides = [1, 1]} : vector<10x128xf32> to vector<6x128xf32>
    %cst_94 = arith.constant 0.000000e+00 : f32
    %187 = vector.broadcast %cst_94 : f32 to vector<4x128xf32>
    %188 = tpu.concatenate %186, %187 in 0 : vector<6x128xf32>, vector<4x128xf32> -> vector<10x128xf32>
    %189 = vector.extract_strided_slice %176 {offsets = [5, 0], sizes = [5, 128], strides = [1, 1]} : vector<10x128xf32> to vector<5x128xf32>
    %cst_95 = arith.constant 0.000000e+00 : f32
    %190 = vector.broadcast %cst_95 : f32 to vector<5x128xf32>
    %191 = tpu.concatenate %189, %190 in 0 : vector<5x128xf32>, vector<5x128xf32> -> vector<10x128xf32>
    %192 = vector.extract_strided_slice %176 {offsets = [6, 0], sizes = [4, 128], strides = [1, 1]} : vector<10x128xf32> to vector<4x128xf32>
    %cst_96 = arith.constant 0.000000e+00 : f32
    %193 = vector.broadcast %cst_96 : f32 to vector<6x128xf32>
    %194 = tpu.concatenate %192, %193 in 0 : vector<4x128xf32>, vector<6x128xf32> -> vector<10x128xf32>
    %195 = vector.extract_strided_slice %176 {offsets = [7, 0], sizes = [3, 128], strides = [1, 1]} : vector<10x128xf32> to vector<3x128xf32>
    %cst_97 = arith.constant 0.000000e+00 : f32
    %196 = vector.broadcast %cst_97 : f32 to vector<7x128xf32>
    %197 = tpu.concatenate %195, %196 in 0 : vector<3x128xf32>, vector<7x128xf32> -> vector<10x128xf32>
    %198 = tpu.concatenate %176, %179, %182, %185, %188, %191, %194, %197 in 1 : vector<10x128xf32>, vector<10x128xf32>, vector<10x128xf32>, vector<10x128xf32>, vector<10x128xf32>, vector<10x128xf32>, vector<10x128xf32>, vector<10x128xf32> -> vector<10x1024xf32>
    %c0_98 = arith.constant 0 : index
    %c0_99 = arith.constant 0 : index
    %199 = vector.load %arg8[%c0_98, %c0_99] : memref<1024x128xf32, #tpu.memory_space<vmem>>, vector<1024x128xf32>
    %cst_100 = arith.constant dense<0.000000e+00> : vector<10x128xf32>
    %200 = tpu.matmul %198, %199, %cst_100 {dimension_numbers = #tpu.dot_dimension_numbers<[1], [0], [0], [1], [0, 0, 1, 1], [], []>} : vector<10x1024xf32>, vector<1024x128xf32>, vector<10x128xf32> -> vector<10x128xf32>
    %c0_101 = arith.constant 0 : index
    %c0_102 = arith.constant 0 : index
    %201 = vector.load %arg9[%c0_101, %c0_102] : memref<1x128xf32, #tpu.memory_space<vmem>>, vector<1x128xf32>
    %202 = vector.broadcast %201 : vector<1x128xf32> to vector<10x128xf32>
    %203 = arith.addf %200, %202 : vector<10x128xf32>
    %cst_103 = arith.constant 0.000000e+00 : f32
    %204 = vector.broadcast %cst_103 : f32 to vector<10x128xf32>
    %205 = arith.subf %204, %203 : vector<10x128xf32>
    %206 = math.exp %205 : vector<10x128xf32>
    %cst_104 = arith.constant 1.000000e+00 : f32
    %207 = vector.broadcast %cst_104 : f32 to vector<10x128xf32>
    %208 = arith.addf %207, %206 : vector<10x128xf32>
    %209 = tpu.reciprocal %208 {approx = true} : vector<10x128xf32> -> vector<10x128xf32>
    %210 = vector.extract_strided_slice %209 {offsets = [1, 0], sizes = [1, 128], strides = [1, 1]} : vector<10x128xf32> to vector<1x128xf32>
    %c0_105 = arith.constant 0 : index
    %c0_106 = arith.constant 0 : index
    %c0_107 = arith.constant 0 : index
    %211 = vector.load %arg23[%c0_105, %c0_106, %c0_107] : memref<1x1x128xf32, #tpu.memory_space<vmem>>, vector<1x1x128xf32>
    %212 = vector.shape_cast %211 : vector<1x1x128xf32> to vector<1x128xf32>
    %213 = vector.shape_cast %210 : vector<1x128xf32> to vector<1x1x128xf32>
    tpu.vector_store %arg23[%c0_105, %c0_106, %c0_107], %213 {strides = array<i32>} : memref<1x1x128xf32, #tpu.memory_space<vmem>>, vector<1x1x128xf32>,
    %214 = vector.broadcast %1 : vector<10x1xf32> to vector<10x128xf32>
    %215 = arith.mulf %209, %214 : vector<10x128xf32>
    %cst_108 = arith.constant 0.000000e+00 : f32
    %216 = vector.broadcast %cst_108 : f32 to vector<1x128xf32>
    %217 = vector.extract_strided_slice %215 {offsets = [0, 0], sizes = [9, 128], strides = [1, 1]} : vector<10x128xf32> to vector<9x128xf32>
    %218 = tpu.concatenate %216, %217 in 0 : vector<1x128xf32>, vector<9x128xf32> -> vector<10x128xf32>
    %cst_109 = arith.constant 0.000000e+00 : f32
    %219 = vector.broadcast %cst_109 : f32 to vector<2x128xf32>
    %220 = vector.extract_strided_slice %215 {offsets = [0, 0], sizes = [8, 128], strides = [1, 1]} : vector<10x128xf32> to vector<8x128xf32>
    %221 = tpu.concatenate %219, %220 in 0 : vector<2x128xf32>, vector<8x128xf32> -> vector<10x128xf32>
    %cst_110 = arith.constant 0.000000e+00 : f32
    %222 = vector.broadcast %cst_110 : f32 to vector<3x128xf32>
    %223 = vector.extract_strided_slice %215 {offsets = [0, 0], sizes = [7, 128], strides = [1, 1]} : vector<10x128xf32> to vector<7x128xf32>
    %224 = tpu.concatenate %222, %223 in 0 : vector<3x128xf32>, vector<7x128xf32> -> vector<10x128xf32>
    %cst_111 = arith.constant 0.000000e+00 : f32
    %225 = vector.broadcast %cst_111 : f32 to vector<4x128xf32>
    %226 = vector.extract_strided_slice %215 {offsets = [0, 0], sizes = [6, 128], strides = [1, 1]} : vector<10x128xf32> to vector<6x128xf32>
    %227 = tpu.concatenate %225, %226 in 0 : vector<4x128xf32>, vector<6x128xf32> -> vector<10x128xf32>
    %cst_112 = arith.constant 0.000000e+00 : f32
    %228 = vector.broadcast %cst_112 : f32 to vector<5x128xf32>
    %229 = vector.extract_strided_slice %215 {offsets = [0, 0], sizes = [5, 128], strides = [1, 1]} : vector<10x128xf32> to vector<5x128xf32>
    %230 = tpu.concatenate %228, %229 in 0 : vector<5x128xf32>, vector<5x128xf32> -> vector<10x128xf32>
    %cst_113 = arith.constant 0.000000e+00 : f32
    %231 = vector.broadcast %cst_113 : f32 to vector<6x128xf32>
    %232 = vector.extract_strided_slice %215 {offsets = [0, 0], sizes = [4, 128], strides = [1, 1]} : vector<10x128xf32> to vector<4x128xf32>
    %233 = tpu.concatenate %231, %232 in 0 : vector<6x128xf32>, vector<4x128xf32> -> vector<10x128xf32>
    %cst_114 = arith.constant 0.000000e+00 : f32
    %234 = vector.broadcast %cst_114 : f32 to vector<7x128xf32>
    %235 = vector.extract_strided_slice %215 {offsets = [0, 0], sizes = [3, 128], strides = [1, 1]} : vector<10x128xf32> to vector<3x128xf32>
    %236 = tpu.concatenate %234, %235 in 0 : vector<7x128xf32>, vector<3x128xf32> -> vector<10x128xf32>
    %237 = tpu.concatenate %215, %218, %221, %224, %227, %230, %233, %236 in 1 : vector<10x128xf32>, vector<10x128xf32>, vector<10x128xf32>, vector<10x128xf32>, vector<10x128xf32>, vector<10x128xf32>, vector<10x128xf32>, vector<10x128xf32> -> vector<10x1024xf32>
    %c0_115 = arith.constant 0 : index
    %c0_116 = arith.constant 0 : index
    %238 = vector.load %arg11[%c0_115, %c0_116] : memref<10x128xf32, #tpu.memory_space<vmem>>, vector<10x128xf32>
    %c0_117 = arith.constant 0 : index
    %c0_118 = arith.constant 0 : index
    %239 = vector.load %arg10[%c0_117, %c0_118] : memref<1024x128xf32, #tpu.memory_space<vmem>>, vector<1024x128xf32>
    %cst_119 = arith.constant dense<0.000000e+00> : vector<10x128xf32>
    %240 = tpu.matmul %237, %239, %cst_119 {dimension_numbers = #tpu.dot_dimension_numbers<[1], [0], [0], [1], [0, 0, 1, 1], [], []>} : vector<10x1024xf32>, vector<1024x128xf32>, vector<10x128xf32> -> vector<10x128xf32>
    %241 = arith.addf %240, %238 : vector<10x128xf32>
    %cst_120 = arith.constant 0.000000e+00 : f32
    %242 = vector.broadcast %cst_120 : f32 to vector<10x128xf32>
    %243 = arith.maximumf %241, %242 : vector<10x128xf32>
    %c0_121 = arith.constant 0 : index
    %c0_122 = arith.constant 0 : index
    %c0_123 = arith.constant 0 : index
    %244 = vector.load %arg12[%c0_121, %c0_122, %c0_123] : memref<4x384x128xf32, #tpu.memory_space<vmem>>, vector<1x384x128xf32>
    %245 = vector.shape_cast %244 : vector<1x384x128xf32> to vector<384x128xf32>
    %246 = vector.extract_strided_slice %243 {offsets = [0, 0], sizes = [8, 128], strides = [1, 1]} : vector<10x128xf32> to vector<8x128xf32>
    %247 = vector.extract_strided_slice %243 {offsets = [1, 0], sizes = [8, 128], strides = [1, 1]} : vector<10x128xf32> to vector<8x128xf32>
    %248 = vector.extract_strided_slice %243 {offsets = [2, 0], sizes = [8, 128], strides = [1, 1]} : vector<10x128xf32> to vector<8x128xf32>
    %249 = tpu.concatenate %246, %247, %248 in 1 : vector<8x128xf32>, vector<8x128xf32>, vector<8x128xf32> -> vector<8x384xf32>
    %cst_124 = arith.constant dense<0.000000e+00> : vector<8x128xf32>
    %250 = tpu.matmul %249, %245, %cst_124 {dimension_numbers = #tpu.dot_dimension_numbers<[1], [0], [0], [1], [0, 0, 1, 1], [], []>} : vector<8x384xf32>, vector<384x128xf32>, vector<8x128xf32> -> vector<8x128xf32>
    %c0_125 = arith.constant 0 : index
    %c0_126 = arith.constant 0 : index
    %c0_127 = arith.constant 0 : index
    %251 = vector.load %arg13[%c0_125, %c0_126, %c0_127] : memref<4x1x128xf32, #tpu.memory_space<vmem>>, vector<1x1x128xf32>
    %252 = vector.shape_cast %251 : vector<1x1x128xf32> to vector<1x128xf32>
    %253 = vector.broadcast %252 : vector<1x128xf32> to vector<8x128xf32>
    %254 = arith.addf %250, %253 : vector<8x128xf32>
    %cst_128 = arith.constant 0.000000e+00 : f32
    %255 = vector.broadcast %cst_128 : f32 to vector<8x128xf32>
    %256 = arith.maximumf %254, %255 : vector<8x128xf32>
    %257 = vector.broadcast %0 : vector<8x1xf32> to vector<8x128xf32>
    %258 = arith.mulf %256, %257 : vector<8x128xf32>
    %259 = tpu.concatenate %2, %258, %2 in 0 : vector<1x128xf32>, vector<8x128xf32>, vector<1x128xf32> -> vector<10x128xf32>
    %c0_129 = arith.constant 0 : index
    %c0_130 = arith.constant 0 : index
    %c0_131 = arith.constant 0 : index
    %260 = vector.load %arg14[%c0_129, %c0_130, %c0_131] : memref<4x384x128xf32, #tpu.memory_space<vmem>>, vector<1x384x128xf32>
    %261 = vector.shape_cast %260 : vector<1x384x128xf32> to vector<384x128xf32>
    %262 = vector.extract_strided_slice %259 {offsets = [0, 0], sizes = [8, 128], strides = [1, 1]} : vector<10x128xf32> to vector<8x128xf32>
    %263 = vector.extract_strided_slice %259 {offsets = [1, 0], sizes = [8, 128], strides = [1, 1]} : vector<10x128xf32> to vector<8x128xf32>
    %264 = vector.extract_strided_slice %259 {offsets = [2, 0], sizes = [8, 128], strides = [1, 1]} : vector<10x128xf32> to vector<8x128xf32>
    %265 = tpu.concatenate %262, %263, %264 in 1 : vector<8x128xf32>, vector<8x128xf32>, vector<8x128xf32> -> vector<8x384xf32>
    %cst_132 = arith.constant dense<0.000000e+00> : vector<8x128xf32>
    %266 = tpu.matmul %265, %261, %cst_132 {dimension_numbers = #tpu.dot_dimension_numbers<[1], [0], [0], [1], [0, 0, 1, 1], [], []>} : vector<8x384xf32>, vector<384x128xf32>, vector<8x128xf32> -> vector<8x128xf32>
    %c0_133 = arith.constant 0 : index
    %c0_134 = arith.constant 0 : index
    %c0_135 = arith.constant 0 : index
    %267 = vector.load %arg15[%c0_133, %c0_134, %c0_135] : memref<4x1x128xf32, #tpu.memory_space<vmem>>, vector<1x1x128xf32>
    %268 = vector.shape_cast %267 : vector<1x1x128xf32> to vector<1x128xf32>
    %269 = vector.broadcast %268 : vector<1x128xf32> to vector<8x128xf32>
    %270 = arith.addf %266, %269 : vector<8x128xf32>
    %cst_136 = arith.constant 0.000000e+00 : f32
    %271 = vector.broadcast %cst_136 : f32 to vector<8x128xf32>
    %272 = arith.maximumf %270, %271 : vector<8x128xf32>
    %c0_137 = arith.constant 0 : index
    %c0_138 = arith.constant 0 : index
    %c0_139 = arith.constant 0 : index
    %273 = vector.load %arg16[%c0_137, %c0_138, %c0_139] : memref<4x1x128xf32, #tpu.memory_space<vmem>>, vector<1x1x128xf32>
    %274 = vector.shape_cast %273 : vector<1x1x128xf32> to vector<1x128xf32>
    %275 = vector.broadcast %274 : vector<1x128xf32> to vector<8x128xf32>
    %276 = arith.mulf %272, %275 : vector<8x128xf32>
    %c0_140 = arith.constant 0 : index
    %c0_141 = arith.constant 0 : index
    %c0_142 = arith.constant 0 : index
    %277 = vector.load %arg17[%c0_140, %c0_141, %c0_142] : memref<4x1x128xf32, #tpu.memory_space<vmem>>, vector<1x1x128xf32>
    %278 = vector.shape_cast %277 : vector<1x1x128xf32> to vector<1x128xf32>
    %279 = vector.broadcast %278 : vector<1x128xf32> to vector<8x128xf32>
    %280 = arith.addf %276, %279 : vector<8x128xf32>
    %281 = vector.broadcast %0 : vector<8x1xf32> to vector<8x128xf32>
    %282 = arith.mulf %280, %281 : vector<8x128xf32>
    %283 = tpu.concatenate %2, %282, %2 in 0 : vector<1x128xf32>, vector<8x128xf32>, vector<1x128xf32> -> vector<10x128xf32>
    %c1_143 = arith.constant 1 : index
    %c0_144 = arith.constant 0 : index
    %c0_145 = arith.constant 0 : index
    %284 = vector.load %arg12[%c1_143, %c0_144, %c0_145] : memref<4x384x128xf32, #tpu.memory_space<vmem>>, vector<1x384x128xf32>
    %285 = vector.shape_cast %284 : vector<1x384x128xf32> to vector<384x128xf32>
    %286 = vector.extract_strided_slice %283 {offsets = [0, 0], sizes = [8, 128], strides = [1, 1]} : vector<10x128xf32> to vector<8x128xf32>
    %287 = vector.extract_strided_slice %283 {offsets = [1, 0], sizes = [8, 128], strides = [1, 1]} : vector<10x128xf32> to vector<8x128xf32>
    %288 = vector.extract_strided_slice %283 {offsets = [2, 0], sizes = [8, 128], strides = [1, 1]} : vector<10x128xf32> to vector<8x128xf32>
    %289 = tpu.concatenate %286, %287, %288 in 1 : vector<8x128xf32>, vector<8x128xf32>, vector<8x128xf32> -> vector<8x384xf32>
    %cst_146 = arith.constant dense<0.000000e+00> : vector<8x128xf32>
    %290 = tpu.matmul %289, %285, %cst_146 {dimension_numbers = #tpu.dot_dimension_numbers<[1], [0], [0], [1], [0, 0, 1, 1], [], []>} : vector<8x384xf32>, vector<384x128xf32>, vector<8x128xf32> -> vector<8x128xf32>
    %c1_147 = arith.constant 1 : index
    %c0_148 = arith.constant 0 : index
    %c0_149 = arith.constant 0 : index
    %291 = vector.load %arg13[%c1_147, %c0_148, %c0_149] : memref<4x1x128xf32, #tpu.memory_space<vmem>>, vector<1x1x128xf32>
    %292 = vector.shape_cast %291 : vector<1x1x128xf32> to vector<1x128xf32>
    %293 = vector.broadcast %292 : vector<1x128xf32> to vector<8x128xf32>
    %294 = arith.addf %290, %293 : vector<8x128xf32>
    %cst_150 = arith.constant 0.000000e+00 : f32
    %295 = vector.broadcast %cst_150 : f32 to vector<8x128xf32>
    %296 = arith.maximumf %294, %295 : vector<8x128xf32>
    %297 = vector.broadcast %0 : vector<8x1xf32> to vector<8x128xf32>
    %298 = arith.mulf %296, %297 : vector<8x128xf32>
    %299 = tpu.concatenate %2, %298, %2 in 0 : vector<1x128xf32>, vector<8x128xf32>, vector<1x128xf32> -> vector<10x128xf32>
    %c1_151 = arith.constant 1 : index
    %c0_152 = arith.constant 0 : index
    %c0_153 = arith.constant 0 : index
    %300 = vector.load %arg14[%c1_151, %c0_152, %c0_153] : memref<4x384x128xf32, #tpu.memory_space<vmem>>, vector<1x384x128xf32>
    %301 = vector.shape_cast %300 : vector<1x384x128xf32> to vector<384x128xf32>
    %302 = vector.extract_strided_slice %299 {offsets = [0, 0], sizes = [8, 128], strides = [1, 1]} : vector<10x128xf32> to vector<8x128xf32>
    %303 = vector.extract_strided_slice %299 {offsets = [1, 0], sizes = [8, 128], strides = [1, 1]} : vector<10x128xf32> to vector<8x128xf32>
    %304 = vector.extract_strided_slice %299 {offsets = [2, 0], sizes = [8, 128], strides = [1, 1]} : vector<10x128xf32> to vector<8x128xf32>
    %305 = tpu.concatenate %302, %303, %304 in 1 : vector<8x128xf32>, vector<8x128xf32>, vector<8x128xf32> -> vector<8x384xf32>
    %cst_154 = arith.constant dense<0.000000e+00> : vector<8x128xf32>
    %306 = tpu.matmul %305, %301, %cst_154 {dimension_numbers = #tpu.dot_dimension_numbers<[1], [0], [0], [1], [0, 0, 1, 1], [], []>} : vector<8x384xf32>, vector<384x128xf32>, vector<8x128xf32> -> vector<8x128xf32>
    %c1_155 = arith.constant 1 : index
    %c0_156 = arith.constant 0 : index
    %c0_157 = arith.constant 0 : index
    %307 = vector.load %arg15[%c1_155, %c0_156, %c0_157] : memref<4x1x128xf32, #tpu.memory_space<vmem>>, vector<1x1x128xf32>
    %308 = vector.shape_cast %307 : vector<1x1x128xf32> to vector<1x128xf32>
    %309 = vector.broadcast %308 : vector<1x128xf32> to vector<8x128xf32>
    %310 = arith.addf %306, %309 : vector<8x128xf32>
    %cst_158 = arith.constant 0.000000e+00 : f32
    %311 = vector.broadcast %cst_158 : f32 to vector<8x128xf32>
    %312 = arith.maximumf %310, %311 : vector<8x128xf32>
    %c1_159 = arith.constant 1 : index
    %c0_160 = arith.constant 0 : index
    %c0_161 = arith.constant 0 : index
    %313 = vector.load %arg16[%c1_159, %c0_160, %c0_161] : memref<4x1x128xf32, #tpu.memory_space<vmem>>, vector<1x1x128xf32>
    %314 = vector.shape_cast %313 : vector<1x1x128xf32> to vector<1x128xf32>
    %315 = vector.broadcast %314 : vector<1x128xf32> to vector<8x128xf32>
    %316 = arith.mulf %312, %315 : vector<8x128xf32>
    %c1_162 = arith.constant 1 : index
    %c0_163 = arith.constant 0 : index
    %c0_164 = arith.constant 0 : index
    %317 = vector.load %arg17[%c1_162, %c0_163, %c0_164] : memref<4x1x128xf32, #tpu.memory_space<vmem>>, vector<1x1x128xf32>
    %318 = vector.shape_cast %317 : vector<1x1x128xf32> to vector<1x128xf32>
    %319 = vector.broadcast %318 : vector<1x128xf32> to vector<8x128xf32>
    %320 = arith.addf %316, %319 : vector<8x128xf32>
    %321 = vector.broadcast %0 : vector<8x1xf32> to vector<8x128xf32>
    %322 = arith.mulf %320, %321 : vector<8x128xf32>
    %323 = tpu.concatenate %2, %322, %2 in 0 : vector<1x128xf32>, vector<8x128xf32>, vector<1x128xf32> -> vector<10x128xf32>
    %c2_165 = arith.constant 2 : index
    %c0_166 = arith.constant 0 : index
    %c0_167 = arith.constant 0 : index
    %324 = vector.load %arg12[%c2_165, %c0_166, %c0_167] : memref<4x384x128xf32, #tpu.memory_space<vmem>>, vector<1x384x128xf32>
    %325 = vector.shape_cast %324 : vector<1x384x128xf32> to vector<384x128xf32>
    %326 = vector.extract_strided_slice %323 {offsets = [0, 0], sizes = [8, 128], strides = [1, 1]} : vector<10x128xf32> to vector<8x128xf32>
    %327 = vector.extract_strided_slice %323 {offsets = [1, 0], sizes = [8, 128], strides = [1, 1]} : vector<10x128xf32> to vector<8x128xf32>
    %328 = vector.extract_strided_slice %323 {offsets = [2, 0], sizes = [8, 128], strides = [1, 1]} : vector<10x128xf32> to vector<8x128xf32>
    %329 = tpu.concatenate %326, %327, %328 in 1 : vector<8x128xf32>, vector<8x128xf32>, vector<8x128xf32> -> vector<8x384xf32>
    %cst_168 = arith.constant dense<0.000000e+00> : vector<8x128xf32>
    %330 = tpu.matmul %329, %325, %cst_168 {dimension_numbers = #tpu.dot_dimension_numbers<[1], [0], [0], [1], [0, 0, 1, 1], [], []>} : vector<8x384xf32>, vector<384x128xf32>, vector<8x128xf32> -> vector<8x128xf32>
    %c2_169 = arith.constant 2 : index
    %c0_170 = arith.constant 0 : index
    %c0_171 = arith.constant 0 : index
    %331 = vector.load %arg13[%c2_169, %c0_170, %c0_171] : memref<4x1x128xf32, #tpu.memory_space<vmem>>, vector<1x1x128xf32>
    %332 = vector.shape_cast %331 : vector<1x1x128xf32> to vector<1x128xf32>
    %333 = vector.broadcast %332 : vector<1x128xf32> to vector<8x128xf32>
    %334 = arith.addf %330, %333 : vector<8x128xf32>
    %cst_172 = arith.constant 0.000000e+00 : f32
    %335 = vector.broadcast %cst_172 : f32 to vector<8x128xf32>
    %336 = arith.maximumf %334, %335 : vector<8x128xf32>
    %337 = vector.broadcast %0 : vector<8x1xf32> to vector<8x128xf32>
    %338 = arith.mulf %336, %337 : vector<8x128xf32>
    %339 = tpu.concatenate %2, %338, %2 in 0 : vector<1x128xf32>, vector<8x128xf32>, vector<1x128xf32> -> vector<10x128xf32>
    %c2_173 = arith.constant 2 : index
    %c0_174 = arith.constant 0 : index
    %c0_175 = arith.constant 0 : index
    %340 = vector.load %arg14[%c2_173, %c0_174, %c0_175] : memref<4x384x128xf32, #tpu.memory_space<vmem>>, vector<1x384x128xf32>
    %341 = vector.shape_cast %340 : vector<1x384x128xf32> to vector<384x128xf32>
    %342 = vector.extract_strided_slice %339 {offsets = [0, 0], sizes = [8, 128], strides = [1, 1]} : vector<10x128xf32> to vector<8x128xf32>
    %343 = vector.extract_strided_slice %339 {offsets = [1, 0], sizes = [8, 128], strides = [1, 1]} : vector<10x128xf32> to vector<8x128xf32>
    %344 = vector.extract_strided_slice %339 {offsets = [2, 0], sizes = [8, 128], strides = [1, 1]} : vector<10x128xf32> to vector<8x128xf32>
    %345 = tpu.concatenate %342, %343, %344 in 1 : vector<8x128xf32>, vector<8x128xf32>, vector<8x128xf32> -> vector<8x384xf32>
    %cst_176 = arith.constant dense<0.000000e+00> : vector<8x128xf32>
    %346 = tpu.matmul %345, %341, %cst_176 {dimension_numbers = #tpu.dot_dimension_numbers<[1], [0], [0], [1], [0, 0, 1, 1], [], []>} : vector<8x384xf32>, vector<384x128xf32>, vector<8x128xf32> -> vector<8x128xf32>
    %c2_177 = arith.constant 2 : index
    %c0_178 = arith.constant 0 : index
    %c0_179 = arith.constant 0 : index
    %347 = vector.load %arg15[%c2_177, %c0_178, %c0_179] : memref<4x1x128xf32, #tpu.memory_space<vmem>>, vector<1x1x128xf32>
    %348 = vector.shape_cast %347 : vector<1x1x128xf32> to vector<1x128xf32>
    %349 = vector.broadcast %348 : vector<1x128xf32> to vector<8x128xf32>
    %350 = arith.addf %346, %349 : vector<8x128xf32>
    %cst_180 = arith.constant 0.000000e+00 : f32
    %351 = vector.broadcast %cst_180 : f32 to vector<8x128xf32>
    %352 = arith.maximumf %350, %351 : vector<8x128xf32>
    %c2_181 = arith.constant 2 : index
    %c0_182 = arith.constant 0 : index
    %c0_183 = arith.constant 0 : index
    %353 = vector.load %arg16[%c2_181, %c0_182, %c0_183] : memref<4x1x128xf32, #tpu.memory_space<vmem>>, vector<1x1x128xf32>
    %354 = vector.shape_cast %353 : vector<1x1x128xf32> to vector<1x128xf32>
    %355 = vector.broadcast %354 : vector<1x128xf32> to vector<8x128xf32>
    %356 = arith.mulf %352, %355 : vector<8x128xf32>
    %c2_184 = arith.constant 2 : index
    %c0_185 = arith.constant 0 : index
    %c0_186 = arith.constant 0 : index
    %357 = vector.load %arg17[%c2_184, %c0_185, %c0_186] : memref<4x1x128xf32, #tpu.memory_space<vmem>>, vector<1x1x128xf32>
    %358 = vector.shape_cast %357 : vector<1x1x128xf32> to vector<1x128xf32>
    %359 = vector.broadcast %358 : vector<1x128xf32> to vector<8x128xf32>
    %360 = arith.addf %356, %359 : vector<8x128xf32>
    %361 = vector.broadcast %0 : vector<8x1xf32> to vector<8x128xf32>
    %362 = arith.mulf %360, %361 : vector<8x128xf32>
    %363 = tpu.concatenate %2, %362, %2 in 0 : vector<1x128xf32>, vector<8x128xf32>, vector<1x128xf32> -> vector<10x128xf32>
    %c3_187 = arith.constant 3 : index
    %c0_188 = arith.constant 0 : index
    %c0_189 = arith.constant 0 : index
    %364 = vector.load %arg12[%c3_187, %c0_188, %c0_189] : memref<4x384x128xf32, #tpu.memory_space<vmem>>, vector<1x384x128xf32>
    %365 = vector.shape_cast %364 : vector<1x384x128xf32> to vector<384x128xf32>
    %366 = vector.extract_strided_slice %363 {offsets = [0, 0], sizes = [8, 128], strides = [1, 1]} : vector<10x128xf32> to vector<8x128xf32>
    %367 = vector.extract_strided_slice %363 {offsets = [1, 0], sizes = [8, 128], strides = [1, 1]} : vector<10x128xf32> to vector<8x128xf32>
    %368 = vector.extract_strided_slice %363 {offsets = [2, 0], sizes = [8, 128], strides = [1, 1]} : vector<10x128xf32> to vector<8x128xf32>
    %369 = tpu.concatenate %366, %367, %368 in 1 : vector<8x128xf32>, vector<8x128xf32>, vector<8x128xf32> -> vector<8x384xf32>
    %cst_190 = arith.constant dense<0.000000e+00> : vector<8x128xf32>
    %370 = tpu.matmul %369, %365, %cst_190 {dimension_numbers = #tpu.dot_dimension_numbers<[1], [0], [0], [1], [0, 0, 1, 1], [], []>} : vector<8x384xf32>, vector<384x128xf32>, vector<8x128xf32> -> vector<8x128xf32>
    %c3_191 = arith.constant 3 : index
    %c0_192 = arith.constant 0 : index
    %c0_193 = arith.constant 0 : index
    %371 = vector.load %arg13[%c3_191, %c0_192, %c0_193] : memref<4x1x128xf32, #tpu.memory_space<vmem>>, vector<1x1x128xf32>
    %372 = vector.shape_cast %371 : vector<1x1x128xf32> to vector<1x128xf32>
    %373 = vector.broadcast %372 : vector<1x128xf32> to vector<8x128xf32>
    %374 = arith.addf %370, %373 : vector<8x128xf32>
    %cst_194 = arith.constant 0.000000e+00 : f32
    %375 = vector.broadcast %cst_194 : f32 to vector<8x128xf32>
    %376 = arith.maximumf %374, %375 : vector<8x128xf32>
    %377 = vector.broadcast %0 : vector<8x1xf32> to vector<8x128xf32>
    %378 = arith.mulf %376, %377 : vector<8x128xf32>
    %379 = tpu.concatenate %2, %378, %2 in 0 : vector<1x128xf32>, vector<8x128xf32>, vector<1x128xf32> -> vector<10x128xf32>
    %c3_195 = arith.constant 3 : index
    %c0_196 = arith.constant 0 : index
    %c0_197 = arith.constant 0 : index
    %380 = vector.load %arg14[%c3_195, %c0_196, %c0_197] : memref<4x384x128xf32, #tpu.memory_space<vmem>>, vector<1x384x128xf32>
    %381 = vector.shape_cast %380 : vector<1x384x128xf32> to vector<384x128xf32>
    %382 = vector.extract_strided_slice %379 {offsets = [0, 0], sizes = [8, 128], strides = [1, 1]} : vector<10x128xf32> to vector<8x128xf32>
    %383 = vector.extract_strided_slice %379 {offsets = [1, 0], sizes = [8, 128], strides = [1, 1]} : vector<10x128xf32> to vector<8x128xf32>
    %384 = vector.extract_strided_slice %379 {offsets = [2, 0], sizes = [8, 128], strides = [1, 1]} : vector<10x128xf32> to vector<8x128xf32>
    %385 = tpu.concatenate %382, %383, %384 in 1 : vector<8x128xf32>, vector<8x128xf32>, vector<8x128xf32> -> vector<8x384xf32>
    %cst_198 = arith.constant dense<0.000000e+00> : vector<8x128xf32>
    %386 = tpu.matmul %385, %381, %cst_198 {dimension_numbers = #tpu.dot_dimension_numbers<[1], [0], [0], [1], [0, 0, 1, 1], [], []>} : vector<8x384xf32>, vector<384x128xf32>, vector<8x128xf32> -> vector<8x128xf32>
    %c3_199 = arith.constant 3 : index
    %c0_200 = arith.constant 0 : index
    %c0_201 = arith.constant 0 : index
    %387 = vector.load %arg15[%c3_199, %c0_200, %c0_201] : memref<4x1x128xf32, #tpu.memory_space<vmem>>, vector<1x1x128xf32>
    %388 = vector.shape_cast %387 : vector<1x1x128xf32> to vector<1x128xf32>
    %389 = vector.broadcast %388 : vector<1x128xf32> to vector<8x128xf32>
    %390 = arith.addf %386, %389 : vector<8x128xf32>
    %cst_202 = arith.constant 0.000000e+00 : f32
    %391 = vector.broadcast %cst_202 : f32 to vector<8x128xf32>
    %392 = arith.maximumf %390, %391 : vector<8x128xf32>
    %c3_203 = arith.constant 3 : index
    %c0_204 = arith.constant 0 : index
    %c0_205 = arith.constant 0 : index
    %393 = vector.load %arg16[%c3_203, %c0_204, %c0_205] : memref<4x1x128xf32, #tpu.memory_space<vmem>>, vector<1x1x128xf32>
    %394 = vector.shape_cast %393 : vector<1x1x128xf32> to vector<1x128xf32>
    %395 = vector.broadcast %394 : vector<1x128xf32> to vector<8x128xf32>
    %396 = arith.mulf %392, %395 : vector<8x128xf32>
    %c3_206 = arith.constant 3 : index
    %c0_207 = arith.constant 0 : index
    %c0_208 = arith.constant 0 : index
    %397 = vector.load %arg17[%c3_206, %c0_207, %c0_208] : memref<4x1x128xf32, #tpu.memory_space<vmem>>, vector<1x1x128xf32>
    %398 = vector.shape_cast %397 : vector<1x1x128xf32> to vector<1x128xf32>
    %399 = vector.broadcast %398 : vector<1x128xf32> to vector<8x128xf32>
    %400 = arith.addf %396, %399 : vector<8x128xf32>
    %401 = vector.broadcast %0 : vector<8x1xf32> to vector<8x128xf32>
    %402 = arith.mulf %400, %401 : vector<8x128xf32>
    %403 = tpu.concatenate %2, %402, %2 in 0 : vector<1x128xf32>, vector<8x128xf32>, vector<1x128xf32> -> vector<10x128xf32>
    %c0_209 = arith.constant 0 : index
    %c0_210 = arith.constant 0 : index
    %404 = vector.load %arg18[%c0_209, %c0_210] : memref<384x128xf32, #tpu.memory_space<vmem>>, vector<384x128xf32>
    %405 = vector.extract_strided_slice %403 {offsets = [0, 0], sizes = [8, 128], strides = [1, 1]} : vector<10x128xf32> to vector<8x128xf32>
    %406 = vector.extract_strided_slice %403 {offsets = [1, 0], sizes = [8, 128], strides = [1, 1]} : vector<10x128xf32> to vector<8x128xf32>
    %407 = vector.extract_strided_slice %403 {offsets = [2, 0], sizes = [8, 128], strides = [1, 1]} : vector<10x128xf32> to vector<8x128xf32>
    %408 = tpu.concatenate %405, %406, %407 in 1 : vector<8x128xf32>, vector<8x128xf32>, vector<8x128xf32> -> vector<8x384xf32>
    %cst_211 = arith.constant dense<0.000000e+00> : vector<8x128xf32>
    %409 = tpu.matmul %408, %404, %cst_211 {dimension_numbers = #tpu.dot_dimension_numbers<[1], [0], [0], [1], [0, 0, 1, 1], [], []>} : vector<8x384xf32>, vector<384x128xf32>, vector<8x128xf32> -> vector<8x128xf32>
    %c0_212 = arith.constant 0 : index
    %c0_213 = arith.constant 0 : index
    %410 = vector.load %arg19[%c0_212, %c0_213] : memref<1x128xf32, #tpu.memory_space<vmem>>, vector<1x128xf32>
    %411 = vector.broadcast %410 : vector<1x128xf32> to vector<8x128xf32>
    %412 = arith.addf %409, %411 : vector<8x128xf32>
    %cst_214 = arith.constant 0.000000e+00 : f32
    %413 = vector.broadcast %cst_214 : f32 to vector<8x128xf32>
    %414 = arith.subf %413, %412 : vector<8x128xf32>
    %415 = math.exp %414 : vector<8x128xf32>
    %cst_215 = arith.constant 1.000000e+00 : f32
    %416 = vector.broadcast %cst_215 : f32 to vector<8x128xf32>
    %417 = arith.addf %416, %415 : vector<8x128xf32>
    %418 = tpu.reciprocal %417 {approx = true} : vector<8x128xf32> -> vector<8x128xf32>
    %419 = tpu.concatenate %2, %418, %2 in 0 : vector<1x128xf32>, vector<8x128xf32>, vector<1x128xf32> -> vector<10x128xf32>
    %c0_216 = arith.constant 0 : index
    %c0_217 = arith.constant 0 : index
    %c0_218 = arith.constant 0 : index
    %420 = vector.load %arg22[%c0_216, %c0_217, %c0_218] : memref<1x10x128xf32, #tpu.memory_space<vmem>>, vector<1x10x128xf32>
    %421 = vector.shape_cast %420 : vector<1x10x128xf32> to vector<10x128xf32>
    %422 = vector.shape_cast %419 : vector<10x128xf32> to vector<1x10x128xf32>
    tpu.vector_store %arg22[%c0_216, %c0_217, %c0_218], %422 {strides = array<i32>} : memref<1x10x128xf32, #tpu.memory_space<vmem>>, vector<1x10x128xf32>,
    return
  }
  func.func @transform_0(%arg0: i32) -> (i32, i32, i32) {
    %c0_i32 = arith.constant 0 : i32
    %c0_i32_0 = arith.constant 0 : i32
    %c0_i32_1 = arith.constant 0 : i32
    return %arg0, %c0_i32, %c0_i32_0 : i32, i32, i32
  }
  func.func @transform_1(%arg0: i32) -> (i32, i32, i32) {
    %c0_i32 = arith.constant 0 : i32
    %c0_i32_0 = arith.constant 0 : i32
    %c0_i32_1 = arith.constant 0 : i32
    %c0_i32_2 = arith.constant 0 : i32
    return %c0_i32, %c0_i32_0, %c0_i32_1 : i32, i32, i32
  }
  func.func @transform_2(%arg0: i32) -> (i32, i32, i32) {
    %c0_i32 = arith.constant 0 : i32
    %c0_i32_0 = arith.constant 0 : i32
    %c0_i32_1 = arith.constant 0 : i32
    %c0_i32_2 = arith.constant 0 : i32
    return %c0_i32, %c0_i32_0, %c0_i32_1 : i32, i32, i32
  }
  func.func @transform_3(%arg0: i32) -> (i32, i32, i32) {
    %c0_i32 = arith.constant 0 : i32
    %c0_i32_0 = arith.constant 0 : i32
    %c0_i32_1 = arith.constant 0 : i32
    %c0_i32_2 = arith.constant 0 : i32
    return %c0_i32, %c0_i32_0, %c0_i32_1 : i32, i32, i32
  }
  func.func @transform_4(%arg0: i32) -> (i32, i32, i32) {
    %c0_i32 = arith.constant 0 : i32
    %c0_i32_0 = arith.constant 0 : i32
    %c0_i32_1 = arith.constant 0 : i32
    %c0_i32_2 = arith.constant 0 : i32
    return %c0_i32, %c0_i32_0, %c0_i32_1 : i32, i32, i32
  }
  func.func @transform_5(%arg0: i32) -> (i32, i32, i32) {
    %c0_i32 = arith.constant 0 : i32
    %c0_i32_0 = arith.constant 0 : i32
    %c0_i32_1 = arith.constant 0 : i32
    %c0_i32_2 = arith.constant 0 : i32
    return %c0_i32, %c0_i32_0, %c0_i32_1 : i32, i32, i32
  }
  func.func @transform_6(%arg0: i32) -> (i32, i32, i32) {
    %c0_i32 = arith.constant 0 : i32
    %c0_i32_0 = arith.constant 0 : i32
    %c0_i32_1 = arith.constant 0 : i32
    %c0_i32_2 = arith.constant 0 : i32
    return %c0_i32, %c0_i32_0, %c0_i32_1 : i32, i32, i32
  }
  func.func @transform_7(%arg0: i32) -> (i32, i32) {
    %c0_i32 = arith.constant 0 : i32
    %c0_i32_0 = arith.constant 0 : i32
    %c0_i32_1 = arith.constant 0 : i32
    return %c0_i32, %c0_i32_0 : i32, i32
  }
  func.func @transform_8(%arg0: i32) -> (i32, i32) {
    %c0_i32 = arith.constant 0 : i32
    %c0_i32_0 = arith.constant 0 : i32
    %c0_i32_1 = arith.constant 0 : i32
    return %c0_i32, %c0_i32_0 : i32, i32
  }
  func.func @transform_9(%arg0: i32) -> (i32, i32) {
    %c0_i32 = arith.constant 0 : i32
    %c0_i32_0 = arith.constant 0 : i32
    %c0_i32_1 = arith.constant 0 : i32
    return %c0_i32, %c0_i32_0 : i32, i32
  }
  func.func @transform_10(%arg0: i32) -> (i32, i32) {
    %c0_i32 = arith.constant 0 : i32
    %c0_i32_0 = arith.constant 0 : i32
    %c0_i32_1 = arith.constant 0 : i32
    return %c0_i32, %c0_i32_0 : i32, i32
  }
  func.func @transform_11(%arg0: i32) -> (i32, i32, i32) {
    %c0_i32 = arith.constant 0 : i32
    %c0_i32_0 = arith.constant 0 : i32
    %c0_i32_1 = arith.constant 0 : i32
    %c0_i32_2 = arith.constant 0 : i32
    return %c0_i32, %c0_i32_0, %c0_i32_1 : i32, i32, i32
  }
  func.func @transform_12(%arg0: i32) -> (i32, i32, i32) {
    %c0_i32 = arith.constant 0 : i32
    %c0_i32_0 = arith.constant 0 : i32
    %c0_i32_1 = arith.constant 0 : i32
    %c0_i32_2 = arith.constant 0 : i32
    return %c0_i32, %c0_i32_0, %c0_i32_1 : i32, i32, i32
  }
  func.func @transform_13(%arg0: i32) -> (i32, i32, i32) {
    %c0_i32 = arith.constant 0 : i32
    %c0_i32_0 = arith.constant 0 : i32
    %c0_i32_1 = arith.constant 0 : i32
    %c0_i32_2 = arith.constant 0 : i32
    return %c0_i32, %c0_i32_0, %c0_i32_1 : i32, i32, i32
  }
  func.func @transform_14(%arg0: i32) -> (i32, i32, i32) {
    %c0_i32 = arith.constant 0 : i32
    %c0_i32_0 = arith.constant 0 : i32
    %c0_i32_1 = arith.constant 0 : i32
    %c0_i32_2 = arith.constant 0 : i32
    return %c0_i32, %c0_i32_0, %c0_i32_1 : i32, i32, i32
  }
  func.func @transform_15(%arg0: i32) -> (i32, i32, i32) {
    %c0_i32 = arith.constant 0 : i32
    %c0_i32_0 = arith.constant 0 : i32
    %c0_i32_1 = arith.constant 0 : i32
    %c0_i32_2 = arith.constant 0 : i32
    return %c0_i32, %c0_i32_0, %c0_i32_1 : i32, i32, i32
  }
  func.func @transform_16(%arg0: i32) -> (i32, i32, i32) {
    %c0_i32 = arith.constant 0 : i32
    %c0_i32_0 = arith.constant 0 : i32
    %c0_i32_1 = arith.constant 0 : i32
    %c0_i32_2 = arith.constant 0 : i32
    return %c0_i32, %c0_i32_0, %c0_i32_1 : i32, i32, i32
  }
  func.func @transform_17(%arg0: i32) -> (i32, i32) {
    %c0_i32 = arith.constant 0 : i32
    %c0_i32_0 = arith.constant 0 : i32
    %c0_i32_1 = arith.constant 0 : i32
    return %c0_i32, %c0_i32_0 : i32, i32
  }
  func.func @transform_18(%arg0: i32) -> (i32, i32) {
    %c0_i32 = arith.constant 0 : i32
    %c0_i32_0 = arith.constant 0 : i32
    %c0_i32_1 = arith.constant 0 : i32
    return %c0_i32, %c0_i32_0 : i32, i32
  }
  func.func @transform_19(%arg0: i32) -> (i32, i32) {
    %c0_i32 = arith.constant 0 : i32
    %c0_i32_0 = arith.constant 0 : i32
    %c0_i32_1 = arith.constant 0 : i32
    return %c0_i32, %c0_i32_0 : i32, i32
  }
  func.func @transform_20(%arg0: i32) -> (i32, i32) {
    %c0_i32 = arith.constant 0 : i32
    %c0_i32_0 = arith.constant 0 : i32
    %c0_i32_1 = arith.constant 0 : i32
    return %c0_i32, %c0_i32_0 : i32, i32
  }
  func.func @transform_21(%arg0: i32) -> (i32, i32, i32) {
    %c0_i32 = arith.constant 0 : i32
    %c0_i32_0 = arith.constant 0 : i32
    %c0_i32_1 = arith.constant 0 : i32
    return %arg0, %c0_i32, %c0_i32_0 : i32, i32, i32
  }
  func.func @transform_22(%arg0: i32) -> (i32, i32, i32) {
    %c0_i32 = arith.constant 0 : i32
    %c0_i32_0 = arith.constant 0 : i32
    %c0_i32_1 = arith.constant 0 : i32
    return %arg0, %c0_i32, %c0_i32_0 : i32, i32, i32
  }
}

</mosaic_0001>

<bundles_post_ra>
// kernel: _lambda_.1
= control target key start
LH: loop header
LB: loop body
LE: loop exit
PB: predicated region body
PF: predicated region fallthrough
CT: control target
= control target key end

     0   :  { %s11174_s0 = inlined_call_operand.vmem [shape: f32[2,10,128], index: 0, kind: input, shape index: {}]   ;;  %s11175_s1 = inlined_call_operand.hbm [shape: f32[4,384,128], index: 1, kind: input, shape index: {}]   ;;  %s11176_s2 = inlined_call_operand.hbm [shape: f32[4,1,128], index: 2, kind: input, shape index: {}]   ;;  %s11177_s3 = inlined_call_operand.hbm [shape: f32[4,384,256], index: 3, kind: input, shape index: {}]   ;;  %s11178_s4 = inlined_call_operand.hbm [shape: f32[4,1,128], index: 4, kind: input, shape index: {}]   ;;  %s11179_s5 = inlined_call_operand.hbm [shape: f32[4,1,128], index: 5, kind: input, shape index: {}]   ;;  %s11180_s6 = inlined_call_operand.hbm [shape: f32[4,1,128], index: 6, kind: input, shape index: {}]   ;;  %s11181_s7 = inlined_call_operand.hbm [shape: f32[1024,128], index: 7, kind: input, shape index: {}]   ;;  %s11182_s8 = inlined_call_operand.hbm [shape: f32[1,128], index: 8, kind: input, shape index: {}]   ;;  %s11183_s9 = inlined_call_operand.hbm [shape: f32[1024,128], index: 9, kind: input, shape index: {}]   ;;  %s11184_s10 = inlined_call_operand.hbm [shape: f32[10,128], index: 10, kind: input, shape index: {}]   ;;  %s11185_s11 = inlined_call_operand.hbm [shape: f32[4,384,128], index: 11, kind: input, shape index: {}]   ;;  %s11186_s12 = inlined_call_operand.hbm [shape: f32[4,1,128], index: 12, kind: input, shape index: {}]   ;;  %s11187_s13 = inlined_call_operand.hbm [shape: f32[4,384,128], index: 13, kind: input, shape index: {}]   ;;  %s11188_s14 = inlined_call_operand.hbm [shape: f32[4,1,128], index: 14, kind: input, shape index: {}]   ;;  %s11189_s15 = inlined_call_operand.hbm [shape: f32[4,1,128], index: 15, kind: input, shape index: {}]   ;;  %s11190_s16 = inlined_call_operand.hbm [shape: f32[4,1,128], index: 16, kind: input, shape index: {}]   ;;  %s11191_s17 = inlined_call_operand.hbm [shape: f32[384,128], index: 17, kind: input, shape index: {}]   ;;  %s11192_s18 = inlined_call_operand.hbm [shape: f32[1,128], index: 18, kind: input, shape index: {}]   ;;  %s11193_s19 = inlined_call_operand.vmem [shape: f32[8,1], index: 19, kind: input, shape index: {}]   ;;  %s11194_s20 = inlined_call_operand.hbm [shape: f32[10,1], index: 20, kind: input, shape index: {}]   ;;  %s11195_s21 = inlined_call_operand.vmem [shape: f32[2,10,128], index: 21, kind: output, shape index: {0}]   ;;  %s11196_s22 = inlined_call_operand.hbm [shape: f32[2,1,128], index: 22, kind: output, shape index: {1}]  }
   0x1   :  { %11231 = sst [smem:[#allocation54_spill]] %s11174_s0 }
   0x2   :  { %11232 = sst [smem:[#allocation55_spill]] %s11175_s1 }
   0x3   :  { %11233 = sst [smem:[#allocation56_spill]] %s11176_s2 }
   0x4   :  { %11234 = sst [smem:[#allocation57_spill]] %s11177_s3 }
   0x5   :  { %11235 = sst [smem:[#allocation58_spill]] %s11178_s4 }
   0x6   :  { %11236 = sst [smem:[#allocation59_spill]] %s11179_s5 }
   0x7   :  { %11237 = sst [smem:[#allocation60_spill]] %s11180_s6 }
   0x8   :  { %11238 = sst [smem:[#allocation61_spill]] %s11182_s8 }
   0x9   :  { %11239 = sst [smem:[#allocation62_spill]] %s11184_s10 }
   0xa   :  { %11240 = sst [smem:[#allocation63_spill]] %s11186_s12 }
   0xb   :  { %11241 = sst [smem:[#allocation64_spill]] %s11188_s14 }
   0xc   :  { %11242 = sst [smem:[#allocation65_spill]] %s11193_s19 }
   0xd   :  { %11243 = sst [smem:[#allocation66_spill]] %s11195_s21 }
   0xe   :  { %11244 = sst [smem:[#allocation67_spill]] %s11196_s22 }
   0xf   :  { %28 = vsyncpa [#allocation3], 0 }
  0x10   :  { %29 = vsyncpa [#allocation6], 0 }
  0x11   :  { %30 = vsyncpa [#allocation9], 0 }
  0x12   :  { %31 = vsyncpa [#allocation12], 0 }
  0x13   :  { %32 = vsyncpa [#allocation15], 0 }
  0x14   :  { %33 = vsyncpa [#allocation18], 0 }
  0x15   :  { %34 = vsyncpa [#allocation21], 0 }
  0x16   :  { %35 = vsyncpa [#allocation24], 0 }
  0x17   :  { %36 = vsyncpa [#allocation27], 0 }
  0x18   :  { %37 = vsyncpa [#allocation30], 0 }
  0x19   :  { %38 = vsyncpa [#allocation4], 0 }
  0x1a   :  { %40 = vsyncpa [#allocation4 + $0x1], 0  ;;  %s10183_s3 = smov 0   ;;  %s10185_s28 = smov 0  }
  0x1b   :  { %s10187_s29 = smov 0   ;;  %s10189_s30 = smov 0  }
  0x1c LB: > { %11245 = sst [smem:[#allocation44_spill]] %s10025_s3  ;;  %s10204_s4 = sadd.s32 4294967295, %s10037_s30   ;;  %s10037_s30 = sphi %s10189_s30, %s11316_s30   ;;  %s10033_s29 = sphi %s10187_s29, %s11319_s29   ;;  %s10029_s28 = sphi %s10185_s28, %s11318_s28   ;;  %s10025_s3 = sphi %s10183_s3, %s11317_s3  }
  0x1d   : > { %11246 = sst [smem:[#allocation45_spill]] %s10029_s28  ;;  %s6201_s0 = sadd.s32 4294967294, %s10037_s30  }
  0x1e   : > { %11247 = sst [smem:[#allocation46_spill]] %s10033_s29  ;;  %s10208_s23 = sadd.s32 1, %s10037_s30  }
  0x1f   : > { %11248 = sst [smem:[#allocation47_spill]] %s10037_s30  ;;  %s525_s1 = sadd.s32 1, %s10033_s29 }
  0x20   : > { %11249 = sst [smem:[#allocation48_spill]] %s10204_s4  ;;  %s522_s5 = ssub.s32 %s10037_s30, %s10208_s23 }
  0x21   : > { %11250 = sst [smem:[#allocation49_spill]] %s10208_s23  ;;  %p535_p0 = scmp.ne.s32.totalorder %s10033_s29, %s10029_s28 }
  0x22   : > { %p523_p1 = scmp.eq.s32.totalorder %s522_s5, 0  ;;  %p536_p2 = scmp.eq.s32.totalorder %s10204_s4, 1 }
  0x23   : > { %p541_p3 = scmp.ne.s32.totalorder %s10029_s28, %s10025_s3  ;;  %p542_p4 = scmp.eq.s32.totalorder %s6201_s0, 1 }
  0x24   : > { %s10219_s24 = scalar_select %p523_p1, %s10033_s29, %s525_s1  }
  0x25   : > { %p10221_p5 = por %p536_p2, %p535_p0  ;;  %p10225_p6 = por %p542_p4, %p541_p3 }
  0x26   : > { %11251 = sst [smem:[#allocation50_spill]] %s10219_s24  ;;  %p6202_p7 = scmp.ge.s32.totalorder %s10037_s30, 1 }
  0x27   : > { %s11252_s6 = scalar_select %p10221_p5, 1, 0 }
  0x28   : > { %s11254_s25 = scalar_select %p10225_p6, 1, 0 }
  0x29   : > { %11253 = sst [smem:[#allocation51_spill]] %s11252_s6  ;;  %p549_p8 = scmp.lt.s32.totalorder %s10037_s30, 3 }
  0x2a   : > { %11255 = sst [smem:[#allocation52_spill]] %s11254_s25  ;;  %p11210_p9 = scmp.eq.s32.totalorder %s10204_s4, 0 }
  0x2b   : > { %p10232_p10 = pnand %p6202_p7, %p549_p8  ;;  %s10039_s2 = smov [#allocation5]  }
  0x2c   : > { %s574_s27 = sshll.u32 %s10039_s2, 4  ;;  %s10040_s1 = smov [#allocation8]   ;;  %s10238_s27 = int_to_ptr.vmem [resolvable:$true] %s574_s27 }
  0x2d   : > { %s11256_s26 = scalar_select %p10232_p10, 1, 0 }
  0x2e   : > { %p9228_p11 = pneg %p10232_p10  ;;  %s600_s5 = sshll.u32 %s10040_s1, 4  ;;  %s10246_s5 = int_to_ptr.vmem [resolvable:$true] %s600_s5 }
  0x2f   : > { %11257 = sst [smem:[#allocation53_spill]] %s11256_s26  ;;  %s10041_s24 = smov [#allocation11]  }
  0x30   : > { %p10242_p12 = pnand %p11210_p9, %p9228_p11  ;;  %s10248_s29 = sshll.u32 %s10041_s24, 4  ;;  %s627_s29 = int_to_ptr.vmem [resolvable:$true] %s10248_s29 }
  0x31   : > { %s11259_s2 = sld [smem:[#allocation56_spill]] }
  0x32   : > { %p10258_p0 = pneg %p10242_p12 }
  0x37   : > { %s9403_s3 = scalar_lea.hbm %s11259_s2, 64 }
  0x38   : > { %p9404_p13 = scmp.ne.s32.totalorder %s11259_s2, %s9403_s3  ;;  %p9410_p3 = scmp.lt.u32.totalorder %s9403_s3, %s11259_s2 }
  0x3a   : > { %p9406_p1 = pnand %p10258_p0, %p9404_p13 }
  0x3c   : > { %p9407_p2 = pneg %p9406_p1 }
  0x3e   : > { %p9412_p4 = pnand %p9410_p3, %p9407_p2 }
  0x40   : > { %9415 = shalt.err (!%p9412_p4)
}
  0x41   : > { %s9416_s21 = scalar_lea.vmem %s10238_s27, 64  ;;  %p9424_p9 = scmp.lt.s32.totalorder %s10238_s27, %s10238_s27 }
  0x42   : > { %p9417_p7 = scmp.ne.s32.totalorder %s10238_s27, %s9416_s21  ;;  %p9425_p6 = scmp.lt.s32.totalorder %s9416_s21, %s9416_s21 }
  0x44   : > { %p9419_p8 = pnand %p9417_p7, %p10258_p0  ;;  %p9426_p13 = por %p9425_p6, %p9424_p9 }
  0x46   : > { %p9420_p11 = pneg %p9419_p8 }
  0x48   : > { %p9427_p1 = pnand %p9426_p13, %p9420_p11 }
  0x4a   : > { %9430 = shalt.err (!%p9427_p1)
}
  0x4b   : > { %s11221_s30 = smov 16   ;;  %s11227_s3 = smov 1  }
  0x4c   : > { %9234 = dma.hbm_to_vmem [thread:$0]  (!%p10242_p12), %s11259_s2, 64, %s10238_s27, [#allocation6], %s11221_s30, %s11221_s30, %s11227_s3  }
  0x4d   : > { %s11261_s6 = sld [smem:[#allocation58_spill]] }
  0x53   : > { %s9431_s21 = scalar_lea.hbm %s11261_s6, 64 }
  0x54   : > { %p9432_p6 = scmp.ne.s32.totalorder %s11261_s6, %s9431_s21  ;;  %p9438_p3 = scmp.lt.u32.totalorder %s9431_s21, %s11261_s6 }
  0x56   : > { %p9434_p9 = pnand %p9432_p6, %p10258_p0 }
  0x58   : > { %p9435_p2 = pneg %p9434_p9 }
  0x5a   : > { %p9440_p4 = pnand %p9438_p3, %p9435_p2 }
  0x5c   : > { %9443 = shalt.err (!%p9440_p4)
}
  0x5d   : > { %s9444_s27 = scalar_lea.vmem %s10246_s5, 64  ;;  %p9452_p13 = scmp.lt.s32.totalorder %s10246_s5, %s10246_s5 }
  0x5e   : > { %p9445_p7 = scmp.ne.s32.totalorder %s10246_s5, %s9444_s27  ;;  %p9453_p1 = scmp.lt.s32.totalorder %s9444_s27, %s9444_s27 }
  0x60   : > { %p9447_p8 = pnand %p9445_p7, %p10258_p0  ;;  %p9454_p6 = por %p9453_p1, %p9452_p13 }
  0x62   : > { %p9448_p11 = pneg %p9447_p8 }
  0x64   : > { %p9455_p9 = pnand %p9454_p6, %p9448_p11 }
  0x66   : > { %9458 = shalt.err (!%p9455_p9)
}
  0x67   : > { %9240 = dma.hbm_to_vmem [thread:$0]  (!%p10242_p12), %s11261_s6, 64, %s10246_s5, [#allocation9], %s11221_s30, %s11221_s30, %s11227_s3  }
  0x68   : > { %s11262_s23 = sld [smem:[#allocation60_spill]] }
  0x6e   : > { %s9459_s25 = scalar_lea.hbm %s11262_s23, 64 }
  0x6f   : > { %p9460_p2 = scmp.ne.s32.totalorder %s11262_s23, %s9459_s25  ;;  %p9466_p7 = scmp.lt.u32.totalorder %s9459_s25, %s11262_s23 }
  0x71   : > { %p9462_p3 = pnand %p9460_p2, %p10258_p0 }
  0x73   : > { %p9463_p4 = pneg %p9462_p3 }
  0x75   : > { %p9468_p8 = pnand %p9466_p7, %p9463_p4 }
  0x77   : > { %9471 = shalt.err (!%p9468_p8)
}
  0x78   : > { %s9472_s19 = scalar_lea.vmem %s627_s29, 64  ;;  %p9480_p6 = scmp.lt.s32.totalorder %s627_s29, %s627_s29 }
  0x79   : > { %p9473_p11 = scmp.ne.s32.totalorder %s627_s29, %s9472_s19  ;;  %p9481_p9 = scmp.lt.s32.totalorder %s9472_s19, %s9472_s19 }
  0x7b   : > { %p9475_p13 = pnand %p9473_p11, %p10258_p0  ;;  %p9482_p5 = por %p9481_p9, %p9480_p6 }
  0x7d   : > { %p9476_p1 = pneg %p9475_p13 }
  0x7f   : > { %p9483_p10 = pnand %p9482_p5, %p9476_p1 }
  0x81   : > { %9486 = shalt.err (!%p9483_p10)
}
  0x82   : > { %9246 = dma.hbm_to_vmem [thread:$0]  (!%p10242_p12), %s11262_s23, 64, %s627_s29, [#allocation12], %s11221_s30, %s11221_s30, %s11227_s3  }
  0x83   : > { %s10044_s4 = smov [#allocation14]   ;;  %s11263_s8 = sld [smem:[#allocation61_spill]] }
  0x84   : > { %s653_s26 = sshll.u32 %s10044_s4, 4  ;;  %s654_s26 = int_to_ptr.vmem [resolvable:$true] %s653_s26 }
  0x89   : > { %s9487_s24 = scalar_lea.hbm %s11263_s8, 16 }
  0x8a   : > { %p9488_p5 = scmp.ne.s32.totalorder %s11263_s8, %s9487_s24  ;;  %p9494_p3 = scmp.lt.u32.totalorder %s9487_s24, %s11263_s8 }
  0x8c   : > { %p9490_p10 = pnand %p9488_p5, %p10258_p0 }
  0x8e   : > { %p9491_p2 = pneg %p9490_p10 }
  0x90   : > { %p9496_p4 = pnand %p9494_p3, %p9491_p2 }
  0x92   : > { %9499 = shalt.err (!%p9496_p4)
}
  0x93   : > { %s9500_s29 = scalar_lea.vmem %s654_s26, 16  ;;  %s9507_s5 = scalar_lea.vmem %s654_s26, 32 }
  0x94   : > { %p9501_p7 = scmp.ne.s32.totalorder %s654_s26, %s9500_s29  ;;  %p9508_p13 = scmp.lt.s32.totalorder %s654_s26, %s654_s26 }
  0x95   : > { %p9509_p1 = scmp.lt.s32.totalorder %s9507_s5, %s9500_s29 }
  0x96   : > { %p9503_p8 = pnand %p9501_p7, %p10258_p0 }
  0x97   : > { %p9510_p6 = por %p9509_p1, %p9508_p13 }
  0x98   : > { %p9504_p11 = pneg %p9503_p8 }
  0x9a   : > { %p9511_p9 = pnand %p9510_p6, %p9504_p11 }
  0x9c   : > { %9514 = shalt.err (!%p9511_p9)
}
  0x9d   : > { %9252 = dma.hbm_to_vmem [thread:$0]  (!%p10242_p12), %s11263_s8, 16, %s654_s26, [#allocation15]  }
  0x9e   : > { %s10045_s2 = smov [#allocation17]   ;;  %s10046_s1 = smov [#allocation20]  }
  0x9f   : > { %s676_s25 = sshll.u32 %s10045_s2, 4  ;;  %s702_s24 = sshll.u32 %s10046_s1, 4  ;;  %s677_s25 = int_to_ptr.vmem [resolvable:$true] %s676_s25  ;;  %s10348_s24 = int_to_ptr.vmem [resolvable:$true] %s702_s24 }
  0xa0   : > { %s11264_s10 = sld [smem:[#allocation62_spill]] }
  0xa6   : > { %s9515_s19 = scalar_lea.hbm %s11264_s10, 256 }
  0xa7   : > { %p9516_p5 = scmp.ne.s32.totalorder %s11264_s10, %s9515_s19  ;;  %p9522_p3 = scmp.lt.u32.totalorder %s9515_s19, %s11264_s10 }
  0xa9   : > { %p9518_p10 = pnand %p9516_p5, %p10258_p0 }
  0xab   : > { %p9519_p2 = pneg %p9518_p10 }
  0xad   : > { %p9524_p4 = pnand %p9522_p3, %p9519_p2 }
  0xaf   : > { %9527 = shalt.err (!%p9524_p4)
}
  0xb0   : > { %s9528_s4 = scalar_lea.vmem %s677_s25, 256  ;;  %p9536_p13 = scmp.lt.s32.totalorder %s677_s25, %s677_s25 }
  0xb1   : > { %p9529_p7 = scmp.ne.s32.totalorder %s677_s25, %s9528_s4  ;;  %p9537_p1 = scmp.lt.s32.totalorder %s9528_s4, %s9528_s4 }
  0xb3   : > { %p9531_p8 = pnand %p9529_p7, %p10258_p0  ;;  %p9538_p6 = por %p9537_p1, %p9536_p13 }
  0xb5   : > { %p9532_p11 = pneg %p9531_p8 }
  0xb7   : > { %p9539_p9 = pnand %p9538_p6, %p9532_p11 }
  0xb9   : > { %9542 = shalt.err (!%p9539_p9)
}
  0xba   : > { %s11223_s2 = smov 128   ;;  %s11225_s1 = smov 8  }
  0xbb   : > { %9258 = dma.hbm_to_vmem [thread:$0]  (!%p10242_p12), %s11264_s10, 256, %s677_s25, [#allocation18], %s11223_s2, %s11223_s2, %s11225_s1  }
  0xbc   : > { %s11265_s12 = sld [smem:[#allocation63_spill]] }
  0xc2   : > { %s9543_s5 = scalar_lea.hbm %s11265_s12, 64 }
  0xc3   : > { %p9544_p5 = scmp.ne.s32.totalorder %s11265_s12, %s9543_s5  ;;  %p9550_p3 = scmp.lt.u32.totalorder %s9543_s5, %s11265_s12 }
  0xc5   : > { %p9546_p10 = pnand %p9544_p5, %p10258_p0 }
  0xc7   : > { %p9547_p2 = pneg %p9546_p10 }
  0xc9   : > { %p9552_p4 = pnand %p9550_p3, %p9547_p2 }
  0xcb   : > { %9555 = shalt.err (!%p9552_p4)
}
  0xcc   : > { %s9556_s25 = scalar_lea.vmem %s10348_s24, 64  ;;  %p9564_p13 = scmp.lt.s32.totalorder %s10348_s24, %s10348_s24 }
  0xcd   : > { %p9557_p7 = scmp.ne.s32.totalorder %s10348_s24, %s9556_s25  ;;  %p9565_p1 = scmp.lt.s32.totalorder %s9556_s25, %s9556_s25 }
  0xcf   : > { %p9559_p8 = pnand %p9557_p7, %p10258_p0  ;;  %p9566_p6 = por %p9565_p1, %p9564_p13 }
  0xd1   : > { %p9560_p11 = pneg %p9559_p8 }
  0xd3   : > { %p9567_p9 = pnand %p9566_p6, %p9560_p11 }
  0xd5   : > { %9570 = shalt.err (!%p9567_p9)
}
  0xd6   : > { %s11266_s30 = smov 16   ;;  %s10049_s19 = smov [#allocation23]  }
  0xd7   : > { %9264 = dma.hbm_to_vmem [thread:$0]  (!%p10242_p12), %s11265_s12, 64, %s10348_s24, [#allocation21], %s11266_s30, %s11266_s30, %s11227_s3  }
  0xd8   : > { %s728_s29 = sshll.u32 %s10049_s19, 4  ;;  %s10050_s5 = smov [#allocation26]   ;;  %s729_s29 = int_to_ptr.vmem [resolvable:$true] %s728_s29 }
  0xd9   : > { %s754_s28 = sshll.u32 %s10050_s5, 4  ;;  %s11267_s14 = sld [smem:[#allocation64_spill]]  ;;  %s10397_s28 = int_to_ptr.vmem [resolvable:$true] %s754_s28 }
  0xdf   : > { %s9571_s25 = scalar_lea.hbm %s11267_s14, 64 }
  0xe0   : > { %p9572_p5 = scmp.ne.s32.totalorder %s11267_s14, %s9571_s25  ;;  %p9578_p3 = scmp.lt.u32.totalorder %s9571_s25, %s11267_s14 }
  0xe2   : > { %p9574_p10 = pnand %p9572_p5, %p10258_p0 }
  0xe4   : > { %p9575_p2 = pneg %p9574_p10 }
  0xe6   : > { %p9580_p4 = pnand %p9578_p3, %p9575_p2 }
  0xe8   : > { %9583 = shalt.err (!%p9580_p4)
}
  0xe9   : > { %s9584_s27 = scalar_lea.vmem %s729_s29, 64  ;;  %p9592_p13 = scmp.lt.s32.totalorder %s729_s29, %s729_s29 }
  0xea   : > { %p9585_p7 = scmp.ne.s32.totalorder %s729_s29, %s9584_s27  ;;  %p9593_p1 = scmp.lt.s32.totalorder %s9584_s27, %s9584_s27 }
  0xec   : > { %p9587_p8 = pnand %p9585_p7, %p10258_p0  ;;  %p9594_p6 = por %p9593_p1, %p9592_p13 }
  0xee   : > { %p9588_p11 = pneg %p9587_p8 }
  0xf0   : > { %p9595_p9 = pnand %p9594_p6, %p9588_p11 }
  0xf2   : > { %9598 = shalt.err (!%p9595_p9)
}
  0xf3   : > { %9270 = dma.hbm_to_vmem [thread:$0]  (!%p10242_p12), %s11267_s14, 64, %s729_s29, [#allocation24], %s11266_s30, %s11266_s30, %s11227_s3  }
  0xf4   : > { %s9599_s26 = scalar_lea.hbm %s11190_s16, 64 }
  0xf5   : > { %p9600_p5 = scmp.ne.s32.totalorder %s11190_s16, %s9599_s26  ;;  %p9606_p3 = scmp.lt.u32.totalorder %s9599_s26, %s11190_s16 }
  0xf7   : > { %p9602_p10 = pnand %p9600_p5, %p10258_p0 }
  0xf9   : > { %p9603_p2 = pneg %p9602_p10 }
  0xfb   : > { %p9608_p4 = pnand %p9606_p3, %p9603_p2 }
  0xfd   : > { %9611 = shalt.err (!%p9608_p4)
}
  0xfe   : > { %s9612_s29 = scalar_lea.vmem %s10397_s28, 64  ;;  %p9620_p13 = scmp.lt.s32.totalorder %s10397_s28, %s10397_s28 }
  0xff   : > { %p9613_p7 = scmp.ne.s32.totalorder %s10397_s28, %s9612_s29  ;;  %p9621_p1 = scmp.lt.s32.totalorder %s9612_s29, %s9612_s29 }
 0x101   : > { %p9615_p8 = pnand %p9613_p7, %p10258_p0  ;;  %p9622_p6 = por %p9621_p1, %p9620_p13 }
 0x103   : > { %p9616_p11 = pneg %p9615_p8 }
 0x105   : > { %p9623_p9 = pnand %p9622_p6, %p9616_p11 }
 0x107   : > { %9626 = shalt.err (!%p9623_p9)
}
 0x108   : > { %9276 = dma.hbm_to_vmem [thread:$0]  (!%p10242_p12), %s11190_s16, 64, %s10397_s28, [#allocation27], %s11266_s30, %s11266_s30, %s11227_s3  }
 0x109   : > { %s10051_s1 = smov [#allocation29]   ;;  %s10052_s5 = smov [#allocation2]  }
 0x10a   : > { %s781_s19 = sshll.u32 %s10051_s1, 4  ;;  %s561_s26 = sshll.u32 %s10052_s5, 4  ;;  %s782_s19 = int_to_ptr.vmem [resolvable:$true] %s781_s19  ;;  %s10446_s26 = int_to_ptr.vmem [resolvable:$true] %s561_s26 }
 0x10b   : > { %s9627_s21 = scalar_lea.hbm %s11192_s18, 16 }
 0x10c   : > { %p9628_p5 = scmp.ne.s32.totalorder %s11192_s18, %s9627_s21  ;;  %p9634_p3 = scmp.lt.u32.totalorder %s9627_s21, %s11192_s18 }
 0x10e   : > { %p9630_p10 = pnand %p9628_p5, %p10258_p0 }
 0x110   : > { %p9631_p2 = pneg %p9630_p10 }
 0x112   : > { %p9636_p4 = pnand %p9634_p3, %p9631_p2 }
 0x114   : > { %9639 = shalt.err (!%p9636_p4)
}
 0x115   : > { %s9640_s2 = scalar_lea.vmem %s782_s19, 16  ;;  %s9647_s1 = scalar_lea.vmem %s782_s19, 32 }
 0x116   : > { %p9641_p7 = scmp.ne.s32.totalorder %s782_s19, %s9640_s2  ;;  %p9648_p13 = scmp.lt.s32.totalorder %s782_s19, %s782_s19 }
 0x117   : > { %p9649_p1 = scmp.lt.s32.totalorder %s9647_s1, %s9640_s2 }
 0x118   : > { %p9643_p8 = pnand %p9641_p7, %p10258_p0 }
 0x119   : > { %p9650_p6 = por %p9649_p1, %p9648_p13 }
 0x11a   : > { %p9644_p11 = pneg %p9643_p8 }
 0x11c   : > { %p9651_p9 = pnand %p9650_p6, %p9644_p11 }
 0x11e   : > { %9654 = shalt.err (!%p9651_p9)
}
 0x11f   : > { %9282 = dma.hbm_to_vmem [thread:$0]  (!%p10242_p12), %s11192_s18, 16, %s782_s19, [#allocation30]  }
 0x120   : > { %s11268_s24 = sld [smem:[#allocation55_spill]] }
 0x126   : > { %s9655_s29 = scalar_lea.hbm %s11268_s24, 24576 }
 0x127   : > { %p9656_p5 = scmp.ne.s32.totalorder %s11268_s24, %s9655_s29  ;;  %p9662_p3 = scmp.lt.u32.totalorder %s9655_s29, %s11268_s24 }
 0x129   : > { %p9658_p10 = pnand %p9656_p5, %p10258_p0 }
 0x12b   : > { %p9659_p2 = pneg %p9658_p10 }
 0x12d   : > { %p9664_p4 = pnand %p9662_p3, %p9659_p2 }
 0x12f   : > { %9667 = shalt.err (!%p9664_p4)
}
 0x130   : > { %s9668_s19 = scalar_lea.vmem %s10446_s26, 24576  ;;  %p9676_p13 = scmp.lt.s32.totalorder %s10446_s26, %s10446_s26 }
 0x131   : > { %p9669_p7 = scmp.ne.s32.totalorder %s10446_s26, %s9668_s19  ;;  %p9677_p1 = scmp.lt.s32.totalorder %s9668_s19, %s9668_s19 }
 0x133   : > { %p9671_p8 = pnand %p9669_p7, %p10258_p0  ;;  %p9678_p6 = por %p9677_p1, %p9676_p13 }
 0x135   : > { %p9672_p11 = pneg %p9671_p8 }
 0x137   : > { %p9679_p9 = pnand %p9678_p6, %p9672_p11 }
 0x139   : > { %9682 = shalt.err (!%p9679_p9)
}
 0x13a   : > { %s11269_s5 = smov 8   ;;  %s11270_s4 = smov 128  }
 0x13b   : > { %9231 = dma.hbm_to_vmem [thread:$0]  (!%p10242_p12), %s11268_s24, 24576, %s10446_s26, [#allocation3], %s11270_s4, %s11270_s4, %s11269_s5  }
 0x13c   : > { %s10053_s29 = smov [#allocation7]   ;;  %s10054_s28 = smov [#allocation10]  }
 0x13d   : > { %s587_s27 = sshll.u32 %s10053_s29, 4  ;;  %s613_s2 = sshll.u32 %s10054_s28, 4  ;;  %s588_s27 = int_to_ptr.vmem [resolvable:$true] %s587_s27  ;;  %s614_s2 = int_to_ptr.vmem [resolvable:$true] %s613_s2 }
 0x13e   : > { %s11271_s3 = sld [smem:[#allocation57_spill]] }
 0x144   : > { %s11272_s6 = smov %s11271_s3  ;;  %s9683_s8 = scalar_lea.hbm %s11271_s3, 49152 }
 0x145   : > { %p9684_p5 = scmp.ne.s32.totalorder %s11272_s6, %s9683_s8  ;;  %p9690_p3 = scmp.lt.u32.totalorder %s9683_s8, %s11272_s6 }
 0x147   : > { %p9686_p10 = pnand %p9684_p5, %p10258_p0 }
 0x149   : > { %p9687_p2 = pneg %p9686_p10 }
 0x14b   : > { %p9692_p4 = pnand %p9690_p3, %p9687_p2 }
 0x14d   : > { %9695 = shalt.err (!%p9692_p4)
}
 0x14e   : > { %s9696_s26 = scalar_lea.vmem %s588_s27, 49152  ;;  %p9704_p13 = scmp.lt.s32.totalorder %s588_s27, %s588_s27 }
 0x14f   : > { %p9697_p7 = scmp.ne.s32.totalorder %s588_s27, %s9696_s26  ;;  %p9705_p1 = scmp.lt.s32.totalorder %s9696_s26, %s9696_s26 }
 0x151   : > { %p9699_p8 = pnand %p9697_p7, %p10258_p0  ;;  %p9706_p6 = por %p9705_p1, %p9704_p13 }
 0x153   : > { %p9700_p11 = pneg %p9699_p8 }
 0x155   : > { %p9707_p9 = pnand %p9706_p6, %p9700_p11 }
 0x157   : > { %9710 = shalt.err (!%p9707_p9)
}
 0x158   : > { %s10055_s10 = smov 256   ;;  %s11273_s21 = sld [smem:[#allocation59_spill]] }
 0x159   : > { %9237 = dma.hbm_to_vmem [thread:$0]  (!%p10242_p12), %s11272_s6, 49152, %s588_s27, [#allocation6], %s10055_s10, %s10055_s10, %s11266_s30  }
 0x15e   : > { %s9711_s29 = scalar_lea.hbm %s11273_s21, 64 }
 0x15f   : > { %p9712_p5 = scmp.ne.s32.totalorder %s11273_s21, %s9711_s29  ;;  %p9718_p3 = scmp.lt.u32.totalorder %s9711_s29, %s11273_s21 }
 0x161   : > { %p9714_p10 = pnand %p9712_p5, %p10258_p0 }
 0x163   : > { %p9715_p2 = pneg %p9714_p10 }
 0x165   : > { %p9720_p4 = pnand %p9718_p3, %p9715_p2 }
 0x167   : > { %9723 = shalt.err (!%p9720_p4)
}
 0x168   : > { %s9724_s26 = scalar_lea.vmem %s614_s2, 64  ;;  %p9732_p13 = scmp.lt.s32.totalorder %s614_s2, %s614_s2 }
 0x169   : > { %p9725_p7 = scmp.ne.s32.totalorder %s614_s2, %s9724_s26  ;;  %p9733_p1 = scmp.lt.s32.totalorder %s9724_s26, %s9724_s26 }
 0x16b   : > { %p9727_p8 = pnand %p9725_p7, %p10258_p0  ;;  %p9734_p6 = por %p9733_p1, %p9732_p13 }
 0x16d   : > { %p9728_p11 = pneg %p9727_p8 }
 0x16f   : > { %p9735_p9 = pnand %p9734_p6, %p9728_p11 }
 0x171   : > { %9738 = shalt.err (!%p9735_p9)
}
 0x172   : > { %s11274_s27 = smov 1   ;;  %s10056_s14 = smov [#allocation13]  }
 0x173   : > { %9243 = dma.hbm_to_vmem [thread:$0]  (!%p10242_p12), %s11273_s21, 64, %s614_s2, [#allocation9], %s11266_s30, %s11266_s30, %s11274_s27  }
 0x174   : > { %s639_s8 = sshll.u32 %s10056_s14, 4  ;;  %s10057_s3 = smov [#allocation16]   ;;  %s640_s8 = int_to_ptr.vmem [resolvable:$true] %s639_s8 }
 0x175   : > { %s663_s29 = sshll.u32 %s10057_s3, 4  ;;  %s9739_s19 = scalar_lea.hbm %s11181_s7, 16384  ;;  %s664_s29 = int_to_ptr.vmem [resolvable:$true] %s663_s29 }
 0x176   : > { %p9740_p5 = scmp.ne.s32.totalorder %s11181_s7, %s9739_s19  ;;  %p9746_p3 = scmp.lt.u32.totalorder %s9739_s19, %s11181_s7 }
 0x178   : > { %p9742_p10 = pnand %p9740_p5, %p10258_p0 }
 0x17a   : > { %p9743_p2 = pneg %p9742_p10 }
 0x17c   : > { %p9748_p4 = pnand %p9746_p3, %p9743_p2 }
 0x17e   : > { %9751 = shalt.err (!%p9748_p4)
}
 0x17f   : > { %s9752_s2 = scalar_lea.vmem %s640_s8, 16384  ;;  %p9760_p13 = scmp.lt.s32.totalorder %s640_s8, %s640_s8 }
 0x180   : > { %p9753_p7 = scmp.ne.s32.totalorder %s640_s8, %s9752_s2  ;;  %p9761_p1 = scmp.lt.s32.totalorder %s9752_s2, %s9752_s2 }
 0x182   : > { %p9755_p8 = pnand %p9753_p7, %p10258_p0  ;;  %p9762_p6 = por %p9761_p1, %p9760_p13 }
 0x184   : > { %p9756_p11 = pneg %p9755_p8 }
 0x186   : > { %p9763_p9 = pnand %p9762_p6, %p9756_p11 }
 0x188   : > { %9766 = shalt.err (!%p9763_p9)
}
 0x189   : > { %9249 = dma.hbm_to_vmem [thread:$0]  (!%p10242_p12), %s11181_s7, 16384, %s640_s8, [#allocation12], %s11270_s4, %s11270_s4, %s11269_s5  }
 0x18a   : > { %s9767_s28 = scalar_lea.hbm %s11183_s9, 16384 }
 0x18b   : > { %p9768_p5 = scmp.ne.s32.totalorder %s11183_s9, %s9767_s28  ;;  %p9774_p3 = scmp.lt.u32.totalorder %s9767_s28, %s11183_s9 }
 0x18d   : > { %p9770_p10 = pnand %p9768_p5, %p10258_p0 }
 0x18f   : > { %p9771_p2 = pneg %p9770_p10 }
 0x191   : > { %p9776_p4 = pnand %p9774_p3, %p9771_p2 }
 0x193   : > { %9779 = shalt.err (!%p9776_p4)
}
 0x194   : > { %s9780_s10 = scalar_lea.vmem %s664_s29, 16384  ;;  %p9788_p13 = scmp.lt.s32.totalorder %s664_s29, %s664_s29 }
 0x195   : > { %p9781_p7 = scmp.ne.s32.totalorder %s664_s29, %s9780_s10  ;;  %p9789_p1 = scmp.lt.s32.totalorder %s9780_s10, %s9780_s10 }
 0x197   : > { %p9783_p8 = pnand %p9781_p7, %p10258_p0  ;;  %p9790_p6 = por %p9789_p1, %p9788_p13 }
 0x199   : > { %p9784_p11 = pneg %p9783_p8 }
 0x19b   : > { %p9791_p9 = pnand %p9790_p6, %p9784_p11 }
 0x19d   : > { %9794 = shalt.err (!%p9791_p9)
}
 0x19e   : > { %9255 = dma.hbm_to_vmem [thread:$0]  (!%p10242_p12), %s11183_s9, 16384, %s664_s29, [#allocation15], %s11270_s4, %s11270_s4, %s11269_s5  }
 0x19f   : > { %s10058_s6 = smov [#allocation19]   ;;  %s10059_s14 = smov [#allocation22]  }
 0x1a0   : > { %s689_s12 = sshll.u32 %s10058_s6, 4  ;;  %s715_s3 = sshll.u32 %s10059_s14, 4  ;;  %s690_s12 = int_to_ptr.vmem [resolvable:$true] %s689_s12  ;;  %s716_s3 = int_to_ptr.vmem [resolvable:$true] %s715_s3 }
 0x1a1   : > { %s9795_s19 = scalar_lea.hbm %s11185_s11, 24576 }
 0x1a2   : > { %p9796_p5 = scmp.ne.s32.totalorder %s11185_s11, %s9795_s19  ;;  %p9802_p3 = scmp.lt.u32.totalorder %s9795_s19, %s11185_s11 }
 0x1a4   : > { %p9798_p10 = pnand %p9796_p5, %p10258_p0 }
 0x1a6   : > { %p9799_p2 = pneg %p9798_p10 }
 0x1a8   : > { %p9804_p4 = pnand %p9802_p3, %p9799_p2 }
 0x1aa   : > { %9807 = shalt.err (!%p9804_p4)
}
 0x1ab   : > { %s9808_s29 = scalar_lea.vmem %s690_s12, 24576  ;;  %p9816_p13 = scmp.lt.s32.totalorder %s690_s12, %s690_s12 }
 0x1ac   : > { %p9809_p7 = scmp.ne.s32.totalorder %s690_s12, %s9808_s29  ;;  %p9817_p1 = scmp.lt.s32.totalorder %s9808_s29, %s9808_s29 }
 0x1ae   : > { %p9811_p8 = pnand %p9809_p7, %p10258_p0  ;;  %p9818_p6 = por %p9817_p1, %p9816_p13 }
 0x1b0   : > { %p9812_p11 = pneg %p9811_p8 }
 0x1b2   : > { %p9819_p9 = pnand %p9818_p6, %p9812_p11 }
 0x1b4   : > { %9822 = shalt.err (!%p9819_p9)
}
 0x1b5   : > { %9261 = dma.hbm_to_vmem [thread:$0]  (!%p10242_p12), %s11185_s11, 24576, %s690_s12, [#allocation18], %s11270_s4, %s11270_s4, %s11269_s5  }
 0x1b6   : > { %s9823_s1 = scalar_lea.hbm %s11187_s13, 24576 }
 0x1b7   : > { %p9824_p5 = scmp.ne.s32.totalorder %s11187_s13, %s9823_s1  ;;  %p9830_p3 = scmp.lt.u32.totalorder %s9823_s1, %s11187_s13 }
 0x1b9   : > { %p9826_p10 = pnand %p9824_p5, %p10258_p0 }
 0x1bb   : > { %p9827_p2 = pneg %p9826_p10 }
 0x1bd   : > { %p9832_p4 = pnand %p9830_p3, %p9827_p2 }
 0x1bf   : > { %9835 = shalt.err (!%p9832_p4)
}
 0x1c0   : > { %s9836_s8 = scalar_lea.vmem %s716_s3, 24576  ;;  %p9844_p13 = scmp.lt.s32.totalorder %s716_s3, %s716_s3 }
 0x1c1   : > { %p9837_p7 = scmp.ne.s32.totalorder %s716_s3, %s9836_s8  ;;  %p9845_p1 = scmp.lt.s32.totalorder %s9836_s8, %s9836_s8 }
 0x1c3   : > { %p9839_p8 = pnand %p9837_p7, %p10258_p0  ;;  %p9846_p6 = por %p9845_p1, %p9844_p13 }
 0x1c5   : > { %p9840_p11 = pneg %p9839_p8 }
 0x1c7   : > { %p9847_p9 = pnand %p9846_p6, %p9840_p11 }
 0x1c9   : > { %9850 = shalt.err (!%p9847_p9)
}
 0x1ca   : > { %9267 = dma.hbm_to_vmem [thread:$0]  (!%p10242_p12), %s11187_s13, 24576, %s716_s3, [#allocation21], %s11270_s4, %s11270_s4, %s11269_s5  }
 0x1cb   : > { %s10060_s2 = smov [#allocation25]   ;;  %s10061_s14 = smov [#allocation28]  }
 0x1cc   : > { %s741_s6 = sshll.u32 %s10060_s2, 4  ;;  %s767_s28 = sshll.u32 %s10061_s14, 4  ;;  %s742_s6 = int_to_ptr.vmem [resolvable:$true] %s741_s6  ;;  %s768_s28 = int_to_ptr.vmem [resolvable:$true] %s767_s28 }
 0x1cd   : > { %s9851_s25 = scalar_lea.hbm %s11189_s15, 64 }
 0x1ce   : > { %p9852_p5 = scmp.ne.s32.totalorder %s11189_s15, %s9851_s25  ;;  %p9858_p3 = scmp.lt.u32.totalorder %s9851_s25, %s11189_s15 }
 0x1d0   : > { %p9854_p10 = pnand %p9852_p5, %p10258_p0 }
 0x1d2   : > { %p9855_p2 = pneg %p9854_p10 }
 0x1d4   : > { %p9860_p4 = pnand %p9858_p3, %p9855_p2 }
 0x1d6   : > { %9863 = shalt.err (!%p9860_p4)
}
 0x1d7   : > { %s9864_s3 = scalar_lea.vmem %s742_s6, 64  ;;  %p9872_p13 = scmp.lt.s32.totalorder %s742_s6, %s742_s6 }
 0x1d8   : > { %p9865_p7 = scmp.ne.s32.totalorder %s742_s6, %s9864_s3  ;;  %p9873_p1 = scmp.lt.s32.totalorder %s9864_s3, %s9864_s3 }
 0x1da   : > { %p9867_p8 = pnand %p9865_p7, %p10258_p0  ;;  %p9874_p6 = por %p9873_p1, %p9872_p13 }
 0x1dc   : > { %p9868_p11 = pneg %p9867_p8 }
 0x1de   : > { %p9875_p9 = pnand %p9874_p6, %p9868_p11 }
 0x1e0   : > { %9878 = shalt.err (!%p9875_p9)
}
 0x1e1   : > { %9273 = dma.hbm_to_vmem [thread:$0]  (!%p10242_p12), %s11189_s15, 64, %s742_s6, [#allocation24], %s11266_s30, %s11266_s30, %s11274_s27  }
 0x1e2   : > { %s9879_s19 = scalar_lea.hbm %s11191_s17, 6144 }
 0x1e3   : > { %p9880_p5 = scmp.ne.s32.totalorder %s11191_s17, %s9879_s19  ;;  %p9886_p3 = scmp.lt.u32.totalorder %s9879_s19, %s11191_s17 }
 0x1e5   : > { %p9882_p10 = pnand %p9880_p5, %p10258_p0 }
 0x1e7   : > { %p9883_p2 = pneg %p9882_p10 }
 0x1e9   : > { %p9888_p4 = pnand %p9886_p3, %p9883_p2 }
 0x1eb   : > { %9891 = shalt.err (!%p9888_p4)
}
 0x1ec   : > { %s9892_s12 = scalar_lea.vmem %s768_s28, 6144  ;;  %p9900_p13 = scmp.lt.s32.totalorder %s768_s28, %s768_s28 }
 0x1ed   : > { %p9893_p7 = scmp.ne.s32.totalorder %s768_s28, %s9892_s12  ;;  %p9901_p1 = scmp.lt.s32.totalorder %s9892_s12, %s9892_s12 }
 0x1ef   : > { %p9895_p8 = pnand %p9893_p7, %p10258_p0  ;;  %p9902_p6 = por %p9901_p1, %p9900_p13 }
 0x1f1   : > { %p9896_p11 = pneg %p9895_p8 }
 0x1f3   : > { %p9903_p9 = pnand %p9902_p6, %p9896_p11 }
 0x1f5   : > { %9906 = shalt.err (!%p9903_p9)
}
 0x1f6   : > { %9279 = dma.hbm_to_vmem [thread:$0]  (!%p10242_p12), %s11191_s17, 6144, %s768_s28, [#allocation27], %s11270_s4, %s11270_s4, %s11269_s5  }
 0x1f7   : > { %s10062_s6 = smov [#allocation31]   ;;  %s9907_s14 = scalar_lea.hbm %s11194_s20, 256 }
 0x1f8   : > { %s794_s3 = sshll.u32 %s10062_s6, 4  ;;  %p9908_p5 = scmp.ne.s32.totalorder %s11194_s20, %s9907_s14  ;;  %s795_s3 = int_to_ptr.vmem [resolvable:$true] %s794_s3 }
 0x1f9   : > { %p9914_p3 = scmp.lt.u32.totalorder %s9907_s14, %s11194_s20 }
 0x1fa   : > { %p9910_p10 = pnand %p9908_p5, %p10258_p0 }
 0x1fc   : > { %p9911_p2 = pneg %p9910_p10 }
 0x1fe   : > { %p9916_p4 = pnand %p9914_p3, %p9911_p2 }
 0x200   : > { %9919 = shalt.err (!%p9916_p4)
}
 0x201   : > { %s9920_s28 = scalar_lea.vmem %s795_s3, 256  ;;  %p9928_p13 = scmp.lt.s32.totalorder %s795_s3, %s795_s3 }
 0x202   : > { %p9921_p7 = scmp.ne.s32.totalorder %s795_s3, %s9920_s28  ;;  %p9929_p1 = scmp.lt.s32.totalorder %s9920_s28, %s9920_s28 }
 0x204   : > { %p9923_p8 = pnand %p9921_p7, %p10258_p0  ;;  %p9930_p6 = por %p9929_p1, %p9928_p13 }
 0x206   : > { %p9924_p11 = pneg %p9923_p8 }
 0x208   : > { %p9931_p9 = pnand %p9930_p6, %p9924_p11 }
 0x20a   : > { %9934 = shalt.err (!%p9931_p9)
}
 0x20b   : > { %9285 = dma.hbm_to_vmem [thread:$0]  (!%p10242_p12), %s11194_s20, 256, %s795_s3, [#allocation30], %s11270_s4, %s11270_s4, %s11269_s5  }
 0x20c   : > { %s11275_s12 = sld [smem:[#allocation53_spill]] }
 0x212   : > { %p11276_p5 = scmp.ne.s32.totalorder %s11275_s12, 0 }
 0x213   : > { %s11277_s22 = sld [smem:[#allocation48_spill]] (!%p11276_p5) }
 0x214   : > { %818 = sbr.rel (%p11276_p5) target bundleno = 5343 (0x14df), region = 104 }
 0x219   : > { %p11278_p0 = scmp.eq.s32.totalorder (!%p11276_p5), %s11277_s22, 0 }
 0x21b   : > { %9980 = dma.done.wait (%p11278_p0), [#allocation3], 24576   ;;  %p11279_p10 = pmov %p11278_p0 }
 0x21c   : > { %p11280_p2 = pmov %p11278_p0 }
 0x21d   : > { %9982 = vsyncadd (%p11279_p10), [#allocation3], 4294942720 }
 0x21e   : > { %9984 = dma.done.wait (%p11280_p2), [#allocation6], 49216   ;;  %p11281_p3 = pmov %p11278_p0 }
 0x21f   : > { %p11282_p4 = pmov %p11278_p0 }
 0x220   : > { %9986 = vsyncadd (%p11281_p3), [#allocation6], 4294918080 }
 0x221   : > { %9988 = dma.done.wait (%p11282_p4), [#allocation9], 128   ;;  %p11283_p12 = pmov %p11278_p0 }
 0x222   : > { %p11284_p7 = pmov %p11278_p0 }
 0x223   : > { %9990 = vsyncadd (%p11283_p12), [#allocation9], 4294967168 }
 0x224   : > { %9992 = dma.done.wait (%p11284_p7), [#allocation12], 16448   ;;  %p11285_p8 = pmov %p11278_p0 }
 0x225   : > { %p11286_p11 = pmov %p11278_p0 }
 0x226   : > { %9994 = vsyncadd (%p11285_p8), [#allocation12], 4294950848 }
 0x227   : > { %9996 = dma.done.wait (%p11286_p11), [#allocation15], 16400   ;;  %p11287_p13 = pmov %p11278_p0 }
 0x228   : > { %p11288_p1 = pmov %p11278_p0 }
 0x229   : > { %9998 = vsyncadd (%p11287_p13), [#allocation15], 4294950896 }
 0x22a   : > { %10000 = dma.done.wait (%p11288_p1), [#allocation18], 24832   ;;  %p11289_p6 = pmov %p11278_p0 }
 0x22b   : > { %p11290_p9 = pmov %p11278_p0 }
 0x22c   : > { %10002 = vsyncadd (%p11289_p6), [#allocation18], 4294942464 }
 0x22d   : > { %10004 = dma.done.wait (%p11290_p9), [#allocation21], 24640   ;;  %p11291_p5 = pmov %p11278_p0 }
 0x22f   : > { %10006 = vsyncadd (%p11291_p5), [#allocation21], 4294942656 }
 0x230   : > { %10008 = dma.done.wait (%p11278_p0), [#allocation24], 128   ;;  %p11292_p10 = pmov %p11278_p0 }
 0x231   : > { %p11293_p2 = pmov %p11278_p0 }
 0x232   : > { %10010 = vsyncadd (%p11292_p10), [#allocation24], 4294967168 }
 0x233   : > { %10012 = dma.done.wait (%p11293_p2), [#allocation27], 6208   ;;  %p11294_p3 = pmov %p11278_p0 }
 0x234   : > { %p11295_p4 = pmov %p11278_p0 }
 0x235   : > { %10014 = vsyncadd (%p11294_p3), [#allocation27], 4294961088 }
 0x236   : > { %10016 = dma.done.wait (%p11295_p4), [#allocation30], 272   ;;  %p11296_p12 = pmov %p11278_p0 }
 0x237   : > { %v10063_v0 = vmov 0.0|0.0   ;;  %vm10064_vm0 = vmmov 0   ;;  %v10065_v1 = vmov 0.0   ;;  %v10066_v2 = vmov 0   ;;  %v987_v3 = vld [vmem:[#allocation2 + $0x80] sm:$0xff]  ;;  %v988_v4 = vld [vmem:[#allocation2 + $0x88] sm:$0xff] }
 0x238   : > { %10018 = vsyncadd (%p11296_p12), [#allocation30], 4294967024  ;;  %7806 = vmatprep.subr.bf16.mxu1 %v10063_v0  ;;  %7351 = vmatprep.mubr.msk.f32.mxu1 %vm10064_vm0, %v10065_v1  ;;  %v971_v5 = vld [vmem:[#allocation2] sm:$0xff]  ;;  %v7774_v6 = vpack.c.bf16 %v988_v4, %v987_v3  ;;  %v972_v7 = vld [vmem:[#allocation2 + $0x8] sm:$0xff]  ;;  %p956_p7 = scmp.lt.s32.totalorder %s11277_s22, 1  ;;  %s11297_s27 = sld [smem:[#allocation54_spill]] }
 0x239   : > { %9389 = vset.pattern.permute.xlu0 %v10066_v2  ;;  %9390 = vset.pattern.permute.xlu1 %v10066_v2  ;;  %v989_v8 = vld [vmem:[#allocation2 + $0x90] sm:$0xff]  ;;  %v990_v9 = vld [vmem:[#allocation2 + $0x98] sm:$0xff]  ;;  %v7776_v10 = vpack.c.bf16 %v972_v7, %v971_v5  ;;  %v1003_v14 = vld [vmem:[#allocation2 + $0x100] sm:$0xff]  ;;  %vm1021_vm1 = vcmask 1046528   ;;  %s11298_s2 = sld [smem:[#allocation65_spill]]  ;;  %vm1026_vm2 = vcmask 1045504  }
 0x23a   : > { %v7778_v11 = vpack.c.bf16 %v990_v9, %v989_v8  ;;  %v973_v12 = vld [vmem:[#allocation2 + $0x10] sm:$0xff]  ;;  %v974_v13 = vld [vmem:[#allocation2 + $0x18] sm:$0xff]  ;;  %7775 = vmatprep.subr.bf16.mxu0 %v7774_v6  ;;  %v1004_v15 = vld [vmem:[#allocation2 + $0x108] sm:$0xff]  ;;  %s10728_s0 = scalar_select %p956_p7, %s11277_s22, 1  ;;  %vm1188_vm3 = vcmask 1040384   ;;  %vm2989_vm5 = vcmask 1042432  }
 0x23b   : > { %v991_v16 = vld [vmem:[#allocation2 + $0xa0] sm:$0xff]  ;;  %v992_v17 = vld [vmem:[#allocation2 + $0xa8] sm:$0xff]  ;;  %7777 = vmatpush3.bf16.msra.mxu0 %v7776_v10  ;;  %v7780_v18 = vpack.c.bf16 %v974_v13, %v973_v12  ;;  %v7807_v19 = vpack.c.bf16 %v1004_v15, %v1003_v14  ;;  %v1005_v20 = vld [vmem:[#allocation2 + $0x110] sm:$0xff]  ;;  %vm2983_vm6 = vcmask 1043456   ;;  %vm2995_vm7 = vcmask 1041408   ;;  %s11301_s14 = sld [smem:[#allocation45_spill]] }
 0x23c   : > { %7779 = vmatprep.subr.bf16.mxu0 %v7778_v11  ;;  %v7782_v21 = vpack.c.bf16 %v992_v17, %v991_v16  ;;  %v975_v22 = vld [vmem:[#allocation2 + $0x20] sm:$0xff]  ;;  %v976_v23 = vld [vmem:[#allocation2 + $0x28] sm:$0xff]  ;;  %v1006_v24 = vld [vmem:[#allocation2 + $0x118] sm:$0xff]  ;;  %s6337_s5 = sshll.u32 %s10728_s0, 4  ;;  %vm2977_vm8 = vcmask 1044480   ;;  %s11308_s25 = sld [smem:[#allocation51_spill]] }
 0x23d   : > { %7808 = vmatpush3.bf16.msra.mxu1 %v7807_v19  ;;  %v7810_v25 = vpack.c.bf16 %v1006_v24, %v1005_v20  ;;  %v993_v26 = vld [vmem:[#allocation2 + $0xb0] sm:$0xff]  ;;  %v994_v27 = vld [vmem:[#allocation2 + $0xb8] sm:$0xff]  ;;  %v1007_v28 = vld [vmem:[#allocation2 + $0x120] sm:$0xff]  ;;  %v7784_v30 = vpack.c.bf16 %v976_v23, %v975_v22  ;;  %s6334_s26 = sshll.u32 %s11277_s22, 4  ;;  %s11309_s8 = sld [smem:[#allocation67_spill]] }
 0x23e   : > { %7809 = vmatprep.subr.bf16.mxu1 %v10063_v0  ;;  %v1008_v29 = vld [vmem:[#allocation2 + $0x128] sm:$0xff]  ;;  %v7786_v31 = vpack.c.bf16 %v994_v27, %v993_v26  ;;  %v977_v32 = vld [vmem:[#allocation2 + $0x30] sm:$0xff]  ;;  %v978_v33 = vld [vmem:[#allocation2 + $0x38] sm:$0xff]  ;;  %s960_s6 = scalar_lea.vmem %s11297_s27, %s6337_s5 }
 0x23f   : > { %7781 = vmatpush3.bf16.msra.mxu0 %v7780_v18  ;;  %v7813_v34 = vpack.c.bf16 %v1008_v29, %v1007_v28  ;;  %v995_v35 = vld [vmem:[#allocation2 + $0xc0] sm:$0xff]  ;;  %v996_v36 = vld [vmem:[#allocation2 + $0xc8] sm:$0xff]  ;;  %v1009_v37 = vld [vmem:[#allocation2 + $0x130] sm:$0xff]  ;;  %v7788_v39 = vpack.c.bf16 %v978_v33, %v977_v32 }
 0x240   : > { %7783 = vmatprep.subr.bf16.mxu0 %v7782_v21  ;;  %v1010_v38 = vld [vmem:[#allocation2 + $0x138] sm:$0xff]  ;;  %v7790_v40 = vpack.c.bf16 %v996_v36, %v995_v35  ;;  %v979_v41 = vld [vmem:[#allocation2 + $0x40] sm:$0xff]  ;;  %v980_v42 = vld [vmem:[#allocation2 + $0x48] sm:$0xff] }
 0x241   : > { %7811 = vmatpush3.bf16.msra.mxu1 %v7810_v25  ;;  %v7816_v43 = vpack.c.bf16 %v1010_v38, %v1009_v37  ;;  %v997_v44 = vld [vmem:[#allocation2 + $0xd0] sm:$0xff]  ;;  %v998_v45 = vld [vmem:[#allocation2 + $0xd8] sm:$0xff]  ;;  %v1011_v46 = vld [vmem:[#allocation2 + $0x140] sm:$0xff]  ;;  %v7792_v50 = vpack.c.bf16 %v980_v42, %v979_v41  ;;  %s954_s1 = sand.u32 1, %s11301_s14  }
 0x242   : > { %7812 = vmatprep.subr.bf16.mxu1 %v10063_v0  ;;  %v1012_v47 = vld [vmem:[#allocation2 + $0x148] sm:$0xff]  ;;  %v10739_v48 = vld [vmem:[%s960_s6] sm:$0xff]  ;;  %v7794_v54 = vpack.c.bf16 %v998_v45, %v997_v44  ;;  %v981_v55 = vld [vmem:[#allocation2 + $0x50] sm:$0xff]  ;;  %s10930_s19 = scalar_lea.vmem [#allocation32], %s954_s1  ;;  %s5923_s30 = scalar_lea.sflag [#allocation4], %s954_s1 }
 0x243   : > { %7785 = vmatpush3.bf16.msra.mxu0 %v7784_v30  ;;  %v10741_v49 = vld [vmem:[%s960_s6 + $0x8] sm:$0x3]  ;;  %v1022_v51 = vrot.slane %v10739_v48, 1  ;;  %v966_v53 = vld [vmem:[%s11298_s2] sm:$0xff]  ;;  %v982_v56 = vld [vmem:[#allocation2 + $0x58] sm:$0xff]  ;;  %v7819_v57 = vpack.c.bf16 %v1012_v47, %v1011_v46  ;;  %v1027_v25 = vrot.slane %v10739_v48, 2  ;;  %s11128_s12 = scalar_lea.hbm %s11309_s8, %s6334_s26 }
 0x244   : > { %7787 = vmatprep.subr.bf16.mxu0 %v7786_v31  ;;  %v1023_v52 = vrot.slane %v10741_v49, 1  ;;  %1181 = vperm.xlu0 %9389, %v966_v53   ;;  %v999_v58 = vld [vmem:[#allocation2 + $0xe0] sm:$0xff]  ;;  %v1000_v59 = vld [vmem:[#allocation2 + $0xe8] sm:$0xff]  ;;  %v967_v61 = vld [vmem:[#allocation31] sm:$0xff]  ;;  %v7796_v2 = vpack.c.bf16 %v982_v56, %v981_v55  ;;  %v1028_v26 = vrot.slane %v10741_v49, 2  ;;  %s5938_s4 = sshll.u32 %s10930_s19, 4  ;;  %s5939_s4 = int_to_ptr.vmem [resolvable:$true] %s5938_s4 }
 0x245   : > { %7814 = vmatpush3.bf16.msra.mxu1 %v7813_v34  ;;  %v1013_v62 = vld [vmem:[#allocation2 + $0x150] sm:$0xff]  ;;  %v1014_v63 = vld [vmem:[#allocation2 + $0x158] sm:$0xff]  ;;  %v7798_v3 = vpack.c.bf16 %v1000_v59, %v999_v58  ;;  %v983_v4 = vld [vmem:[#allocation2 + $0x60] sm:$0xff]  ;;  %s9935_s27 = scalar_lea.vmem %s5939_s4, 16  ;;  %p11310_p11 = scmp.ne.s32.totalorder %s11308_s25, 0 }
 0x246   : > { %7815 = vmatprep.subr.bf16.mxu1 %v10063_v0  ;;  %v1024_v60 = vsel %vm1021_vm1, %v1022_v51, %v1023_v52  ;;  %v984_v5 = vld [vmem:[#allocation2 + $0x68] sm:$0xff]  ;;  %v7822_v6 = vpack.c.bf16 %v1014_v63, %v1013_v62  ;;  %v1001_v7 = vld [vmem:[#allocation2 + $0xf0] sm:$0xff]  ;;  %v1002_v8 = vld [vmem:[#allocation2 + $0xf8] sm:$0xff]  ;;  %v1029_v33 = vsel %vm1026_vm2, %v1027_v25, %v1028_v26  ;;  %p9936_p8 = scmp.ne.s32.totalorder %s5939_s4, %s9935_s27  ;;  %s10067_s6 = smov [#allocation32]  }
 0x247   : > { %7789 = vmatpush3.bf16.msra.mxu0 %v7788_v39  ;;  %1102 = vmatprep.mubr.f32.mxu0 %v1024_v60  ;;  %v1015_v9 = vld [vmem:[#allocation2 + $0x160] sm:$0xff]  ;;  %v1016_v10 = vld [vmem:[#allocation2 + $0x168] sm:$0xff]  ;;  %v7800_v11 = vpack.c.bf16 %v984_v5, %v983_v4  ;;  %v7802_v12 = vpack.c.bf16 %v1002_v8, %v1001_v7  ;;  %v985_v13 = vld [vmem:[#allocation2 + $0x70] sm:$0xff]  ;;  %s9939_s3 = sshll.u32 %s10067_s6, 4  ;;  %s9940_s3 = int_to_ptr.vmem [resolvable:$false] %s9939_s3 }
 0x248   : > { %7791 = vmatprep.subr.bf16.mxu0 %v7790_v40  ;;  %3454 = vperm.xlu0 %9389, %v967_v61   ;;  %v986_v14 = vld [vmem:[#allocation2 + $0x78] sm:$0xff]  ;;  %v7825_v15 = vpack.c.bf16 %v1016_v10, %v1015_v9  ;;  %v1192_v16 = vld [vmem:[#allocation7 + $0x8] sm:$0xff]  ;;  %v1191_v22 = vld [vmem:[#allocation7] sm:$0xff]  ;;  %p9937_p13 = pnand %p9936_p8, %p11310_p11  ;;  %s9941_s29 = scalar_lea.vmem %s9940_s3, 32 }
 0x249   : > { %7817 = vmatpush3.bf16.msra.mxu1 %v7816_v43  ;;  %v1194_v17 = vld [vmem:[#allocation7 + $0x18] sm:$0xff]  ;;  %v1017_v18 = vld [vmem:[#allocation2 + $0x170] sm:$0xff]  ;;  %v7804_v20 = vpack.c.bf16 %v986_v14, %v985_v13  ;;  %v1195_v31 = vld [vmem:[#allocation7 + $0x20] sm:$0xff]  ;;  %p9942_p6 = scmp.lt.s32.totalorder %s5939_s4, %s9940_s3  ;;  %p9943_p9 = scmp.lt.s32.totalorder %s9941_s29, %s9935_s27 }
 0x24a   : > { %7818 = vmatprep.subr.bf16.mxu1 %v10063_v0  ;;  %v1018_v19 = vld [vmem:[#allocation2 + $0x178] sm:$0xff]  ;;  %v7830_v21 = vpack.c.bf16 %v1194_v17, %v1192_v16  ;;  %v1196_v27 = vld [vmem:[#allocation7 + $0x28] sm:$0xff]  ;;  %v1199_v38 = vld [vmem:[#allocation7 + $0x40] sm:$0xff]  ;;  %p9938_p1 = pneg %p9937_p13 }
 0x24b   : > { %7793 = vmatpush3.bf16.msra.mxu0 %v7792_v50  ;;  %v1193_v23 = vld [vmem:[#allocation7 + $0x10] sm:$0xff]  ;;  %v7828_v24 = vpack.c.bf16 %v1018_v19, %v1017_v18  ;;  %v1198_v28 = vld [vmem:[#allocation7 + $0x38] sm:$0xff]  ;;  %v1200_v34 = vld [vmem:[#allocation7 + $0x48] sm:$0xff]  ;;  %p9944_p5 = por %p9943_p9, %p9942_p6 }
 0x24c   : > { %7795 = vmatprep.subr.bf16.mxu0 %v7794_v54  ;;  %v7832_v29 = vpack.c.bf16 %v1193_v23, %v1191_v22  ;;  %v7834_v30 = vpack.c.bf16 %v1198_v28, %v1196_v27  ;;  %v1197_v32 = vld [vmem:[#allocation7 + $0x30] sm:$0xff]  ;;  %v1202_v35 = vld [vmem:[#allocation7 + $0x58] sm:$0xff]  ;;  %v1204_v40 = vld [vmem:[#allocation7 + $0x68] sm:$0xff] }
 0x24d   : > { %7820 = vmatpush3.bf16.msra.mxu1 %v7819_v57  ;;  %v7836_v36 = vpack.c.bf16 %v1197_v32, %v1195_v31  ;;  %v7838_v37 = vpack.c.bf16 %v1202_v35, %v1200_v34  ;;  %v1201_v39 = vld [vmem:[#allocation7 + $0x50] sm:$0xff]  ;;  %v1206_v41 = vld [vmem:[#allocation7 + $0x78] sm:$0xff]  ;;  %v1203_v44 = vld [vmem:[#allocation7 + $0x60] sm:$0xff]  ;;  %p9945_p0 = pnand %p9944_p5, %p9938_p1 }
 0x24e   : > { %7821 = vmatprep.subr.bf16.mxu1 %v10063_v0  ;;  %v7840_v42 = vpack.c.bf16 %v1201_v39, %v1199_v38  ;;  %v7842_v43 = vpack.c.bf16 %v1206_v41, %v1204_v40  ;;  %v1205_v45 = vld [vmem:[#allocation7 + $0x70] sm:$0xff]  ;;  %v1208_v46 = vld [vmem:[#allocation7 + $0x88] sm:$0xff]  ;;  %v1210_v47 = vld [vmem:[#allocation7 + $0x98] sm:$0xff] }
 0x24f   : > { %7797 = vmatpush3.bf16.msra.mxu0 %v7796_v2  ;;  %v7844_v49 = vpack.c.bf16 %v1205_v45, %v1203_v44  ;;  %v1207_v50 = vld [vmem:[#allocation7 + $0x80] sm:$0xff]  ;;  %v1209_v51 = vld [vmem:[#allocation7 + $0x90] sm:$0xff]  ;;  %v1212_v52 = vld [vmem:[#allocation7 + $0xa8] sm:$0xff] }
 0x250   : > { %7799 = vmatprep.subr.bf16.mxu0 %v7798_v3  ;;  %v1214_v53 = vld [vmem:[#allocation7 + $0xb8] sm:$0xff]  ;;  %v7848_v54 = vpack.c.bf16 %v1209_v51, %v1207_v50  ;;  %v1211_v56 = vld [vmem:[#allocation7 + $0xa0] sm:$0xff]  ;;  %v1213_v57 = vld [vmem:[#allocation7 + $0xb0] sm:$0xff] }
 0x251   : > { %7823 = vmatpush3.bf16.msra.mxu1 %v7822_v6  ;;  %v7850_v55 = vpack.c.bf16 %v1214_v53, %v1212_v52  ;;  %v1216_v58 = vld [vmem:[#allocation7 + $0xc8] sm:$0xff]  ;;  %v1218_v59 = vld [vmem:[#allocation7 + $0xd8] sm:$0xff]  ;;  %v7852_v60 = vpack.c.bf16 %v1213_v57, %v1211_v56  ;;  %v1215_v62 = vld [vmem:[#allocation7 + $0xc0] sm:$0xff] }
 0x252   : > { %7824 = vmatprep.subr.bf16.mxu1 %v10063_v0  ;;  %v7854_v61 = vpack.c.bf16 %v1218_v59, %v1216_v58  ;;  %v1217_v63 = vld [vmem:[#allocation7 + $0xd0] sm:$0xff]  ;;  %v1220_v2 = vld [vmem:[#allocation7 + $0xe8] sm:$0xff]  ;;  %v1222_v3 = vld [vmem:[#allocation7 + $0xf8] sm:$0xff] }
 0x253   : > { %7801 = vmatpush3.bf16.msra.mxu0 %v7800_v11  ;;  %v7856_v4 = vpack.c.bf16 %v1217_v63, %v1215_v62  ;;  %v7858_v5 = vpack.c.bf16 %v1222_v3, %v1220_v2  ;;  %v1219_v6 = vld [vmem:[#allocation7 + $0xe0] sm:$0xff]  ;;  %v1221_v7 = vld [vmem:[#allocation7 + $0xf0] sm:$0xff]  ;;  %v1224_v8 = vld [vmem:[#allocation7 + $0x108] sm:$0xff] }
 0x254   : > { %7803 = vmatprep.subr.bf16.mxu0 %v7802_v12  ;;  %v1226_v9 = vld [vmem:[#allocation7 + $0x118] sm:$0xff]  ;;  %v7860_v10 = vpack.c.bf16 %v1221_v7, %v1219_v6  ;;  %v1223_v12 = vld [vmem:[#allocation7 + $0x100] sm:$0xff]  ;;  %v1225_v13 = vld [vmem:[#allocation7 + $0x110] sm:$0xff] }
 0x255   : > { %7826 = vmatpush3.bf16.msra.mxu1 %v7825_v15  ;;  %v7862_v11 = vpack.c.bf16 %v1226_v9, %v1224_v8  ;;  %v1228_v14 = vld [vmem:[#allocation7 + $0x128] sm:$0xff]  ;;  %v1230_v15 = vld [vmem:[#allocation7 + $0x138] sm:$0xff]  ;;  %v7864_v16 = vpack.c.bf16 %v1225_v13, %v1223_v12  ;;  %v1227_v18 = vld [vmem:[#allocation7 + $0x120] sm:$0xff] }
 0x256   : > { %7827 = vmatprep.subr.bf16.mxu1 %v10063_v0  ;;  %v7866_v17 = vpack.c.bf16 %v1230_v15, %v1228_v14  ;;  %v1229_v19 = vld [vmem:[#allocation7 + $0x130] sm:$0xff]  ;;  %v1236_v26 = vld [vmem:[#allocation7 + $0x168] sm:$0xff]  ;;  %v1238_v27 = vld [vmem:[#allocation7 + $0x178] sm:$0xff] }
 0x257   : > { %7805 = vmatpush3.bf16.msra.mxu0 %v7804_v20  ;;  %v1232_v20 = vld [vmem:[#allocation7 + $0x148] sm:$0xff]  ;;  %v7868_v22 = vpack.c.bf16 %v1229_v19, %v1227_v18  ;;  %v1233_v25 = vld [vmem:[#allocation7 + $0x150] sm:$0xff]  ;;  %v1242_v34 = vld [vmem:[#allocation7 + $0x198] sm:$0xff] }
 0x258   : > { %7831 = vmatprep.subr.bf16.mxu0 %v7830_v21  ;;  %v1234_v21 = vld [vmem:[#allocation7 + $0x158] sm:$0xff]  ;;  %v1237_v31 = vld [vmem:[#allocation7 + $0x170] sm:$0xff]  ;;  %v1244_v39 = vld [vmem:[#allocation7 + $0x1a8] sm:$0xff] }
 0x259   : > { %7829 = vmatpush3.bf16.msra.mxu1 %v7828_v24  ;;  %v7870_v23 = vpack.c.bf16 %v1234_v21, %v1232_v20  ;;  %v1231_v24 = vld [vmem:[#allocation7 + $0x140] sm:$0xff]  ;;  %v1246_v40 = vld [vmem:[#allocation7 + $0x1b8] sm:$0xff]  ;;  %v1248_v45 = vld [vmem:[#allocation7 + $0x1c8] sm:$0xff] }
 0x25a   : > { %1103 = vmatmul.mubr.f32.vlgmr.msra.gmra.mrb[0].mxu0 %v10739_v48  ;;  %v7846_v48 = vpack.c.bf16 %v1210_v47, %v1208_v46  ;;  %v7872_v28 = vpack.c.bf16 %v1233_v25, %v1231_v24  ;;  %v7882_v41 = vpack.c.bf16 %v1246_v40, %v1244_v39  ;;  %v1250_v46 = vld [vmem:[#allocation7 + $0x1d8] sm:$0xff]  ;;  %v1252_v50 = vld [vmem:[#allocation7 + $0x1e8] sm:$0xff]  ;;  %v1251_v53 = vld [vmem:[#allocation7 + $0x1e0] sm:$0xff] }
 0x25b   : > { %7833 = vmatpush1.bf16.msra.mxu0 %v7832_v29  ;;  %v7874_v29 = vpack.c.bf16 %v1238_v27, %v1236_v26  ;;  %v7886_v47 = vpack.c.bf16 %v1250_v46, %v1248_v45  ;;  %v1254_v52 = vld [vmem:[#allocation7 + $0x1f8] sm:$0xff]  ;;  %v1256_v57 = vld [vmem:[#allocation7 + $0x208] sm:$0xff]  ;;  %vm10769_vm4 = vmneg %vm1188_vm3 }
 0x25c   : > { %7352 = vmatmul.mubr.f32.vlgmr.msra.gmra.mrb[0].mxu1 %v1029_v33  ;;  %7835 = vmatprep.subr.bf16.mxu0 %v7834_v30  ;;  %v1235_v30 = vld [vmem:[#allocation7 + $0x160] sm:$0xff]  ;;  %v1240_v33 = vld [vmem:[#allocation7 + $0x188] sm:$0xff]  ;;  %v1258_v58 = vld [vmem:[#allocation7 + $0x218] sm:$0xff] }
 0x25d   : > { %v7876_v32 = vpack.c.bf16 %v1237_v31, %v1235_v30  ;;  %v7878_v35 = vpack.c.bf16 %v1242_v34, %v1240_v33  ;;  %v7894_v59 = vpack.c.bf16 %v1258_v58, %v1256_v57  ;;  %v1472_v62 = vld [vmem:[#allocation2 + $0x180] sm:$0xff]  ;;  %v1473_v2 = vld [vmem:[#allocation2 + $0x188] sm:$0xff]  ;;  %v1490_v3 = vld [vmem:[#allocation2 + $0x210] sm:$0xff] }
 0x25e   : > { %v1474_v7 = vld [vmem:[#allocation2 + $0x190] sm:$0xff]  ;;  %v1475_v8 = vld [vmem:[#allocation2 + $0x198] sm:$0xff]  ;;  %v1492_v9 = vld [vmem:[#allocation2 + $0x220] sm:$0xff] }
 0x25f   : > { %7837 = vmatpush1.bf16.msra.mxu0 %v7836_v36  ;;  %v1239_v36 = vld [vmem:[#allocation7 + $0x180] sm:$0xff]  ;;  %v6247_v18 = vld [vmem:[#allocation5] ss:$0 sm:$0xff]  ;;  %vm10934_vm9 = vmneg %vm2989_vm5 }
 0x260   : > { %7839 = vmatprep.subr.bf16.mxu0 %v7838_v37  ;;  %v1241_v37 = vld [vmem:[#allocation7 + $0x190] sm:$0xff]  ;;  %v1476_v13 = vld [vmem:[#allocation2 + $0x1a0] sm:$0xff]  ;;  %v1477_v14 = vld [vmem:[#allocation2 + $0x1a8] sm:$0xff] }
 0x261   : > { %v7880_v38 = vpack.c.bf16 %v1241_v37, %v1239_v36  ;;  %v7936_v15 = vpack.c.bf16 %v1477_v14, %v1476_v13  ;;  %v1262_v33 = vld [vmem:[#allocation7 + $0x238] sm:$0xff]  ;;  %v1259_v40 = vld [vmem:[#allocation7 + $0x220] sm:$0xff]  ;;  %vm6291_vm10 = vmneg %vm2995_vm7 }
 0x262   : > { %v1263_v46 = vld [vmem:[#allocation7 + $0x240] sm:$0xff]  ;;  %vm10947_vm11 = vmneg %vm1021_vm1 }
 0x263   : > { %7841 = vmatpush1.bf16.msra.mxu0 %v7840_v42  ;;  %v1243_v42 = vld [vmem:[#allocation7 + $0x1a0] sm:$0xff]  ;;  %vm10955_vm12 = vmneg %vm2977_vm8 }
 0x264   : > { %7843 = vmatprep.subr.bf16.mxu0 %v7842_v43  ;;  %v1245_v43 = vld [vmem:[#allocation7 + $0x1b0] sm:$0xff]  ;;  %v1271_v58 = vld [vmem:[#allocation7 + $0x280] sm:$0xff]  ;;  %vm6295_vm13 = vmneg %vm2983_vm6 }
 0x265   : > { %v7884_v44 = vpack.c.bf16 %v1245_v43, %v1243_v42  ;;  %v1264_v42 = vld [vmem:[#allocation7 + $0x248] sm:$0xff]  ;;  %v1266_v43 = vld [vmem:[#allocation7 + $0x258] sm:$0xff]  ;;  %v1283_v14 = vld [vmem:[#allocation7 + $0x2e0] sm:$0xff] }
 0x266   : > { %v7902_v45 = vpack.c.bf16 %v1266_v43, %v1264_v42  ;;  %v1484_v43 = vld [vmem:[#allocation2 + $0x1e0] sm:$0xff]  ;;  %vm6299_vm14 = vmneg %vm1026_vm2 }
 0x267   : > { %7845 = vmatpush1.bf16.msra.mxu0 %v7844_v49  ;;  %v1247_v49 = vld [vmem:[#allocation7 + $0x1c0] sm:$0xff] }
 0x268   : > { %7847 = vmatprep.subr.bf16.mxu0 %v7846_v48  ;;  %v1249_v48 = vld [vmem:[#allocation7 + $0x1d0] sm:$0xff] }
 0x269   : > { %v7888_v51 = vpack.c.bf16 %v1249_v48, %v1247_v49  ;;  %v1268_v49 = vld [vmem:[#allocation7 + $0x268] sm:$0xff]  ;;  %v1270_v48 = vld [vmem:[#allocation7 + $0x278] sm:$0xff] }
 0x26b   : > { %7849 = vmatpush1.bf16.msra.mxu0 %v7848_v54  ;;  %v1253_v54 = vld [vmem:[#allocation7 + $0x1f0] sm:$0xff] }
 0x26c   : > { %7851 = vmatprep.subr.bf16.mxu0 %v7850_v55  ;;  %v7890_v55 = vpack.c.bf16 %v1254_v52, %v1252_v50  ;;  %v7892_v56 = vpack.c.bf16 %v1253_v54, %v1251_v53  ;;  %v1267_v52 = vld [vmem:[#allocation7 + $0x260] sm:$0xff]  ;;  %v1269_v53 = vld [vmem:[#allocation7 + $0x270] sm:$0xff]  ;;  %v1272_v54 = vld [vmem:[#allocation7 + $0x288] sm:$0xff] }
 0x26f   : > { %7853 = vmatpush1.bf16.msra.mxu0 %v7852_v60  ;;  %v1488_v60 = vld [vmem:[#allocation2 + $0x200] sm:$0xff] }
 0x270   : > { %7855 = vmatprep.subr.bf16.mxu0 %v7854_v61  ;;  %v1489_v61 = vld [vmem:[#allocation2 + $0x208] sm:$0xff] }
 0x271   : > { %v7926_v63 = vpack.c.bf16 %v1489_v61, %v1488_v60  ;;  %v1276_v60 = vld [vmem:[#allocation7 + $0x2a8] sm:$0xff]  ;;  %v1278_v61 = vld [vmem:[#allocation7 + $0x2b8] sm:$0xff] }
 0x273   : > { %7857 = vmatpush1.bf16.msra.mxu0 %v7856_v4  ;;  %v1491_v4 = vld [vmem:[#allocation2 + $0x218] sm:$0xff]  ;;  %7927 = vmatprep.subr.bf16.mxu1 %v7926_v63  ;;  %v7914_v63 = vpack.c.bf16 %v1278_v61, %v1276_v60 }
 0x274   : > { %7859 = vmatprep.subr.bf16.mxu0 %v7858_v5  ;;  %v7928_v5 = vpack.c.bf16 %v1473_v2, %v1472_v62  ;;  %v7930_v6 = vpack.c.bf16 %v1491_v4, %v1490_v3  ;;  %v1275_v2 = vld [vmem:[#allocation7 + $0x2a0] sm:$0xff]  ;;  %v1277_v3 = vld [vmem:[#allocation7 + $0x2b0] sm:$0xff]  ;;  %v1280_v4 = vld [vmem:[#allocation7 + $0x2c8] sm:$0xff] }
 0x276   : > { %7929 = vmatpush3.bf16.msra.mxu1 %v7928_v5  ;;  %v1282_v5 = vld [vmem:[#allocation7 + $0x2d8] sm:$0xff] }
 0x277   : > { %7861 = vmatpush1.bf16.msra.mxu0 %v7860_v10  ;;  %v1493_v10 = vld [vmem:[#allocation2 + $0x228] sm:$0xff]  ;;  %7931 = vmatprep.subr.bf16.mxu1 %v7930_v6  ;;  %v7916_v6 = vpack.c.bf16 %v1277_v3, %v1275_v2  ;;  %v1504_v2 = vld [vmem:[#allocation2 + $0x280] sm:$0xff] }
 0x278   : > { %7863 = vmatprep.subr.bf16.mxu0 %v7862_v11  ;;  %v7932_v11 = vpack.c.bf16 %v1475_v8, %v1474_v7  ;;  %v7934_v12 = vpack.c.bf16 %v1493_v10, %v1492_v9  ;;  %v7918_v7 = vpack.c.bf16 %v1282_v5, %v1280_v4  ;;  %v1279_v8 = vld [vmem:[#allocation7 + $0x2c0] sm:$0xff]  ;;  %v1281_v9 = vld [vmem:[#allocation7 + $0x2d0] sm:$0xff]  ;;  %v1284_v10 = vld [vmem:[#allocation7 + $0x2e8] sm:$0xff] }
 0x279   : > { %v1505_v3 = vld [vmem:[#allocation2 + $0x288] sm:$0xff] }
 0x27a   : > { %7933 = vmatpush3.bf16.msra.mxu1 %v7932_v11  ;;  %v1286_v11 = vld [vmem:[#allocation7 + $0x2f8] sm:$0xff] }
 0x27b   : > { %7865 = vmatpush1.bf16.msra.mxu0 %v7864_v16  ;;  %7935 = vmatprep.subr.bf16.mxu1 %v7934_v12  ;;  %v7920_v12 = vpack.c.bf16 %v1281_v9, %v1279_v8  ;;  %v7922_v13 = vpack.c.bf16 %v1286_v11, %v1284_v10  ;;  %v7959_v8 = vpack.c.bf16 %v1505_v3, %v1504_v2  ;;  %v1506_v10 = vld [vmem:[#allocation2 + $0x290] sm:$0xff]  ;;  %v1507_v11 = vld [vmem:[#allocation2 + $0x298] sm:$0xff] }
 0x27c   : > { %7867 = vmatprep.subr.bf16.mxu0 %v7866_v17  ;;  %v1704_v2 = vld [vmem:[#allocation7 + $0x390] sm:$0xff] }
 0x27e   : > { %7937 = vmatpush3.bf16.msra.mxu1 %v7936_v15  ;;  %v1285_v15 = vld [vmem:[#allocation7 + $0x2f0] sm:$0xff] }
 0x27f   : > { %7869 = vmatpush1.bf16.msra.mxu0 %v7868_v22 }
 0x280   : > { %7871 = vmatprep.subr.bf16.mxu0 %v7870_v23 }
 0x283   : > { %7873 = vmatpush1.bf16.msra.mxu0 %v7872_v28  ;;  %v1255_v28 = vld [vmem:[#allocation7 + $0x200] sm:$0xff] }
 0x284   : > { %7875 = vmatprep.subr.bf16.mxu0 %v7874_v29  ;;  %v1257_v29 = vld [vmem:[#allocation7 + $0x210] sm:$0xff] }
 0x285   : > { %v7896_v37 = vpack.c.bf16 %v1257_v29, %v1255_v28  ;;  %v1497_v28 = vld [vmem:[#allocation2 + $0x248] sm:$0xff] }
 0x287   : > { %7877 = vmatpush1.bf16.msra.mxu0 %v7876_v32  ;;  %v1260_v32 = vld [vmem:[#allocation7 + $0x228] sm:$0xff] }
 0x288   : > { %7879 = vmatprep.subr.bf16.mxu0 %v7878_v35  ;;  %v7898_v39 = vpack.c.bf16 %v1262_v33, %v1260_v32  ;;  %v1480_v32 = vld [vmem:[#allocation2 + $0x1c0] sm:$0xff]  ;;  %v1481_v33 = vld [vmem:[#allocation2 + $0x1c8] sm:$0xff] }
 0x28b   : > { %7881 = vmatpush1.bf16.msra.mxu0 %v7880_v38 }
 0x28c   : > { %7883 = vmatprep.subr.bf16.mxu0 %v7882_v41  ;;  %v1261_v41 = vld [vmem:[#allocation7 + $0x230] sm:$0xff] }
 0x28f   : > { %7885 = vmatpush1.bf16.msra.mxu0 %v7884_v44  ;;  %v7900_v44 = vpack.c.bf16 %v1261_v41, %v1259_v40  ;;  %v1500_v40 = vld [vmem:[#allocation2 + $0x260] sm:$0xff]  ;;  %v1501_v41 = vld [vmem:[#allocation2 + $0x268] sm:$0xff] }
 0x290   : > { %7887 = vmatprep.subr.bf16.mxu0 %v7886_v47  ;;  %v1265_v47 = vld [vmem:[#allocation7 + $0x250] sm:$0xff]  ;;  %v7950_v42 = vpack.c.bf16 %v1501_v41, %v1500_v40  ;;  %v1691_v40 = vld [vmem:[#allocation7 + $0x328] sm:$0xff]  ;;  %v1693_v41 = vld [vmem:[#allocation7 + $0x338] sm:$0xff] }
 0x291   : > { %v7904_v50 = vpack.c.bf16 %v1265_v47, %v1263_v46  ;;  %v1502_v46 = vld [vmem:[#allocation2 + $0x270] sm:$0xff]  ;;  %v1503_v47 = vld [vmem:[#allocation2 + $0x278] sm:$0xff] }
 0x293   : > { %7889 = vmatpush1.bf16.msra.mxu0 %v7888_v51  ;;  %v7906_v51 = vpack.c.bf16 %v1270_v48, %v1268_v49  ;;  %v7954_v49 = vpack.c.bf16 %v1503_v47, %v1502_v46  ;;  %v1486_v48 = vld [vmem:[#allocation2 + $0x1f0] sm:$0xff] }
 0x294   : > { %7891 = vmatprep.subr.bf16.mxu0 %v7890_v55  ;;  %v1274_v55 = vld [vmem:[#allocation7 + $0x298] sm:$0xff]  ;;  %v1695_v47 = vld [vmem:[#allocation7 + $0x348] sm:$0xff] }
 0x295   : > { %v7910_v57 = vpack.c.bf16 %v1274_v55, %v1272_v54  ;;  %v6250_v54 = vld [vmem:[#allocation8] ss:$0 sm:$0xff] }
 0x297   : > { %7893 = vmatpush1.bf16.msra.mxu0 %v7892_v56  ;;  %v7908_v56 = vpack.c.bf16 %v1269_v53, %v1267_v52 }
 0x298   : > { %7895 = vmatprep.subr.bf16.mxu0 %v7894_v59  ;;  %v1273_v59 = vld [vmem:[#allocation7 + $0x290] sm:$0xff] }
 0x299   : > { %v7912_v62 = vpack.c.bf16 %v1273_v59, %v1271_v58  ;;  %v6252_v59 = vld [vmem:[#allocation11] ss:$0 sm:$0xff] }
 0x2c3   : > { %v10757_v25 = vpop.permute.xlu0 %1181 }
 0x32d   : > { %v6371_v16 = vpop.f32.mrb[0].mxu0 }
 0x32e   : > { %v6372_v17 = vpop.f32.mrb[1].mxu0 }
 0x32f   : > { %v6373_v19 = vadd.f32 %v6372_v17, %v6371_v16  ;;  %v1174_v20 = vpop.f32.mrb[0].mxu1  ;;  %v7924_v16 = vpack.c.bf16 %v1285_v15, %v1283_v14  ;;  %v1509_v14 = vld [vmem:[#allocation2 + $0x2a8] sm:$0xff] }
 0x330   : > { %v7353_v21 = vpop.f32.mrb[1].mxu1 }
 0x331   : > { %v1105_v22 = vadd.f32 %v6373_v19, %v6247_v18  ;;  %v1495_v21 = vld [vmem:[#allocation2 + $0x238] sm:$0xff] }
 0x333   : > { %v1175_v23 = vadd.f32 %v1174_v20, %v1105_v22  ;;  %v1494_v20 = vld [vmem:[#allocation2 + $0x230] sm:$0xff] }
 0x334   : > { %v7938_v22 = vpack.c.bf16 %v1495_v21, %v1494_v20  ;;  %v1513_v20 = vld [vmem:[#allocation2 + $0x2c8] sm:$0xff] }
 0x335   : > { %v1178_v24 = vmax.f32 %v1175_v23, 0.0  ;;  %v1478_v23 = vld [vmem:[#allocation2 + $0x1b0] sm:$0xff] }
 0x336   : > { %7939 = vmatprep.subr.bf16.mxu1 %v7938_v22  ;;  %v1514_v22 = vld [vmem:[#allocation2 + $0x2d0] sm:$0xff] }
 0x337   : > { %v1184_v26 = vmul.f32 %v10757_v25, %v1178_v24  ;;  %v1479_v24 = vld [vmem:[#allocation2 + $0x1b8] sm:$0xff] }
 0x339   : > { %v1186_v27 = vrot.slane %v1184_v26, 7  ;;  %v7940_v26 = vpack.c.bf16 %v1479_v24, %v1478_v23  ;;  %v1515_v23 = vld [vmem:[#allocation2 + $0x2d8] sm:$0xff] }
 0x33a   : > { %v7974_v24 = vpack.c.bf16 %v1515_v23, %v1514_v22  ;;  %v1721_v22 = vld [vmem:[#allocation7 + $0x418] sm:$0xff] }
 0x33b   : > { %v10761_v30 = vsel %vm1188_vm3, 0.0, %v1186_v27  ;;  %v10764_v31 = vsel %vm1188_vm3, %v1186_v27, 0.0  ;;  %7941 = vmatpush3.bf16.msra.mxu1 %v7940_v26  ;;  %v1516_v26 = vld [vmem:[#allocation2 + $0x2e0] sm:$0xff] }
 0x33c   : > { %v1289_v34 = vrot.slane %v10761_v30, 1  ;;  %v1290_v35 = vrot.slane %v10764_v31, 1  ;;  %v1293_v17 = vrot.slane %v10761_v30, 2  ;;  %v1294_v18 = vrot.slane %v10764_v31, 2  ;;  %v1498_v31 = vld [vmem:[#allocation2 + $0x250] sm:$0xff] }
 0x33d   : > { %v7944_v30 = vpack.c.bf16 %v1481_v33, %v1480_v32  ;;  %v1519_v32 = vld [vmem:[#allocation2 + $0x2f8] sm:$0xff]  ;;  %v1687_v33 = vld [vmem:[#allocation7 + $0x308] sm:$0xff] }
 0x33e   : > { %v1291_v38 = vsel %vm1021_vm1, %v1289_v34, %v1290_v35  ;;  %v1295_v19 = vsel %vm1026_vm2, %v1293_v17, %v1294_v18  ;;  %v1499_v34 = vld [vmem:[#allocation2 + $0x258] sm:$0xff] }
 0x33f   : > { %1361 = vmatprep.mubr.f32.mxu0 %v1291_v38  ;;  %v7946_v35 = vpack.c.bf16 %v1499_v34, %v1498_v31  ;;  %v1483_v38 = vld [vmem:[#allocation2 + $0x1d8] sm:$0xff] }
 0x340   : > { %6249 = vmatmul.mubr.msk.f32.vlgmr.msra.gmra.mrb[2].mxu0 %vm10769_vm4, %v1186_v27  ;;  %v1496_v27 = vld [vmem:[#allocation2 + $0x240] sm:$0xff]  ;;  %v1511_v17 = vld [vmem:[#allocation2 + $0x2b8] sm:$0xff] }
 0x341   : > { %7897 = vmatpush1.bf16.msra.mxu0 %v7896_v37  ;;  %1432 = vmatprep.mubr.f32.mxu0 %v10065_v1  ;;  %v7942_v29 = vpack.c.bf16 %v1497_v28, %v1496_v27  ;;  %v1482_v37 = vld [vmem:[#allocation2 + $0x1d0] sm:$0xff]  ;;  %v1517_v27 = vld [vmem:[#allocation2 + $0x2e8] sm:$0xff] }
 0x342   : > { %7899 = vmatprep.subr.bf16.mxu0 %v7898_v39  ;;  %v7948_v39 = vpack.c.bf16 %v1483_v38, %v1482_v37  ;;  %v7977_v28 = vpack.c.bf16 %v1517_v27, %v1516_v26  ;;  %v1688_v37 = vld [vmem:[#allocation7 + $0x310] sm:$0xff]  ;;  %v1718_v26 = vld [vmem:[#allocation7 + $0x400] sm:$0xff] }
 0x343   : > { %7943 = vmatprep.subr.bf16.mxu1 %v7942_v29  ;;  %v1518_v29 = vld [vmem:[#allocation2 + $0x2f0] sm:$0xff] }
 0x344   : > { %7945 = vmatpush3.bf16.msra.mxu1 %v7944_v30  ;;  %v1689_v30 = vld [vmem:[#allocation7 + $0x318] sm:$0xff]  ;;  %v7980_v31 = vpack.c.bf16 %v1519_v32, %v1518_v29  ;;  %v1720_v27 = vld [vmem:[#allocation7 + $0x410] sm:$0xff] }
 0x345   : > { %7901 = vmatpush1.bf16.msra.mxu0 %v7900_v44  ;;  %7947 = vmatprep.subr.bf16.mxu1 %v7946_v35  ;;  %v1485_v44 = vld [vmem:[#allocation2 + $0x1e8] sm:$0xff]  ;;  %v7982_v34 = vpack.c.bf16 %v1689_v30, %v1687_v33  ;;  %v1725_v29 = vld [vmem:[#allocation7 + $0x438] sm:$0xff]  ;;  %v8016_v32 = vpack.c.bf16 %v1720_v27, %v1718_v26 }
 0x346   : > { %7903 = vmatprep.subr.bf16.mxu0 %v7902_v45  ;;  %v7952_v45 = vpack.c.bf16 %v1485_v44, %v1484_v43  ;;  %v1686_v35 = vld [vmem:[#allocation7 + $0x300] sm:$0xff]  ;;  %v7986_v43 = vpack.c.bf16 %v1693_v41, %v1691_v40  ;;  %v1728_v40 = vld [vmem:[#allocation7 + $0x450] sm:$0xff]  ;;  %v1731_v41 = vld [vmem:[#allocation7 + $0x468] sm:$0xff] }
 0x347   : > { %v1690_v44 = vld [vmem:[#allocation7 + $0x320] sm:$0xff] }
 0x348   : > { %7949 = vmatpush3.bf16.msra.mxu1 %v7948_v39  ;;  %v1722_v30 = vld [vmem:[#allocation7 + $0x420] sm:$0xff] }
 0x349   : > { %7905 = vmatpush1.bf16.msra.mxu0 %v7904_v50  ;;  %7951 = vmatprep.subr.bf16.mxu1 %v7950_v42  ;;  %v1487_v50 = vld [vmem:[#allocation2 + $0x1f8] sm:$0xff]  ;;  %v7984_v42 = vpack.c.bf16 %v1688_v37, %v1686_v35  ;;  %v1991_v26 = vld [vmem:[#allocation2 + $0x3a8] sm:$0xff] }
 0x34a   : > { %7907 = vmatprep.subr.bf16.mxu0 %v7906_v51  ;;  %v7956_v51 = vpack.c.bf16 %v1487_v50, %v1486_v48  ;;  %v1729_v35 = vld [vmem:[#allocation7 + $0x458] sm:$0xff] }
 0x34c   : > { %7953 = vmatpush3.bf16.msra.mxu1 %v7952_v45  ;;  %v1692_v45 = vld [vmem:[#allocation7 + $0x330] sm:$0xff] }
 0x34d   : > { %7909 = vmatpush1.bf16.msra.mxu0 %v7908_v56  ;;  %7955 = vmatprep.subr.bf16.mxu1 %v7954_v49  ;;  %v1697_v49 = vld [vmem:[#allocation7 + $0x358] sm:$0xff]  ;;  %v7988_v48 = vpack.c.bf16 %v1692_v45, %v1690_v44  ;;  %v1730_v45 = vld [vmem:[#allocation7 + $0x460] sm:$0xff] }
 0x34e   : > { %7911 = vmatprep.subr.bf16.mxu0 %v7910_v57  ;;  %v6251_v57 = vld [vmem:[#allocation10] ss:$0 sm:$0xff]  ;;  %v7990_v50 = vpack.c.bf16 %v1697_v49, %v1695_v47  ;;  %v1735_v47 = vld [vmem:[#allocation7 + $0x488] sm:$0xff]  ;;  %v1737_v49 = vld [vmem:[#allocation7 + $0x498] sm:$0xff] }
 0x350   : > { %7957 = vmatpush3.bf16.msra.mxu1 %v7956_v51  ;;  %v1694_v51 = vld [vmem:[#allocation7 + $0x340] sm:$0xff] }
 0x351   : > { %7913 = vmatpush1.bf16.msra.mxu0 %v7912_v62  ;;  %7958 = vmatprep.subr.bf16.mxu1 %v10063_v0 }
 0x352   : > { %7915 = vmatprep.subr.bf16.mxu0 %v7914_v63 }
 0x355   : > { %7917 = vmatpush1.bf16.msra.mxu0 %v7916_v6 }
 0x356   : > { %7919 = vmatprep.subr.bf16.mxu0 %v7918_v7 }
 0x359   : > { %7921 = vmatpush1.bf16.msra.mxu0 %v7920_v12  ;;  %v7962_v12 = vpack.c.bf16 %v1507_v11, %v1506_v10  ;;  %v1711_v10 = vld [vmem:[#allocation7 + $0x3c8] sm:$0xff]  ;;  %v1713_v11 = vld [vmem:[#allocation7 + $0x3d8] sm:$0xff] }
 0x35a   : > { %7923 = vmatprep.subr.bf16.mxu0 %v7922_v13  ;;  %v1508_v13 = vld [vmem:[#allocation2 + $0x2a0] sm:$0xff] }
 0x35b   : > { %v7965_v15 = vpack.c.bf16 %v1509_v14, %v1508_v13  ;;  %v8006_v13 = vpack.c.bf16 %v1713_v11, %v1711_v10  ;;  %v1712_v14 = vld [vmem:[#allocation7 + $0x3d0] sm:$0xff]  ;;  %v1751_v10 = vld [vmem:[#allocation7 + $0x508] sm:$0xff]  ;;  %v1753_v11 = vld [vmem:[#allocation7 + $0x518] sm:$0xff] }
 0x35d   : > { %7925 = vmatpush1.bf16.msra.mxu0 %v7924_v16  ;;  %v1510_v16 = vld [vmem:[#allocation2 + $0x2b0] sm:$0xff] }
 0x35e   : > { %v7968_v18 = vpack.c.bf16 %v1511_v17, %v1510_v16  ;;  %v1717_v16 = vld [vmem:[#allocation7 + $0x3f8] sm:$0xff] }
 0x360   : > { %1433 = vmatmul.mubr.f32.vlgmr.msra.gmra.mrb[2].mxu0 %v1295_v19  ;;  %v1512_v19 = vld [vmem:[#allocation2 + $0x2c0] sm:$0xff] }
 0x361   : > { %v7971_v21 = vpack.c.bf16 %v1513_v20, %v1512_v19  ;;  %v1714_v19 = vld [vmem:[#allocation7 + $0x3e0] sm:$0xff]  ;;  %v1716_v20 = vld [vmem:[#allocation7 + $0x3f0] sm:$0xff] }
 0x362   : > { %v8012_v23 = vpack.c.bf16 %v1716_v20, %v1714_v19  ;;  %v1989_v19 = vld [vmem:[#allocation2 + $0x398] sm:$0xff] }
 0x433   : > { %v1434_v52 = vpop.f32.mrb[2].mxu0 }
 0x434   : > { %v1436_v53 = vpop.f32.mrb[3].mxu0 }
 0x435   : > { %v1439_v55 = vmax.f32 %v1434_v52, %v1436_v53  ;;  %v1696_v52 = vld [vmem:[#allocation7 + $0x350] sm:$0xff]  ;;  %v1699_v53 = vld [vmem:[#allocation7 + $0x368] sm:$0xff] }
 0x437   : > { %v1447_v56 = vadd.f32 %v6250_v54, %v1439_v55  ;;  %v1701_v54 = vld [vmem:[#allocation7 + $0x378] sm:$0xff]  ;;  %v7992_v55 = vpack.c.bf16 %v1696_v52, %v1694_v51  ;;  %v1734_v51 = vld [vmem:[#allocation7 + $0x480] sm:$0xff]  ;;  %v1736_v52 = vld [vmem:[#allocation7 + $0x490] sm:$0xff] }
 0x439   : > { %v1448_v58 = vmax.f32 %v1447_v56, 0.0  ;;  %v7994_v56 = vpack.c.bf16 %v1701_v54, %v1699_v53  ;;  %v8032_v53 = vpack.c.bf16 %v1736_v52, %v1734_v51  ;;  %v1739_v54 = vld [vmem:[#allocation7 + $0x4a8] sm:$0xff] }
 0x43b   : > { %v1456_v60 = vmul.f32 %v6251_v57, %v1448_v58  ;;  %v1698_v57 = vld [vmem:[#allocation7 + $0x360] sm:$0xff]  ;;  %v1700_v58 = vld [vmem:[#allocation7 + $0x370] sm:$0xff] }
 0x43d   : > { %v1464_v61 = vadd.f32 %v6252_v59, %v1456_v60  ;;  %v1703_v59 = vld [vmem:[#allocation7 + $0x388] sm:$0xff]  ;;  %v1705_v60 = vld [vmem:[#allocation7 + $0x398] sm:$0xff] }
 0x43f   : > { %v1465_v62 = vmul.f32 %v1464_v61, %v10757_v25  ;;  %v7996_v61 = vpack.c.bf16 %v1700_v58, %v1698_v57  ;;  %v1738_v57 = vld [vmem:[#allocation7 + $0x4a0] sm:$0xff]  ;;  %v1740_v58 = vld [vmem:[#allocation7 + $0x4b0] sm:$0xff] }
 0x441   : > { %v1467_v63 = vrot.slane %v1465_v62, 7  ;;  %v7998_v62 = vpack.c.bf16 %v1705_v60, %v1703_v59  ;;  %v8036_v59 = vpack.c.bf16 %v1740_v58, %v1738_v57  ;;  %v1743_v60 = vld [vmem:[#allocation7 + $0x4c8] sm:$0xff]  ;;  %v1761_v58 = vld [vmem:[#allocation7 + $0x558] sm:$0xff] }
 0x442   : > { %v1759_v57 = vld [vmem:[#allocation7 + $0x548] sm:$0xff] }
 0x443   : > { %v1469_v4 = vsel %vm1188_vm3, 0.0, %v1467_v63  ;;  %v1470_v5 = vsel %vm1188_vm3, %v1467_v63, 0.0 }
 0x444   : > { %v1522_v6 = vrot.slane %v1469_v4, 1  ;;  %v1523_v7 = vrot.slane %v1470_v5, 1  ;;  %v1526_v38 = vrot.slane %v1469_v4, 2  ;;  %v1527_v39 = vrot.slane %v1470_v5, 2  ;;  %v1707_v4 = vld [vmem:[#allocation7 + $0x3a8] sm:$0xff]  ;;  %v1709_v5 = vld [vmem:[#allocation7 + $0x3b8] sm:$0xff] }
 0x446   : > { %v1524_v9 = vsel %vm1021_vm1, %v1522_v6, %v1523_v7  ;;  %v1528_v46 = vsel %vm1026_vm2, %v1526_v38, %v1527_v39  ;;  %v8002_v6 = vpack.c.bf16 %v1709_v5, %v1707_v4  ;;  %v1706_v7 = vld [vmem:[#allocation7 + $0x3a0] sm:$0xff]  ;;  %v1747_v4 = vld [vmem:[#allocation7 + $0x4e8] sm:$0xff]  ;;  %v1749_v5 = vld [vmem:[#allocation7 + $0x4f8] sm:$0xff] }
 0x447   : > { %1602 = vmatprep.mubr.f32.mxu1 %v1524_v9  ;;  %v1726_v39 = vld [vmem:[#allocation7 + $0x440] sm:$0xff] }
 0x448   : > { %6255 = vmatmul.mubr.msk.f32.vlgmr.msra.gmra.mrb[2].mxu1 %vm10769_vm4, %v1467_v63  ;;  %v1702_v63 = vld [vmem:[#allocation7 + $0x380] sm:$0xff] }
 0x449   : > { %7960 = vmatpush3.bf16.msra.mxu1 %v7959_v8  ;;  %7386 = vmatprep.mubr.msk.f32.mxu1 %vm10064_vm0, %v10065_v1  ;;  %v8000_v3 = vpack.c.bf16 %v1704_v2, %v1702_v63  ;;  %v1708_v8 = vld [vmem:[#allocation7 + $0x3b0] sm:$0xff]  ;;  %v1742_v63 = vld [vmem:[#allocation7 + $0x4c0] sm:$0xff] }
 0x44a   : > { %7961 = vmatprep.subr.bf16.mxu1 %v10063_v0  ;;  %v8004_v9 = vpack.c.bf16 %v1708_v8, %v1706_v7  ;;  %v1744_v2 = vld [vmem:[#allocation7 + $0x4d0] sm:$0xff]  ;;  %v1746_v7 = vld [vmem:[#allocation7 + $0x4e0] sm:$0xff] }
 0x44b   : > { %v1748_v8 = vld [vmem:[#allocation7 + $0x4f0] sm:$0xff] }
 0x44d   : > { %7963 = vmatpush3.bf16.msra.mxu1 %v7962_v12  ;;  %v1710_v12 = vld [vmem:[#allocation7 + $0x3c0] sm:$0xff] }
 0x44e   : > { %7964 = vmatprep.subr.bf16.mxu1 %v10063_v0  ;;  %v8008_v17 = vpack.c.bf16 %v1712_v14, %v1710_v12  ;;  %v8046_v12 = vpack.c.bf16 %v1753_v11, %v1751_v10  ;;  %v1987_v14 = vld [vmem:[#allocation2 + $0x388] sm:$0xff] }
 0x44f   : > { %v1766_v11 = vld [vmem:[#allocation7 + $0x580] sm:$0xff] }
 0x451   : > { %7966 = vmatpush3.bf16.msra.mxu1 %v7965_v15  ;;  %v1715_v15 = vld [vmem:[#allocation7 + $0x3e8] sm:$0xff] }
 0x452   : > { %7967 = vmatprep.subr.bf16.mxu1 %v10063_v0 }
 0x455   : > { %7969 = vmatpush3.bf16.msra.mxu1 %v7968_v18  ;;  %v8010_v18 = vpack.c.bf16 %v1717_v16, %v1715_v15  ;;  %v1970_v15 = vld [vmem:[#allocation2 + $0x300] sm:$0xff] }
 0x456   : > { %7970 = vmatprep.subr.bf16.mxu1 %v10063_v0 }
 0x459   : > { %7972 = vmatpush3.bf16.msra.mxu1 %v7971_v21  ;;  %v1719_v21 = vld [vmem:[#allocation7 + $0x408] sm:$0xff] }
 0x45a   : > { %7973 = vmatprep.subr.bf16.mxu1 %v10063_v0 }
 0x45d   : > { %7975 = vmatpush3.bf16.msra.mxu1 %v7974_v24  ;;  %v8014_v24 = vpack.c.bf16 %v1721_v22, %v1719_v21  ;;  %v1972_v22 = vld [vmem:[#allocation2 + $0x310] sm:$0xff] }
 0x45e   : > { %7976 = vmatprep.subr.bf16.mxu1 %v10063_v0 }
 0x461   : > { %7978 = vmatpush3.bf16.msra.mxu1 %v7977_v28  ;;  %v1723_v28 = vld [vmem:[#allocation7 + $0x428] sm:$0xff] }
 0x462   : > { %7979 = vmatprep.subr.bf16.mxu1 %v10063_v0  ;;  %v8018_v33 = vpack.c.bf16 %v1725_v29, %v1723_v28  ;;  %v1974_v29 = vld [vmem:[#allocation2 + $0x320] sm:$0xff] }
 0x465   : > { %7981 = vmatpush3.bf16.msra.mxu1 %v7980_v31  ;;  %v1724_v31 = vld [vmem:[#allocation7 + $0x430] sm:$0xff] }
 0x466   : > { %7983 = vmatprep.subr.bf16.mxu1 %v7982_v34  ;;  %v1727_v34 = vld [vmem:[#allocation7 + $0x448] sm:$0xff]  ;;  %v8020_v37 = vpack.c.bf16 %v1724_v31, %v1722_v30 }
 0x467   : > { %v8022_v38 = vpack.c.bf16 %v1729_v35, %v1727_v34  ;;  %v6253_v35 = vld [vmem:[#allocation5 + $0x1] ss:$0 sm:$0xff] }
 0x468   : > { %7387 = vmatmul.mubr.f32.vlgmr.msra.gmra.mrb[4].mxu1 %v1528_v46  ;;  %v1732_v46 = vld [vmem:[#allocation7 + $0x470] sm:$0xff] }
 0x469   : > { %7985 = vmatpush1.bf16.msra.mxu1 %v7984_v42  ;;  %v1733_v42 = vld [vmem:[#allocation7 + $0x478] sm:$0xff] }
 0x46a   : > { %7987 = vmatprep.subr.bf16.mxu1 %v7986_v43  ;;  %v8024_v43 = vpack.c.bf16 %v1728_v40, %v1726_v39  ;;  %v8026_v44 = vpack.c.bf16 %v1733_v42, %v1731_v41 }
 0x46d   : > { %7989 = vmatpush1.bf16.msra.mxu1 %v7988_v48  ;;  %v8028_v48 = vpack.c.bf16 %v1732_v46, %v1730_v45  ;;  %v1752_v45 = vld [vmem:[#allocation7 + $0x510] sm:$0xff] }
 0x46e   : > { %7991 = vmatprep.subr.bf16.mxu1 %v7990_v50  ;;  %v8030_v50 = vpack.c.bf16 %v1737_v49, %v1735_v47  ;;  %v1755_v49 = vld [vmem:[#allocation7 + $0x528] sm:$0xff] }
 0x471   : > { %7993 = vmatpush1.bf16.msra.mxu1 %v7992_v55  ;;  %v1741_v55 = vld [vmem:[#allocation7 + $0x4b8] sm:$0xff] }
 0x472   : > { %7995 = vmatprep.subr.bf16.mxu1 %v7994_v56  ;;  %v8034_v56 = vpack.c.bf16 %v1741_v55, %v1739_v54  ;;  %v1754_v55 = vld [vmem:[#allocation7 + $0x520] sm:$0xff] }
 0x475   : > { %7997 = vmatpush1.bf16.msra.mxu1 %v7996_v61  ;;  %v1745_v61 = vld [vmem:[#allocation7 + $0x4d8] sm:$0xff] }
 0x476   : > { %7999 = vmatprep.subr.bf16.mxu1 %v7998_v62  ;;  %v8038_v62 = vpack.c.bf16 %v1745_v61, %v1743_v60  ;;  %v8054_v60 = vpack.c.bf16 %v1761_v58, %v1759_v57  ;;  %v1758_v61 = vld [vmem:[#allocation7 + $0x540] sm:$0xff] }
 0x477   : > { %v1982_v58 = vld [vmem:[#allocation2 + $0x360] sm:$0xff] }
 0x479   : > { %8001 = vmatpush1.bf16.msra.mxu1 %v8000_v3  ;;  %v8040_v3 = vpack.c.bf16 %v1744_v2, %v1742_v63  ;;  %v1763_v63 = vld [vmem:[#allocation7 + $0x568] sm:$0xff]  ;;  %v1765_v2 = vld [vmem:[#allocation7 + $0x578] sm:$0xff] }
 0x47a   : > { %8003 = vmatprep.subr.bf16.mxu1 %v8002_v6  ;;  %v8042_v6 = vpack.c.bf16 %v1749_v5, %v1747_v4  ;;  %v8058_v4 = vpack.c.bf16 %v1765_v2, %v1763_v63  ;;  %v1762_v5 = vld [vmem:[#allocation7 + $0x560] sm:$0xff]  ;;  %v1984_v2 = vld [vmem:[#allocation2 + $0x370] sm:$0xff] }
 0x47d   : > { %8005 = vmatpush1.bf16.msra.mxu1 %v8004_v9  ;;  %v8044_v9 = vpack.c.bf16 %v1748_v8, %v1746_v7  ;;  %v1767_v7 = vld [vmem:[#allocation7 + $0x588] sm:$0xff]  ;;  %v1769_v8 = vld [vmem:[#allocation7 + $0x598] sm:$0xff] }
 0x47e   : > { %8007 = vmatprep.subr.bf16.mxu1 %v8006_v13  ;;  %v1986_v13 = vld [vmem:[#allocation2 + $0x380] sm:$0xff]  ;;  %v8062_v10 = vpack.c.bf16 %v1769_v8, %v1767_v7 }
 0x47f   : > { %v8078_v16 = vpack.c.bf16 %v1987_v14, %v1986_v13  ;;  %v1771_v13 = vld [vmem:[#allocation7 + $0x5a8] sm:$0xff]  ;;  %v1773_v14 = vld [vmem:[#allocation7 + $0x5b8] sm:$0xff]  ;;  %v6258_v7 = vld [vmem:[#allocation8 + $0x1] ss:$0 sm:$0xff] }
 0x481   : > { %8009 = vmatpush1.bf16.msra.mxu1 %v8008_v17  ;;  %v1971_v17 = vld [vmem:[#allocation2 + $0x308] sm:$0xff]  ;;  %8079 = vmatprep.subr.bf16.mxu0 %v8078_v16  ;;  %v8066_v16 = vpack.c.bf16 %v1773_v14, %v1771_v13 }
 0x482   : > { %8011 = vmatprep.subr.bf16.mxu1 %v8010_v18  ;;  %v1988_v18 = vld [vmem:[#allocation2 + $0x390] sm:$0xff]  ;;  %v8080_v20 = vpack.c.bf16 %v1971_v17, %v1970_v15  ;;  %v1770_v17 = vld [vmem:[#allocation7 + $0x5a0] sm:$0xff] }
 0x483   : > { %v8082_v21 = vpack.c.bf16 %v1989_v19, %v1988_v18  ;;  %v1772_v18 = vld [vmem:[#allocation7 + $0x5b0] sm:$0xff]  ;;  %v1775_v19 = vld [vmem:[#allocation7 + $0x5c8] sm:$0xff] }
 0x484   : > { %8081 = vmatpush3.bf16.msra.mxu0 %v8080_v20  ;;  %v1777_v20 = vld [vmem:[#allocation7 + $0x5d8] sm:$0xff] }
 0x485   : > { %8013 = vmatpush1.bf16.msra.mxu1 %v8012_v23  ;;  %v1973_v23 = vld [vmem:[#allocation2 + $0x318] sm:$0xff]  ;;  %8083 = vmatprep.subr.bf16.mxu0 %v8082_v21  ;;  %v8068_v21 = vpack.c.bf16 %v1772_v18, %v1770_v17  ;;  %v2002_v17 = vld [vmem:[#allocation2 + $0x400] sm:$0xff]  ;;  %v2003_v18 = vld [vmem:[#allocation2 + $0x408] sm:$0xff] }
 0x486   : > { %8015 = vmatprep.subr.bf16.mxu1 %v8014_v24  ;;  %v1990_v24 = vld [vmem:[#allocation2 + $0x3a0] sm:$0xff]  ;;  %v8084_v27 = vpack.c.bf16 %v1973_v23, %v1972_v22  ;;  %v8070_v22 = vpack.c.bf16 %v1777_v20, %v1775_v19 }
 0x487   : > { %v8086_v28 = vpack.c.bf16 %v1991_v26, %v1990_v24  ;;  %v1774_v23 = vld [vmem:[#allocation7 + $0x5c0] sm:$0xff]  ;;  %v1776_v24 = vld [vmem:[#allocation7 + $0x5d0] sm:$0xff]  ;;  %v1779_v26 = vld [vmem:[#allocation7 + $0x5e8] sm:$0xff] }
 0x488   : > { %8085 = vmatpush3.bf16.msra.mxu0 %v8084_v27  ;;  %v1781_v27 = vld [vmem:[#allocation7 + $0x5f8] sm:$0xff] }
 0x489   : > { %8017 = vmatpush1.bf16.msra.mxu1 %v8016_v32  ;;  %v1975_v32 = vld [vmem:[#allocation2 + $0x328] sm:$0xff]  ;;  %8087 = vmatprep.subr.bf16.mxu0 %v8086_v28  ;;  %v8072_v28 = vpack.c.bf16 %v1776_v24, %v1774_v23  ;;  %v8111_v23 = vpack.c.bf16 %v2003_v18, %v2002_v17  ;;  %v2202_v17 = vld [vmem:[#allocation7 + $0x690] sm:$0xff] }
 0x48a   : > { %8019 = vmatprep.subr.bf16.mxu1 %v8018_v33  ;;  %v8088_v33 = vpack.c.bf16 %v1975_v32, %v1974_v29  ;;  %v8074_v29 = vpack.c.bf16 %v1781_v27, %v1779_v26  ;;  %v1778_v32 = vld [vmem:[#allocation7 + $0x5e0] sm:$0xff]  ;;  %v2004_v26 = vld [vmem:[#allocation2 + $0x410] sm:$0xff]  ;;  %v2005_v27 = vld [vmem:[#allocation2 + $0x418] sm:$0xff] }
 0x48c   : > { %8089 = vmatpush3.bf16.msra.mxu0 %v8088_v33  ;;  %v1780_v33 = vld [vmem:[#allocation7 + $0x5f0] sm:$0xff] }
 0x48d   : > { %8021 = vmatpush1.bf16.msra.mxu1 %v8020_v37 }
 0x48e   : > { %8023 = vmatprep.subr.bf16.mxu1 %v8022_v38 }
 0x491   : > { %8025 = vmatpush1.bf16.msra.mxu1 %v8024_v43 }
 0x492   : > { %8027 = vmatprep.subr.bf16.mxu1 %v8026_v44  ;;  %v1750_v44 = vld [vmem:[#allocation7 + $0x500] sm:$0xff] }
 0x493   : > { %v8048_v52 = vpack.c.bf16 %v1752_v45, %v1750_v44  ;;  %v1995_v44 = vld [vmem:[#allocation2 + $0x3c8] sm:$0xff] }
 0x495   : > { %8029 = vmatpush1.bf16.msra.mxu1 %v8028_v48  ;;  %v1757_v48 = vld [vmem:[#allocation7 + $0x538] sm:$0xff] }
 0x496   : > { %8031 = vmatprep.subr.bf16.mxu1 %v8030_v50  ;;  %v8050_v54 = vpack.c.bf16 %v1757_v48, %v1755_v49  ;;  %v1978_v49 = vld [vmem:[#allocation2 + $0x340] sm:$0xff]  ;;  %v1979_v48 = vld [vmem:[#allocation2 + $0x348] sm:$0xff] }
 0x499   : > { %8033 = vmatpush1.bf16.msra.mxu1 %v8032_v53 }
 0x49a   : > { %8035 = vmatprep.subr.bf16.mxu1 %v8034_v56  ;;  %v1756_v56 = vld [vmem:[#allocation7 + $0x530] sm:$0xff] }
 0x49d   : > { %8037 = vmatpush1.bf16.msra.mxu1 %v8036_v59  ;;  %v8052_v59 = vpack.c.bf16 %v1756_v56, %v1754_v55  ;;  %v1998_v55 = vld [vmem:[#allocation2 + $0x3e0] sm:$0xff]  ;;  %v1999_v56 = vld [vmem:[#allocation2 + $0x3e8] sm:$0xff] }
 0x49e   : > { %8039 = vmatprep.subr.bf16.mxu1 %v8038_v62  ;;  %v1760_v62 = vld [vmem:[#allocation7 + $0x550] sm:$0xff]  ;;  %v8102_v57 = vpack.c.bf16 %v1999_v56, %v1998_v55  ;;  %v2189_v55 = vld [vmem:[#allocation7 + $0x628] sm:$0xff]  ;;  %v2191_v56 = vld [vmem:[#allocation7 + $0x638] sm:$0xff] }
 0x4a1   : > { %8041 = vmatpush1.bf16.msra.mxu1 %v8040_v3  ;;  %v8056_v3 = vpack.c.bf16 %v1760_v62, %v1758_v61  ;;  %v2000_v61 = vld [vmem:[#allocation2 + $0x3f0] sm:$0xff]  ;;  %v2001_v62 = vld [vmem:[#allocation2 + $0x3f8] sm:$0xff] }
 0x4a2   : > { %8043 = vmatprep.subr.bf16.mxu1 %v8042_v6  ;;  %v1764_v6 = vld [vmem:[#allocation7 + $0x570] sm:$0xff]  ;;  %v8106_v63 = vpack.c.bf16 %v2001_v62, %v2000_v61  ;;  %v2193_v62 = vld [vmem:[#allocation7 + $0x648] sm:$0xff] }
 0x4a5   : > { %8045 = vmatpush1.bf16.msra.mxu1 %v8044_v9  ;;  %v8060_v9 = vpack.c.bf16 %v1764_v6, %v1762_v5 }
 0x4a6   : > { %8047 = vmatprep.subr.bf16.mxu1 %v8046_v12  ;;  %v1768_v12 = vld [vmem:[#allocation7 + $0x590] sm:$0xff] }
 0x4a7   : > { %v8064_v15 = vpack.c.bf16 %v1768_v12, %v1766_v11  ;;  %v6260_v12 = vld [vmem:[#allocation11 + $0x1] ss:$0 sm:$0xff] }
 0x51b   : > { %v6423_v30 = vpop.f32.mrb[2].mxu1 }
 0x51c   : > { %v6424_v31 = vpop.f32.mrb[3].mxu1 }
 0x51d   : > { %v6425_v34 = vadd.f32 %v6424_v31, %v6423_v30  ;;  %v8076_v30 = vpack.c.bf16 %v1780_v33, %v1778_v32  ;;  %v2007_v32 = vld [vmem:[#allocation2 + $0x428] sm:$0xff] }
 0x51f   : > { %v1605_v37 = vadd.f32 %v6425_v34, %v6253_v35 }
 0x53b   : > { %v1674_v38 = vpop.f32.mrb[4].mxu1 }
 0x53c   : > { %v1675_v39 = vadd.f32 %v1674_v38, %v1605_v37  ;;  %v7388_v40 = vpop.f32.mrb[5].mxu1  ;;  %v1992_v37 = vld [vmem:[#allocation2 + $0x3b0] sm:$0xff]  ;;  %v1993_v38 = vld [vmem:[#allocation2 + $0x3b8] sm:$0xff] }
 0x53d   : > { %v1976_v40 = vld [vmem:[#allocation2 + $0x330] sm:$0xff] }
 0x53e   : > { %v1678_v41 = vmax.f32 %v1675_v39, 0.0  ;;  %v8090_v39 = vpack.c.bf16 %v1993_v38, %v1992_v37  ;;  %v2011_v37 = vld [vmem:[#allocation2 + $0x448] sm:$0xff] }
 0x540   : > { %v1679_v42 = vmul.f32 %v1678_v41, %v10757_v25  ;;  %v1977_v41 = vld [vmem:[#allocation2 + $0x338] sm:$0xff]  ;;  %8091 = vmatprep.subr.bf16.mxu0 %v8090_v39  ;;  %v2012_v39 = vld [vmem:[#allocation2 + $0x450] sm:$0xff] }
 0x542   : > { %v1681_v43 = vrot.slane %v1679_v42, 7  ;;  %v8092_v42 = vpack.c.bf16 %v1977_v41, %v1976_v40  ;;  %v2013_v40 = vld [vmem:[#allocation2 + $0x458] sm:$0xff] }
 0x543   : > { %v8126_v41 = vpack.c.bf16 %v2013_v40, %v2012_v39  ;;  %v2219_v39 = vld [vmem:[#allocation7 + $0x718] sm:$0xff] }
 0x544   : > { %v10799_v46 = vsel %vm1188_vm3, 0.0, %v1681_v43  ;;  %v10802_v47 = vsel %vm1188_vm3, %v1681_v43, 0.0  ;;  %8093 = vmatpush3.bf16.msra.mxu0 %v8092_v42  ;;  %v2014_v42 = vld [vmem:[#allocation2 + $0x460] sm:$0xff] }
 0x545   : > { %v1784_v50 = vrot.slane %v10799_v46, 1  ;;  %v1785_v51 = vrot.slane %v10802_v47, 1  ;;  %v1788_v31 = vrot.slane %v10799_v46, 2  ;;  %v1789_v34 = vrot.slane %v10802_v47, 2  ;;  %v1996_v47 = vld [vmem:[#allocation2 + $0x3d0] sm:$0xff] }
 0x546   : > { %v8096_v46 = vpack.c.bf16 %v1979_v48, %v1978_v49  ;;  %v2017_v49 = vld [vmem:[#allocation2 + $0x478] sm:$0xff]  ;;  %v2185_v48 = vld [vmem:[#allocation7 + $0x608] sm:$0xff] }
 0x547   : > { %v1786_v53 = vsel %vm1021_vm1, %v1784_v50, %v1785_v51  ;;  %v1790_v35 = vsel %vm1026_vm2, %v1788_v31, %v1789_v34  ;;  %v1997_v50 = vld [vmem:[#allocation2 + $0x3d8] sm:$0xff] }
 0x548   : > { %1856 = vmatprep.mubr.f32.mxu1 %v1786_v53  ;;  %v8098_v51 = vpack.c.bf16 %v1997_v50, %v1996_v47  ;;  %v1981_v53 = vld [vmem:[#allocation2 + $0x358] sm:$0xff] }
 0x549   : > { %6257 = vmatmul.mubr.msk.f32.vlgmr.msra.gmra.mrb[6].mxu1 %vm10769_vm4, %v1681_v43  ;;  %v1994_v43 = vld [vmem:[#allocation2 + $0x3c0] sm:$0xff]  ;;  %v2009_v31 = vld [vmem:[#allocation2 + $0x438] sm:$0xff] }
 0x54a   : > { %8049 = vmatpush1.bf16.msra.mxu1 %v8048_v52  ;;  %1927 = vmatprep.mubr.f32.mxu1 %v10065_v1  ;;  %v8094_v45 = vpack.c.bf16 %v1995_v44, %v1994_v43  ;;  %v1980_v52 = vld [vmem:[#allocation2 + $0x350] sm:$0xff]  ;;  %v2015_v43 = vld [vmem:[#allocation2 + $0x468] sm:$0xff] }
 0x54b   : > { %8051 = vmatprep.subr.bf16.mxu1 %v8050_v54  ;;  %v8100_v54 = vpack.c.bf16 %v1981_v53, %v1980_v52  ;;  %v8129_v44 = vpack.c.bf16 %v2015_v43, %v2014_v42  ;;  %v2186_v52 = vld [vmem:[#allocation7 + $0x610] sm:$0xff]  ;;  %v2216_v42 = vld [vmem:[#allocation7 + $0x700] sm:$0xff] }
 0x54c   : > { %8095 = vmatprep.subr.bf16.mxu0 %v8094_v45  ;;  %v2016_v45 = vld [vmem:[#allocation2 + $0x470] sm:$0xff] }
 0x54d   : > { %8097 = vmatpush3.bf16.msra.mxu0 %v8096_v46  ;;  %v2187_v46 = vld [vmem:[#allocation7 + $0x618] sm:$0xff]  ;;  %v8132_v47 = vpack.c.bf16 %v2017_v49, %v2016_v45  ;;  %v2218_v43 = vld [vmem:[#allocation7 + $0x710] sm:$0xff] }
 0x54e   : > { %8053 = vmatpush1.bf16.msra.mxu1 %v8052_v59  ;;  %8099 = vmatprep.subr.bf16.mxu0 %v8098_v51  ;;  %v1983_v59 = vld [vmem:[#allocation2 + $0x368] sm:$0xff]  ;;  %v8134_v50 = vpack.c.bf16 %v2187_v46, %v2185_v48  ;;  %v2223_v45 = vld [vmem:[#allocation7 + $0x738] sm:$0xff]  ;;  %v8168_v49 = vpack.c.bf16 %v2218_v43, %v2216_v42 }
 0x54f   : > { %8055 = vmatprep.subr.bf16.mxu1 %v8054_v60  ;;  %v8104_v60 = vpack.c.bf16 %v1983_v59, %v1982_v58  ;;  %v2184_v51 = vld [vmem:[#allocation7 + $0x600] sm:$0xff]  ;;  %v8138_v58 = vpack.c.bf16 %v2191_v56, %v2189_v55  ;;  %v2226_v55 = vld [vmem:[#allocation7 + $0x750] sm:$0xff]  ;;  %v2229_v56 = vld [vmem:[#allocation7 + $0x768] sm:$0xff] }
 0x550   : > { %v2188_v59 = vld [vmem:[#allocation7 + $0x620] sm:$0xff] }
 0x551   : > { %8101 = vmatpush3.bf16.msra.mxu0 %v8100_v54  ;;  %v2220_v46 = vld [vmem:[#allocation7 + $0x720] sm:$0xff] }
 0x552   : > { %8057 = vmatpush1.bf16.msra.mxu1 %v8056_v3  ;;  %8103 = vmatprep.subr.bf16.mxu0 %v8102_v57  ;;  %v1985_v3 = vld [vmem:[#allocation2 + $0x378] sm:$0xff]  ;;  %v8136_v57 = vpack.c.bf16 %v2186_v52, %v2184_v51  ;;  %v2489_v42 = vld [vmem:[#allocation2 + $0x528] sm:$0xff] }
 0x553   : > { %8059 = vmatprep.subr.bf16.mxu1 %v8058_v4  ;;  %v8108_v4 = vpack.c.bf16 %v1985_v3, %v1984_v2  ;;  %v2227_v51 = vld [vmem:[#allocation7 + $0x758] sm:$0xff] }
 0x555   : > { %8105 = vmatpush3.bf16.msra.mxu0 %v8104_v60  ;;  %v2190_v60 = vld [vmem:[#allocation7 + $0x630] sm:$0xff] }
 0x556   : > { %8061 = vmatpush1.bf16.msra.mxu1 %v8060_v9  ;;  %8107 = vmatprep.subr.bf16.mxu0 %v8106_v63  ;;  %v2195_v63 = vld [vmem:[#allocation7 + $0x658] sm:$0xff]  ;;  %v8140_v2 = vpack.c.bf16 %v2190_v60, %v2188_v59  ;;  %v2228_v60 = vld [vmem:[#allocation7 + $0x760] sm:$0xff] }
 0x557   : > { %8063 = vmatprep.subr.bf16.mxu1 %v8062_v10  ;;  %v6259_v10 = vld [vmem:[#allocation10 + $0x1] ss:$0 sm:$0xff]  ;;  %v8142_v3 = vpack.c.bf16 %v2195_v63, %v2193_v62  ;;  %v2233_v62 = vld [vmem:[#allocation7 + $0x788] sm:$0xff]  ;;  %v2235_v63 = vld [vmem:[#allocation7 + $0x798] sm:$0xff] }
 0x559   : > { %8109 = vmatpush3.bf16.msra.mxu0 %v8108_v4  ;;  %v2192_v4 = vld [vmem:[#allocation7 + $0x640] sm:$0xff] }
 0x55a   : > { %8065 = vmatpush1.bf16.msra.mxu1 %v8064_v15  ;;  %8110 = vmatprep.subr.bf16.mxu0 %v10063_v0 }
 0x55b   : > { %8067 = vmatprep.subr.bf16.mxu1 %v8066_v16 }
 0x55e   : > { %8069 = vmatpush1.bf16.msra.mxu1 %v8068_v21 }
 0x55f   : > { %8071 = vmatprep.subr.bf16.mxu1 %v8070_v22 }
 0x562   : > { %8073 = vmatpush1.bf16.msra.mxu1 %v8072_v28  ;;  %v8114_v28 = vpack.c.bf16 %v2005_v27, %v2004_v26  ;;  %v2209_v26 = vld [vmem:[#allocation7 + $0x6c8] sm:$0xff]  ;;  %v2211_v27 = vld [vmem:[#allocation7 + $0x6d8] sm:$0xff] }
 0x563   : > { %8075 = vmatprep.subr.bf16.mxu1 %v8074_v29  ;;  %v2006_v29 = vld [vmem:[#allocation2 + $0x420] sm:$0xff] }
 0x564   : > { %v8117_v33 = vpack.c.bf16 %v2007_v32, %v2006_v29  ;;  %v8158_v29 = vpack.c.bf16 %v2211_v27, %v2209_v26  ;;  %v2210_v32 = vld [vmem:[#allocation7 + $0x6d0] sm:$0xff]  ;;  %v2249_v26 = vld [vmem:[#allocation7 + $0x808] sm:$0xff]  ;;  %v2251_v27 = vld [vmem:[#allocation7 + $0x818] sm:$0xff] }
 0x566   : > { %8077 = vmatpush1.bf16.msra.mxu1 %v8076_v30  ;;  %v2008_v30 = vld [vmem:[#allocation2 + $0x430] sm:$0xff] }
 0x567   : > { %v8120_v34 = vpack.c.bf16 %v2009_v31, %v2008_v30  ;;  %v2215_v30 = vld [vmem:[#allocation7 + $0x6f8] sm:$0xff] }
 0x569   : > { %1928 = vmatmul.mubr.f32.vlgmr.msra.gmra.mrb[6].mxu1 %v1790_v35  ;;  %v2010_v35 = vld [vmem:[#allocation2 + $0x440] sm:$0xff] }
 0x56a   : > { %v8123_v38 = vpack.c.bf16 %v2011_v37, %v2010_v35  ;;  %v2212_v35 = vld [vmem:[#allocation7 + $0x6e0] sm:$0xff]  ;;  %v2214_v37 = vld [vmem:[#allocation7 + $0x6f0] sm:$0xff] }
 0x56b   : > { %v8164_v40 = vpack.c.bf16 %v2214_v37, %v2212_v35  ;;  %v2487_v35 = vld [vmem:[#allocation2 + $0x518] sm:$0xff] }
 0x63c   : > { %v1929_v5 = vpop.f32.mrb[6].mxu1 }
 0x63d   : > { %v1931_v6 = vpop.f32.mrb[7].mxu1 }
 0x63e   : > { %v1934_v8 = vmax.f32 %v1929_v5, %v1931_v6  ;;  %v2194_v5 = vld [vmem:[#allocation7 + $0x650] sm:$0xff]  ;;  %v2197_v6 = vld [vmem:[#allocation7 + $0x668] sm:$0xff] }
 0x640   : > { %v1943_v9 = vadd.f32 %v6258_v7, %v1934_v8  ;;  %v2199_v7 = vld [vmem:[#allocation7 + $0x678] sm:$0xff]  ;;  %v8144_v8 = vpack.c.bf16 %v2194_v5, %v2192_v4  ;;  %v2232_v4 = vld [vmem:[#allocation7 + $0x780] sm:$0xff]  ;;  %v2234_v5 = vld [vmem:[#allocation7 + $0x790] sm:$0xff] }
 0x642   : > { %v1944_v11 = vmax.f32 %v1943_v9, 0.0  ;;  %v8146_v9 = vpack.c.bf16 %v2199_v7, %v2197_v6  ;;  %v8184_v6 = vpack.c.bf16 %v2234_v5, %v2232_v4  ;;  %v2237_v7 = vld [vmem:[#allocation7 + $0x7a8] sm:$0xff] }
 0x644   : > { %v1953_v13 = vmul.f32 %v6259_v10, %v1944_v11  ;;  %v2196_v10 = vld [vmem:[#allocation7 + $0x660] sm:$0xff]  ;;  %v2198_v11 = vld [vmem:[#allocation7 + $0x670] sm:$0xff] }
 0x646   : > { %v1962_v14 = vadd.f32 %v6260_v12, %v1953_v13  ;;  %v2201_v12 = vld [vmem:[#allocation7 + $0x688] sm:$0xff]  ;;  %v2203_v13 = vld [vmem:[#allocation7 + $0x698] sm:$0xff] }
 0x648   : > { %v1963_v15 = vmul.f32 %v1962_v14, %v10757_v25  ;;  %v8148_v14 = vpack.c.bf16 %v2198_v11, %v2196_v10  ;;  %v2236_v10 = vld [vmem:[#allocation7 + $0x7a0] sm:$0xff]  ;;  %v2238_v11 = vld [vmem:[#allocation7 + $0x7b0] sm:$0xff] }
 0x64a   : > { %v1965_v16 = vrot.slane %v1963_v15, 7  ;;  %v8150_v15 = vpack.c.bf16 %v2203_v13, %v2201_v12  ;;  %v8188_v12 = vpack.c.bf16 %v2238_v11, %v2236_v10  ;;  %v2241_v13 = vld [vmem:[#allocation7 + $0x7c8] sm:$0xff]  ;;  %v2259_v11 = vld [vmem:[#allocation7 + $0x858] sm:$0xff] }
 0x64b   : > { %v2257_v10 = vld [vmem:[#allocation7 + $0x848] sm:$0xff] }
 0x64c   : > { %v1967_v19 = vsel %vm1188_vm3, 0.0, %v1965_v16  ;;  %v1968_v20 = vsel %vm1188_vm3, %v1965_v16, 0.0 }
 0x64d   : > { %v2020_v21 = vrot.slane %v1967_v19, 1  ;;  %v2021_v22 = vrot.slane %v1968_v20, 1  ;;  %v2024_v53 = vrot.slane %v1967_v19, 2  ;;  %v2025_v54 = vrot.slane %v1968_v20, 2  ;;  %v2205_v19 = vld [vmem:[#allocation7 + $0x6a8] sm:$0xff]  ;;  %v2207_v20 = vld [vmem:[#allocation7 + $0x6b8] sm:$0xff] }
 0x64f   : > { %v2022_v24 = vsel %vm1021_vm1, %v2020_v21, %v2021_v22  ;;  %v2026_v61 = vsel %vm1026_vm2, %v2024_v53, %v2025_v54  ;;  %v8154_v21 = vpack.c.bf16 %v2207_v20, %v2205_v19  ;;  %v2204_v22 = vld [vmem:[#allocation7 + $0x6a0] sm:$0xff]  ;;  %v2245_v19 = vld [vmem:[#allocation7 + $0x7e8] sm:$0xff]  ;;  %v2247_v20 = vld [vmem:[#allocation7 + $0x7f8] sm:$0xff] }
 0x650   : > { %2100 = vmatprep.mubr.f32.mxu0 %v2022_v24  ;;  %v2224_v54 = vld [vmem:[#allocation7 + $0x740] sm:$0xff] }
 0x651   : > { %6263 = vmatmul.mubr.msk.f32.vlgmr.msra.gmra.mrb[4].mxu0 %vm10769_vm4, %v1965_v16  ;;  %v2200_v16 = vld [vmem:[#allocation7 + $0x680] sm:$0xff] }
 0x652   : > { %8112 = vmatpush3.bf16.msra.mxu0 %v8111_v23  ;;  %7421 = vmatprep.mubr.msk.f32.mxu0 %vm10064_vm0, %v10065_v1  ;;  %v8152_v18 = vpack.c.bf16 %v2202_v17, %v2200_v16  ;;  %v2206_v23 = vld [vmem:[#allocation7 + $0x6b0] sm:$0xff]  ;;  %v2240_v16 = vld [vmem:[#allocation7 + $0x7c0] sm:$0xff] }
 0x653   : > { %8113 = vmatprep.subr.bf16.mxu0 %v10063_v0  ;;  %v8156_v24 = vpack.c.bf16 %v2206_v23, %v2204_v22  ;;  %v2242_v17 = vld [vmem:[#allocation7 + $0x7d0] sm:$0xff]  ;;  %v2244_v22 = vld [vmem:[#allocation7 + $0x7e0] sm:$0xff] }
 0x654   : > { %v2246_v23 = vld [vmem:[#allocation7 + $0x7f0] sm:$0xff] }
 0x656   : > { %8115 = vmatpush3.bf16.msra.mxu0 %v8114_v28  ;;  %v2208_v28 = vld [vmem:[#allocation7 + $0x6c0] sm:$0xff] }
 0x657   : > { %8116 = vmatprep.subr.bf16.mxu0 %v10063_v0  ;;  %v8160_v31 = vpack.c.bf16 %v2210_v32, %v2208_v28  ;;  %v8198_v28 = vpack.c.bf16 %v2251_v27, %v2249_v26  ;;  %v2485_v32 = vld [vmem:[#allocation2 + $0x508] sm:$0xff] }
 0x658   : > { %v2264_v27 = vld [vmem:[#allocation7 + $0x880] sm:$0xff] }
 0x65a   : > { %8118 = vmatpush3.bf16.msra.mxu0 %v8117_v33  ;;  %v2213_v33 = vld [vmem:[#allocation7 + $0x6e8] sm:$0xff] }
 0x65b   : > { %8119 = vmatprep.subr.bf16.mxu0 %v10063_v0 }
 0x65e   : > { %8121 = vmatpush3.bf16.msra.mxu0 %v8120_v34  ;;  %v8162_v34 = vpack.c.bf16 %v2215_v30, %v2213_v33  ;;  %v2468_v33 = vld [vmem:[#allocation2 + $0x480] sm:$0xff] }
 0x65f   : > { %8122 = vmatprep.subr.bf16.mxu0 %v10063_v0 }
 0x662   : > { %8124 = vmatpush3.bf16.msra.mxu0 %v8123_v38  ;;  %v2217_v38 = vld [vmem:[#allocation7 + $0x708] sm:$0xff] }
 0x663   : > { %8125 = vmatprep.subr.bf16.mxu0 %v10063_v0 }
 0x666   : > { %8127 = vmatpush3.bf16.msra.mxu0 %v8126_v41  ;;  %v8166_v41 = vpack.c.bf16 %v2219_v39, %v2217_v38  ;;  %v2470_v39 = vld [vmem:[#allocation2 + $0x490] sm:$0xff] }
 0x667   : > { %8128 = vmatprep.subr.bf16.mxu0 %v10063_v0 }
 0x66a   : > { %8130 = vmatpush3.bf16.msra.mxu0 %v8129_v44  ;;  %v2221_v44 = vld [vmem:[#allocation7 + $0x728] sm:$0xff] }
 0x66b   : > { %8131 = vmatprep.subr.bf16.mxu0 %v10063_v0  ;;  %v8170_v48 = vpack.c.bf16 %v2223_v45, %v2221_v44  ;;  %v2472_v45 = vld [vmem:[#allocation2 + $0x4a0] sm:$0xff] }
 0x66e   : > { %8133 = vmatpush3.bf16.msra.mxu0 %v8132_v47  ;;  %v2222_v47 = vld [vmem:[#allocation7 + $0x730] sm:$0xff] }
 0x66f   : > { %8135 = vmatprep.subr.bf16.mxu0 %v8134_v50  ;;  %v2225_v50 = vld [vmem:[#allocation7 + $0x748] sm:$0xff]  ;;  %v8172_v52 = vpack.c.bf16 %v2222_v47, %v2220_v46 }
 0x670   : > { %v8174_v53 = vpack.c.bf16 %v2227_v51, %v2225_v50  ;;  %v6261_v51 = vld [vmem:[#allocation5 + $0x2] ss:$0 sm:$0xff] }
 0x671   : > { %7422 = vmatmul.mubr.f32.vlgmr.msra.gmra.mrb[6].mxu0 %v2026_v61  ;;  %v2230_v61 = vld [vmem:[#allocation7 + $0x770] sm:$0xff] }
 0x672   : > { %8137 = vmatpush1.bf16.msra.mxu0 %v8136_v57  ;;  %v2231_v57 = vld [vmem:[#allocation7 + $0x778] sm:$0xff] }
 0x673   : > { %8139 = vmatprep.subr.bf16.mxu0 %v8138_v58  ;;  %v8176_v58 = vpack.c.bf16 %v2226_v55, %v2224_v54  ;;  %v8178_v59 = vpack.c.bf16 %v2231_v57, %v2229_v56 }
 0x676   : > { %8141 = vmatpush1.bf16.msra.mxu0 %v8140_v2  ;;  %v8180_v2 = vpack.c.bf16 %v2230_v61, %v2228_v60  ;;  %v2250_v60 = vld [vmem:[#allocation7 + $0x810] sm:$0xff] }
 0x677   : > { %8143 = vmatprep.subr.bf16.mxu0 %v8142_v3  ;;  %v8182_v3 = vpack.c.bf16 %v2235_v63, %v2233_v62  ;;  %v2253_v63 = vld [vmem:[#allocation7 + $0x828] sm:$0xff] }
 0x67a   : > { %8145 = vmatpush1.bf16.msra.mxu0 %v8144_v8  ;;  %v2239_v8 = vld [vmem:[#allocation7 + $0x7b8] sm:$0xff] }
 0x67b   : > { %8147 = vmatprep.subr.bf16.mxu0 %v8146_v9  ;;  %v8186_v9 = vpack.c.bf16 %v2239_v8, %v2237_v7  ;;  %v2252_v8 = vld [vmem:[#allocation7 + $0x820] sm:$0xff] }
 0x67e   : > { %8149 = vmatpush1.bf16.msra.mxu0 %v8148_v14  ;;  %v2243_v14 = vld [vmem:[#allocation7 + $0x7d8] sm:$0xff] }
 0x67f   : > { %8151 = vmatprep.subr.bf16.mxu0 %v8150_v15  ;;  %v8190_v15 = vpack.c.bf16 %v2243_v14, %v2241_v13  ;;  %v8206_v13 = vpack.c.bf16 %v2259_v11, %v2257_v10  ;;  %v2256_v14 = vld [vmem:[#allocation7 + $0x840] sm:$0xff] }
 0x680   : > { %v2480_v11 = vld [vmem:[#allocation2 + $0x4e0] sm:$0xff] }
 0x682   : > { %8153 = vmatpush1.bf16.msra.mxu0 %v8152_v18  ;;  %v8192_v18 = vpack.c.bf16 %v2242_v17, %v2240_v16  ;;  %v2261_v16 = vld [vmem:[#allocation7 + $0x868] sm:$0xff]  ;;  %v2263_v17 = vld [vmem:[#allocation7 + $0x878] sm:$0xff] }
 0x683   : > { %8155 = vmatprep.subr.bf16.mxu0 %v8154_v21  ;;  %v8194_v21 = vpack.c.bf16 %v2247_v20, %v2245_v19  ;;  %v8210_v19 = vpack.c.bf16 %v2263_v17, %v2261_v16  ;;  %v2260_v20 = vld [vmem:[#allocation7 + $0x860] sm:$0xff]  ;;  %v2482_v17 = vld [vmem:[#allocation2 + $0x4f0] sm:$0xff] }
 0x686   : > { %8157 = vmatpush1.bf16.msra.mxu0 %v8156_v24  ;;  %v8196_v24 = vpack.c.bf16 %v2246_v23, %v2244_v22  ;;  %v2265_v22 = vld [vmem:[#allocation7 + $0x888] sm:$0xff]  ;;  %v2267_v23 = vld [vmem:[#allocation7 + $0x898] sm:$0xff] }
 0x687   : > { %8159 = vmatprep.subr.bf16.mxu0 %v8158_v29  ;;  %v2484_v29 = vld [vmem:[#allocation2 + $0x500] sm:$0xff]  ;;  %v8214_v26 = vpack.c.bf16 %v2267_v23, %v2265_v22 }
 0x688   : > { %v8230_v30 = vpack.c.bf16 %v2485_v32, %v2484_v29  ;;  %v2269_v29 = vld [vmem:[#allocation7 + $0x8a8] sm:$0xff]  ;;  %v2271_v32 = vld [vmem:[#allocation7 + $0x8b8] sm:$0xff]  ;;  %v6266_v22 = vld [vmem:[#allocation8 + $0x2] ss:$0 sm:$0xff] }
 0x68a   : > { %8161 = vmatpush1.bf16.msra.mxu0 %v8160_v31  ;;  %v2469_v31 = vld [vmem:[#allocation2 + $0x488] sm:$0xff]  ;;  %8231 = vmatprep.subr.bf16.mxu1 %v8230_v30  ;;  %v8218_v30 = vpack.c.bf16 %v2271_v32, %v2269_v29 }
 0x68b   : > { %8163 = vmatprep.subr.bf16.mxu0 %v8162_v34  ;;  %v2486_v34 = vld [vmem:[#allocation2 + $0x510] sm:$0xff]  ;;  %v8232_v37 = vpack.c.bf16 %v2469_v31, %v2468_v33  ;;  %v2268_v31 = vld [vmem:[#allocation7 + $0x8a0] sm:$0xff] }
 0x68c   : > { %v8234_v38 = vpack.c.bf16 %v2487_v35, %v2486_v34  ;;  %v2270_v34 = vld [vmem:[#allocation7 + $0x8b0] sm:$0xff]  ;;  %v2273_v35 = vld [vmem:[#allocation7 + $0x8c8] sm:$0xff] }
 0x68d   : > { %8233 = vmatpush3.bf16.msra.mxu1 %v8232_v37  ;;  %v2275_v37 = vld [vmem:[#allocation7 + $0x8d8] sm:$0xff] }
 0x68e   : > { %8165 = vmatpush1.bf16.msra.mxu0 %v8164_v40  ;;  %v2471_v40 = vld [vmem:[#allocation2 + $0x498] sm:$0xff]  ;;  %8235 = vmatprep.subr.bf16.mxu1 %v8234_v38  ;;  %v8220_v38 = vpack.c.bf16 %v2270_v34, %v2268_v31  ;;  %v2500_v31 = vld [vmem:[#allocation2 + $0x580] sm:$0xff]  ;;  %v2501_v34 = vld [vmem:[#allocation2 + $0x588] sm:$0xff] }
 0x68f   : > { %8167 = vmatprep.subr.bf16.mxu0 %v8166_v41  ;;  %v2488_v41 = vld [vmem:[#allocation2 + $0x520] sm:$0xff]  ;;  %v8236_v43 = vpack.c.bf16 %v2471_v40, %v2470_v39  ;;  %v8222_v39 = vpack.c.bf16 %v2275_v37, %v2273_v35 }
 0x690   : > { %v8238_v44 = vpack.c.bf16 %v2489_v42, %v2488_v41  ;;  %v2272_v40 = vld [vmem:[#allocation7 + $0x8c0] sm:$0xff]  ;;  %v2274_v41 = vld [vmem:[#allocation7 + $0x8d0] sm:$0xff]  ;;  %v2277_v42 = vld [vmem:[#allocation7 + $0x8e8] sm:$0xff] }
 0x691   : > { %8237 = vmatpush3.bf16.msra.mxu1 %v8236_v43  ;;  %v2279_v43 = vld [vmem:[#allocation7 + $0x8f8] sm:$0xff] }
 0x692   : > { %8169 = vmatpush1.bf16.msra.mxu0 %v8168_v49  ;;  %v2473_v49 = vld [vmem:[#allocation2 + $0x4a8] sm:$0xff]  ;;  %8239 = vmatprep.subr.bf16.mxu1 %v8238_v44  ;;  %v8224_v44 = vpack.c.bf16 %v2274_v41, %v2272_v40  ;;  %v8263_v40 = vpack.c.bf16 %v2501_v34, %v2500_v31  ;;  %v2700_v31 = vld [vmem:[#allocation7 + $0x990] sm:$0xff] }
 0x693   : > { %8171 = vmatprep.subr.bf16.mxu0 %v8170_v48  ;;  %v8240_v48 = vpack.c.bf16 %v2473_v49, %v2472_v45  ;;  %v8226_v45 = vpack.c.bf16 %v2279_v43, %v2277_v42  ;;  %v2276_v49 = vld [vmem:[#allocation7 + $0x8e0] sm:$0xff]  ;;  %v2502_v42 = vld [vmem:[#allocation2 + $0x590] sm:$0xff]  ;;  %v2503_v43 = vld [vmem:[#allocation2 + $0x598] sm:$0xff] }
 0x695   : > { %8241 = vmatpush3.bf16.msra.mxu1 %v8240_v48  ;;  %v2278_v48 = vld [vmem:[#allocation7 + $0x8f0] sm:$0xff] }
 0x696   : > { %8173 = vmatpush1.bf16.msra.mxu0 %v8172_v52 }
 0x697   : > { %8175 = vmatprep.subr.bf16.mxu0 %v8174_v53 }
 0x69a   : > { %8177 = vmatpush1.bf16.msra.mxu0 %v8176_v58 }
 0x69b   : > { %8179 = vmatprep.subr.bf16.mxu0 %v8178_v59  ;;  %v2248_v59 = vld [vmem:[#allocation7 + $0x800] sm:$0xff] }
 0x69c   : > { %v8200_v5 = vpack.c.bf16 %v2250_v60, %v2248_v59  ;;  %v2493_v59 = vld [vmem:[#allocation2 + $0x548] sm:$0xff] }
 0x69e   : > { %8181 = vmatpush1.bf16.msra.mxu0 %v8180_v2  ;;  %v2255_v2 = vld [vmem:[#allocation7 + $0x838] sm:$0xff] }
 0x69f   : > { %8183 = vmatprep.subr.bf16.mxu0 %v8182_v3  ;;  %v8202_v7 = vpack.c.bf16 %v2255_v2, %v2253_v63  ;;  %v2476_v63 = vld [vmem:[#allocation2 + $0x4c0] sm:$0xff]  ;;  %v2477_v2 = vld [vmem:[#allocation2 + $0x4c8] sm:$0xff] }
 0x6a2   : > { %8185 = vmatpush1.bf16.msra.mxu0 %v8184_v6 }
 0x6a3   : > { %8187 = vmatprep.subr.bf16.mxu0 %v8186_v9  ;;  %v2254_v9 = vld [vmem:[#allocation7 + $0x830] sm:$0xff] }
 0x6a6   : > { %8189 = vmatpush1.bf16.msra.mxu0 %v8188_v12  ;;  %v8204_v12 = vpack.c.bf16 %v2254_v9, %v2252_v8  ;;  %v2496_v8 = vld [vmem:[#allocation2 + $0x560] sm:$0xff]  ;;  %v2497_v9 = vld [vmem:[#allocation2 + $0x568] sm:$0xff] }
 0x6a7   : > { %8191 = vmatprep.subr.bf16.mxu0 %v8190_v15  ;;  %v2258_v15 = vld [vmem:[#allocation7 + $0x850] sm:$0xff]  ;;  %v8254_v10 = vpack.c.bf16 %v2497_v9, %v2496_v8  ;;  %v2687_v8 = vld [vmem:[#allocation7 + $0x928] sm:$0xff]  ;;  %v2689_v9 = vld [vmem:[#allocation7 + $0x938] sm:$0xff] }
 0x6aa   : > { %8193 = vmatpush1.bf16.msra.mxu0 %v8192_v18  ;;  %v8208_v18 = vpack.c.bf16 %v2258_v15, %v2256_v14  ;;  %v2498_v14 = vld [vmem:[#allocation2 + $0x570] sm:$0xff]  ;;  %v2499_v15 = vld [vmem:[#allocation2 + $0x578] sm:$0xff] }
 0x6ab   : > { %8195 = vmatprep.subr.bf16.mxu0 %v8194_v21  ;;  %v2262_v21 = vld [vmem:[#allocation7 + $0x870] sm:$0xff]  ;;  %v8258_v16 = vpack.c.bf16 %v2499_v15, %v2498_v14  ;;  %v2691_v15 = vld [vmem:[#allocation7 + $0x948] sm:$0xff] }
 0x6ae   : > { %8197 = vmatpush1.bf16.msra.mxu0 %v8196_v24  ;;  %v8212_v24 = vpack.c.bf16 %v2262_v21, %v2260_v20 }
 0x6af   : > { %8199 = vmatprep.subr.bf16.mxu0 %v8198_v28  ;;  %v2266_v28 = vld [vmem:[#allocation7 + $0x890] sm:$0xff] }
 0x6b0   : > { %v8216_v33 = vpack.c.bf16 %v2266_v28, %v2264_v27  ;;  %v6268_v28 = vld [vmem:[#allocation11 + $0x2] ss:$0 sm:$0xff] }
 0x724   : > { %v6475_v46 = vpop.f32.mrb[4].mxu0 }
 0x725   : > { %v6476_v47 = vpop.f32.mrb[5].mxu0 }
 0x726   : > { %v6477_v50 = vadd.f32 %v6476_v47, %v6475_v46  ;;  %v8228_v46 = vpack.c.bf16 %v2278_v48, %v2276_v49  ;;  %v2505_v49 = vld [vmem:[#allocation2 + $0x5a8] sm:$0xff] }
 0x728   : > { %v2103_v52 = vadd.f32 %v6477_v50, %v6261_v51 }
 0x744   : > { %v2172_v53 = vpop.f32.mrb[6].mxu0 }
 0x745   : > { %v2173_v54 = vadd.f32 %v2172_v53, %v2103_v52  ;;  %v7423_v55 = vpop.f32.mrb[7].mxu0  ;;  %v2490_v52 = vld [vmem:[#allocation2 + $0x530] sm:$0xff]  ;;  %v2491_v53 = vld [vmem:[#allocation2 + $0x538] sm:$0xff] }
 0x746   : > { %v2474_v55 = vld [vmem:[#allocation2 + $0x4b0] sm:$0xff] }
 0x747   : > { %v2176_v56 = vmax.f32 %v2173_v54, 0.0  ;;  %v8242_v54 = vpack.c.bf16 %v2491_v53, %v2490_v52  ;;  %v2509_v52 = vld [vmem:[#allocation2 + $0x5c8] sm:$0xff] }
 0x749   : > { %v2177_v57 = vmul.f32 %v2176_v56, %v10757_v25  ;;  %v2475_v56 = vld [vmem:[#allocation2 + $0x4b8] sm:$0xff]  ;;  %8243 = vmatprep.subr.bf16.mxu1 %v8242_v54  ;;  %v2510_v54 = vld [vmem:[#allocation2 + $0x5d0] sm:$0xff] }
 0x74b   : > { %v2179_v58 = vrot.slane %v2177_v57, 7  ;;  %v8244_v57 = vpack.c.bf16 %v2475_v56, %v2474_v55  ;;  %v2511_v55 = vld [vmem:[#allocation2 + $0x5d8] sm:$0xff] }
 0x74c   : > { %v8278_v56 = vpack.c.bf16 %v2511_v55, %v2510_v54  ;;  %v2717_v54 = vld [vmem:[#allocation7 + $0xa18] sm:$0xff] }
 0x74d   : > { %v10832_v61 = vsel %vm1188_vm3, 0.0, %v2179_v58  ;;  %v10835_v62 = vsel %vm1188_vm3, %v2179_v58, 0.0  ;;  %8245 = vmatpush3.bf16.msra.mxu1 %v8244_v57  ;;  %v2512_v57 = vld [vmem:[#allocation2 + $0x5e0] sm:$0xff] }
 0x74e   : > { %v2282_v3 = vrot.slane %v10832_v61, 1  ;;  %v2283_v4 = vrot.slane %v10835_v62, 1  ;;  %v2286_v47 = vrot.slane %v10832_v61, 2  ;;  %v2287_v50 = vrot.slane %v10835_v62, 2  ;;  %v2494_v62 = vld [vmem:[#allocation2 + $0x550] sm:$0xff] }
 0x74f   : > { %v8248_v61 = vpack.c.bf16 %v2477_v2, %v2476_v63  ;;  %v2515_v63 = vld [vmem:[#allocation2 + $0x5f8] sm:$0xff]  ;;  %v2683_v2 = vld [vmem:[#allocation7 + $0x908] sm:$0xff] }
 0x750   : > { %v2284_v6 = vsel %vm1021_vm1, %v2282_v3, %v2283_v4  ;;  %v2288_v51 = vsel %vm1026_vm2, %v2286_v47, %v2287_v50  ;;  %v2495_v3 = vld [vmem:[#allocation2 + $0x558] sm:$0xff] }
 0x751   : > { %2354 = vmatprep.mubr.f32.mxu0 %v2284_v6  ;;  %v8250_v4 = vpack.c.bf16 %v2495_v3, %v2494_v62  ;;  %v2479_v6 = vld [vmem:[#allocation2 + $0x4d8] sm:$0xff] }
 0x752   : > { %6265 = vmatmul.mubr.msk.f32.vlgmr.msra.gmra.mrb[8].mxu0 %vm10769_vm4, %v2179_v58  ;;  %v2492_v58 = vld [vmem:[#allocation2 + $0x540] sm:$0xff]  ;;  %v2507_v47 = vld [vmem:[#allocation2 + $0x5b8] sm:$0xff] }
 0x753   : > { %8201 = vmatpush1.bf16.msra.mxu0 %v8200_v5  ;;  %2425 = vmatprep.mubr.f32.mxu0 %v10065_v1  ;;  %v8246_v60 = vpack.c.bf16 %v2493_v59, %v2492_v58  ;;  %v2478_v5 = vld [vmem:[#allocation2 + $0x4d0] sm:$0xff]  ;;  %v2513_v58 = vld [vmem:[#allocation2 + $0x5e8] sm:$0xff] }
 0x754   : > { %8203 = vmatprep.subr.bf16.mxu0 %v8202_v7  ;;  %v8252_v7 = vpack.c.bf16 %v2479_v6, %v2478_v5  ;;  %v8281_v59 = vpack.c.bf16 %v2513_v58, %v2512_v57  ;;  %v2684_v5 = vld [vmem:[#allocation7 + $0x910] sm:$0xff]  ;;  %v2714_v57 = vld [vmem:[#allocation7 + $0xa00] sm:$0xff] }
 0x755   : > { %8247 = vmatprep.subr.bf16.mxu1 %v8246_v60  ;;  %v2514_v60 = vld [vmem:[#allocation2 + $0x5f0] sm:$0xff] }
 0x756   : > { %8249 = vmatpush3.bf16.msra.mxu1 %v8248_v61  ;;  %v2685_v61 = vld [vmem:[#allocation7 + $0x918] sm:$0xff]  ;;  %v8284_v62 = vpack.c.bf16 %v2515_v63, %v2514_v60  ;;  %v2716_v58 = vld [vmem:[#allocation7 + $0xa10] sm:$0xff] }
 0x757   : > { %8205 = vmatpush1.bf16.msra.mxu0 %v8204_v12  ;;  %8251 = vmatprep.subr.bf16.mxu1 %v8250_v4  ;;  %v2481_v12 = vld [vmem:[#allocation2 + $0x4e8] sm:$0xff]  ;;  %v8286_v3 = vpack.c.bf16 %v2685_v61, %v2683_v2  ;;  %v2721_v60 = vld [vmem:[#allocation7 + $0xa38] sm:$0xff]  ;;  %v8320_v63 = vpack.c.bf16 %v2716_v58, %v2714_v57  ;;  %v3026_v57 = vld [vmem:[#allocation13 + $0xa0] sm:$0xff] }
 0x758   : > { %8207 = vmatprep.subr.bf16.mxu0 %v8206_v13  ;;  %v8256_v13 = vpack.c.bf16 %v2481_v12, %v2480_v11  ;;  %v2682_v4 = vld [vmem:[#allocation7 + $0x900] sm:$0xff]  ;;  %v8290_v11 = vpack.c.bf16 %v2689_v9, %v2687_v8  ;;  %v2724_v8 = vld [vmem:[#allocation7 + $0xa50] sm:$0xff]  ;;  %v2727_v9 = vld [vmem:[#allocation7 + $0xa68] sm:$0xff] }
 0x759   : > { %v2686_v12 = vld [vmem:[#allocation7 + $0x920] sm:$0xff]  ;;  %v3027_v58 = vld [vmem:[#allocation13 + $0xa8] sm:$0xff] }
 0x75a   : > { %8253 = vmatpush3.bf16.msra.mxu1 %v8252_v7  ;;  %v2718_v61 = vld [vmem:[#allocation7 + $0xa20] sm:$0xff] }
 0x75b   : > { %8209 = vmatpush1.bf16.msra.mxu0 %v8208_v18  ;;  %8255 = vmatprep.subr.bf16.mxu1 %v8254_v10  ;;  %v2483_v18 = vld [vmem:[#allocation2 + $0x4f8] sm:$0xff]  ;;  %v8288_v10 = vpack.c.bf16 %v2684_v5, %v2682_v4 }
 0x75c   : > { %8211 = vmatprep.subr.bf16.mxu0 %v8210_v19  ;;  %v8260_v19 = vpack.c.bf16 %v2483_v18, %v2482_v17  ;;  %v2725_v4 = vld [vmem:[#allocation7 + $0xa58] sm:$0xff] }
 0x75e   : > { %8257 = vmatpush3.bf16.msra.mxu1 %v8256_v13  ;;  %v2688_v13 = vld [vmem:[#allocation7 + $0x930] sm:$0xff] }
 0x75f   : > { %8213 = vmatpush1.bf16.msra.mxu0 %v8212_v24  ;;  %8259 = vmatprep.subr.bf16.mxu1 %v8258_v16  ;;  %v2693_v16 = vld [vmem:[#allocation7 + $0x958] sm:$0xff]  ;;  %v8292_v17 = vpack.c.bf16 %v2688_v13, %v2686_v12  ;;  %v2726_v13 = vld [vmem:[#allocation7 + $0xa60] sm:$0xff] }
 0x760   : > { %8215 = vmatprep.subr.bf16.mxu0 %v8214_v26  ;;  %v6267_v26 = vld [vmem:[#allocation10 + $0x2] ss:$0 sm:$0xff]  ;;  %v8294_v18 = vpack.c.bf16 %v2693_v16, %v2691_v15  ;;  %v2731_v15 = vld [vmem:[#allocation7 + $0xa88] sm:$0xff]  ;;  %v2733_v16 = vld [vmem:[#allocation7 + $0xa98] sm:$0xff] }
 0x762   : > { %8261 = vmatpush3.bf16.msra.mxu1 %v8260_v19  ;;  %v2690_v19 = vld [vmem:[#allocation7 + $0x940] sm:$0xff] }
 0x763   : > { %8217 = vmatpush1.bf16.msra.mxu0 %v8216_v33  ;;  %8262 = vmatprep.subr.bf16.mxu1 %v10063_v0 }
 0x764   : > { %8219 = vmatprep.subr.bf16.mxu0 %v8218_v30 }
 0x767   : > { %8221 = vmatpush1.bf16.msra.mxu0 %v8220_v38 }
 0x768   : > { %8223 = vmatprep.subr.bf16.mxu0 %v8222_v39 }
 0x76b   : > { %8225 = vmatpush1.bf16.msra.mxu0 %v8224_v44  ;;  %v8266_v44 = vpack.c.bf16 %v2503_v43, %v2502_v42  ;;  %v2707_v42 = vld [vmem:[#allocation7 + $0x9c8] sm:$0xff]  ;;  %v2709_v43 = vld [vmem:[#allocation7 + $0x9d8] sm:$0xff] }
 0x76c   : > { %8227 = vmatprep.subr.bf16.mxu0 %v8226_v45  ;;  %v2504_v45 = vld [vmem:[#allocation2 + $0x5a0] sm:$0xff] }
 0x76d   : > { %v8269_v48 = vpack.c.bf16 %v2505_v49, %v2504_v45  ;;  %v8310_v45 = vpack.c.bf16 %v2709_v43, %v2707_v42  ;;  %v2708_v49 = vld [vmem:[#allocation7 + $0x9d0] sm:$0xff]  ;;  %v2747_v42 = vld [vmem:[#allocation7 + $0xb08] sm:$0xff]  ;;  %v2749_v43 = vld [vmem:[#allocation7 + $0xb18] sm:$0xff] }
 0x76f   : > { %8229 = vmatpush1.bf16.msra.mxu0 %v8228_v46  ;;  %v2506_v46 = vld [vmem:[#allocation2 + $0x5b0] sm:$0xff] }
 0x770   : > { %v8272_v50 = vpack.c.bf16 %v2507_v47, %v2506_v46  ;;  %v2713_v46 = vld [vmem:[#allocation7 + $0x9f8] sm:$0xff] }
 0x772   : > { %2426 = vmatmul.mubr.f32.vlgmr.msra.gmra.mrb[8].mxu0 %v2288_v51  ;;  %v2508_v51 = vld [vmem:[#allocation2 + $0x5c0] sm:$0xff] }
 0x773   : > { %v8275_v53 = vpack.c.bf16 %v2509_v52, %v2508_v51  ;;  %v2710_v51 = vld [vmem:[#allocation7 + $0x9e0] sm:$0xff]  ;;  %v2712_v52 = vld [vmem:[#allocation7 + $0x9f0] sm:$0xff] }
 0x774   : > { %v8316_v55 = vpack.c.bf16 %v2712_v52, %v2710_v51  ;;  %v3024_v51 = vld [vmem:[#allocation13 + $0x90] sm:$0xff]  ;;  %v3025_v52 = vld [vmem:[#allocation13 + $0x98] sm:$0xff] }
 0x845   : > { %v2427_v20 = vpop.f32.mrb[8].mxu0 }
 0x846   : > { %v2429_v21 = vpop.f32.mrb[9].mxu0 }
 0x847   : > { %v2432_v23 = vmax.f32 %v2427_v20, %v2429_v21  ;;  %v2692_v20 = vld [vmem:[#allocation7 + $0x950] sm:$0xff]  ;;  %v2695_v21 = vld [vmem:[#allocation7 + $0x968] sm:$0xff] }
 0x849   : > { %v2441_v24 = vadd.f32 %v6266_v22, %v2432_v23  ;;  %v2697_v22 = vld [vmem:[#allocation7 + $0x978] sm:$0xff]  ;;  %v8296_v23 = vpack.c.bf16 %v2692_v20, %v2690_v19  ;;  %v2730_v19 = vld [vmem:[#allocation7 + $0xa80] sm:$0xff]  ;;  %v2732_v20 = vld [vmem:[#allocation7 + $0xa90] sm:$0xff] }
 0x84b   : > { %v2442_v27 = vmax.f32 %v2441_v24, 0.0  ;;  %v8298_v24 = vpack.c.bf16 %v2697_v22, %v2695_v21  ;;  %v8336_v21 = vpack.c.bf16 %v2732_v20, %v2730_v19  ;;  %v2735_v22 = vld [vmem:[#allocation7 + $0xaa8] sm:$0xff] }
 0x84d   : > { %v2451_v29 = vmul.f32 %v6267_v26, %v2442_v27  ;;  %v2694_v26 = vld [vmem:[#allocation7 + $0x960] sm:$0xff]  ;;  %v2696_v27 = vld [vmem:[#allocation7 + $0x970] sm:$0xff] }
 0x84f   : > { %v2460_v32 = vadd.f32 %v6268_v28, %v2451_v29  ;;  %v2699_v28 = vld [vmem:[#allocation7 + $0x988] sm:$0xff]  ;;  %v2701_v29 = vld [vmem:[#allocation7 + $0x998] sm:$0xff] }
 0x851   : > { %v2461_v33 = vmul.f32 %v2460_v32, %v10757_v25  ;;  %v8300_v32 = vpack.c.bf16 %v2696_v27, %v2694_v26  ;;  %v2734_v26 = vld [vmem:[#allocation7 + $0xaa0] sm:$0xff]  ;;  %v2736_v27 = vld [vmem:[#allocation7 + $0xab0] sm:$0xff] }
 0x853   : > { %v2463_v30 = vrot.slane %v2461_v33, 7  ;;  %v8302_v33 = vpack.c.bf16 %v2701_v29, %v2699_v28  ;;  %v8340_v28 = vpack.c.bf16 %v2736_v27, %v2734_v26  ;;  %v2739_v29 = vld [vmem:[#allocation7 + $0xac8] sm:$0xff]  ;;  %v2757_v27 = vld [vmem:[#allocation7 + $0xb58] sm:$0xff] }
 0x854   : > { %v2755_v26 = vld [vmem:[#allocation7 + $0xb48] sm:$0xff] }
 0x855   : > { %v2465_v35 = vsel %vm1188_vm3, 0.0, %v2463_v30  ;;  %v2466_v37 = vsel %vm1188_vm3, %v2463_v30, 0.0 }
 0x856   : > { %v2518_v38 = vrot.slane %v2465_v35, 1  ;;  %v2519_v39 = vrot.slane %v2466_v37, 1  ;;  %v2522_v6 = vrot.slane %v2465_v35, 2  ;;  %v2523_v7 = vrot.slane %v2466_v37, 2  ;;  %v2703_v35 = vld [vmem:[#allocation7 + $0x9a8] sm:$0xff]  ;;  %v2705_v37 = vld [vmem:[#allocation7 + $0x9b8] sm:$0xff] }
 0x858   : > { %v2520_v41 = vsel %vm1021_vm1, %v2518_v38, %v2519_v39  ;;  %v2524_v14 = vsel %vm1026_vm2, %v2522_v6, %v2523_v7  ;;  %v8306_v38 = vpack.c.bf16 %v2705_v37, %v2703_v35  ;;  %v2702_v39 = vld [vmem:[#allocation7 + $0x9a0] sm:$0xff]  ;;  %v2743_v35 = vld [vmem:[#allocation7 + $0xae8] sm:$0xff]  ;;  %v2745_v37 = vld [vmem:[#allocation7 + $0xaf8] sm:$0xff] }
 0x859   : > { %2598 = vmatprep.mubr.f32.mxu1 %v2520_v41  ;;  %v2722_v7 = vld [vmem:[#allocation7 + $0xa40] sm:$0xff] }
 0x85a   : > { %6271 = vmatmul.mubr.msk.f32.vlgmr.msra.gmra.mrb[8].mxu1 %vm10769_vm4, %v2463_v30  ;;  %v2698_v30 = vld [vmem:[#allocation7 + $0x980] sm:$0xff] }
 0x85b   : > { %8264 = vmatpush3.bf16.msra.mxu1 %v8263_v40  ;;  %7456 = vmatprep.mubr.msk.f32.mxu1 %vm10064_vm0, %v10065_v1  ;;  %v8304_v34 = vpack.c.bf16 %v2700_v31, %v2698_v30  ;;  %v2704_v40 = vld [vmem:[#allocation7 + $0x9b0] sm:$0xff]  ;;  %v2738_v30 = vld [vmem:[#allocation7 + $0xac0] sm:$0xff] }
 0x85c   : > { %8265 = vmatprep.subr.bf16.mxu1 %v10063_v0  ;;  %v8308_v41 = vpack.c.bf16 %v2704_v40, %v2702_v39  ;;  %v2740_v31 = vld [vmem:[#allocation7 + $0xad0] sm:$0xff]  ;;  %v2742_v39 = vld [vmem:[#allocation7 + $0xae0] sm:$0xff] }
 0x85d   : > { %v2744_v40 = vld [vmem:[#allocation7 + $0xaf0] sm:$0xff] }
 0x85f   : > { %8267 = vmatpush3.bf16.msra.mxu1 %v8266_v44  ;;  %v2706_v44 = vld [vmem:[#allocation7 + $0x9c0] sm:$0xff] }
 0x860   : > { %8268 = vmatprep.subr.bf16.mxu1 %v10063_v0  ;;  %v8312_v47 = vpack.c.bf16 %v2708_v49, %v2706_v44  ;;  %v8350_v44 = vpack.c.bf16 %v2749_v43, %v2747_v42  ;;  %v3023_v49 = vld [vmem:[#allocation13 + $0x88] sm:$0xff]  ;;  %v2762_v43 = vld [vmem:[#allocation7 + $0xb80] sm:$0xff] }
 0x863   : > { %8270 = vmatpush3.bf16.msra.mxu1 %v8269_v48  ;;  %v2711_v48 = vld [vmem:[#allocation7 + $0x9e8] sm:$0xff] }
 0x864   : > { %8271 = vmatprep.subr.bf16.mxu1 %v10063_v0 }
 0x867   : > { %8273 = vmatpush3.bf16.msra.mxu1 %v8272_v50  ;;  %v8314_v50 = vpack.c.bf16 %v2713_v46, %v2711_v48  ;;  %v3006_v48 = vld [vmem:[#allocation13] sm:$0xff] }
 0x868   : > { %8274 = vmatprep.subr.bf16.mxu1 %v10063_v0 }
 0x86b   : > { %8276 = vmatpush3.bf16.msra.mxu1 %v8275_v53  ;;  %v2715_v53 = vld [vmem:[#allocation7 + $0xa08] sm:$0xff] }
 0x86c   : > { %8277 = vmatprep.subr.bf16.mxu1 %v10063_v0 }
 0x86f   : > { %8279 = vmatpush3.bf16.msra.mxu1 %v8278_v56  ;;  %v8318_v56 = vpack.c.bf16 %v2717_v54, %v2715_v53  ;;  %v3008_v53 = vld [vmem:[#allocation13 + $0x10] sm:$0xff]  ;;  %v3009_v54 = vld [vmem:[#allocation13 + $0x18] sm:$0xff] }
 0x870   : > { %8280 = vmatprep.subr.bf16.mxu1 %v10063_v0 }
 0x873   : > { %8282 = vmatpush3.bf16.msra.mxu1 %v8281_v59  ;;  %v2719_v59 = vld [vmem:[#allocation7 + $0xa28] sm:$0xff] }
 0x874   : > { %8283 = vmatprep.subr.bf16.mxu1 %v10063_v0  ;;  %v8322_v2 = vpack.c.bf16 %v2721_v60, %v2719_v59  ;;  %v8390_v59 = vpack.c.bf16 %v3027_v58, %v3026_v57  ;;  %v3010_v60 = vld [vmem:[#allocation13 + $0x20] sm:$0xff]  ;;  %v2777_v58 = vld [vmem:[#allocation7 + $0xbf8] sm:$0xff] }
 0x875   : > { %v2775_v57 = vld [vmem:[#allocation7 + $0xbe8] sm:$0xff] }
 0x877   : > { %8285 = vmatpush3.bf16.msra.mxu1 %v8284_v62  ;;  %v2720_v62 = vld [vmem:[#allocation7 + $0xa30] sm:$0xff] }
 0x878   : > { %8287 = vmatprep.subr.bf16.mxu1 %v8286_v3  ;;  %v2723_v3 = vld [vmem:[#allocation7 + $0xa48] sm:$0xff]  ;;  %v8324_v5 = vpack.c.bf16 %v2720_v62, %v2718_v61 }
 0x879   : > { %v8326_v6 = vpack.c.bf16 %v2725_v4, %v2723_v3  ;;  %v6269_v4 = vld [vmem:[#allocation5 + $0x3] ss:$0 sm:$0xff] }
 0x87a   : > { %7457 = vmatmul.mubr.f32.vlgmr.msra.gmra.mrb[10].mxu1 %v2524_v14  ;;  %v2728_v14 = vld [vmem:[#allocation7 + $0xa70] sm:$0xff] }
 0x87b   : > { %8289 = vmatpush1.bf16.msra.mxu1 %v8288_v10  ;;  %v2729_v10 = vld [vmem:[#allocation7 + $0xa78] sm:$0xff] }
 0x87c   : > { %8291 = vmatprep.subr.bf16.mxu1 %v8290_v11  ;;  %v8328_v11 = vpack.c.bf16 %v2724_v8, %v2722_v7  ;;  %v8330_v12 = vpack.c.bf16 %v2729_v10, %v2727_v9 }
 0x87f   : > { %8293 = vmatpush1.bf16.msra.mxu1 %v8292_v17  ;;  %v8332_v17 = vpack.c.bf16 %v2728_v14, %v2726_v13  ;;  %v2748_v13 = vld [vmem:[#allocation7 + $0xb10] sm:$0xff] }
 0x880   : > { %8295 = vmatprep.subr.bf16.mxu1 %v8294_v18  ;;  %v8334_v18 = vpack.c.bf16 %v2733_v16, %v2731_v15  ;;  %v2751_v16 = vld [vmem:[#allocation7 + $0xb28] sm:$0xff] }
 0x883   : > { %8297 = vmatpush1.bf16.msra.mxu1 %v8296_v23  ;;  %v2737_v23 = vld [vmem:[#allocation7 + $0xab8] sm:$0xff] }
 0x884   : > { %8299 = vmatprep.subr.bf16.mxu1 %v8298_v24  ;;  %v8338_v24 = vpack.c.bf16 %v2737_v23, %v2735_v22  ;;  %v2750_v23 = vld [vmem:[#allocation7 + $0xb20] sm:$0xff] }
 0x887   : > { %8301 = vmatpush1.bf16.msra.mxu1 %v8300_v32  ;;  %v2741_v32 = vld [vmem:[#allocation7 + $0xad8] sm:$0xff] }
 0x888   : > { %8303 = vmatprep.subr.bf16.mxu1 %v8302_v33  ;;  %v8342_v33 = vpack.c.bf16 %v2741_v32, %v2739_v29  ;;  %v8358_v29 = vpack.c.bf16 %v2757_v27, %v2755_v26  ;;  %v2754_v32 = vld [vmem:[#allocation7 + $0xb40] sm:$0xff] }
 0x889   : > { %v3012_v27 = vld [vmem:[#allocation13 + $0x30] sm:$0xff] }
 0x88b   : > { %8305 = vmatpush1.bf16.msra.mxu1 %v8304_v34  ;;  %v8344_v34 = vpack.c.bf16 %v2740_v31, %v2738_v30  ;;  %v2759_v30 = vld [vmem:[#allocation7 + $0xb68] sm:$0xff]  ;;  %v2761_v31 = vld [vmem:[#allocation7 + $0xb78] sm:$0xff] }
 0x88c   : > { %8307 = vmatprep.subr.bf16.mxu1 %v8306_v38  ;;  %v8346_v38 = vpack.c.bf16 %v2745_v37, %v2743_v35  ;;  %v8362_v35 = vpack.c.bf16 %v2761_v31, %v2759_v30  ;;  %v2758_v37 = vld [vmem:[#allocation7 + $0xb60] sm:$0xff] }
 0x88d   : > { %v3108_v30 = vld [vmem:[#allocation13 + $0x330] sm:$0xff]  ;;  %v3109_v31 = vld [vmem:[#allocation13 + $0x338] sm:$0xff] }
 0x88f   : > { %8309 = vmatpush1.bf16.msra.mxu1 %v8308_v41  ;;  %v8348_v41 = vpack.c.bf16 %v2744_v40, %v2742_v39  ;;  %v2763_v39 = vld [vmem:[#allocation7 + $0xb88] sm:$0xff]  ;;  %v2765_v40 = vld [vmem:[#allocation7 + $0xb98] sm:$0xff] }
 0x890   : > { %8311 = vmatprep.subr.bf16.mxu1 %v8310_v45  ;;  %v3022_v45 = vld [vmem:[#allocation13 + $0x80] sm:$0xff]  ;;  %v8366_v42 = vpack.c.bf16 %v2765_v40, %v2763_v39 }
 0x891   : > { %v8382_v46 = vpack.c.bf16 %v3023_v49, %v3022_v45  ;;  %v2767_v45 = vld [vmem:[#allocation7 + $0xba8] sm:$0xff]  ;;  %v2769_v49 = vld [vmem:[#allocation7 + $0xbb8] sm:$0xff] }
 0x892   : > { %v3014_v40 = vld [vmem:[#allocation13 + $0x40] sm:$0xff] }
 0x893   : > { %8313 = vmatpush1.bf16.msra.mxu1 %v8312_v47  ;;  %v3007_v47 = vld [vmem:[#allocation13 + $0x8] sm:$0xff]  ;;  %8383 = vmatprep.subr.bf16.mxu0 %v8382_v46  ;;  %v8370_v46 = vpack.c.bf16 %v2769_v49, %v2767_v45  ;;  %v3110_v45 = vld [vmem:[#allocation13 + $0x340] sm:$0xff] }
 0x894   : > { %8315 = vmatprep.subr.bf16.mxu1 %v8314_v50  ;;  %v8384_v50 = vpack.c.bf16 %v3007_v47, %v3006_v48  ;;  %v2766_v47 = vld [vmem:[#allocation7 + $0xba0] sm:$0xff] }
 0x896   : > { %8385 = vmatpush3.bf16.msra.mxu0 %v8384_v50  ;;  %v2768_v50 = vld [vmem:[#allocation7 + $0xbb0] sm:$0xff] }
 0x897   : > { %8317 = vmatpush1.bf16.msra.mxu1 %v8316_v55  ;;  %v8386_v55 = vpack.c.bf16 %v3025_v52, %v3024_v51  ;;  %v2771_v51 = vld [vmem:[#allocation7 + $0xbc8] sm:$0xff]  ;;  %v2773_v52 = vld [vmem:[#allocation7 + $0xbd8] sm:$0xff] }
 0x898   : > { %8319 = vmatprep.subr.bf16.mxu1 %v8318_v56  ;;  %v8388_v56 = vpack.c.bf16 %v3009_v54, %v3008_v53  ;;  %v8372_v53 = vpack.c.bf16 %v2768_v50, %v2766_v47  ;;  %v8374_v54 = vpack.c.bf16 %v2773_v52, %v2771_v51  ;;  %v3032_v47 = vld [vmem:[#allocation13 + $0xd0] sm:$0xff]  ;;  %v3033_v50 = vld [vmem:[#allocation13 + $0xd8] sm:$0xff] }
 0x899   : > { %8387 = vmatprep.subr.bf16.mxu0 %v8386_v55  ;;  %v2770_v55 = vld [vmem:[#allocation7 + $0xbc0] sm:$0xff]  ;;  %v8402_v51 = vpack.c.bf16 %v3033_v50, %v3032_v47 }
 0x89a   : > { %8389 = vmatpush3.bf16.msra.mxu0 %v8388_v56  ;;  %v2772_v56 = vld [vmem:[#allocation7 + $0xbd0] sm:$0xff]  ;;  %v3016_v52 = vld [vmem:[#allocation13 + $0x50] sm:$0xff] }
 0x89b   : > { %8321 = vmatpush1.bf16.msra.mxu1 %v8320_v63  ;;  %v3011_v63 = vld [vmem:[#allocation13 + $0x28] sm:$0xff]  ;;  %8391 = vmatprep.subr.bf16.mxu0 %v8390_v59  ;;  %v8376_v59 = vpack.c.bf16 %v2772_v56, %v2770_v55  ;;  %v3128_v55 = vld [vmem:[#allocation13 + $0x3d0] sm:$0xff]  ;;  %v3129_v56 = vld [vmem:[#allocation13 + $0x3d8] sm:$0xff] }
 0x89c   : > { %8323 = vmatprep.subr.bf16.mxu1 %v8322_v2  ;;  %v8392_v2 = vpack.c.bf16 %v3011_v63, %v3010_v60  ;;  %v8378_v60 = vpack.c.bf16 %v2777_v58, %v2775_v57  ;;  %v2774_v63 = vld [vmem:[#allocation7 + $0xbe0] sm:$0xff]  ;;  %v8498_v58 = vpack.c.bf16 %v3129_v56, %v3128_v55 }
 0x89d   : > { %v3112_v57 = vld [vmem:[#allocation13 + $0x350] sm:$0xff] }
 0x89e   : > { %8393 = vmatpush3.bf16.msra.mxu0 %v8392_v2  ;;  %v2776_v2 = vld [vmem:[#allocation7 + $0xbf0] sm:$0xff] }
 0x89f   : > { %8325 = vmatpush1.bf16.msra.mxu1 %v8324_v5 }
 0x8a0   : > { %8327 = vmatprep.subr.bf16.mxu1 %v8326_v6 }
 0x8a3   : > { %8329 = vmatpush1.bf16.msra.mxu1 %v8328_v11 }
 0x8a4   : > { %8331 = vmatprep.subr.bf16.mxu1 %v8330_v12  ;;  %v2746_v12 = vld [vmem:[#allocation7 + $0xb00] sm:$0xff] }
 0x8a5   : > { %v8352_v20 = vpack.c.bf16 %v2748_v13, %v2746_v12  ;;  %v3104_v13 = vld [vmem:[#allocation13 + $0x310] sm:$0xff] }
 0x8a7   : > { %8333 = vmatpush1.bf16.msra.mxu1 %v8332_v17  ;;  %v2753_v17 = vld [vmem:[#allocation7 + $0xb38] sm:$0xff] }
 0x8a8   : > { %8335 = vmatprep.subr.bf16.mxu1 %v8334_v18  ;;  %v8354_v22 = vpack.c.bf16 %v2753_v17, %v2751_v16  ;;  %v3105_v16 = vld [vmem:[#allocation13 + $0x318] sm:$0xff] }
 0x8ab   : > { %8337 = vmatpush1.bf16.msra.mxu1 %v8336_v21 }
 0x8ac   : > { %8339 = vmatprep.subr.bf16.mxu1 %v8338_v24  ;;  %v2752_v24 = vld [vmem:[#allocation7 + $0xb30] sm:$0xff] }
 0x8af   : > { %8341 = vmatpush1.bf16.msra.mxu1 %v8340_v28  ;;  %v8356_v28 = vpack.c.bf16 %v2752_v24, %v2750_v23  ;;  %v3028_v23 = vld [vmem:[#allocation13 + $0xb0] sm:$0xff]  ;;  %v3029_v24 = vld [vmem:[#allocation13 + $0xb8] sm:$0xff] }
 0x8b0   : > { %8343 = vmatprep.subr.bf16.mxu1 %v8342_v33  ;;  %v2756_v33 = vld [vmem:[#allocation7 + $0xb50] sm:$0xff]  ;;  %v8394_v26 = vpack.c.bf16 %v3029_v24, %v3028_v23 }
 0x8b1   : > { %v3054_v23 = vld [vmem:[#allocation13 + $0x180] sm:$0xff]  ;;  %v3055_v24 = vld [vmem:[#allocation13 + $0x188] sm:$0xff] }
 0x8b2   : > { %8395 = vmatprep.subr.bf16.mxu0 %v8394_v26  ;;  %v8414_v26 = vpack.c.bf16 %v3055_v24, %v3054_v23  ;;  %v3065_v23 = vld [vmem:[#allocation13 + $0x1d8] sm:$0xff] }
 0x8b3   : > { %8345 = vmatpush1.bf16.msra.mxu1 %v8344_v34  ;;  %v8360_v34 = vpack.c.bf16 %v2756_v33, %v2754_v32  ;;  %v3125_v33 = vld [vmem:[#allocation13 + $0x3b8] sm:$0xff] }
 0x8b4   : > { %8347 = vmatprep.subr.bf16.mxu1 %v8346_v38  ;;  %v2760_v38 = vld [vmem:[#allocation7 + $0xb70] sm:$0xff] }
 0x8b7   : > { %8349 = vmatpush1.bf16.msra.mxu1 %v8348_v41  ;;  %v8364_v41 = vpack.c.bf16 %v2760_v38, %v2758_v37  ;;  %v3030_v37 = vld [vmem:[#allocation13 + $0xc0] sm:$0xff]  ;;  %v3031_v38 = vld [vmem:[#allocation13 + $0xc8] sm:$0xff] }
 0x8b8   : > { %8351 = vmatprep.subr.bf16.mxu1 %v8350_v44  ;;  %v2764_v44 = vld [vmem:[#allocation7 + $0xb90] sm:$0xff]  ;;  %v8398_v39 = vpack.c.bf16 %v3031_v38, %v3030_v37 }
 0x8b9   : > { %v8368_v48 = vpack.c.bf16 %v2764_v44, %v2762_v43  ;;  %v3126_v43 = vld [vmem:[#allocation13 + $0x3c0] sm:$0xff]  ;;  %v3127_v44 = vld [vmem:[#allocation13 + $0x3c8] sm:$0xff] }
 0x8ba   : > { %v8494_v49 = vpack.c.bf16 %v3127_v44, %v3126_v43 }
 0x92d   : > { %v6527_v61 = vpop.f32.mrb[8].mxu1 }
 0x92e   : > { %v6528_v62 = vpop.f32.mrb[9].mxu1 }
 0x92f   : > { %v6529_v3 = vadd.f32 %v6528_v62, %v6527_v61  ;;  %v3118_v61 = vld [vmem:[#allocation13 + $0x380] sm:$0xff]  ;;  %v3119_v62 = vld [vmem:[#allocation13 + $0x388] sm:$0xff] }
 0x931   : > { %v2601_v5 = vadd.f32 %v6529_v3, %v6269_v4  ;;  %v8380_v3 = vpack.c.bf16 %v2776_v2, %v2774_v63  ;;  %v8478_v4 = vpack.c.bf16 %v3119_v62, %v3118_v61  ;;  %v3034_v63 = vld [vmem:[#allocation13 + $0xe0] sm:$0xff]  ;;  %v3035_v2 = vld [vmem:[#allocation13 + $0xe8] sm:$0xff] }
 0x932   : > { %v8406_v61 = vpack.c.bf16 %v3035_v2, %v3034_v63  ;;  %v3018_v62 = vld [vmem:[#allocation13 + $0x60] sm:$0xff] }
 0x94d   : > { %v2670_v6 = vpop.f32.mrb[10].mxu1 }
 0x94e   : > { %v2671_v7 = vadd.f32 %v2670_v6, %v2601_v5  ;;  %v7458_v8 = vpop.f32.mrb[11].mxu1  ;;  %v3102_v5 = vld [vmem:[#allocation13 + $0x300] sm:$0xff]  ;;  %v3103_v6 = vld [vmem:[#allocation13 + $0x308] sm:$0xff] }
 0x950   : > { %v2674_v9 = vmax.f32 %v2671_v7, 0.0 }
 0x952   : > { %v2675_v10 = vmul.f32 %v2674_v9, %v10757_v25  ;;  %v3120_v9 = vld [vmem:[#allocation13 + $0x390] sm:$0xff] }
 0x954   : > { %v2677_v11 = vrot.slane %v2675_v10, 7  ;;  %v3121_v10 = vld [vmem:[#allocation13 + $0x398] sm:$0xff] }
 0x955   : > { %v8482_v12 = vpack.c.bf16 %v3121_v10, %v3120_v9 }
 0x956   : > { %v10865_v14 = vsel %vm1188_vm3, 0.0, %v2677_v11  ;;  %v10868_v15 = vsel %vm1188_vm3, %v2677_v11, 0.0 }
 0x957   : > { %v2780_v18 = vrot.slane %v10865_v14, 1  ;;  %v2781_v19 = vrot.slane %v10868_v15, 1  ;;  %v2784_v7 = vrot.slane %v10865_v14, 2  ;;  %v2785_v8 = vrot.slane %v10868_v15, 2  ;;  %v3106_v14 = vld [vmem:[#allocation13 + $0x320] sm:$0xff] }
 0x959   : > { %v2782_v21 = vsel %vm1021_vm1, %v2780_v18, %v2781_v19  ;;  %v2786_v17 = vsel %vm1026_vm2, %v2784_v7, %v2785_v8  ;;  %v3122_v18 = vld [vmem:[#allocation13 + $0x3a0] sm:$0xff]  ;;  %v3123_v19 = vld [vmem:[#allocation13 + $0x3a8] sm:$0xff] }
 0x95a   : > { %2852 = vmatprep.mubr.f32.mxu1 %v2782_v21  ;;  %v8486_v21 = vpack.c.bf16 %v3123_v19, %v3122_v18  ;;  %v3114_v7 = vld [vmem:[#allocation13 + $0x360] sm:$0xff]  ;;  %v3115_v8 = vld [vmem:[#allocation13 + $0x368] sm:$0xff]  ;;  %v3132_v18 = vld [vmem:[#allocation13 + $0x3f0] sm:$0xff] }
 0x95b   : > { %6273 = vmatmul.mubr.msk.f32.vlgmr.msra.gmra.mrb[12].mxu1 %vm10769_vm4, %v2677_v11  ;;  %v8480_v11 = vpack.c.bf16 %v3103_v6, %v3102_v5  ;;  %v3131_v6 = vld [vmem:[#allocation13 + $0x3e8] sm:$0xff]  ;;  %v8504_v10 = vpack.c.bf16 %v3115_v8, %v3114_v7  ;;  %v3042_v7 = vld [vmem:[#allocation13 + $0x120] sm:$0xff] }
 0x95c   : > { %8353 = vmatpush1.bf16.msra.mxu1 %v8352_v20  ;;  %2923 = vmatprep.mubr.f32.mxu1 %v10065_v1  ;;  %v8484_v20 = vpack.c.bf16 %v3105_v16, %v3104_v13  ;;  %v3020_v16 = vld [vmem:[#allocation13 + $0x70] sm:$0xff]  ;;  %v3043_v8 = vld [vmem:[#allocation13 + $0x128] sm:$0xff] }
 0x95d   : > { %8355 = vmatprep.subr.bf16.mxu1 %v8354_v22  ;;  %v3107_v22 = vld [vmem:[#allocation13 + $0x328] sm:$0xff] }
 0x95e   : > { %v8488_v15 = vpack.c.bf16 %v3107_v22, %v3106_v14  ;;  %v3117_v14 = vld [vmem:[#allocation13 + $0x378] sm:$0xff] }
 0x960   : > { %8357 = vmatpush1.bf16.msra.mxu1 %v8356_v28  ;;  %v3013_v28 = vld [vmem:[#allocation13 + $0x38] sm:$0xff] }
 0x961   : > { %8359 = vmatprep.subr.bf16.mxu1 %v8358_v29  ;;  %v3124_v29 = vld [vmem:[#allocation13 + $0x3b0] sm:$0xff]  ;;  %v8396_v32 = vpack.c.bf16 %v3013_v28, %v3012_v27  ;;  %v968_v27 = vld [vmem:[#allocation31 + $0x8] sm:$0x3] }
 0x962   : > { %3459 = vperm.xlu1 %9390, %v968_v27   ;;  %v3048_v27 = vld [vmem:[#allocation13 + $0x150] sm:$0xff] }
 0x963   : > { %8397 = vmatpush3.bf16.msra.mxu0 %v8396_v32  ;;  %v6274_v32 = vld [vmem:[#allocation8 + $0x3] ss:$0 sm:$0xff] }
 0x964   : > { %8361 = vmatpush1.bf16.msra.mxu1 %v8360_v34  ;;  %v8490_v34 = vpack.c.bf16 %v3125_v33, %v3124_v29  ;;  %8399 = vmatprep.subr.bf16.mxu0 %v8398_v39 }
 0x965   : > { %8363 = vmatprep.subr.bf16.mxu1 %v8362_v35  ;;  %v8492_v35 = vpack.c.bf16 %v3109_v31, %v3108_v30  ;;  %v6275_v31 = vld [vmem:[#allocation10 + $0x3] ss:$0 sm:$0xff] }
 0x968   : > { %8365 = vmatpush1.bf16.msra.mxu1 %v8364_v41  ;;  %v3015_v41 = vld [vmem:[#allocation13 + $0x48] sm:$0xff] }
 0x969   : > { %8367 = vmatprep.subr.bf16.mxu1 %v8366_v42  ;;  %v8400_v42 = vpack.c.bf16 %v3015_v41, %v3014_v40  ;;  %v3038_v40 = vld [vmem:[#allocation13 + $0x100] sm:$0xff]  ;;  %v3039_v41 = vld [vmem:[#allocation13 + $0x108] sm:$0xff] }
 0x96a   : > { %v8416_v43 = vpack.c.bf16 %v3039_v41, %v3038_v40  ;;  %v3052_v40 = vld [vmem:[#allocation13 + $0x170] sm:$0xff]  ;;  %v3053_v41 = vld [vmem:[#allocation13 + $0x178] sm:$0xff] }
 0x96b   : > { %8401 = vmatpush3.bf16.msra.mxu0 %v8400_v42 }
 0x96c   : > { %8369 = vmatpush1.bf16.msra.mxu1 %v8368_v48  ;;  %v3111_v48 = vld [vmem:[#allocation13 + $0x348] sm:$0xff]  ;;  %8403 = vmatprep.subr.bf16.mxu0 %v8402_v51 }
 0x96d   : > { %8371 = vmatprep.subr.bf16.mxu1 %v8370_v46  ;;  %v8496_v46 = vpack.c.bf16 %v3111_v48, %v3110_v45  ;;  %v3057_v48 = vld [vmem:[#allocation13 + $0x198] sm:$0xff] }
 0x970   : > { %8373 = vmatpush1.bf16.msra.mxu1 %v8372_v53  ;;  %v3017_v53 = vld [vmem:[#allocation13 + $0x58] sm:$0xff] }
 0x971   : > { %8375 = vmatprep.subr.bf16.mxu1 %v8374_v54  ;;  %v8404_v54 = vpack.c.bf16 %v3017_v53, %v3016_v52 }
 0x973   : > { %8405 = vmatpush3.bf16.msra.mxu0 %v8404_v54 }
 0x974   : > { %8377 = vmatpush1.bf16.msra.mxu1 %v8376_v59  ;;  %v3113_v59 = vld [vmem:[#allocation13 + $0x358] sm:$0xff]  ;;  %8407 = vmatprep.subr.bf16.mxu0 %v8406_v61  ;;  %v3058_v61 = vld [vmem:[#allocation13 + $0x1a0] sm:$0xff] }
 0x975   : > { %8379 = vmatprep.subr.bf16.mxu1 %v8378_v60  ;;  %v8500_v60 = vpack.c.bf16 %v3113_v59, %v3112_v57  ;;  %v3040_v59 = vld [vmem:[#allocation13 + $0x110] sm:$0xff] }
 0x978   : > { %8381 = vmatpush1.bf16.msra.mxu1 %v8380_v3  ;;  %v3019_v3 = vld [vmem:[#allocation13 + $0x68] sm:$0xff] }
 0x979   : > { %8479 = vmatprep.subr.bf16.mxu1 %v8478_v4  ;;  %v3130_v4 = vld [vmem:[#allocation13 + $0x3e0] sm:$0xff]  ;;  %v8408_v5 = vpack.c.bf16 %v3019_v3, %v3018_v62  ;;  %v3059_v62 = vld [vmem:[#allocation13 + $0x1a8] sm:$0xff] }
 0x97a   : > { %v8502_v9 = vpack.c.bf16 %v3131_v6, %v3130_v4  ;;  %v8422_v6 = vpack.c.bf16 %v3059_v62, %v3058_v61 }
 0x97b   : > { %2924 = vmatmul.mubr.f32.vlgmr.msra.gmra.mrb[12].mxu1 %v2786_v17  ;;  %8409 = vmatpush3.bf16.msra.mxu0 %v8408_v5  ;;  %v3021_v17 = vld [vmem:[#allocation13 + $0x78] sm:$0xff] }
 0x97c   : > { %8481 = vmatpush3.bf16.msra.mxu1 %v8480_v11  ;;  %v3036_v11 = vld [vmem:[#allocation13 + $0xf0] sm:$0xff]  ;;  %v8412_v19 = vpack.c.bf16 %v3021_v17, %v3020_v16  ;;  %v3045_v17 = vld [vmem:[#allocation13 + $0x138] sm:$0xff] }
 0x97d   : > { %8483 = vmatprep.subr.bf16.mxu1 %v8482_v12  ;;  %v3037_v12 = vld [vmem:[#allocation13 + $0xf8] sm:$0xff]  ;;  %v3044_v16 = vld [vmem:[#allocation13 + $0x130] sm:$0xff] }
 0x97e   : > { %v8410_v13 = vpack.c.bf16 %v3037_v12, %v3036_v11  ;;  %v8424_v12 = vpack.c.bf16 %v3043_v8, %v3042_v7  ;;  %v3093_v7 = vld [vmem:[#allocation13 + $0x2b8] sm:$0xff] }
 0x980   : > { %8485 = vmatpush3.bf16.msra.mxu1 %v8484_v20  ;;  %v3133_v20 = vld [vmem:[#allocation13 + $0x3f8] sm:$0xff]  ;;  %8411 = vmatprep.subr.bf16.mxu0 %v8410_v13 }
 0x981   : > { %8487 = vmatprep.subr.bf16.mxu1 %v8486_v21  ;;  %v3116_v21 = vld [vmem:[#allocation13 + $0x370] sm:$0xff]  ;;  %v8506_v22 = vpack.c.bf16 %v3133_v20, %v3132_v18  ;;  %8413 = vmatpush3.bf16.msra.mxu0 %v8412_v19  ;;  %v3062_v18 = vld [vmem:[#allocation13 + $0x1c0] sm:$0xff]  ;;  %v3063_v19 = vld [vmem:[#allocation13 + $0x1c8] sm:$0xff]  ;;  %v8428_v20 = vpack.c.bf16 %v3045_v17, %v3044_v16 }
 0x982   : > { %8415 = vmatprep.subr.bf16.mxu0 %v8414_v26  ;;  %v3078_v17 = vld [vmem:[#allocation13 + $0x240] sm:$0xff] }
 0x984   : > { %8489 = vmatpush3.bf16.msra.mxu1 %v8488_v15  ;;  %v8508_v15 = vpack.c.bf16 %v3117_v14, %v3116_v21  ;;  %v8430_v21 = vpack.c.bf16 %v3063_v19, %v3062_v18  ;;  %v3046_v14 = vld [vmem:[#allocation13 + $0x140] sm:$0xff]  ;;  %v3079_v18 = vld [vmem:[#allocation13 + $0x248] sm:$0xff]  ;;  %v3096_v19 = vld [vmem:[#allocation13 + $0x2d0] sm:$0xff] }
 0x985   : > { %8491 = vmatprep.subr.bf16.mxu1 %v8490_v34 }
 0x988   : > { %8493 = vmatpush3.bf16.msra.mxu1 %v8492_v35  ;;  %v6276_v35 = vld [vmem:[#allocation11 + $0x3] ss:$0 sm:$0xff] }
 0x989   : > { %8495 = vmatprep.subr.bf16.mxu1 %v8494_v49  ;;  %v3056_v49 = vld [vmem:[#allocation13 + $0x190] sm:$0xff] }
 0x98c   : > { %8497 = vmatpush3.bf16.msra.mxu1 %v8496_v46 }
 0x98d   : > { %8499 = vmatprep.subr.bf16.mxu1 %v8498_v58  ;;  %v8418_v58 = vpack.c.bf16 %v3057_v48, %v3056_v49  ;;  %v8444_v49 = vpack.c.bf16 %v3053_v41, %v3052_v40  ;;  %v3540_v40 = vld [vmem:[#allocation16 + $0x180] sm:$0xff] }
 0x990   : > { %8501 = vmatpush3.bf16.msra.mxu1 %v8500_v60  ;;  %v3041_v60 = vld [vmem:[#allocation13 + $0x118] sm:$0xff] }
 0x991   : > { %8503 = vmatprep.subr.bf16.mxu1 %v8502_v9  ;;  %v8420_v5 = vpack.c.bf16 %v3041_v60, %v3040_v59  ;;  %v3060_v9 = vld [vmem:[#allocation13 + $0x1b0] sm:$0xff]  ;;  %v3090_v59 = vld [vmem:[#allocation13 + $0x2a0] sm:$0xff]  ;;  %v3091_v60 = vld [vmem:[#allocation13 + $0x2a8] sm:$0xff] }
 0x994   : > { %8505 = vmatpush3.bf16.msra.mxu1 %v8504_v10  ;;  %v3061_v10 = vld [vmem:[#allocation13 + $0x1b8] sm:$0xff] }
 0x995   : > { %8507 = vmatprep.subr.bf16.mxu1 %v8506_v22  ;;  %v8426_v13 = vpack.c.bf16 %v3061_v10, %v3060_v9  ;;  %v3047_v22 = vld [vmem:[#allocation13 + $0x148] sm:$0xff]  ;;  %v3076_v9 = vld [vmem:[#allocation13 + $0x230] sm:$0xff]  ;;  %v3077_v10 = vld [vmem:[#allocation13 + $0x238] sm:$0xff] }
 0x996   : > { %v8432_v24 = vpack.c.bf16 %v3047_v22, %v3046_v14  ;;  %v3080_v22 = vld [vmem:[#allocation13 + $0x250] sm:$0xff] }
 0x998   : > { %8509 = vmatpush3.bf16.msra.mxu1 %v8508_v15  ;;  %v3064_v15 = vld [vmem:[#allocation13 + $0x1d0] sm:$0xff] }
 0x999   : > { %v8434_v26 = vpack.c.bf16 %v3065_v23, %v3064_v15  ;;  %v3081_v15 = vld [vmem:[#allocation13 + $0x258] sm:$0xff]  ;;  %v3098_v23 = vld [vmem:[#allocation13 + $0x2e0] sm:$0xff] }
 0xa4e   : > { %v2925_v28 = vpop.f32.mrb[12].mxu1 }
 0xa4f   : > { %v2927_v29 = vpop.f32.mrb[13].mxu1 }
 0xa50   : > { %v2930_v33 = vmax.f32 %v2925_v28, %v2927_v29  ;;  %v3049_v28 = vld [vmem:[#allocation13 + $0x158] sm:$0xff]  ;;  %v3066_v29 = vld [vmem:[#allocation13 + $0x1e0] sm:$0xff] }
 0xa52   : > { %v2939_v30 = vadd.f32 %v6274_v32, %v2930_v33  ;;  %v3067_v32 = vld [vmem:[#allocation13 + $0x1e8] sm:$0xff]  ;;  %v8436_v33 = vpack.c.bf16 %v3049_v28, %v3048_v27  ;;  %v3082_v28 = vld [vmem:[#allocation13 + $0x260] sm:$0xff] }
 0xa54   : > { %v2940_v34 = vmax.f32 %v2939_v30, 0.0  ;;  %v8438_v30 = vpack.c.bf16 %v3067_v32, %v3066_v29  ;;  %v3083_v29 = vld [vmem:[#allocation13 + $0x268] sm:$0xff]  ;;  %v3100_v32 = vld [vmem:[#allocation13 + $0x2f0] sm:$0xff] }
 0xa56   : > { %v2949_v37 = vmul.f32 %v6275_v31, %v2940_v34  ;;  %v3050_v31 = vld [vmem:[#allocation13 + $0x160] sm:$0xff]  ;;  %v3051_v34 = vld [vmem:[#allocation13 + $0x168] sm:$0xff] }
 0xa58   : > { %v2958_v38 = vadd.f32 %v6276_v35, %v2949_v37  ;;  %v3068_v35 = vld [vmem:[#allocation13 + $0x1f0] sm:$0xff]  ;;  %v3069_v37 = vld [vmem:[#allocation13 + $0x1f8] sm:$0xff] }
 0xa5a   : > { %v2959_v39 = vmul.f32 %v2958_v38, %v10757_v25  ;;  %v8440_v38 = vpack.c.bf16 %v3051_v34, %v3050_v31  ;;  %v3084_v34 = vld [vmem:[#allocation13 + $0x270] sm:$0xff] }
 0xa5c   : > { %v2961_v42 = vrot.slane %v2959_v39, 7  ;;  %v8442_v39 = vpack.c.bf16 %v3069_v37, %v3068_v35  ;;  %v3085_v35 = vld [vmem:[#allocation13 + $0x278] sm:$0xff] }
 0xa5d   : > { %v8476_v37 = vpack.c.bf16 %v3085_v35, %v3084_v34  ;;  %v3532_v34 = vld [vmem:[#allocation16 + $0x140] sm:$0xff]  ;;  %v3533_v35 = vld [vmem:[#allocation16 + $0x148] sm:$0xff] }
 0xa5e   : > { %v10881_v44 = vsel %vm1188_vm3, 0.0, %v2961_v42  ;;  %v10884_v45 = vsel %vm1188_vm3, %v2961_v42, 0.0 }
 0xa5f   : > { %v2967_v46 = vrot.slane %v10881_v44, 1  ;;  %v2968_v47 = vrot.slane %v10884_v45, 1  ;;  %v3001_v50 = vrot.slane %v10881_v44, 7  ;;  %v3002_v51 = vrot.slane %v10884_v45, 7 }
 0xa60   : > { %v2984_v52 = vrot.slane %v10881_v44, 4  ;;  %v2985_v53 = vrot.slane %v10884_v45, 4  ;;  %v2996_v54 = vrot.slane %v10881_v44, 6  ;;  %v2997_v55 = vrot.slane %v10884_v45, 6 }
 0xa61   : > { %v2969_v56 = vsel %vm1021_vm1, %v2967_v46, %v2968_v47  ;;  %v3003_v57 = vsel %vm1188_vm3, %v3001_v50, %v3002_v51  ;;  %v2978_v3 = vrot.slane %v10881_v44, 3  ;;  %v2979_v4 = vrot.slane %v10884_v45, 3  ;;  %v3070_v46 = vld [vmem:[#allocation13 + $0x200] sm:$0xff] }
 0xa62   : > { %3205 = vmatprep.mubr.f32.mxu0 %v2969_v56  ;;  %6285 = vmatprep.mubr.msk.f32.mxu1 %vm2989_vm5, %v3003_v57  ;;  %v10898_v63 = vsel %vm2983_vm6, %v2984_v52, %v2985_v53  ;;  %v2998_v2 = vsel %vm2995_vm7, %v2996_v54, %v2997_v55  ;;  %v2973_v50 = vrot.slane %v10881_v44, 2  ;;  %v2974_v51 = vrot.slane %v10884_v45, 2  ;;  %v3088_v52 = vld [vmem:[#allocation13 + $0x290] sm:$0xff]  ;;  %v3089_v53 = vld [vmem:[#allocation13 + $0x298] sm:$0xff] }
 0xa63   : > { %6279 = vmatmul.mubr.msk.f32.vlgmr.msra.gmra.mrb[10].mxu0 %vm10769_vm4, %v2961_v42  ;;  %6286 = vmatmul.mubr.msk.f32.vlgmr.msra.gmra.mrb[14].mxu1 %vm2983_vm6, %v2998_v2  ;;  %v2980_v11 = vsel %vm2977_vm8, %v2978_v3, %v2979_v4  ;;  %v8450_v55 = vpack.c.bf16 %v3089_v53, %v3088_v52  ;;  %v3072_v56 = vld [vmem:[#allocation13 + $0x210] sm:$0xff]  ;;  %v3073_v57 = vld [vmem:[#allocation13 + $0x218] sm:$0xff]  ;;  %v2990_v2 = vrot.slane %v10881_v44, 5  ;;  %v2991_v61 = vrot.slane %v10884_v45, 5  ;;  %v3074_v4 = vld [vmem:[#allocation13 + $0x220] sm:$0xff] }
 0xa64   : > { %8417 = vmatpush3.bf16.msra.mxu0 %v8416_v43  ;;  %6280 = vmatprep.mubr.msk.f32.mxu0 %vm1188_vm3, %v2968_v47  ;;  %v3087_v43 = vld [vmem:[#allocation13 + $0x288] sm:$0xff]  ;;  %v8452_v62 = vpack.c.bf16 %v3073_v57, %v3072_v56  ;;  %v8454_v3 = vpack.c.bf16 %v3091_v60, %v3090_v59  ;;  %v3511_v52 = vld [vmem:[#allocation16 + $0x98] sm:$0xff]  ;;  %v3542_v53 = vld [vmem:[#allocation16 + $0x190] sm:$0xff] }
 0xa65   : > { %8419 = vmatprep.subr.bf16.mxu0 %v8418_v58  ;;  %3435 = vmatprep.mubr.f32.mxu1 %v10065_v1  ;;  %v3071_v47 = vld [vmem:[#allocation13 + $0x208] sm:$0xff]  ;;  %v2975_v58 = vsel %vm1026_vm2, %v2973_v50, %v2974_v51  ;;  %v2992_v8 = vsel %vm2989_vm5, %v2990_v2, %v2991_v61  ;;  %v3494_v56 = vld [vmem:[#allocation16 + $0x10] sm:$0xff]  ;;  %v3495_v57 = vld [vmem:[#allocation16 + $0x18] sm:$0xff] }
 0xa66   : > { %v8448_v54 = vpack.c.bf16 %v3071_v47, %v3070_v46  ;;  %v3524_v47 = vld [vmem:[#allocation16 + $0x100] sm:$0xff]  ;;  %v3525_v50 = vld [vmem:[#allocation16 + $0x108] sm:$0xff]  ;;  %v8516_v59 = vpack.c.bf16 %v3495_v57, %v3494_v56  ;;  %v3526_v60 = vld [vmem:[#allocation16 + $0x110] sm:$0xff] }
 0xa67   : > { %6281 = vmatmul.mubr.msk.f32.gmra.mrb[12].mxu0 %vm1188_vm3, %v2961_v42  ;;  %3436 = vmatmul.mubr.f32.gmra.mrb[16].mxu1 %v10065_v1  ;;  %v3086_v42 = vld [vmem:[#allocation13 + $0x280] sm:$0xff]  ;;  %v8544_v51 = vpack.c.bf16 %v3525_v50, %v3524_v47  ;;  %v3534_v47 = vld [vmem:[#allocation16 + $0x150] sm:$0xff]  ;;  %v3505_v57 = vld [vmem:[#allocation16 + $0x68] sm:$0xff] }
 0xa68   : > { %8421 = vmatpush3.bf16.msra.mxu0 %v8420_v5  ;;  %6282 = vmatprep.mubr.msk.f32.mxu0 %vm1021_vm1, %v2980_v11  ;;  %v8446_v48 = vpack.c.bf16 %v3087_v43, %v3086_v42  ;;  %v3075_v5 = vld [vmem:[#allocation13 + $0x228] sm:$0xff]  ;;  %v3094_v11 = vld [vmem:[#allocation13 + $0x2c0] sm:$0xff] }
 0xa69   : > { %8423 = vmatprep.subr.bf16.mxu0 %v8422_v6  ;;  %v3092_v6 = vld [vmem:[#allocation13 + $0x2b0] sm:$0xff]  ;;  %v8456_v44 = vpack.c.bf16 %v3075_v5, %v3074_v4  ;;  %v3492_v43 = vld [vmem:[#allocation16] sm:$0xff]  ;;  %v3527_v2 = vld [vmem:[#allocation16 + $0x118] sm:$0xff] }
 0xa6a   : > { %v8458_v45 = vpack.c.bf16 %v3093_v7, %v3092_v6  ;;  %v3541_v42 = vld [vmem:[#allocation16 + $0x188] sm:$0xff]  ;;  %v8548_v61 = vpack.c.bf16 %v3527_v2, %v3526_v60  ;;  %v3544_v4 = vld [vmem:[#allocation16 + $0x1a0] sm:$0xff]  ;;  %v3535_v50 = vld [vmem:[#allocation16 + $0x158] sm:$0xff] }
 0xa6b   : > { %v3545_v6 = vld [vmem:[#allocation16 + $0x1a8] sm:$0xff]  ;;  %v3496_v7 = vld [vmem:[#allocation16 + $0x20] sm:$0xff] }
 0xa6c   : > { %8425 = vmatpush3.bf16.msra.mxu0 %v8424_v12  ;;  %v3095_v12 = vld [vmem:[#allocation13 + $0x2c8] sm:$0xff] }
 0xa6d   : > { %8427 = vmatprep.subr.bf16.mxu0 %v8426_v13  ;;  %v8460_v13 = vpack.c.bf16 %v3077_v10, %v3076_v9  ;;  %v8462_v16 = vpack.c.bf16 %v3095_v12, %v3094_v11  ;;  %v3528_v9 = vld [vmem:[#allocation16 + $0x120] sm:$0xff]  ;;  %v3529_v10 = vld [vmem:[#allocation16 + $0x128] sm:$0xff]  ;;  %v3514_v12 = vld [vmem:[#allocation16 + $0xb0] sm:$0xff] }
 0xa6e   : > { %v8552_v11 = vpack.c.bf16 %v3529_v10, %v3528_v9  ;;  %v3504_v56 = vld [vmem:[#allocation16 + $0x60] sm:$0xff]  ;;  %v3537_v2 = vld [vmem:[#allocation16 + $0x168] sm:$0xff]  ;;  %v3538_v9 = vld [vmem:[#allocation16 + $0x170] sm:$0xff] }
 0xa6f   : > { %v3536_v60 = vld [vmem:[#allocation16 + $0x160] sm:$0xff]  ;;  %v3539_v10 = vld [vmem:[#allocation16 + $0x178] sm:$0xff] }
 0xa70   : > { %8429 = vmatpush3.bf16.msra.mxu0 %v8428_v20  ;;  %v3097_v20 = vld [vmem:[#allocation13 + $0x2d8] sm:$0xff] }
 0xa71   : > { %8431 = vmatprep.subr.bf16.mxu0 %v8430_v21  ;;  %v8464_v21 = vpack.c.bf16 %v3079_v18, %v3078_v17  ;;  %v8466_v14 = vpack.c.bf16 %v3097_v20, %v3096_v19  ;;  %v3547_v18 = vld [vmem:[#allocation16 + $0x1b8] sm:$0xff]  ;;  %v3498_v19 = vld [vmem:[#allocation16 + $0x30] sm:$0xff] }
 0xa72   : > { %v3499_v20 = vld [vmem:[#allocation16 + $0x38] sm:$0xff] }
 0xa74   : > { %8433 = vmatpush3.bf16.msra.mxu0 %v8432_v24  ;;  %v3099_v24 = vld [vmem:[#allocation13 + $0x2e8] sm:$0xff] }
 0xa75   : > { %8435 = vmatprep.subr.bf16.mxu0 %v8434_v26  ;;  %v8468_v26 = vpack.c.bf16 %v3081_v15, %v3080_v22  ;;  %v8470_v27 = vpack.c.bf16 %v3099_v24, %v3098_v23  ;;  %v3530_v22 = vld [vmem:[#allocation16 + $0x130] sm:$0xff]  ;;  %v3531_v15 = vld [vmem:[#allocation16 + $0x138] sm:$0xff]  ;;  %v3516_v24 = vld [vmem:[#allocation16 + $0xc0] sm:$0xff] }
 0xa76   : > { %v8556_v23 = vpack.c.bf16 %v3531_v15, %v3530_v22 }
 0xa78   : > { %8437 = vmatpush3.bf16.msra.mxu0 %v8436_v33  ;;  %v3101_v33 = vld [vmem:[#allocation13 + $0x2f8] sm:$0xff] }
 0xa79   : > { %8439 = vmatprep.subr.bf16.mxu0 %v8438_v30  ;;  %v8472_v30 = vpack.c.bf16 %v3083_v29, %v3082_v28  ;;  %v8474_v31 = vpack.c.bf16 %v3101_v33, %v3100_v32  ;;  %v3549_v29 = vld [vmem:[#allocation16 + $0x1c8] sm:$0xff]  ;;  %v3500_v32 = vld [vmem:[#allocation16 + $0x40] sm:$0xff] }
 0xa7a   : > { %v3501_v33 = vld [vmem:[#allocation16 + $0x48] sm:$0xff] }
 0xa7c   : > { %8441 = vmatpush3.bf16.msra.mxu0 %v8440_v38  ;;  %v3508_v38 = vld [vmem:[#allocation16 + $0x80] sm:$0xff] }
 0xa7d   : > { %8443 = vmatprep.subr.bf16.mxu0 %v8442_v39  ;;  %v3509_v39 = vld [vmem:[#allocation16 + $0x88] sm:$0xff] }
 0xa7e   : > { %v8510_v41 = vpack.c.bf16 %v3509_v39, %v3508_v38  ;;  %v3518_v38 = vld [vmem:[#allocation16 + $0xd0] sm:$0xff]  ;;  %v3519_v39 = vld [vmem:[#allocation16 + $0xd8] sm:$0xff] }
 0xa80   : > { %8445 = vmatpush3.bf16.msra.mxu0 %v8444_v49  ;;  %v3493_v49 = vld [vmem:[#allocation16 + $0x8] sm:$0xff] }
 0xa81   : > { %8447 = vmatprep.subr.bf16.mxu0 %v8446_v48  ;;  %v8542_v48 = vpack.c.bf16 %v3541_v42, %v3540_v40  ;;  %v8512_v46 = vpack.c.bf16 %v3493_v49, %v3492_v43  ;;  %v3550_v40 = vld [vmem:[#allocation16 + $0x1d0] sm:$0xff]  ;;  %v3551_v42 = vld [vmem:[#allocation16 + $0x1d8] sm:$0xff] }
 0xa82   : > { %v3502_v43 = vld [vmem:[#allocation16 + $0x50] sm:$0xff]  ;;  %v3503_v49 = vld [vmem:[#allocation16 + $0x58] sm:$0xff] }
 0xa83   : > { %3281 = vmatmul.mubr.f32.vlgmr.msra.gmra.mrb[14].mxu0 %v2975_v58  ;;  %8543 = vmatprep.subr.bf16.mxu1 %v8542_v48  ;;  %v8562_v48 = vpack.c.bf16 %v3551_v42, %v3550_v40 }
 0xa84   : > { %8449 = vmatpush3.bf16.msra.mxu0 %v8448_v54  ;;  %3285 = vmatprep.mubr.f32.mxu0 %v10065_v1 }
 0xa85   : > { %8451 = vmatprep.subr.bf16.mxu0 %v8450_v55  ;;  %8545 = vmatpush3.bf16.msra.mxu1 %v8544_v51  ;;  %v3543_v55 = vld [vmem:[#allocation16 + $0x198] sm:$0xff]  ;;  %v8564_v51 = vpack.c.bf16 %v3535_v50, %v3534_v47 }
 0xa86   : > { %v8546_v58 = vpack.c.bf16 %v3543_v55, %v3542_v53  ;;  %v3552_v53 = vld [vmem:[#allocation16 + $0x1e0] sm:$0xff]  ;;  %v3553_v55 = vld [vmem:[#allocation16 + $0x1e8] sm:$0xff] }
 0xa87   : > { %3286 = vmatmul.mubr.f32.gmra.mrb[16].mxu0 %v10065_v1 }
 0xa88   : > { %8453 = vmatpush3.bf16.msra.mxu0 %v8452_v62  ;;  %6283 = vmatprep.mubr.msk.f32.mxu0 %vm2977_vm8, %v2992_v8  ;;  %v3512_v62 = vld [vmem:[#allocation16 + $0xa0] sm:$0xff]  ;;  %v3497_v8 = vld [vmem:[#allocation16 + $0x28] sm:$0xff] }
 0xa89   : > { %8455 = vmatprep.subr.bf16.mxu0 %v8454_v3  ;;  %8547 = vmatprep.subr.bf16.mxu1 %v8546_v58  ;;  %v3513_v3 = vld [vmem:[#allocation16 + $0xa8] sm:$0xff]  ;;  %v8566_v58 = vpack.c.bf16 %v3553_v55, %v3552_v53 }
 0xa8a   : > { %8549 = vmatpush3.bf16.msra.mxu1 %v8548_v61  ;;  %v8518_v5 = vpack.c.bf16 %v3513_v3, %v3512_v62  ;;  %v8568_v61 = vpack.c.bf16 %v3537_v2, %v3536_v60  ;;  %v3522_v62 = vld [vmem:[#allocation16 + $0xf0] sm:$0xff]  ;;  %v3523_v3 = vld [vmem:[#allocation16 + $0xf8] sm:$0xff] }
 0xa8c   : > { %8457 = vmatpush3.bf16.msra.mxu0 %v8456_v44  ;;  %v8550_v44 = vpack.c.bf16 %v3545_v6, %v3544_v4  ;;  %v3554_v4 = vld [vmem:[#allocation16 + $0x1f0] sm:$0xff]  ;;  %v3555_v6 = vld [vmem:[#allocation16 + $0x1f8] sm:$0xff] }
 0xa8d   : > { %8459 = vmatprep.subr.bf16.mxu0 %v8458_v45  ;;  %v8520_v45 = vpack.c.bf16 %v3497_v8, %v3496_v7  ;;  %v3506_v7 = vld [vmem:[#allocation16 + $0x70] sm:$0xff]  ;;  %v3507_v8 = vld [vmem:[#allocation16 + $0x78] sm:$0xff] }
 0xa8e   : > { %8551 = vmatprep.subr.bf16.mxu1 %v8550_v44  ;;  %v8570_v44 = vpack.c.bf16 %v3555_v6, %v3554_v4  ;;  %v3455_v4 = vpop.permute.xlu0 %3454  ;;  %v3589_v6 = vld [vmem:[#allocation16 + $0x308] sm:$0xff] }
 0xa8f   : > { %8553 = vmatpush3.bf16.msra.mxu1 %v8552_v11  ;;  %v8572_v11 = vpack.c.bf16 %v3539_v10, %v3538_v9  ;;  %v3583_v9 = vld [vmem:[#allocation16 + $0x2d8] sm:$0xff] }
 0xa90   : > { %8461 = vmatpush3.bf16.msra.mxu0 %v8460_v13  ;;  %v3515_v13 = vld [vmem:[#allocation16 + $0xb8] sm:$0xff] }
 0xa91   : > { %8463 = vmatprep.subr.bf16.mxu0 %v8462_v16  ;;  %v3546_v16 = vld [vmem:[#allocation16 + $0x1b0] sm:$0xff]  ;;  %v8522_v17 = vpack.c.bf16 %v3515_v13, %v3514_v12  ;;  %v3572_v12 = vld [vmem:[#allocation16 + $0x280] sm:$0xff]  ;;  %v3573_v13 = vld [vmem:[#allocation16 + $0x288] sm:$0xff] }
 0xa94   : > { %8465 = vmatpush3.bf16.msra.mxu0 %v8464_v21  ;;  %v8554_v21 = vpack.c.bf16 %v3547_v18, %v3546_v16  ;;  %v3604_v16 = vld [vmem:[#allocation16 + $0x380] sm:$0xff]  ;;  %v3605_v18 = vld [vmem:[#allocation16 + $0x388] sm:$0xff] }
 0xa95   : > { %8467 = vmatprep.subr.bf16.mxu0 %v8466_v14  ;;  %v8524_v14 = vpack.c.bf16 %v3499_v20, %v3498_v19  ;;  %v8606_v19 = vpack.c.bf16 %v3605_v18, %v3604_v16 }
 0xa96   : > { %8555 = vmatprep.subr.bf16.mxu1 %v8554_v21 }
 0xa97   : > { %8557 = vmatpush3.bf16.msra.mxu1 %v8556_v23 }
 0xa98   : > { %8469 = vmatpush3.bf16.msra.mxu0 %v8468_v26  ;;  %v3517_v26 = vld [vmem:[#allocation16 + $0xc8] sm:$0xff] }
 0xa99   : > { %8471 = vmatprep.subr.bf16.mxu0 %v8470_v27  ;;  %v3548_v27 = vld [vmem:[#allocation16 + $0x1c0] sm:$0xff]  ;;  %v8526_v28 = vpack.c.bf16 %v3517_v26, %v3516_v24 }
 0xa9c   : > { %8473 = vmatpush3.bf16.msra.mxu0 %v8472_v30  ;;  %v8558_v30 = vpack.c.bf16 %v3549_v29, %v3548_v27 }
 0xa9d   : > { %8475 = vmatprep.subr.bf16.mxu0 %v8474_v31  ;;  %v8528_v31 = vpack.c.bf16 %v3501_v33, %v3500_v32  ;;  %v6277_v33 = vld [vmem:[#allocation14] ss:$0 sm:$0xff] }
 0xa9e   : > { %8559 = vmatprep.subr.bf16.mxu1 %v8558_v30 }
 0xaa0   : > { %8477 = vmatpush3.bf16.msra.mxu0 %v8476_v37  ;;  %v8560_v37 = vpack.c.bf16 %v3533_v35, %v3532_v34 }
 0xaa1   : > { %8511 = vmatprep.subr.bf16.mxu0 %v8510_v41  ;;  %v8530_v41 = vpack.c.bf16 %v3519_v39, %v3518_v38 }
 0xaa2   : > { %8561 = vmatpush3.bf16.msra.mxu1 %v8560_v37 }
 0xaa3   : > { %6284 = vmatmul.mubr.msk.f32.vlgmr.msra.gmra.mrb[18].mxu0 %vm1026_vm2, %v10898_v63  ;;  %v3510_v63 = vld [vmem:[#allocation16 + $0x90] sm:$0xff]  ;;  %8563 = vmatprep.subr.bf16.mxu1 %v8562_v48 }
 0xaa4   : > { %3360 = vmatprep.mubr.f32.mxu0 %v10065_v1  ;;  %8513 = vmatpush3.bf16.msra.mxu0 %v8512_v46  ;;  %v8514_v54 = vpack.c.bf16 %v3511_v52, %v3510_v63  ;;  %v8532_v46 = vpack.c.bf16 %v3503_v49, %v3502_v43  ;;  %v3520_v63 = vld [vmem:[#allocation16 + $0xe0] sm:$0xff]  ;;  %v3521_v52 = vld [vmem:[#allocation16 + $0xe8] sm:$0xff] }
 0xaa6   : > { %8515 = vmatprep.subr.bf16.mxu0 %v8514_v54  ;;  %8565 = vmatpush3.bf16.msra.mxu1 %v8564_v51  ;;  %v8534_v54 = vpack.c.bf16 %v3521_v52, %v3520_v63 }
 0xaa7   : > { %3361 = vmatmul.mubr.f32.gmra.mrb[20].mxu0 %v10065_v1  ;;  %8567 = vmatprep.subr.bf16.mxu1 %v8566_v58 }
 0xaa8   : > { %8517 = vmatpush3.bf16.msra.mxu0 %v8516_v59  ;;  %v8536_v59 = vpack.c.bf16 %v3505_v57, %v3504_v56 }
 0xaa9   : > { %8519 = vmatprep.subr.bf16.mxu0 %v8518_v5  ;;  %v8538_v5 = vpack.c.bf16 %v3523_v3, %v3522_v62  ;;  %v3557_v62 = vld [vmem:[#allocation16 + $0x208] sm:$0xff] }
 0xaaa   : > { %8569 = vmatpush3.bf16.msra.mxu1 %v8568_v61  ;;  %v3556_v61 = vld [vmem:[#allocation16 + $0x200] sm:$0xff] }
 0xaab   : > { %8571 = vmatprep.subr.bf16.mxu1 %v8570_v44  ;;  %v3575_v44 = vld [vmem:[#allocation16 + $0x298] sm:$0xff]  ;;  %v8576_v10 = vpack.c.bf16 %v3557_v62, %v3556_v61 }
 0xaac   : > { %8521 = vmatpush3.bf16.msra.mxu0 %v8520_v45  ;;  %v8540_v45 = vpack.c.bf16 %v3507_v8, %v3506_v7  ;;  %v3574_v8 = vld [vmem:[#allocation16 + $0x290] sm:$0xff] }
 0xaad   : > { %8523 = vmatprep.subr.bf16.mxu0 %v8522_v17  ;;  %v8574_v17 = vpack.c.bf16 %v3573_v13, %v3572_v12  ;;  %v3607_v12 = vld [vmem:[#allocation16 + $0x398] sm:$0xff] }
 0xaae   : > { %8573 = vmatpush3.bf16.msra.mxu1 %v8572_v11  ;;  %v3606_v11 = vld [vmem:[#allocation16 + $0x390] sm:$0xff] }
 0xaaf   : > { %8607 = vmatprep.subr.bf16.mxu1 %v8606_v19  ;;  %v3558_v19 = vld [vmem:[#allocation16 + $0x210] sm:$0xff] }
 0xab0   : > { %8525 = vmatpush3.bf16.msra.mxu0 %v8524_v14 }
 0xab1   : > { %8527 = vmatprep.subr.bf16.mxu0 %v8526_v28 }
 0xab4   : > { %8529 = vmatpush3.bf16.msra.mxu0 %v8528_v31 }
 0xab5   : > { %8531 = vmatprep.subr.bf16.mxu0 %v8530_v41 }
 0xab8   : > { %8533 = vmatpush3.bf16.msra.mxu0 %v8532_v46 }
 0xab9   : > { %8535 = vmatprep.subr.bf16.mxu0 %v8534_v54 }
 0xabc   : > { %8537 = vmatpush3.bf16.msra.mxu0 %v8536_v59 }
 0xabd   : > { %8539 = vmatprep.subr.bf16.mxu0 %v8538_v5  ;;  %v3588_v5 = vld [vmem:[#allocation16 + $0x300] sm:$0xff] }
 0xabe   : > { %v8608_v18 = vpack.c.bf16 %v3589_v6, %v3588_v5 }
 0xac0   : > { %8541 = vmatpush3.bf16.msra.mxu0 %v8540_v45  ;;  %v3460_v45 = vpop.permute.xlu1 %3459 }
 0xac1   : > { %8575 = vmatprep.subr.bf16.mxu0 %v8574_v17 }
 0xb36   : > { %v6579_v20 = vpop.f32.mrb[10].mxu0  ;;  %v6693_v21 = vpop.f32.mrb[14].mxu1 }
 0xb37   : > { %v6580_v14 = vpop.f32.mrb[11].mxu0  ;;  %v6694_v22 = vpop.f32.mrb[15].mxu1 }
 0xb38   : > { %v6581_v15 = vadd.f32 %v6580_v14, %v6579_v20  ;;  %v6695_v23 = vadd.f32 %v6694_v22, %v6693_v21  ;;  %v8578_v21 = vpack.c.bf16 %v3575_v44, %v3574_v8  ;;  %v3559_v14 = vld [vmem:[#allocation16 + $0x218] sm:$0xff]  ;;  %v3590_v22 = vld [vmem:[#allocation16 + $0x310] sm:$0xff]  ;;  %v3596_v8 = vld [vmem:[#allocation16 + $0x340] sm:$0xff] }
 0xb39   : > { %v3597_v44 = vld [vmem:[#allocation16 + $0x348] sm:$0xff] }
 0xb3a   : > { %v6582_v24 = vpop.f32.mrb[12].mxu0  ;;  %v6696_v26 = vpop.f32.mrb[16].mxu1  ;;  %v3208_v34 = vadd.f32 %v6581_v15, %v6277_v33  ;;  %v3591_v15 = vld [vmem:[#allocation16 + $0x318] sm:$0xff] }
 0xb3b   : > { %v6583_v27 = vpop.f32.mrb[13].mxu0  ;;  %v6697_v28 = vpop.f32.mrb[17].mxu1 }
 0xb3c   : > { %v6584_v29 = vadd.f32 %v6583_v27, %v6582_v24  ;;  %v6698_v32 = vadd.f32 %v6697_v28, %v6696_v26  ;;  %v8610_v24 = vpack.c.bf16 %v3607_v12, %v3606_v11  ;;  %v3576_v27 = vld [vmem:[#allocation16 + $0x2a0] sm:$0xff]  ;;  %v3577_v28 = vld [vmem:[#allocation16 + $0x2a8] sm:$0xff]  ;;  %v3615_v11 = vld [vmem:[#allocation16 + $0x3d8] sm:$0xff] }
 0xb3e   : > { %v3213_v40 = vadd.f32 %v6584_v29, %v6277_v33  ;;  %v3608_v29 = vld [vmem:[#allocation16 + $0x3a0] sm:$0xff]  ;;  %v8580_v33 = vpack.c.bf16 %v3559_v14, %v3558_v19 }
 0xb3f   : > { %v3584_v14 = vld [vmem:[#allocation16 + $0x2e0] sm:$0xff] }
 0xb56   : > { %v6617_v30 = vpop.f32.mrb[14].mxu0 }
 0xb57   : > { %v6618_v31 = vpop.f32.mrb[15].mxu0 }
 0xb58   : > { %v6619_v35 = vadd.f32 %v6618_v31, %v6617_v30  ;;  %v8612_v30 = vpack.c.bf16 %v3591_v15, %v3590_v22  ;;  %v3609_v31 = vld [vmem:[#allocation16 + $0x3a8] sm:$0xff]  ;;  %v3616_v15 = vld [vmem:[#allocation16 + $0x3e0] sm:$0xff] }
 0xb59   : > { %v3585_v22 = vld [vmem:[#allocation16 + $0x2e8] sm:$0xff] }
 0xb5a   : > { %v3283_v37 = vadd.f32 %v6619_v35, %v3208_v34  ;;  %v6620_v38 = vpop.f32.mrb[16].mxu0  ;;  %v3560_v34 = vld [vmem:[#allocation16 + $0x220] sm:$0xff]  ;;  %v3561_v35 = vld [vmem:[#allocation16 + $0x228] sm:$0xff] }
 0xb5b   : > { %v6621_v39 = vpop.f32.mrb[17].mxu0 }
 0xb5c   : > { %v6622_v41 = vadd.f32 %v6621_v39, %v6620_v38  ;;  %v3593_v38 = vld [vmem:[#allocation16 + $0x328] sm:$0xff]  ;;  %v3578_v39 = vld [vmem:[#allocation16 + $0x2b0] sm:$0xff] }
 0xb5e   : > { %v3288_v42 = vadd.f32 %v6622_v41, %v3213_v40  ;;  %v8582_v41 = vpack.c.bf16 %v3577_v28, %v3576_v27  ;;  %v3568_v27 = vld [vmem:[#allocation16 + $0x260] sm:$0xff]  ;;  %v3569_v28 = vld [vmem:[#allocation16 + $0x268] sm:$0xff] }
 0xb76   : > { %v6655_v43 = vpop.f32.mrb[18].mxu0 }
 0xb77   : > { %v6656_v49 = vpop.f32.mrb[19].mxu0 }
 0xb78   : > { %v6657_v48 = vadd.f32 %v6656_v49, %v6655_v43  ;;  %v3610_v43 = vld [vmem:[#allocation16 + $0x3b0] sm:$0xff]  ;;  %v3611_v49 = vld [vmem:[#allocation16 + $0x3b8] sm:$0xff] }
 0xb7a   : > { %v3358_v46 = vadd.f32 %v6657_v48, %v3283_v37  ;;  %v6658_v47 = vpop.f32.mrb[20].mxu0  ;;  %v3592_v37 = vld [vmem:[#allocation16 + $0x320] sm:$0xff] }
 0xb7b   : > { %v6659_v50 = vpop.f32.mrb[21].mxu0 }
 0xb7c   : > { %v3433_v51 = vadd.f32 %v6695_v23, %v3358_v46  ;;  %v6660_v63 = vadd.f32 %v6659_v50, %v6658_v47  ;;  %v8614_v47 = vpack.c.bf16 %v3609_v31, %v3608_v29  ;;  %v8598_v29 = vpack.c.bf16 %v3585_v22, %v3584_v14  ;;  %v3586_v31 = vld [vmem:[#allocation16 + $0x2f0] sm:$0xff]  ;;  %v3603_v46 = vld [vmem:[#allocation16 + $0x378] sm:$0xff]  ;;  %v3928_v14 = vld [vmem:[#allocation19 + $0x30] sm:$0xff] }
 0xb7d   : > { %v3929_v22 = vld [vmem:[#allocation19 + $0x38] sm:$0xff] }
 0xb7e   : > { %v3441_v52 = vsub.f32 0.0, %v3433_v51  ;;  %v3363_v53 = vadd.f32 %v6660_v63, %v3288_v42  ;;  %v3579_v42 = vld [vmem:[#allocation16 + $0x2b8] sm:$0xff]  ;;  %v8584_v51 = vpack.c.bf16 %v3561_v35, %v3560_v34  ;;  %v8616_v63 = vpack.c.bf16 %v3593_v38, %v3592_v37  ;;  %v3618_v35 = vld [vmem:[#allocation16 + $0x3f0] sm:$0xff] }
 0xb7f   : > { %v3587_v34 = vld [vmem:[#allocation16 + $0x2f8] sm:$0xff]  ;;  %v8600_v38 = vpack.c.bf16 %v3569_v28, %v3568_v27  ;;  %v3962_v27 = vld [vmem:[#allocation19 + $0x140] sm:$0xff] }
 0xb80   : > { %v3443_v54 = vmul.f32 1.442695, %v3441_v52  ;;  %v3438_v55 = vadd.f32 %v6698_v32, %v3363_v53  ;;  %v3562_v52 = vld [vmem:[#allocation16 + $0x230] sm:$0xff]  ;;  %v3563_v53 = vld [vmem:[#allocation16 + $0x238] sm:$0xff] }
 0xb81   : > { %v8588_v61 = vpack.c.bf16 %v3563_v53, %v3562_v52  ;;  %v3619_v37 = vld [vmem:[#allocation16 + $0x3f8] sm:$0xff]  ;;  %v3938_v53 = vld [vmem:[#allocation19 + $0x80] sm:$0xff] }
 0xb82   : > { %9391 = vpow2.f32 %v3443_v54  ;;  %v3442_v56 = vsub.f32 0.0, %v3438_v55  ;;  %v8586_v54 = vpack.c.bf16 %v3579_v42, %v3578_v39  ;;  %v8618_v55 = vpack.c.bf16 %v3611_v49, %v3610_v43  ;;  %v3571_v43 = vld [vmem:[#allocation16 + $0x278] sm:$0xff]  ;;  %v3602_v49 = vld [vmem:[#allocation16 + $0x370] sm:$0xff] }
 0xb83   : > { %v8634_v42 = vpack.c.bf16 %v3619_v37, %v3618_v35  ;;  %v3949_v35 = vld [vmem:[#allocation19 + $0xd8] sm:$0xff]  ;;  %v3964_v37 = vld [vmem:[#allocation19 + $0x150] sm:$0xff] }
 0xb84   : > { %v3445_v57 = vmul.f32 1.442695, %v3442_v56  ;;  %v3594_v56 = vld [vmem:[#allocation16 + $0x330] sm:$0xff] }
 0xb86   : > { %9393 = vpow2.f32 %v3445_v57  ;;  %v3595_v57 = vld [vmem:[#allocation16 + $0x338] sm:$0xff] }
 0xb87   : > { %v8620_v62 = vpack.c.bf16 %v3595_v57, %v3594_v56  ;;  %v3955_v57 = vld [vmem:[#allocation19 + $0x108] sm:$0xff] }
 0xb8c   : > { %v9392_v58 = vpop.eup %9391 }
 0xb8d   : > { %v3447_v59 = vadd.f32 1.0, %v9392_v58  ;;  %v3580_v58 = vld [vmem:[#allocation16 + $0x2c0] sm:$0xff] }
 0xb8f   : > { %9395 = vrcp.f32 %v3447_v59  ;;  %v3581_v59 = vld [vmem:[#allocation16 + $0x2c8] sm:$0xff] }
 0xb90   : > { %v9394_v60 = vpop.eup %9393  ;;  %v8590_v5 = vpack.c.bf16 %v3581_v59, %v3580_v58  ;;  %v3922_v58 = vld [vmem:[#allocation19] sm:$0xff]  ;;  %v3923_v59 = vld [vmem:[#allocation19 + $0x8] sm:$0xff] }
 0xb91   : > { %v3448_v2 = vadd.f32 1.0, %v9394_v60  ;;  %v3612_v60 = vld [vmem:[#allocation16 + $0x3c0] sm:$0xff] }
 0xb93   : > { %9397 = vrcp.f32 %v3448_v2  ;;  %v3613_v2 = vld [vmem:[#allocation16 + $0x3c8] sm:$0xff] }
 0xb94   : > { %v8622_v6 = vpack.c.bf16 %v3613_v2, %v3612_v60  ;;  %v8640_v2 = vpack.c.bf16 %v3923_v59, %v3922_v58  ;;  %v3968_v58 = vld [vmem:[#allocation19 + $0x170] sm:$0xff] }
 0xb99   : > { %v9396_v3 = vpop.eup %9395 }
 0xb9a   : > { %v10926_v7 = vmul.f32 %v9396_v3, %v3455_v4  ;;  %3451 = vst [vmem:[%s10930_s19 - $0x1] sm:$0x2] %v9396_v3  ;;  %v3564_v3 = vld [vmem:[#allocation16 + $0x240] sm:$0xff]  ;;  %v3565_v4 = vld [vmem:[#allocation16 + $0x248] sm:$0xff] }
 0xb9b   : > { %v8592_v12 = vpack.c.bf16 %v3565_v4, %v3564_v3  ;;  %v3924_v3 = vld [vmem:[#allocation19 + $0x10] sm:$0xff]  ;;  %v3925_v4 = vld [vmem:[#allocation19 + $0x18] sm:$0xff] }
 0xb9c   : > { %v3466_v13 = vrot.slane %v10926_v7, 7  ;;  %v3475_v16 = vrot.slane %v10926_v7, 5  ;;  %v3472_v17 = vrot.slane %v10926_v7, 6  ;;  %v3487_v48 = vrot.slane %v10926_v7, 1 }
 0xb9d   : > { %v9398_v20 = vpop.eup %9397  ;;  %v3481_v50 = vrot.slane %v10926_v7, 3  ;;  %v3484_v52 = vrot.slane %v10926_v7, 2 }
 0xb9e   : > { %v3463_v23 = vmul.f32 %v9398_v20, %v3460_v45  ;;  %6288 = vmatprep.mubr.msk.f32.mxu0 %vm10769_vm4, %v3466_v13  ;;  %6290 = vmatprep.mubr.msk.f32.mxu1 %vm10934_vm9, %v3475_v16  ;;  %v3582_v45 = vld [vmem:[#allocation16 + $0x2d0] sm:$0xff] }
 0xb9f   : > { %3685 = vmatmul.mubr.f32.vlgmr.msra.gmra.mrb[22].mxu0 %v10926_v7  ;;  %6292 = vmatmul.mubr.msk.f32.vlgmr.msra.gmra.mrb[18].mxu1 %vm6291_vm10, %v3472_v17  ;;  %v3598_v20 = vld [vmem:[#allocation16 + $0x350] sm:$0xff] }
 0xba0   : > { %v3467_v32 = vrot.slane %v3463_v23, 7  ;;  %8577 = vmatpush3.bf16.msra.mxu0 %v8576_v10  ;;  %8609 = vmatpush3.bf16.msra.mxu1 %v8608_v18  ;;  %v3614_v10 = vld [vmem:[#allocation16 + $0x3d0] sm:$0xff]  ;;  %v8594_v18 = vpack.c.bf16 %v3583_v9, %v3582_v45 }
 0xba1   : > { %3764 = vmatprep.mubr.f32.mxu1 %v3475_v16  ;;  %8579 = vmatprep.subr.bf16.mxu0 %v8578_v21  ;;  %v3566_v16 = vld [vmem:[#allocation16 + $0x250] sm:$0xff]  ;;  %v8626_v19 = vpack.c.bf16 %v3615_v11, %v3614_v10  ;;  %v3599_v21 = vld [vmem:[#allocation16 + $0x358] sm:$0xff] }
 0xba2   : > { %8611 = vmatprep.subr.bf16.mxu1 %v8610_v24  ;;  %v3468_v40 = vsel %vm1188_vm3, %v3466_v13, %v3467_v32  ;;  %v8624_v13 = vpack.c.bf16 %v3597_v44, %v3596_v8  ;;  %v8628_v26 = vpack.c.bf16 %v3599_v21, %v3598_v20  ;;  %v3942_v8 = vld [vmem:[#allocation19 + $0xa0] sm:$0xff]  ;;  %v3943_v44 = vld [vmem:[#allocation19 + $0xa8] sm:$0xff]  ;;  %v3961_v21 = vld [vmem:[#allocation19 + $0x138] sm:$0xff] }
 0xba3   : > { %3689 = vmatprep.mubr.f32.mxu0 %v3468_v40  ;;  %3765 = vmatmul.mubr.f32.gmra.mrb[20].mxu1 %v3472_v17  ;;  %v3567_v17 = vld [vmem:[#allocation16 + $0x258] sm:$0xff]  ;;  %v3570_v40 = vld [vmem:[#allocation16 + $0x270] sm:$0xff]  ;;  %v8646_v9 = vpack.c.bf16 %v3943_v44, %v3942_v8 }
 0xba4   : > { %8581 = vmatpush3.bf16.msra.mxu0 %v8580_v33  ;;  %8613 = vmatpush3.bf16.msra.mxu1 %v8612_v30  ;;  %v8596_v24 = vpack.c.bf16 %v3567_v17, %v3566_v16  ;;  %v3600_v33 = vld [vmem:[#allocation16 + $0x360] sm:$0xff]  ;;  %v3601_v30 = vld [vmem:[#allocation16 + $0x368] sm:$0xff]  ;;  %v3958_v45 = vld [vmem:[#allocation19 + $0x120] sm:$0xff] }
 0xba5   : > { %3690 = vmatmul.mubr.f32.gmra.mrb[24].mxu0 %v3463_v23  ;;  %6298 = vmatprep.mubr.msk.f32.mxu1 %vm10947_vm11, %v3487_v48  ;;  %v3617_v23 = vld [vmem:[#allocation16 + $0x3e8] sm:$0xff]  ;;  %v8632_v39 = vpack.c.bf16 %v3601_v30, %v3600_v33  ;;  %v3959_v10 = vld [vmem:[#allocation19 + $0x128] sm:$0xff]  ;;  %v3926_v11 = vld [vmem:[#allocation19 + $0x20] sm:$0xff] }
 0xba6   : > { %6294 = vmatprep.mubr.msk.f32.mxu0 %vm10955_vm12, %v3481_v50  ;;  %8583 = vmatprep.subr.bf16.mxu0 %v8582_v41  ;;  %v8630_v32 = vpack.c.bf16 %v3617_v23, %v3616_v15  ;;  %v8602_v41 = vpack.c.bf16 %v3587_v34, %v3586_v31  ;;  %v3945_v16 = vld [vmem:[#allocation19 + $0xb8] sm:$0xff]  ;;  %v8677_v17 = vpack.c.bf16 %v3959_v10, %v3958_v45  ;;  %v3931_v33 = vld [vmem:[#allocation19 + $0x48] sm:$0xff]  ;;  %v3948_v34 = vld [vmem:[#allocation19 + $0xd0] sm:$0xff] }
 0xba7   : > { %8615 = vmatprep.subr.bf16.mxu1 %v8614_v47  ;;  %v8604_v47 = vpack.c.bf16 %v3571_v43, %v3570_v40  ;;  %v8652_v23 = vpack.c.bf16 %v3929_v22, %v3928_v14  ;;  %v3932_v40 = vld [vmem:[#allocation19 + $0x50] sm:$0xff] }
 0xba8   : > { %8585 = vmatpush3.bf16.msra.mxu0 %v8584_v51  ;;  %8617 = vmatpush3.bf16.msra.mxu1 %v8616_v63  ;;  %v8636_v51 = vpack.c.bf16 %v3603_v46, %v3602_v49  ;;  %v3478_v63 = vrot.slane %v10926_v7, 4  ;;  %v3950_v49 = vld [vmem:[#allocation19 + $0xe0] sm:$0xff]  ;;  %v3951_v46 = vld [vmem:[#allocation19 + $0xe8] sm:$0xff] }
 0xba9   : > { %8587 = vmatprep.subr.bf16.mxu0 %v8586_v54  ;;  %8619 = vmatprep.subr.bf16.mxu1 %v8618_v55  ;;  %v3939_v54 = vld [vmem:[#allocation19 + $0x88] sm:$0xff]  ;;  %v3954_v55 = vld [vmem:[#allocation19 + $0x100] sm:$0xff] }
 0xbaa   : > { %v8638_v56 = vpack.c.bf16 %v3939_v54, %v3938_v53  ;;  %v8671_v60 = vpack.c.bf16 %v3955_v57, %v3954_v55  ;;  %v3935_v53 = vld [vmem:[#allocation19 + $0x68] sm:$0xff]  ;;  %v3953_v57 = vld [vmem:[#allocation19 + $0xf8] sm:$0xff] }
 0xbac   : > { %8589 = vmatpush3.bf16.msra.mxu0 %v8588_v61  ;;  %8621 = vmatpush3.bf16.msra.mxu1 %v8620_v62  ;;  %v3940_v61 = vld [vmem:[#allocation19 + $0x90] sm:$0xff]  ;;  %v3941_v62 = vld [vmem:[#allocation19 + $0x98] sm:$0xff] }
 0xbad   : > { %8591 = vmatprep.subr.bf16.mxu0 %v8590_v5  ;;  %8623 = vmatprep.subr.bf16.mxu1 %v8622_v6  ;;  %v8642_v7 = vpack.c.bf16 %v3941_v62, %v3940_v61  ;;  %v8644_v6 = vpack.c.bf16 %v3925_v4, %v3924_v3  ;;  %v3937_v61 = vld [vmem:[#allocation19 + $0x78] sm:$0xff] }
 0xbb0   : > { %8593 = vmatpush3.bf16.msra.mxu0 %v8592_v12  ;;  %8625 = vmatpush3.bf16.msra.mxu1 %v8624_v13  ;;  %v3927_v12 = vld [vmem:[#allocation19 + $0x28] sm:$0xff]  ;;  %v3944_v13 = vld [vmem:[#allocation19 + $0xb0] sm:$0xff] }
 0xbb1   : > { %8595 = vmatprep.subr.bf16.mxu0 %v8594_v18  ;;  %8627 = vmatprep.subr.bf16.mxu1 %v8626_v19  ;;  %v8648_v18 = vpack.c.bf16 %v3927_v12, %v3926_v11  ;;  %v3960_v19 = vld [vmem:[#allocation19 + $0x130] sm:$0xff]  ;;  %v8650_v20 = vpack.c.bf16 %v3945_v16, %v3944_v13 }
 0xbb2   : > { %v8680_v15 = vpack.c.bf16 %v3961_v21, %v3960_v19 }
 0xbb4   : > { %8597 = vmatpush3.bf16.msra.mxu0 %v8596_v24  ;;  %8629 = vmatpush3.bf16.msra.mxu1 %v8628_v26  ;;  %v3946_v24 = vld [vmem:[#allocation19 + $0xc0] sm:$0xff]  ;;  %v3947_v26 = vld [vmem:[#allocation19 + $0xc8] sm:$0xff] }
 0xbb5   : > { %8599 = vmatprep.subr.bf16.mxu0 %v8598_v29  ;;  %8631 = vmatprep.subr.bf16.mxu1 %v8630_v32  ;;  %v8654_v28 = vpack.c.bf16 %v3947_v26, %v3946_v24  ;;  %v3963_v29 = vld [vmem:[#allocation19 + $0x148] sm:$0xff]  ;;  %v3930_v32 = vld [vmem:[#allocation19 + $0x40] sm:$0xff] }
 0xbb6   : > { %v8683_v30 = vpack.c.bf16 %v3963_v29, %v3962_v27  ;;  %v8656_v31 = vpack.c.bf16 %v3931_v33, %v3930_v32 }
 0xbb8   : > { %8601 = vmatpush3.bf16.msra.mxu0 %v8600_v38  ;;  %8633 = vmatpush3.bf16.msra.mxu1 %v8632_v39  ;;  %v8658_v38 = vpack.c.bf16 %v3949_v35, %v3948_v34  ;;  %v3965_v39 = vld [vmem:[#allocation19 + $0x158] sm:$0xff] }
 0xbb9   : > { %8603 = vmatprep.subr.bf16.mxu0 %v8602_v41  ;;  %8635 = vmatprep.subr.bf16.mxu1 %v8634_v42  ;;  %v3933_v41 = vld [vmem:[#allocation19 + $0x58] sm:$0xff]  ;;  %v8686_v42 = vpack.c.bf16 %v3965_v39, %v3964_v37 }
 0xbba   : > { %v8660_v43 = vpack.c.bf16 %v3933_v41, %v3932_v40  ;;  %v4166_v40 = vld [vmem:[#allocation22 + $0x100] sm:$0xff]  ;;  %v4167_v41 = vld [vmem:[#allocation22 + $0x108] sm:$0xff] }
 0xbbc   : > { %8605 = vmatpush3.bf16.msra.mxu0 %v8604_v47  ;;  %8637 = vmatpush3.bf16.msra.mxu1 %v8636_v51  ;;  %v3966_v47 = vld [vmem:[#allocation19 + $0x160] sm:$0xff]  ;;  %v8662_v51 = vpack.c.bf16 %v3951_v46, %v3950_v49  ;;  %v4135_v49 = vld [vmem:[#allocation22 + $0x8] sm:$0xff]  ;;  %v8727_v46 = vpack.c.bf16 %v4167_v41, %v4166_v40 }
 0xbbd   : > { %8670 = vmatprep.subr.bf16.mxu1 %v10063_v0  ;;  %8639 = vmatprep.subr.bf16.mxu0 %v8638_v56  ;;  %v3952_v56 = vld [vmem:[#allocation19 + $0xf0] sm:$0xff]  ;;  %v4178_v40 = vld [vmem:[#allocation22 + $0x160] sm:$0xff] }
 0xbbe   : > { %v8666_v59 = vpack.c.bf16 %v3953_v57, %v3952_v56  ;;  %v4168_v56 = vld [vmem:[#allocation22 + $0x110] sm:$0xff]  ;;  %v4169_v57 = vld [vmem:[#allocation22 + $0x118] sm:$0xff] }
 0xbbf   : > { %6296 = vmatmul.mubr.msk.f32.vlgmr.msra.gmra.mrb[26].mxu0 %vm6295_vm13, %v3478_v63  ;;  %6300 = vmatmul.mubr.msk.f32.vlgmr.msra.gmra.mrb[22].mxu1 %vm6299_vm14, %v3484_v52 }
 0xbc0   : > { %3839 = vmatprep.mubr.f32.mxu0 %v3481_v50  ;;  %3914 = vmatprep.mubr.f32.mxu1 %v3487_v48  ;;  %v3956_v50 = vld [vmem:[#allocation19 + $0x110] sm:$0xff]  ;;  %v3957_v48 = vld [vmem:[#allocation19 + $0x118] sm:$0xff] }
 0xbc1   : > { %8672 = vmatpush3.bf16.msra.mxu1 %v8671_v60  ;;  %8641 = vmatpush3.bf16.msra.mxu0 %v8640_v2  ;;  %v8674_v5 = vpack.c.bf16 %v3957_v48, %v3956_v50  ;;  %v3969_v60 = vld [vmem:[#allocation19 + $0x178] sm:$0xff]  ;;  %v3936_v2 = vld [vmem:[#allocation19 + $0x70] sm:$0xff] }
 0xbc2   : > { %8673 = vmatprep.subr.bf16.mxu1 %v10063_v0  ;;  %8643 = vmatprep.subr.bf16.mxu0 %v8642_v7  ;;  %v8692_v62 = vpack.c.bf16 %v3969_v60, %v3968_v58  ;;  %v8668_v50 = vpack.c.bf16 %v3937_v61, %v3936_v2  ;;  %v4150_v7 = vld [vmem:[#allocation22 + $0x80] sm:$0xff]  ;;  %v4151_v48 = vld [vmem:[#allocation22 + $0x88] sm:$0xff]  ;;  %v4136_v2 = vld [vmem:[#allocation22 + $0x10] sm:$0xff] }
 0xbc3   : > { %3840 = vmatmul.mubr.f32.gmra.mrb[28].mxu0 %v3478_v63  ;;  %3915 = vmatmul.mubr.f32.gmra.mrb[24].mxu1 %v3484_v52  ;;  %v3967_v63 = vld [vmem:[#allocation19 + $0x168] sm:$0xff]  ;;  %v3934_v52 = vld [vmem:[#allocation19 + $0x60] sm:$0xff]  ;;  %v8694_v3 = vpack.c.bf16 %v4151_v48, %v4150_v7  ;;  %v8730_v7 = vpack.c.bf16 %v4169_v57, %v4168_v56 }
 0xbc4   : > { %7491 = vmatprep.mubr.msk.f32.mxu1 %vm10064_vm0, %v10065_v1  ;;  %v8689_v54 = vpack.c.bf16 %v3967_v63, %v3966_v47  ;;  %v8664_v55 = vpack.c.bf16 %v3935_v53, %v3934_v52  ;;  %v4152_v47 = vld [vmem:[#allocation22 + $0x90] sm:$0xff]  ;;  %v4137_v61 = vld [vmem:[#allocation22 + $0x18] sm:$0xff] }
 0xbc5   : > { %8675 = vmatpush3.bf16.msra.mxu1 %v8674_v5  ;;  %8645 = vmatpush3.bf16.msra.mxu0 %v8644_v6  ;;  %v3490_v6 = vld [vmem:[#allocation17] sm:$0xff]  ;;  %v8700_v48 = vpack.c.bf16 %v4137_v61, %v4136_v2  ;;  %v4149_v56 = vld [vmem:[#allocation22 + $0x78] sm:$0xff] }
 0xbc6   : > { %8676 = vmatprep.subr.bf16.mxu1 %v10063_v0  ;;  %8647 = vmatprep.subr.bf16.mxu0 %v8646_v9 }
 0xbc9   : > { %8678 = vmatpush3.bf16.msra.mxu1 %v8677_v17  ;;  %8649 = vmatpush3.bf16.msra.mxu0 %v8648_v18  ;;  %v3491_v18 = vld [vmem:[#allocation17 + $0x8] sm:$0x3] }
 0xbca   : > { %8679 = vmatprep.subr.bf16.mxu1 %v10063_v0  ;;  %8651 = vmatprep.subr.bf16.mxu0 %v8650_v20 }
 0xbcd   : > { %8681 = vmatpush3.bf16.msra.mxu1 %v8680_v15  ;;  %8653 = vmatpush3.bf16.msra.mxu0 %v8652_v23 }
 0xbce   : > { %8682 = vmatprep.subr.bf16.mxu1 %v10063_v0  ;;  %8655 = vmatprep.subr.bf16.mxu0 %v8654_v28 }
 0xbd1   : > { %8684 = vmatpush3.bf16.msra.mxu1 %v8683_v30  ;;  %8657 = vmatpush3.bf16.msra.mxu0 %v8656_v31 }
 0xbd2   : > { %8685 = vmatprep.subr.bf16.mxu1 %v10063_v0  ;;  %8659 = vmatprep.subr.bf16.mxu0 %v8658_v38 }
 0xbd5   : > { %8687 = vmatpush3.bf16.msra.mxu1 %v8686_v42  ;;  %8661 = vmatpush3.bf16.msra.mxu0 %v8660_v43  ;;  %v4134_v43 = vld [vmem:[#allocation22] sm:$0xff] }
 0xbd6   : > { %8688 = vmatprep.subr.bf16.mxu1 %v10063_v0  ;;  %8663 = vmatprep.subr.bf16.mxu0 %v8662_v51  ;;  %v4153_v51 = vld [vmem:[#allocation22 + $0x98] sm:$0xff] }
 0xbd7   : > { %v8698_v60 = vpack.c.bf16 %v4153_v51, %v4152_v47  ;;  %v4164_v51 = vld [vmem:[#allocation22 + $0xf0] sm:$0xff] }
 0xbd9   : > { %8690 = vmatpush3.bf16.msra.mxu1 %v8689_v54  ;;  %8665 = vmatpush3.bf16.msra.mxu0 %v8664_v55  ;;  %v8696_v55 = vpack.c.bf16 %v4135_v49, %v4134_v43  ;;  %v4146_v43 = vld [vmem:[#allocation22 + $0x60] sm:$0xff]  ;;  %v4147_v49 = vld [vmem:[#allocation22 + $0x68] sm:$0xff] }
 0xbda   : > { %8691 = vmatprep.subr.bf16.mxu1 %v10063_v0  ;;  %8667 = vmatprep.subr.bf16.mxu0 %v8666_v59  ;;  %v8720_v47 = vpack.c.bf16 %v4147_v49, %v4146_v43  ;;  %v4386_v43 = vld [vmem:[#allocation19 + $0x238] sm:$0xff]  ;;  %v4401_v49 = vld [vmem:[#allocation19 + $0x2b0] sm:$0xff] }
 0xbdd   : > { %8693 = vmatpush3.bf16.msra.mxu1 %v8692_v62  ;;  %8669 = vmatpush3.bf16.msra.mxu0 %v8668_v50  ;;  %v4154_v62 = vld [vmem:[#allocation22 + $0xa0] sm:$0xff]  ;;  %v4155_v50 = vld [vmem:[#allocation22 + $0xa8] sm:$0xff] }
 0xbde   : > { %8726 = vmatprep.subr.bf16.mxu1 %v10063_v0  ;;  %8695 = vmatprep.subr.bf16.mxu0 %v8694_v3  ;;  %v4170_v3 = vld [vmem:[#allocation22 + $0x120] sm:$0xff] }
 0xc72   : > { %v6731_v4 = vpop.f32.mrb[22].mxu0  ;;  %v6769_v5 = vpop.f32.mrb[18].mxu1 }
 0xc73   : > { %v6732_v8 = vpop.f32.mrb[23].mxu0  ;;  %v6770_v44 = vpop.f32.mrb[19].mxu1 }
 0xc74   : > { %v6733_v45 = vadd.f32 %v6732_v8, %v6731_v4  ;;  %v6771_v9 = vadd.f32 %v6770_v44, %v6769_v5  ;;  %v4171_v4 = vld [vmem:[#allocation22 + $0x128] sm:$0xff]  ;;  %v8702_v5 = vpack.c.bf16 %v4155_v50, %v4154_v62 }
 0xc75   : > { %v4139_v8 = vld [vmem:[#allocation22 + $0x28] sm:$0xff]  ;;  %v8733_v44 = vpack.c.bf16 %v4171_v4, %v4170_v3 }
 0xc76   : > { %v3687_v10 = vadd.f32 %v6733_v45, %v3490_v6  ;;  %v6772_v11 = vpop.f32.mrb[20].mxu1  ;;  %v4138_v6 = vld [vmem:[#allocation22 + $0x20] sm:$0xff] }
 0xc77   : > { %v6773_v12 = vpop.f32.mrb[21].mxu1  ;;  %v8704_v45 = vpack.c.bf16 %v4139_v8, %v4138_v6 }
 0xc78   : > { %v3762_v13 = vadd.f32 %v6771_v9, %v3687_v10  ;;  %v6734_v16 = vpop.f32.mrb[24].mxu0  ;;  %v6774_v17 = vadd.f32 %v6773_v12, %v6772_v11  ;;  %v4156_v9 = vld [vmem:[#allocation22 + $0xb0] sm:$0xff]  ;;  %v4157_v10 = vld [vmem:[#allocation22 + $0xb8] sm:$0xff] }
 0xc79   : > { %v6735_v19 = vpop.f32.mrb[25].mxu0  ;;  %v4172_v11 = vld [vmem:[#allocation22 + $0x130] sm:$0xff]  ;;  %v8706_v12 = vpack.c.bf16 %v4157_v10, %v4156_v9  ;;  %v4363_v10 = vld [vmem:[#allocation19 + $0x180] sm:$0xff] }
 0xc7a   : > { %v6736_v20 = vadd.f32 %v6735_v19, %v6734_v16  ;;  %v4140_v16 = vld [vmem:[#allocation22 + $0x30] sm:$0xff] }
 0xc7c   : > { %v3692_v21 = vadd.f32 %v6736_v20, %v3491_v18  ;;  %v4158_v20 = vld [vmem:[#allocation22 + $0xc0] sm:$0xff] }
 0xc7e   : > { %v3767_v14 = vadd.f32 %v6774_v17, %v3692_v21  ;;  %v4141_v17 = vld [vmem:[#allocation22 + $0x38] sm:$0xff]  ;;  %v4159_v21 = vld [vmem:[#allocation22 + $0xc8] sm:$0xff] }
 0xc7f   : > { %v8708_v19 = vpack.c.bf16 %v4141_v17, %v4140_v16  ;;  %v4381_v17 = vld [vmem:[#allocation19 + $0x210] sm:$0xff] }
 0xc92   : > { %v6807_v22 = vpop.f32.mrb[26].mxu0  ;;  %v6845_v15 = vpop.f32.mrb[22].mxu1 }
 0xc93   : > { %v6808_v23 = vpop.f32.mrb[27].mxu0  ;;  %v6846_v24 = vpop.f32.mrb[23].mxu1 }
 0xc94   : > { %v6809_v26 = vadd.f32 %v6808_v23, %v6807_v22  ;;  %v6847_v27 = vadd.f32 %v6846_v24, %v6845_v15  ;;  %v8710_v22 = vpack.c.bf16 %v4159_v21, %v4158_v20  ;;  %v4175_v15 = vld [vmem:[#allocation22 + $0x148] sm:$0xff]  ;;  %v4142_v23 = vld [vmem:[#allocation22 + $0x40] sm:$0xff] }
 0xc95   : > { %v4143_v24 = vld [vmem:[#allocation22 + $0x48] sm:$0xff] }
 0xc96   : > { %v3837_v28 = vadd.f32 %v6809_v26, %v3762_v13  ;;  %v6810_v29 = vpop.f32.mrb[28].mxu0  ;;  %v6848_v32 = vpop.f32.mrb[24].mxu1  ;;  %v4173_v13 = vld [vmem:[#allocation22 + $0x138] sm:$0xff] }
 0xc97   : > { %v6811_v33 = vpop.f32.mrb[29].mxu0  ;;  %v6849_v30 = vpop.f32.mrb[25].mxu1  ;;  %v8736_v18 = vpack.c.bf16 %v4173_v13, %v4172_v11  ;;  %v4364_v11 = vld [vmem:[#allocation19 + $0x188] sm:$0xff] }
 0xc98   : > { %v3912_v31 = vadd.f32 %v6847_v27, %v3837_v28  ;;  %v6812_v34 = vadd.f32 %v6811_v33, %v6810_v29  ;;  %v6850_v35 = vadd.f32 %v6849_v30, %v6848_v32  ;;  %v8712_v27 = vpack.c.bf16 %v4143_v24, %v4142_v23  ;;  %v4160_v28 = vld [vmem:[#allocation22 + $0xd0] sm:$0xff]  ;;  %v4161_v29 = vld [vmem:[#allocation22 + $0xd8] sm:$0xff] }
 0xc99   : > { %v4176_v32 = vld [vmem:[#allocation22 + $0x150] sm:$0xff]  ;;  %v8714_v33 = vpack.c.bf16 %v4161_v29, %v4160_v28  ;;  %v4177_v30 = vld [vmem:[#allocation22 + $0x158] sm:$0xff] }
 0xc9a   : > { %v3842_v37 = vadd.f32 %v6812_v34, %v3767_v14  ;;  %v3920_v38 = vmax.f32 %v3912_v31, 0.0  ;;  %v4174_v14 = vld [vmem:[#allocation22 + $0x140] sm:$0xff]  ;;  %v4144_v31 = vld [vmem:[#allocation22 + $0x50] sm:$0xff]  ;;  %v4145_v34 = vld [vmem:[#allocation22 + $0x58] sm:$0xff] }
 0xc9b   : > { %v8739_v26 = vpack.c.bf16 %v4175_v15, %v4174_v14  ;;  %v4397_v15 = vld [vmem:[#allocation19 + $0x290] sm:$0xff]  ;;  %v4398_v23 = vld [vmem:[#allocation19 + $0x298] sm:$0xff] }
 0xc9c   : > { %v3917_v39 = vadd.f32 %v6850_v35, %v3842_v37  ;;  %v3976_v63 = vrot.slane %v3920_v38, 2  ;;  %v3972_v54 = vrot.slane %v3920_v38, 1  ;;  %v8742_v35 = vpack.c.bf16 %v4177_v30, %v4176_v32  ;;  %v4365_v28 = vld [vmem:[#allocation19 + $0x190] sm:$0xff]  ;;  %v4366_v29 = vld [vmem:[#allocation19 + $0x198] sm:$0xff]  ;;  %v4383_v30 = vld [vmem:[#allocation19 + $0x220] sm:$0xff] }
 0xc9d   : > { %v8716_v37 = vpack.c.bf16 %v4145_v34, %v4144_v31  ;;  %v8786_v32 = vpack.c.bf16 %v4398_v23, %v4397_v15  ;;  %v4384_v31 = vld [vmem:[#allocation19 + $0x228] sm:$0xff]  ;;  %v4399_v34 = vld [vmem:[#allocation19 + $0x2a0] sm:$0xff]  ;;  %v4378_v15 = vld [vmem:[#allocation19 + $0x1f8] sm:$0xff] }
 0xc9e   : > { %v3921_v42 = vmax.f32 %v3917_v39, 0.0  ;;  %v4163_v39 = vld [vmem:[#allocation22 + $0xe8] sm:$0xff] }
 0xca0   : > { %v3973_v52 = vrot.slane %v3921_v42, 1  ;;  %v3977_v53 = vrot.slane %v3921_v42, 2  ;;  %v4179_v42 = vld [vmem:[#allocation22 + $0x168] sm:$0xff] }
 0xca2   : > { %v3974_v58 = vsel %vm1021_vm1, %v3972_v54, %v3973_v52  ;;  %v3978_v59 = vsel %vm1026_vm2, %v3976_v63, %v3977_v53  ;;  %v4165_v63 = vld [vmem:[#allocation22 + $0xf8] sm:$0xff]  ;;  %v4180_v52 = vld [vmem:[#allocation22 + $0x170] sm:$0xff] }
 0xca3   : > { %4051 = vmatprep.mubr.f32.mxu0 %v3974_v58  ;;  %7492 = vmatmul.mubr.f32.vlgmr.msra.gmra.mrb[26].mxu1 %v3978_v59  ;;  %v8722_v53 = vpack.c.bf16 %v4165_v63, %v4164_v51  ;;  %v4181_v54 = vld [vmem:[#allocation22 + $0x178] sm:$0xff]  ;;  %v4369_v51 = vld [vmem:[#allocation19 + $0x1b0] sm:$0xff] }
 0xca4   : > { %4052 = vmatmul.mubr.f32.vlgmr.msra.gmra.mrb[30].mxu0 %v3920_v38  ;;  %8728 = vmatpush3.bf16.msra.mxu1 %v8727_v46  ;;  %v4162_v38 = vld [vmem:[#allocation22 + $0xe0] sm:$0xff]  ;;  %v8745_v46 = vpack.c.bf16 %v4179_v42, %v4178_v40  ;;  %v8748_v57 = vpack.c.bf16 %v4181_v54, %v4180_v52  ;;  %v4385_v42 = vld [vmem:[#allocation19 + $0x230] sm:$0xff]  ;;  %v4370_v63 = vld [vmem:[#allocation19 + $0x1b8] sm:$0xff] }
 0xca5   : > { %8697 = vmatpush3.bf16.msra.mxu0 %v8696_v55  ;;  %8729 = vmatprep.subr.bf16.mxu1 %v10063_v0  ;;  %v8718_v41 = vpack.c.bf16 %v4163_v39, %v4162_v38  ;;  %v4148_v55 = vld [vmem:[#allocation22 + $0x70] sm:$0xff]  ;;  %v4379_v59 = vld [vmem:[#allocation19 + $0x200] sm:$0xff]  ;;  %v4368_v39 = vld [vmem:[#allocation19 + $0x1a8] sm:$0xff] }
 0xca6   : > { %8699 = vmatprep.subr.bf16.mxu0 %v8698_v60  ;;  %7526 = vmatprep.mubr.msk.f32.mxu1 %vm10064_vm0, %v10065_v1  ;;  %v8724_v58 = vpack.c.bf16 %v4149_v56, %v4148_v55  ;;  %v4380_v60 = vld [vmem:[#allocation19 + $0x208] sm:$0xff]  ;;  %v4367_v38 = vld [vmem:[#allocation19 + $0x1a0] sm:$0xff] }
 0xca7   : > { %v8750_v2 = vpack.c.bf16 %v4380_v60, %v4379_v59  ;;  %v4387_v54 = vld [vmem:[#allocation19 + $0x240] sm:$0xff]  ;;  %v4388_v55 = vld [vmem:[#allocation19 + $0x248] sm:$0xff] }
 0xca8   : > { %8731 = vmatpush3.bf16.msra.mxu1 %v8730_v7  ;;  %v6301_v7 = vld [vmem:[#allocation20] ss:$0 sm:$0xff]  ;;  %v4372_v60 = vld [vmem:[#allocation19 + $0x1c8] sm:$0xff] }
 0xca9   : > { %8701 = vmatpush3.bf16.msra.mxu0 %v8700_v48  ;;  %8732 = vmatprep.subr.bf16.mxu1 %v10063_v0  ;;  %v4403_v56 = vld [vmem:[#allocation19 + $0x2c0] sm:$0xff] }
 0xcaa   : > { %8703 = vmatprep.subr.bf16.mxu0 %v8702_v5  ;;  %v4371_v59 = vld [vmem:[#allocation19 + $0x1c0] sm:$0xff] }
 0xcac   : > { %8734 = vmatpush3.bf16.msra.mxu1 %v8733_v44  ;;  %v4395_v44 = vld [vmem:[#allocation19 + $0x280] sm:$0xff] }
 0xcad   : > { %8705 = vmatpush3.bf16.msra.mxu0 %v8704_v45  ;;  %8735 = vmatprep.subr.bf16.mxu1 %v10063_v0  ;;  %v4396_v45 = vld [vmem:[#allocation19 + $0x288] sm:$0xff] }
 0xcae   : > { %8707 = vmatprep.subr.bf16.mxu0 %v8706_v12  ;;  %v8783_v16 = vpack.c.bf16 %v4396_v45, %v4395_v44  ;;  %v4391_v44 = vld [vmem:[#allocation19 + $0x260] sm:$0xff]  ;;  %v4392_v45 = vld [vmem:[#allocation19 + $0x268] sm:$0xff] }
 0xcb0   : > { %8737 = vmatpush3.bf16.msra.mxu1 %v8736_v18  ;;  %v4382_v18 = vld [vmem:[#allocation19 + $0x218] sm:$0xff] }
 0xcb1   : > { %8709 = vmatpush3.bf16.msra.mxu0 %v8708_v19  ;;  %8738 = vmatprep.subr.bf16.mxu1 %v10063_v0 }
 0xcb2   : > { %8711 = vmatprep.subr.bf16.mxu0 %v8710_v22  ;;  %v8752_v22 = vpack.c.bf16 %v4364_v11, %v4363_v10  ;;  %v8774_v10 = vpack.c.bf16 %v4392_v45, %v4391_v44  ;;  %v4408_v11 = vld [vmem:[#allocation19 + $0x2e8] sm:$0xff] }
 0xcb3   : > { %v4613_v45 = vld [vmem:[#allocation22 + $0x2a0] sm:$0xff] }
 0xcb4   : > { %8740 = vmatpush3.bf16.msra.mxu1 %v8739_v26 }
 0xcb5   : > { %8713 = vmatpush3.bf16.msra.mxu0 %v8712_v27  ;;  %8741 = vmatprep.subr.bf16.mxu1 %v10063_v0  ;;  %v8754_v27 = vpack.c.bf16 %v4382_v18, %v4381_v17  ;;  %v4393_v18 = vld [vmem:[#allocation19 + $0x270] sm:$0xff] }
 0xcb6   : > { %8715 = vmatprep.subr.bf16.mxu0 %v8714_v33  ;;  %v8756_v33 = vpack.c.bf16 %v4366_v29, %v4365_v28 }
 0xcb8   : > { %8743 = vmatpush3.bf16.msra.mxu1 %v8742_v35  ;;  %v8758_v35 = vpack.c.bf16 %v4384_v31, %v4383_v30  ;;  %v6302_v30 = vld [vmem:[#allocation23] ss:$0 sm:$0xff] }
 0xcb9   : > { %8717 = vmatpush3.bf16.msra.mxu0 %v8716_v37  ;;  %8744 = vmatprep.subr.bf16.mxu1 %v10063_v0  ;;  %v4400_v37 = vld [vmem:[#allocation19 + $0x2a8] sm:$0xff] }
 0xcba   : > { %8719 = vmatprep.subr.bf16.mxu0 %v8718_v41  ;;  %v8789_v40 = vpack.c.bf16 %v4400_v37, %v4399_v34  ;;  %v8760_v41 = vpack.c.bf16 %v4368_v39, %v4367_v38  ;;  %v6305_v38 = vld [vmem:[#allocation25] ss:$0 sm:$0xff] }
 0xcbc   : > { %8746 = vmatpush3.bf16.msra.mxu1 %v8745_v46  ;;  %v8762_v46 = vpack.c.bf16 %v4386_v43, %v4385_v42 }
 0xcbd   : > { %8721 = vmatpush3.bf16.msra.mxu0 %v8720_v47  ;;  %8747 = vmatprep.subr.bf16.mxu1 %v10063_v0  ;;  %v4402_v47 = vld [vmem:[#allocation19 + $0x2b8] sm:$0xff] }
 0xcbe   : > { %8723 = vmatprep.subr.bf16.mxu0 %v8722_v53  ;;  %v8792_v52 = vpack.c.bf16 %v4402_v47, %v4401_v49  ;;  %v8764_v53 = vpack.c.bf16 %v4370_v63, %v4369_v51  ;;  %v4609_v49 = vld [vmem:[#allocation22 + $0x280] sm:$0xff]  ;;  %v4578_v63 = vld [vmem:[#allocation22 + $0x188] sm:$0xff] }
 0xcbf   : > { %v4577_v51 = vld [vmem:[#allocation22 + $0x180] sm:$0xff] }
 0xcc0   : > { %8749 = vmatpush3.bf16.msra.mxu1 %v8748_v57  ;;  %v8766_v57 = vpack.c.bf16 %v4388_v55, %v4387_v54  ;;  %v4595_v55 = vld [vmem:[#allocation22 + $0x210] sm:$0xff] }
 0xcc1   : > { %8725 = vmatpush3.bf16.msra.mxu0 %v8724_v58  ;;  %8782 = vmatprep.subr.bf16.mxu1 %v10063_v0  ;;  %v4404_v58 = vld [vmem:[#allocation19 + $0x2c8] sm:$0xff] }
 0xcc2   : > { %8751 = vmatprep.subr.bf16.mxu0 %v8750_v2  ;;  %v8795_v2 = vpack.c.bf16 %v4404_v58, %v4403_v56  ;;  %v4596_v56 = vld [vmem:[#allocation22 + $0x218] sm:$0xff] }
 0xd76   : > { %v4123_v61 = vpop.f32.mrb[26].mxu1 }
 0xd77   : > { %v6883_v62 = vpop.f32.mrb[30].mxu0  ;;  %v7493_v50 = vpop.f32.mrb[27].mxu1 }
 0xd78   : > { %v6884_v48 = vpop.f32.mrb[31].mxu0  ;;  %v4390_v50 = vld [vmem:[#allocation19 + $0x258] sm:$0xff] }
 0xd79   : > { %v6885_v3 = vadd.f32 %v6884_v48, %v6883_v62  ;;  %v4389_v62 = vld [vmem:[#allocation19 + $0x250] sm:$0xff] }
 0xd7a   : > { %v4405_v48 = vld [vmem:[#allocation19 + $0x2d0] sm:$0xff] }
 0xd7b   : > { %v4054_v4 = vadd.f32 %v6885_v3, %v6301_v7  ;;  %v8770_v7 = vpack.c.bf16 %v4390_v50, %v4389_v62  ;;  %v4406_v3 = vld [vmem:[#allocation19 + $0x2d8] sm:$0xff] }
 0xd7c   : > { %v4612_v62 = vld [vmem:[#allocation22 + $0x298] sm:$0xff] }
 0xd7d   : > { %v4124_v5 = vadd.f32 %v4123_v61, %v4054_v4  ;;  %v8768_v61 = vpack.c.bf16 %v4372_v60, %v4371_v59  ;;  %v4373_v4 = vld [vmem:[#allocation19 + $0x1d0] sm:$0xff] }
 0xd7f   : > { %v4127_v6 = vmax.f32 %v4124_v5, 0.0  ;;  %v8798_v5 = vpack.c.bf16 %v4406_v3, %v4405_v48  ;;  %v8810_v48 = vpack.c.bf16 %v4596_v56, %v4595_v55  ;;  %v4579_v3 = vld [vmem:[#allocation22 + $0x190] sm:$0xff] }
 0xd80   : > { %v4607_v56 = vld [vmem:[#allocation22 + $0x270] sm:$0xff] }
 0xd81   : > { %v4128_v8 = vmul.f32 %v4127_v6, %v10757_v25  ;;  %v4374_v6 = vld [vmem:[#allocation19 + $0x1d8] sm:$0xff] }
 0xd83   : > { %v4130_v9 = vrot.slane %v4128_v8, 7  ;;  %v8772_v8 = vpack.c.bf16 %v4374_v6, %v4373_v4  ;;  %v4580_v4 = vld [vmem:[#allocation22 + $0x198] sm:$0xff]  ;;  %v4598_v6 = vld [vmem:[#allocation22 + $0x228] sm:$0xff] }
 0xd84   : > { %v8812_v44 = vpack.c.bf16 %v4580_v4, %v4579_v3 }
 0xd85   : > { %v4132_v12 = vsel %vm1188_vm3, 0.0, %v4130_v9  ;;  %v4133_v13 = vsel %vm1188_vm3, %v4130_v9, 0.0 }
 0xd86   : > { %v4184_v19 = vrot.slane %v4132_v12, 1  ;;  %v4185_v20 = vrot.slane %v4133_v13, 1  ;;  %v4188_v21 = vrot.slane %v4132_v12, 2  ;;  %v4189_v14 = vrot.slane %v4133_v13, 2  ;;  %v4375_v12 = vld [vmem:[#allocation19 + $0x1e0] sm:$0xff]  ;;  %v4376_v13 = vld [vmem:[#allocation19 + $0x1e8] sm:$0xff] }
 0xd87   : > { %v8776_v17 = vpack.c.bf16 %v4376_v13, %v4375_v12  ;;  %v4582_v12 = vld [vmem:[#allocation22 + $0x1a8] sm:$0xff] }
 0xd88   : > { %v4186_v24 = vsel %vm1021_vm1, %v4184_v19, %v4185_v20  ;;  %v4190_v26 = vsel %vm1026_vm2, %v4188_v21, %v4189_v14  ;;  %v4394_v19 = vld [vmem:[#allocation19 + $0x278] sm:$0xff]  ;;  %v4409_v20 = vld [vmem:[#allocation19 + $0x2f0] sm:$0xff] }
 0xd89   : > { %4263 = vmatprep.mubr.f32.mxu0 %v4186_v24  ;;  %7527 = vmatmul.mubr.f32.vlgmr.msra.gmra.mrb[28].mxu1 %v4190_v26  ;;  %v8778_v21 = vpack.c.bf16 %v4394_v19, %v4393_v18  ;;  %v4410_v14 = vld [vmem:[#allocation19 + $0x2f8] sm:$0xff]  ;;  %v4593_v26 = vld [vmem:[#allocation22 + $0x200] sm:$0xff] }
 0xd8a   : > { %6304 = vmatmul.mubr.msk.f32.vlgmr.msra.gmra.mrb[32].mxu0 %vm10769_vm4, %v4130_v9  ;;  %8784 = vmatpush3.bf16.msra.mxu1 %v8783_v16  ;;  %v4407_v9 = vld [vmem:[#allocation19 + $0x2e0] sm:$0xff]  ;;  %v8804_v23 = vpack.c.bf16 %v4410_v14, %v4409_v20  ;;  %v4615_v19 = vld [vmem:[#allocation22 + $0x2b0] sm:$0xff] }
 0xd8b   : > { %8753 = vmatpush3.bf16.msra.mxu0 %v8752_v22  ;;  %8785 = vmatprep.subr.bf16.mxu1 %v10063_v0  ;;  %v8801_v16 = vpack.c.bf16 %v4408_v11, %v4407_v9  ;;  %v4377_v22 = vld [vmem:[#allocation19 + $0x1f0] sm:$0xff]  ;;  %v4581_v11 = vld [vmem:[#allocation22 + $0x1a0] sm:$0xff]  ;;  %v4600_v18 = vld [vmem:[#allocation22 + $0x238] sm:$0xff] }
 0xd8c   : > { %8755 = vmatprep.subr.bf16.mxu0 %v8754_v27  ;;  %7561 = vmatprep.mubr.msk.f32.mxu1 %vm10064_vm0, %v10065_v1  ;;  %v8780_v24 = vpack.c.bf16 %v4378_v15, %v4377_v22  ;;  %v4594_v27 = vld [vmem:[#allocation22 + $0x208] sm:$0xff]  ;;  %v4583_v14 = vld [vmem:[#allocation22 + $0x1b0] sm:$0xff]  ;;  %v4584_v22 = vld [vmem:[#allocation22 + $0x1b8] sm:$0xff] }
 0xd8d   : > { %v8806_v28 = vpack.c.bf16 %v4594_v27, %v4593_v26  ;;  %v4614_v9 = vld [vmem:[#allocation22 + $0x2a8] sm:$0xff]  ;;  %v4617_v27 = vld [vmem:[#allocation22 + $0x2c0] sm:$0xff] }
 0xd8e   : > { %8787 = vmatpush3.bf16.msra.mxu1 %v8786_v32  ;;  %v8845_v13 = vpack.c.bf16 %v4614_v9, %v4613_v45  ;;  %v4602_v26 = vld [vmem:[#allocation22 + $0x248] sm:$0xff] }
 0xd8f   : > { %8757 = vmatpush3.bf16.msra.mxu0 %v8756_v33  ;;  %8788 = vmatprep.subr.bf16.mxu1 %v10063_v0 }
 0xd90   : > { %8759 = vmatprep.subr.bf16.mxu0 %v8758_v35 }
 0xd92   : > { %8790 = vmatpush3.bf16.msra.mxu1 %v8789_v40  ;;  %v6306_v40 = vld [vmem:[#allocation26] ss:$0 sm:$0xff] }
 0xd93   : > { %8761 = vmatpush3.bf16.msra.mxu0 %v8760_v41  ;;  %8791 = vmatprep.subr.bf16.mxu1 %v10063_v0 }
 0xd94   : > { %8763 = vmatprep.subr.bf16.mxu0 %v8762_v46  ;;  %v4610_v46 = vld [vmem:[#allocation22 + $0x288] sm:$0xff] }
 0xd95   : > { %v8839_v54 = vpack.c.bf16 %v4610_v46, %v4609_v49  ;;  %v4605_v49 = vld [vmem:[#allocation22 + $0x260] sm:$0xff]  ;;  %v4606_v46 = vld [vmem:[#allocation22 + $0x268] sm:$0xff] }
 0xd96   : > { %8793 = vmatpush3.bf16.msra.mxu1 %v8792_v52 }
 0xd97   : > { %8765 = vmatpush3.bf16.msra.mxu0 %v8764_v53  ;;  %8794 = vmatprep.subr.bf16.mxu1 %v10063_v0 }
 0xd98   : > { %8767 = vmatprep.subr.bf16.mxu0 %v8766_v57 }
 0xd9a   : > { %8796 = vmatpush3.bf16.msra.mxu1 %v8795_v2  ;;  %v8808_v2 = vpack.c.bf16 %v4578_v63, %v4577_v51  ;;  %v8830_v51 = vpack.c.bf16 %v4606_v46, %v4605_v49  ;;  %v4622_v63 = vld [vmem:[#allocation22 + $0x2e8] sm:$0xff]  ;;  %v4813_v49 = vld [vmem:[#allocation19 + $0x320] sm:$0xff] }
 0xd9b   : > { %8769 = vmatpush3.bf16.msra.mxu0 %v8768_v61  ;;  %8797 = vmatprep.subr.bf16.mxu1 %v10063_v0  ;;  %v4611_v61 = vld [vmem:[#allocation22 + $0x290] sm:$0xff]  ;;  %v4814_v46 = vld [vmem:[#allocation19 + $0x328] sm:$0xff] }
 0xd9c   : > { %8771 = vmatprep.subr.bf16.mxu0 %v8770_v7 }
 0xd9e   : > { %8799 = vmatpush3.bf16.msra.mxu1 %v8798_v5  ;;  %v4597_v5 = vld [vmem:[#allocation22 + $0x220] sm:$0xff] }
 0xd9f   : > { %8773 = vmatpush3.bf16.msra.mxu0 %v8772_v8  ;;  %8800 = vmatprep.subr.bf16.mxu1 %v10063_v0  ;;  %v8842_v8 = vpack.c.bf16 %v4612_v62, %v4611_v61  ;;  %v4592_v61 = vld [vmem:[#allocation22 + $0x1f8] sm:$0xff] }
 0xda0   : > { %8775 = vmatprep.subr.bf16.mxu0 %v8774_v10  ;;  %v8814_v10 = vpack.c.bf16 %v4598_v6, %v4597_v5 }
 0xda2   : > { %8802 = vmatpush3.bf16.msra.mxu1 %v8801_v16  ;;  %v8816_v16 = vpack.c.bf16 %v4582_v12, %v4581_v11 }
 0xda3   : > { %8777 = vmatpush3.bf16.msra.mxu0 %v8776_v17  ;;  %8803 = vmatprep.subr.bf16.mxu1 %v10063_v0  ;;  %v4599_v17 = vld [vmem:[#allocation22 + $0x230] sm:$0xff] }
 0xda4   : > { %8779 = vmatprep.subr.bf16.mxu0 %v8778_v21  ;;  %v8818_v20 = vpack.c.bf16 %v4600_v18, %v4599_v17  ;;  %v4616_v21 = vld [vmem:[#allocation22 + $0x2b8] sm:$0xff] }
 0xda5   : > { %v8848_v15 = vpack.c.bf16 %v4616_v21, %v4615_v19  ;;  %v4809_v18 = vld [vmem:[#allocation19 + $0x300] sm:$0xff]  ;;  %v4810_v19 = vld [vmem:[#allocation19 + $0x308] sm:$0xff] }
 0xda6   : > { %8805 = vmatpush3.bf16.msra.mxu1 %v8804_v23  ;;  %v8820_v23 = vpack.c.bf16 %v4584_v22, %v4583_v14  ;;  %v4827_v22 = vld [vmem:[#allocation19 + $0x390] sm:$0xff] }
 0xda7   : > { %8781 = vmatpush3.bf16.msra.mxu0 %v8780_v24  ;;  %8838 = vmatprep.subr.bf16.mxu1 %v10063_v0  ;;  %v4601_v24 = vld [vmem:[#allocation22 + $0x240] sm:$0xff] }
 0xda8   : > { %8807 = vmatprep.subr.bf16.mxu0 %v8806_v28  ;;  %v8822_v28 = vpack.c.bf16 %v4602_v26, %v4601_v24 }
 0xe5c   : > { %v4335_v29 = vpop.f32.mrb[28].mxu1 }
 0xe5d   : > { %v6935_v32 = vpop.f32.mrb[32].mxu0  ;;  %v7528_v33 = vpop.f32.mrb[29].mxu1 }
 0xe5e   : > { %v6936_v31 = vpop.f32.mrb[33].mxu0  ;;  %v4586_v33 = vld [vmem:[#allocation22 + $0x1c8] sm:$0xff] }
 0xe5f   : > { %v6937_v34 = vadd.f32 %v6936_v31, %v6935_v32  ;;  %v4585_v32 = vld [vmem:[#allocation22 + $0x1c0] sm:$0xff] }
 0xe60   : > { %v8824_v31 = vpack.c.bf16 %v4586_v33, %v4585_v32  ;;  %v4844_v32 = vld [vmem:[#allocation19 + $0x418] sm:$0xff] }
 0xe61   : > { %v4266_v35 = vadd.f32 %v6937_v34, %v6302_v30  ;;  %v4603_v34 = vld [vmem:[#allocation22 + $0x250] sm:$0xff] }
 0xe63   : > { %v4336_v37 = vadd.f32 %v4335_v29, %v4266_v35  ;;  %v4618_v29 = vld [vmem:[#allocation22 + $0x2c8] sm:$0xff]  ;;  %v4604_v35 = vld [vmem:[#allocation22 + $0x258] sm:$0xff] }
 0xe64   : > { %v8851_v30 = vpack.c.bf16 %v4618_v29, %v4617_v27  ;;  %v4843_v29 = vld [vmem:[#allocation19 + $0x410] sm:$0xff] }
 0xe65   : > { %v4339_v39 = vmax.f32 %v4336_v37, 0.0  ;;  %v4619_v37 = vld [vmem:[#allocation22 + $0x2d0] sm:$0xff] }
 0xe67   : > { %v4347_v41 = vmul.f32 %v6305_v38, %v4339_v39  ;;  %v8826_v38 = vpack.c.bf16 %v4604_v35, %v4603_v34  ;;  %v4620_v39 = vld [vmem:[#allocation22 + $0x2d8] sm:$0xff]  ;;  %v4811_v34 = vld [vmem:[#allocation19 + $0x310] sm:$0xff] }
 0xe68   : > { %v4812_v35 = vld [vmem:[#allocation19 + $0x318] sm:$0xff] }
 0xe69   : > { %v4355_v42 = vadd.f32 %v6306_v40, %v4347_v41  ;;  %v4587_v40 = vld [vmem:[#allocation22 + $0x1d0] sm:$0xff]  ;;  %v4588_v41 = vld [vmem:[#allocation22 + $0x1d8] sm:$0xff] }
 0xe6b   : > { %v4356_v43 = vmul.f32 %v4355_v42, %v10757_v25  ;;  %v8854_v42 = vpack.c.bf16 %v4620_v39, %v4619_v37  ;;  %v8898_v37 = vpack.c.bf16 %v4844_v32, %v4843_v29  ;;  %v4829_v39 = vld [vmem:[#allocation19 + $0x3a0] sm:$0xff]  ;;  %v4824_v29 = vld [vmem:[#allocation19 + $0x378] sm:$0xff] }
 0xe6d   : > { %v4358_v47 = vrot.slane %v4356_v43, 7  ;;  %v8828_v43 = vpack.c.bf16 %v4588_v41, %v4587_v40  ;;  %v4830_v40 = vld [vmem:[#allocation19 + $0x3a8] sm:$0xff]  ;;  %v4845_v41 = vld [vmem:[#allocation19 + $0x420] sm:$0xff] }
 0xe6f   : > { %v4360_v52 = vsel %vm1188_vm3, 0.0, %v4358_v47  ;;  %v4361_v53 = vsel %vm1188_vm3, %v4358_v47, 0.0 }
 0xe70   : > { %v4413_v57 = vrot.slane %v4360_v52, 1  ;;  %v4414_v58 = vrot.slane %v4361_v53, 1  ;;  %v4417_v59 = vrot.slane %v4360_v52, 2  ;;  %v4418_v60 = vrot.slane %v4361_v53, 2  ;;  %v4589_v52 = vld [vmem:[#allocation22 + $0x1e0] sm:$0xff]  ;;  %v4590_v53 = vld [vmem:[#allocation22 + $0x1e8] sm:$0xff] }
 0xe71   : > { %v8832_v55 = vpack.c.bf16 %v4590_v53, %v4589_v52  ;;  %v4832_v52 = vld [vmem:[#allocation19 + $0x3b8] sm:$0xff]  ;;  %v4847_v53 = vld [vmem:[#allocation19 + $0x430] sm:$0xff] }
 0xe72   : > { %v4415_v50 = vsel %vm1021_vm1, %v4413_v57, %v4414_v58  ;;  %v4419_v7 = vsel %vm1026_vm2, %v4417_v59, %v4418_v60  ;;  %v4608_v57 = vld [vmem:[#allocation22 + $0x278] sm:$0xff]  ;;  %v4623_v58 = vld [vmem:[#allocation22 + $0x2f0] sm:$0xff] }
 0xe73   : > { %4493 = vmatprep.mubr.f32.mxu0 %v4415_v50  ;;  %7562 = vmatmul.mubr.f32.vlgmr.msra.gmra.mrb[30].mxu1 %v4419_v7  ;;  %v8834_v59 = vpack.c.bf16 %v4608_v57, %v4607_v56  ;;  %v4624_v60 = vld [vmem:[#allocation22 + $0x2f8] sm:$0xff]  ;;  %v4815_v56 = vld [vmem:[#allocation19 + $0x330] sm:$0xff] }
 0xe74   : > { %6309 = vmatmul.mubr.msk.f32.vlgmr.msra.gmra.mrb[34].mxu0 %vm10769_vm4, %v4358_v47  ;;  %8840 = vmatpush3.bf16.msra.mxu1 %v8839_v54  ;;  %v4621_v47 = vld [vmem:[#allocation22 + $0x2e0] sm:$0xff]  ;;  %v8860_v62 = vpack.c.bf16 %v4624_v60, %v4623_v58  ;;  %v4816_v57 = vld [vmem:[#allocation19 + $0x338] sm:$0xff] }
 0xe75   : > { %8809 = vmatpush3.bf16.msra.mxu0 %v8808_v2  ;;  %8841 = vmatprep.subr.bf16.mxu1 %v10063_v0  ;;  %v8857_v54 = vpack.c.bf16 %v4622_v63, %v4621_v47  ;;  %v4591_v2 = vld [vmem:[#allocation22 + $0x1f0] sm:$0xff]  ;;  %v4825_v7 = vld [vmem:[#allocation19 + $0x380] sm:$0xff] }
 0xe76   : > { %8811 = vmatprep.subr.bf16.mxu0 %v8810_v48  ;;  %7596 = vmatprep.mubr.msk.f32.mxu1 %vm10064_vm0, %v10065_v1  ;;  %v8836_v50 = vpack.c.bf16 %v4592_v61, %v4591_v2  ;;  %v4826_v48 = vld [vmem:[#allocation19 + $0x388] sm:$0xff]  ;;  %v4831_v63 = vld [vmem:[#allocation19 + $0x3b0] sm:$0xff]  ;;  %v4833_v60 = vld [vmem:[#allocation19 + $0x3c0] sm:$0xff] }
 0xe77   : > { %v8862_v3 = vpack.c.bf16 %v4826_v48, %v4825_v7  ;;  %v4834_v2 = vld [vmem:[#allocation19 + $0x3c8] sm:$0xff]  ;;  %v4849_v61 = vld [vmem:[#allocation19 + $0x440] sm:$0xff] }
 0xe78   : > { %8843 = vmatpush3.bf16.msra.mxu1 %v8842_v8  ;;  %v6307_v8 = vld [vmem:[#allocation20 + $0x1] ss:$0 sm:$0xff]  ;;  %v4818_v48 = vld [vmem:[#allocation19 + $0x348] sm:$0xff] }
 0xe79   : > { %8813 = vmatpush3.bf16.msra.mxu0 %v8812_v44  ;;  %8844 = vmatprep.subr.bf16.mxu1 %v10063_v0  ;;  %v4817_v7 = vld [vmem:[#allocation19 + $0x340] sm:$0xff] }
 0xe7a   : > { %8815 = vmatprep.subr.bf16.mxu0 %v8814_v10 }
 0xe7c   : > { %8846 = vmatpush3.bf16.msra.mxu1 %v8845_v13  ;;  %v4841_v13 = vld [vmem:[#allocation19 + $0x400] sm:$0xff] }
 0xe7d   : > { %8817 = vmatpush3.bf16.msra.mxu0 %v8816_v16  ;;  %8847 = vmatprep.subr.bf16.mxu1 %v10063_v0  ;;  %v4842_v16 = vld [vmem:[#allocation19 + $0x408] sm:$0xff] }
 0xe7e   : > { %8819 = vmatprep.subr.bf16.mxu0 %v8818_v20  ;;  %v8895_v14 = vpack.c.bf16 %v4842_v16, %v4841_v13  ;;  %v4837_v13 = vld [vmem:[#allocation19 + $0x3e0] sm:$0xff]  ;;  %v4838_v16 = vld [vmem:[#allocation19 + $0x3e8] sm:$0xff] }
 0xe80   : > { %8849 = vmatpush3.bf16.msra.mxu1 %v8848_v15  ;;  %v4828_v15 = vld [vmem:[#allocation19 + $0x398] sm:$0xff] }
 0xe81   : > { %8821 = vmatpush3.bf16.msra.mxu0 %v8820_v23  ;;  %8850 = vmatprep.subr.bf16.mxu1 %v10063_v0 }
 0xe82   : > { %8823 = vmatprep.subr.bf16.mxu0 %v8822_v28  ;;  %v8864_v28 = vpack.c.bf16 %v4810_v19, %v4809_v18  ;;  %v8886_v18 = vpack.c.bf16 %v4838_v16, %v4837_v13  ;;  %v4854_v19 = vld [vmem:[#allocation19 + $0x468] sm:$0xff] }
 0xe83   : > { %v5059_v16 = vld [vmem:[#allocation22 + $0x420] sm:$0xff] }
 0xe84   : > { %8852 = vmatpush3.bf16.msra.mxu1 %v8851_v30 }
 0xe85   : > { %8825 = vmatpush3.bf16.msra.mxu0 %v8824_v31  ;;  %8853 = vmatprep.subr.bf16.mxu1 %v10063_v0  ;;  %v8866_v31 = vpack.c.bf16 %v4828_v15, %v4827_v22  ;;  %v4839_v15 = vld [vmem:[#allocation19 + $0x3f0] sm:$0xff] }
 0xe86   : > { %8827 = vmatprep.subr.bf16.mxu0 %v8826_v38  ;;  %v8868_v38 = vpack.c.bf16 %v4812_v35, %v4811_v34 }
 0xe88   : > { %8855 = vmatpush3.bf16.msra.mxu1 %v8854_v42  ;;  %v8870_v42 = vpack.c.bf16 %v4830_v40, %v4829_v39  ;;  %v6310_v39 = vld [vmem:[#allocation23 + $0x1] ss:$0 sm:$0xff] }
 0xe89   : > { %8829 = vmatpush3.bf16.msra.mxu0 %v8828_v43  ;;  %8856 = vmatprep.subr.bf16.mxu1 %v10063_v0  ;;  %v4846_v43 = vld [vmem:[#allocation19 + $0x428] sm:$0xff] }
 0xe8a   : > { %8831 = vmatprep.subr.bf16.mxu0 %v8830_v51  ;;  %v8901_v47 = vpack.c.bf16 %v4846_v43, %v4845_v41  ;;  %v8872_v51 = vpack.c.bf16 %v4814_v46, %v4813_v49  ;;  %v6313_v49 = vld [vmem:[#allocation25 + $0x1] ss:$0 sm:$0xff] }
 0xe8c   : > { %8858 = vmatpush3.bf16.msra.mxu1 %v8857_v54  ;;  %v8874_v54 = vpack.c.bf16 %v4832_v52, %v4831_v63 }
 0xe8d   : > { %8833 = vmatpush3.bf16.msra.mxu0 %v8832_v55  ;;  %8859 = vmatprep.subr.bf16.mxu1 %v10063_v0  ;;  %v4848_v55 = vld [vmem:[#allocation19 + $0x438] sm:$0xff] }
 0xe8e   : > { %8835 = vmatprep.subr.bf16.mxu0 %v8834_v59  ;;  %v8904_v58 = vpack.c.bf16 %v4848_v55, %v4847_v53  ;;  %v8876_v59 = vpack.c.bf16 %v4816_v57, %v4815_v56  ;;  %v5055_v53 = vld [vmem:[#allocation22 + $0x400] sm:$0xff]  ;;  %v5024_v57 = vld [vmem:[#allocation22 + $0x308] sm:$0xff] }
 0xe8f   : > { %v5023_v56 = vld [vmem:[#allocation22 + $0x300] sm:$0xff] }
 0xe90   : > { %8861 = vmatpush3.bf16.msra.mxu1 %v8860_v62  ;;  %v8878_v62 = vpack.c.bf16 %v4834_v2, %v4833_v60  ;;  %v5041_v2 = vld [vmem:[#allocation22 + $0x390] sm:$0xff] }
 0xe91   : > { %8837 = vmatpush3.bf16.msra.mxu0 %v8836_v50  ;;  %8894 = vmatprep.subr.bf16.mxu1 %v10063_v0  ;;  %v4850_v50 = vld [vmem:[#allocation19 + $0x448] sm:$0xff] }
 0xe92   : > { %8863 = vmatprep.subr.bf16.mxu0 %v8862_v3  ;;  %v8907_v3 = vpack.c.bf16 %v4850_v50, %v4849_v61  ;;  %v5042_v61 = vld [vmem:[#allocation22 + $0x398] sm:$0xff] }
 0xf46   : > { %v4565_v4 = vpop.f32.mrb[30].mxu1 }
 0xf47   : > { %v6987_v5 = vpop.f32.mrb[34].mxu0  ;;  %v7563_v6 = vpop.f32.mrb[31].mxu1 }
 0xf48   : > { %v6988_v44 = vpop.f32.mrb[35].mxu0  ;;  %v4836_v6 = vld [vmem:[#allocation19 + $0x3d8] sm:$0xff] }
 0xf49   : > { %v6989_v45 = vadd.f32 %v6988_v44, %v6987_v5  ;;  %v4835_v5 = vld [vmem:[#allocation19 + $0x3d0] sm:$0xff] }
 0xf4a   : > { %v4851_v44 = vld [vmem:[#allocation19 + $0x450] sm:$0xff] }
 0xf4b   : > { %v4496_v9 = vadd.f32 %v6989_v45, %v6307_v8  ;;  %v8882_v8 = vpack.c.bf16 %v4836_v6, %v4835_v5  ;;  %v4852_v45 = vld [vmem:[#allocation19 + $0x458] sm:$0xff] }
 0xf4c   : > { %v5058_v5 = vld [vmem:[#allocation22 + $0x418] sm:$0xff] }
 0xf4d   : > { %v4566_v10 = vadd.f32 %v4565_v4, %v4496_v9  ;;  %v8880_v4 = vpack.c.bf16 %v4818_v48, %v4817_v7  ;;  %v4819_v9 = vld [vmem:[#allocation19 + $0x350] sm:$0xff] }
 0xf4f   : > { %v4569_v11 = vmax.f32 %v4566_v10, 0.0  ;;  %v8910_v10 = vpack.c.bf16 %v4852_v45, %v4851_v44  ;;  %v8922_v44 = vpack.c.bf16 %v5042_v61, %v5041_v2  ;;  %v5025_v45 = vld [vmem:[#allocation22 + $0x310] sm:$0xff] }
 0xf50   : > { %v5053_v61 = vld [vmem:[#allocation22 + $0x3f0] sm:$0xff] }
 0xf51   : > { %v4570_v12 = vmul.f32 %v4569_v11, %v10757_v25  ;;  %v4820_v11 = vld [vmem:[#allocation19 + $0x358] sm:$0xff] }
 0xf53   : > { %v4572_v17 = vrot.slane %v4570_v12, 7  ;;  %v8884_v12 = vpack.c.bf16 %v4820_v11, %v4819_v9  ;;  %v5026_v9 = vld [vmem:[#allocation22 + $0x318] sm:$0xff]  ;;  %v5044_v11 = vld [vmem:[#allocation22 + $0x3a8] sm:$0xff] }
 0xf54   : > { %v8924_v13 = vpack.c.bf16 %v5026_v9, %v5025_v45 }
 0xf55   : > { %v4574_v20 = vsel %vm1188_vm3, 0.0, %v4572_v17  ;;  %v4575_v21 = vsel %vm1188_vm3, %v4572_v17, 0.0 }
 0xf56   : > { %v4627_v23 = vrot.slane %v4574_v20, 1  ;;  %v4628_v24 = vrot.slane %v4575_v21, 1  ;;  %v4631_v26 = vrot.slane %v4574_v20, 2  ;;  %v4632_v27 = vrot.slane %v4575_v21, 2  ;;  %v4821_v20 = vld [vmem:[#allocation19 + $0x360] sm:$0xff]  ;;  %v4822_v21 = vld [vmem:[#allocation19 + $0x368] sm:$0xff] }
 0xf57   : > { %v8888_v22 = vpack.c.bf16 %v4822_v21, %v4821_v20  ;;  %v5028_v20 = vld [vmem:[#allocation22 + $0x328] sm:$0xff] }
 0xf58   : > { %v4629_v33 = vsel %vm1021_vm1, %v4627_v23, %v4628_v24  ;;  %v4633_v30 = vsel %vm1026_vm2, %v4631_v26, %v4632_v27  ;;  %v4840_v23 = vld [vmem:[#allocation19 + $0x3f8] sm:$0xff]  ;;  %v4855_v24 = vld [vmem:[#allocation19 + $0x470] sm:$0xff] }
 0xf59   : > { %4707 = vmatprep.mubr.f32.mxu0 %v4629_v33  ;;  %7597 = vmatmul.mubr.f32.vlgmr.msra.gmra.mrb[32].mxu1 %v4633_v30  ;;  %v8890_v26 = vpack.c.bf16 %v4840_v23, %v4839_v15  ;;  %v4856_v27 = vld [vmem:[#allocation19 + $0x478] sm:$0xff]  ;;  %v5039_v30 = vld [vmem:[#allocation22 + $0x380] sm:$0xff] }
 0xf5a   : > { %6312 = vmatmul.mubr.msk.f32.vlgmr.msra.gmra.mrb[36].mxu0 %vm10769_vm4, %v4572_v17  ;;  %8896 = vmatpush3.bf16.msra.mxu1 %v8895_v14  ;;  %v4853_v17 = vld [vmem:[#allocation19 + $0x460] sm:$0xff]  ;;  %v8916_v32 = vpack.c.bf16 %v4856_v27, %v4855_v24  ;;  %v5061_v23 = vld [vmem:[#allocation22 + $0x430] sm:$0xff] }
 0xf5b   : > { %8865 = vmatpush3.bf16.msra.mxu0 %v8864_v28  ;;  %8897 = vmatprep.subr.bf16.mxu1 %v10063_v0  ;;  %v8913_v14 = vpack.c.bf16 %v4854_v19, %v4853_v17  ;;  %v4823_v28 = vld [vmem:[#allocation19 + $0x370] sm:$0xff]  ;;  %v5027_v19 = vld [vmem:[#allocation22 + $0x320] sm:$0xff]  ;;  %v5046_v15 = vld [vmem:[#allocation22 + $0x3b8] sm:$0xff] }
 0xf5c   : > { %8867 = vmatprep.subr.bf16.mxu0 %v8866_v31  ;;  %7631 = vmatprep.mubr.msk.f32.mxu1 %vm10064_vm0, %v10065_v1  ;;  %v8892_v33 = vpack.c.bf16 %v4824_v29, %v4823_v28  ;;  %v5040_v31 = vld [vmem:[#allocation22 + $0x388] sm:$0xff]  ;;  %v5029_v27 = vld [vmem:[#allocation22 + $0x330] sm:$0xff]  ;;  %v5030_v28 = vld [vmem:[#allocation22 + $0x338] sm:$0xff] }
 0xf5d   : > { %v8918_v34 = vpack.c.bf16 %v5040_v31, %v5039_v30  ;;  %v5060_v17 = vld [vmem:[#allocation22 + $0x428] sm:$0xff]  ;;  %v5063_v31 = vld [vmem:[#allocation22 + $0x440] sm:$0xff] }
 0xf5e   : > { %8899 = vmatpush3.bf16.msra.mxu1 %v8898_v37  ;;  %v8957_v21 = vpack.c.bf16 %v5060_v17, %v5059_v16  ;;  %v5048_v30 = vld [vmem:[#allocation22 + $0x3c8] sm:$0xff] }
 0xf5f   : > { %8869 = vmatpush3.bf16.msra.mxu0 %v8868_v38  ;;  %8900 = vmatprep.subr.bf16.mxu1 %v10063_v0 }
 0xf60   : > { %8871 = vmatprep.subr.bf16.mxu0 %v8870_v42 }
 0xf62   : > { %8902 = vmatpush3.bf16.msra.mxu1 %v8901_v47  ;;  %v6314_v47 = vld [vmem:[#allocation26 + $0x1] ss:$0 sm:$0xff] }
 0xf63   : > { %8873 = vmatpush3.bf16.msra.mxu0 %v8872_v51  ;;  %8903 = vmatprep.subr.bf16.mxu1 %v10063_v0 }
 0xf64   : > { %8875 = vmatprep.subr.bf16.mxu0 %v8874_v54  ;;  %v5056_v54 = vld [vmem:[#allocation22 + $0x408] sm:$0xff] }
 0xf65   : > { %v8951_v60 = vpack.c.bf16 %v5056_v54, %v5055_v53  ;;  %v5051_v53 = vld [vmem:[#allocation22 + $0x3e0] sm:$0xff]  ;;  %v5052_v54 = vld [vmem:[#allocation22 + $0x3e8] sm:$0xff] }
 0xf66   : > { %8905 = vmatpush3.bf16.msra.mxu1 %v8904_v58 }
 0xf67   : > { %8877 = vmatpush3.bf16.msra.mxu0 %v8876_v59  ;;  %8906 = vmatprep.subr.bf16.mxu1 %v10063_v0 }
 0xf68   : > { %8879 = vmatprep.subr.bf16.mxu0 %v8878_v62 }
 0xf6a   : > { %8908 = vmatpush3.bf16.msra.mxu1 %v8907_v3  ;;  %v8920_v3 = vpack.c.bf16 %v5024_v57, %v5023_v56  ;;  %v8942_v56 = vpack.c.bf16 %v5052_v54, %v5051_v53  ;;  %v5068_v57 = vld [vmem:[#allocation22 + $0x468] sm:$0xff]  ;;  %v5259_v53 = vld [vmem:[#allocation19 + $0x4a0] sm:$0xff] }
 0xf6b   : > { %8881 = vmatpush3.bf16.msra.mxu0 %v8880_v4  ;;  %8909 = vmatprep.subr.bf16.mxu1 %v10063_v0  ;;  %v5057_v4 = vld [vmem:[#allocation22 + $0x410] sm:$0xff]  ;;  %v5260_v54 = vld [vmem:[#allocation19 + $0x4a8] sm:$0xff] }
 0xf6c   : > { %8883 = vmatprep.subr.bf16.mxu0 %v8882_v8 }
 0xf6e   : > { %8911 = vmatpush3.bf16.msra.mxu1 %v8910_v10  ;;  %v5043_v10 = vld [vmem:[#allocation22 + $0x3a0] sm:$0xff] }
 0xf6f   : > { %8885 = vmatpush3.bf16.msra.mxu0 %v8884_v12  ;;  %8912 = vmatprep.subr.bf16.mxu1 %v10063_v0  ;;  %v8954_v12 = vpack.c.bf16 %v5058_v5, %v5057_v4  ;;  %v5038_v4 = vld [vmem:[#allocation22 + $0x378] sm:$0xff] }
 0xf70   : > { %8887 = vmatprep.subr.bf16.mxu0 %v8886_v18  ;;  %v8926_v18 = vpack.c.bf16 %v5044_v11, %v5043_v10 }
 0xf72   : > { %8914 = vmatpush3.bf16.msra.mxu1 %v8913_v14  ;;  %v8928_v14 = vpack.c.bf16 %v5028_v20, %v5027_v19 }
 0xf73   : > { %8889 = vmatpush3.bf16.msra.mxu0 %v8888_v22  ;;  %8915 = vmatprep.subr.bf16.mxu1 %v10063_v0  ;;  %v5045_v22 = vld [vmem:[#allocation22 + $0x3b0] sm:$0xff] }
 0xf74   : > { %8891 = vmatprep.subr.bf16.mxu0 %v8890_v26  ;;  %v8930_v24 = vpack.c.bf16 %v5046_v15, %v5045_v22  ;;  %v5062_v26 = vld [vmem:[#allocation22 + $0x438] sm:$0xff] }
 0xf75   : > { %v8960_v29 = vpack.c.bf16 %v5062_v26, %v5061_v23  ;;  %v5255_v15 = vld [vmem:[#allocation19 + $0x480] sm:$0xff]  ;;  %v5256_v23 = vld [vmem:[#allocation19 + $0x488] sm:$0xff] }
 0xf76   : > { %8917 = vmatpush3.bf16.msra.mxu1 %v8916_v32  ;;  %v8932_v32 = vpack.c.bf16 %v5030_v28, %v5029_v27  ;;  %v5273_v28 = vld [vmem:[#allocation19 + $0x510] sm:$0xff] }
 0xf77   : > { %8893 = vmatpush3.bf16.msra.mxu0 %v8892_v33  ;;  %8950 = vmatprep.subr.bf16.mxu1 %v10063_v0  ;;  %v5047_v33 = vld [vmem:[#allocation22 + $0x3c0] sm:$0xff] }
 0xf78   : > { %8919 = vmatprep.subr.bf16.mxu0 %v8918_v34  ;;  %v8934_v34 = vpack.c.bf16 %v5048_v30, %v5047_v33 }
0x102c   : > { %v4779_v35 = vpop.f32.mrb[32].mxu1 }
0x102d   : > { %v7039_v37 = vpop.f32.mrb[36].mxu0  ;;  %v7598_v38 = vpop.f32.mrb[33].mxu1 }
0x102e   : > { %v7040_v40 = vpop.f32.mrb[37].mxu0  ;;  %v5032_v38 = vld [vmem:[#allocation22 + $0x348] sm:$0xff] }
0x102f   : > { %v7041_v41 = vadd.f32 %v7040_v40, %v7039_v37  ;;  %v5031_v37 = vld [vmem:[#allocation22 + $0x340] sm:$0xff] }
0x1030   : > { %v8936_v40 = vpack.c.bf16 %v5032_v38, %v5031_v37  ;;  %v5290_v37 = vld [vmem:[#allocation19 + $0x598] sm:$0xff] }
0x1031   : > { %v4710_v42 = vadd.f32 %v7041_v41, %v6310_v39  ;;  %v5049_v41 = vld [vmem:[#allocation22 + $0x3d0] sm:$0xff] }
0x1033   : > { %v4780_v43 = vadd.f32 %v4779_v35, %v4710_v42  ;;  %v5064_v35 = vld [vmem:[#allocation22 + $0x448] sm:$0xff]  ;;  %v5050_v42 = vld [vmem:[#allocation22 + $0x3d8] sm:$0xff] }
0x1034   : > { %v8963_v39 = vpack.c.bf16 %v5064_v35, %v5063_v31  ;;  %v5289_v35 = vld [vmem:[#allocation19 + $0x590] sm:$0xff] }
0x1035   : > { %v4783_v46 = vmax.f32 %v4780_v43, 0.0  ;;  %v5065_v43 = vld [vmem:[#allocation22 + $0x450] sm:$0xff] }
0x1037   : > { %v4792_v51 = vmul.f32 %v6313_v49, %v4783_v46  ;;  %v8938_v49 = vpack.c.bf16 %v5050_v42, %v5049_v41  ;;  %v5066_v46 = vld [vmem:[#allocation22 + $0x458] sm:$0xff]  ;;  %v5257_v41 = vld [vmem:[#allocation19 + $0x490] sm:$0xff] }
0x1038   : > { %v5258_v42 = vld [vmem:[#allocation19 + $0x498] sm:$0xff] }
0x1039   : > { %v4801_v63 = vadd.f32 %v6314_v47, %v4792_v51  ;;  %v5033_v47 = vld [vmem:[#allocation22 + $0x350] sm:$0xff]  ;;  %v5034_v51 = vld [vmem:[#allocation22 + $0x358] sm:$0xff] }
0x103b   : > { %v4802_v52 = vmul.f32 %v4801_v63, %v10757_v25  ;;  %v8966_v63 = vpack.c.bf16 %v5066_v46, %v5065_v43  ;;  %v9010_v43 = vpack.c.bf16 %v5290_v37, %v5289_v35  ;;  %v5275_v46 = vld [vmem:[#allocation19 + $0x520] sm:$0xff]  ;;  %v5270_v35 = vld [vmem:[#allocation19 + $0x4f8] sm:$0xff] }
0x103d   : > { %v4804_v55 = vrot.slane %v4802_v52, 7  ;;  %v8940_v52 = vpack.c.bf16 %v5034_v51, %v5033_v47  ;;  %v5276_v47 = vld [vmem:[#allocation19 + $0x528] sm:$0xff]  ;;  %v5291_v51 = vld [vmem:[#allocation19 + $0x5a0] sm:$0xff] }
0x103f   : > { %v4806_v58 = vsel %vm1188_vm3, 0.0, %v4804_v55  ;;  %v4807_v59 = vsel %vm1188_vm3, %v4804_v55, 0.0 }
0x1040   : > { %v4859_v62 = vrot.slane %v4806_v58, 1  ;;  %v4860_v50 = vrot.slane %v4807_v59, 1  ;;  %v4863_v7 = vrot.slane %v4806_v58, 2  ;;  %v4864_v48 = vrot.slane %v4807_v59, 2  ;;  %v5035_v58 = vld [vmem:[#allocation22 + $0x360] sm:$0xff]  ;;  %v5036_v59 = vld [vmem:[#allocation22 + $0x368] sm:$0xff] }
0x1041   : > { %v8944_v2 = vpack.c.bf16 %v5036_v59, %v5035_v58  ;;  %v5278_v58 = vld [vmem:[#allocation19 + $0x538] sm:$0xff]  ;;  %v5293_v59 = vld [vmem:[#allocation19 + $0x5b0] sm:$0xff] }
0x1042   : > { %v4861_v6 = vsel %vm1021_vm1, %v4859_v62, %v4860_v50  ;;  %v4865_v8 = vsel %vm1026_vm2, %v4863_v7, %v4864_v48  ;;  %v5054_v62 = vld [vmem:[#allocation22 + $0x3f8] sm:$0xff]  ;;  %v5069_v50 = vld [vmem:[#allocation22 + $0x470] sm:$0xff] }
0x1043   : > { %4939 = vmatprep.mubr.f32.mxu0 %v4861_v6  ;;  %7632 = vmatmul.mubr.f32.vlgmr.msra.gmra.mrb[34].mxu1 %v4865_v8  ;;  %v8946_v7 = vpack.c.bf16 %v5054_v62, %v5053_v61  ;;  %v5070_v48 = vld [vmem:[#allocation22 + $0x478] sm:$0xff]  ;;  %v5261_v61 = vld [vmem:[#allocation19 + $0x4b0] sm:$0xff] }
0x1044   : > { %6317 = vmatmul.mubr.msk.f32.vlgmr.msra.gmra.mrb[38].mxu0 %vm10769_vm4, %v4804_v55  ;;  %8952 = vmatpush3.bf16.msra.mxu1 %v8951_v60  ;;  %v5067_v55 = vld [vmem:[#allocation22 + $0x460] sm:$0xff]  ;;  %v8972_v5 = vpack.c.bf16 %v5070_v48, %v5069_v50  ;;  %v5262_v62 = vld [vmem:[#allocation19 + $0x4b8] sm:$0xff] }
0x1045   : > { %8921 = vmatpush3.bf16.msra.mxu0 %v8920_v3  ;;  %8953 = vmatprep.subr.bf16.mxu1 %v10063_v0  ;;  %v8969_v60 = vpack.c.bf16 %v5068_v57, %v5067_v55  ;;  %v5037_v3 = vld [vmem:[#allocation22 + $0x370] sm:$0xff]  ;;  %v5271_v8 = vld [vmem:[#allocation19 + $0x500] sm:$0xff] }
0x1046   : > { %8923 = vmatprep.subr.bf16.mxu0 %v8922_v44  ;;  %7666 = vmatprep.mubr.msk.f32.mxu1 %vm10064_vm0, %v10065_v1  ;;  %v8948_v6 = vpack.c.bf16 %v5038_v4, %v5037_v3  ;;  %v5272_v44 = vld [vmem:[#allocation19 + $0x508] sm:$0xff]  ;;  %v5277_v57 = vld [vmem:[#allocation19 + $0x530] sm:$0xff]  ;;  %v5279_v48 = vld [vmem:[#allocation19 + $0x540] sm:$0xff] }
0x1047   : > { %v8974_v45 = vpack.c.bf16 %v5272_v44, %v5271_v8  ;;  %v5280_v3 = vld [vmem:[#allocation19 + $0x548] sm:$0xff]  ;;  %v5295_v4 = vld [vmem:[#allocation19 + $0x5c0] sm:$0xff] }
0x1048   : > { %8955 = vmatpush3.bf16.msra.mxu1 %v8954_v12  ;;  %v6315_v12 = vld [vmem:[#allocation20 + $0x2] ss:$0 sm:$0xff]  ;;  %v5264_v44 = vld [vmem:[#allocation19 + $0x4c8] sm:$0xff] }
0x1049   : > { %8925 = vmatpush3.bf16.msra.mxu0 %v8924_v13  ;;  %8956 = vmatprep.subr.bf16.mxu1 %v10063_v0  ;;  %v5263_v8 = vld [vmem:[#allocation19 + $0x4c0] sm:$0xff] }
0x104a   : > { %8927 = vmatprep.subr.bf16.mxu0 %v8926_v18 }
0x104c   : > { %8958 = vmatpush3.bf16.msra.mxu1 %v8957_v21  ;;  %v5287_v21 = vld [vmem:[#allocation19 + $0x580] sm:$0xff] }
0x104d   : > { %8929 = vmatpush3.bf16.msra.mxu0 %v8928_v14  ;;  %8959 = vmatprep.subr.bf16.mxu1 %v10063_v0  ;;  %v5288_v14 = vld [vmem:[#allocation19 + $0x588] sm:$0xff] }
0x104e   : > { %8931 = vmatprep.subr.bf16.mxu0 %v8930_v24  ;;  %v9007_v27 = vpack.c.bf16 %v5288_v14, %v5287_v21  ;;  %v5283_v21 = vld [vmem:[#allocation19 + $0x560] sm:$0xff]  ;;  %v5284_v14 = vld [vmem:[#allocation19 + $0x568] sm:$0xff] }
0x1050   : > { %8961 = vmatpush3.bf16.msra.mxu1 %v8960_v29  ;;  %v5274_v29 = vld [vmem:[#allocation19 + $0x518] sm:$0xff] }
0x1051   : > { %8933 = vmatpush3.bf16.msra.mxu0 %v8932_v32  ;;  %8962 = vmatprep.subr.bf16.mxu1 %v10063_v0 }
0x1052   : > { %8935 = vmatprep.subr.bf16.mxu0 %v8934_v34  ;;  %v8976_v34 = vpack.c.bf16 %v5256_v23, %v5255_v15  ;;  %v8998_v15 = vpack.c.bf16 %v5284_v14, %v5283_v21  ;;  %v5300_v23 = vld [vmem:[#allocation19 + $0x5e8] sm:$0xff] }
0x1053   : > { %v5505_v14 = vld [vmem:[#allocation22 + $0x5a0] sm:$0xff] }
0x1054   : > { %8964 = vmatpush3.bf16.msra.mxu1 %v8963_v39 }
0x1055   : > { %8937 = vmatpush3.bf16.msra.mxu0 %v8936_v40  ;;  %8965 = vmatprep.subr.bf16.mxu1 %v10063_v0  ;;  %v8978_v40 = vpack.c.bf16 %v5274_v29, %v5273_v28  ;;  %v5285_v29 = vld [vmem:[#allocation19 + $0x570] sm:$0xff] }
0x1056   : > { %8939 = vmatprep.subr.bf16.mxu0 %v8938_v49  ;;  %v8980_v49 = vpack.c.bf16 %v5258_v42, %v5257_v41 }
0x1058   : > { %8967 = vmatpush3.bf16.msra.mxu1 %v8966_v63  ;;  %v8982_v63 = vpack.c.bf16 %v5276_v47, %v5275_v46  ;;  %v6318_v46 = vld [vmem:[#allocation23 + $0x2] ss:$0 sm:$0xff] }
0x1059   : > { %8941 = vmatpush3.bf16.msra.mxu0 %v8940_v52  ;;  %8968 = vmatprep.subr.bf16.mxu1 %v10063_v0  ;;  %v5292_v52 = vld [vmem:[#allocation19 + $0x5a8] sm:$0xff] }
0x105a   : > { %8943 = vmatprep.subr.bf16.mxu0 %v8942_v56  ;;  %v9013_v55 = vpack.c.bf16 %v5292_v52, %v5291_v51  ;;  %v8984_v56 = vpack.c.bf16 %v5260_v54, %v5259_v53  ;;  %v6321_v53 = vld [vmem:[#allocation25 + $0x2] ss:$0 sm:$0xff] }
0x105c   : > { %8970 = vmatpush3.bf16.msra.mxu1 %v8969_v60  ;;  %v8986_v60 = vpack.c.bf16 %v5278_v58, %v5277_v57 }
0x105d   : > { %8945 = vmatpush3.bf16.msra.mxu0 %v8944_v2  ;;  %8971 = vmatprep.subr.bf16.mxu1 %v10063_v0  ;;  %v5294_v2 = vld [vmem:[#allocation19 + $0x5b8] sm:$0xff] }
0x105e   : > { %8947 = vmatprep.subr.bf16.mxu0 %v8946_v7  ;;  %v9016_v50 = vpack.c.bf16 %v5294_v2, %v5293_v59  ;;  %v8988_v7 = vpack.c.bf16 %v5262_v62, %v5261_v61  ;;  %v5501_v59 = vld [vmem:[#allocation22 + $0x580] sm:$0xff]  ;;  %v5470_v62 = vld [vmem:[#allocation22 + $0x488] sm:$0xff] }
0x105f   : > { %v5469_v61 = vld [vmem:[#allocation22 + $0x480] sm:$0xff] }
0x1060   : > { %8973 = vmatpush3.bf16.msra.mxu1 %v8972_v5  ;;  %v8990_v5 = vpack.c.bf16 %v5280_v3, %v5279_v48  ;;  %v5487_v3 = vld [vmem:[#allocation22 + $0x510] sm:$0xff] }
0x1061   : > { %8949 = vmatpush3.bf16.msra.mxu0 %v8948_v6  ;;  %9006 = vmatprep.subr.bf16.mxu1 %v10063_v0  ;;  %v5296_v6 = vld [vmem:[#allocation19 + $0x5c8] sm:$0xff] }
0x1062   : > { %8975 = vmatprep.subr.bf16.mxu0 %v8974_v45  ;;  %v9019_v45 = vpack.c.bf16 %v5296_v6, %v5295_v4  ;;  %v5488_v4 = vld [vmem:[#allocation22 + $0x518] sm:$0xff] }
0x1116   : > { %v5011_v9 = vpop.f32.mrb[34].mxu1 }
0x1117   : > { %v7091_v10 = vpop.f32.mrb[38].mxu0  ;;  %v7633_v11 = vpop.f32.mrb[35].mxu1 }
0x1118   : > { %v7092_v13 = vpop.f32.mrb[39].mxu0  ;;  %v5282_v11 = vld [vmem:[#allocation19 + $0x558] sm:$0xff] }
0x1119   : > { %v7093_v16 = vadd.f32 %v7092_v13, %v7091_v10  ;;  %v5281_v10 = vld [vmem:[#allocation19 + $0x550] sm:$0xff] }
0x111a   : > { %v5297_v13 = vld [vmem:[#allocation19 + $0x5d0] sm:$0xff] }
0x111b   : > { %v4942_v17 = vadd.f32 %v7093_v16, %v6315_v12  ;;  %v8994_v12 = vpack.c.bf16 %v5282_v11, %v5281_v10  ;;  %v5298_v16 = vld [vmem:[#allocation19 + $0x5d8] sm:$0xff] }
0x111c   : > { %v5504_v10 = vld [vmem:[#allocation22 + $0x598] sm:$0xff] }
0x111d   : > { %v5012_v18 = vadd.f32 %v5011_v9, %v4942_v17  ;;  %v8992_v9 = vpack.c.bf16 %v5264_v44, %v5263_v8  ;;  %v5265_v17 = vld [vmem:[#allocation19 + $0x4d0] sm:$0xff] }
0x111f   : > { %v5015_v19 = vmax.f32 %v5012_v18, 0.0  ;;  %v9022_v18 = vpack.c.bf16 %v5298_v16, %v5297_v13  ;;  %v9034_v13 = vpack.c.bf16 %v5488_v4, %v5487_v3  ;;  %v5471_v16 = vld [vmem:[#allocation22 + $0x490] sm:$0xff] }
0x1120   : > { %v5499_v4 = vld [vmem:[#allocation22 + $0x570] sm:$0xff] }
0x1121   : > { %v5016_v20 = vmul.f32 %v5015_v19, %v10757_v25  ;;  %v5266_v19 = vld [vmem:[#allocation19 + $0x4d8] sm:$0xff] }
0x1123   : > { %v5018_v22 = vrot.slane %v5016_v20, 7  ;;  %v8996_v20 = vpack.c.bf16 %v5266_v19, %v5265_v17  ;;  %v5472_v17 = vld [vmem:[#allocation22 + $0x498] sm:$0xff]  ;;  %v5490_v19 = vld [vmem:[#allocation22 + $0x528] sm:$0xff] }
0x1124   : > { %v9036_v21 = vpack.c.bf16 %v5472_v17, %v5471_v16 }
0x1125   : > { %v5020_v24 = vsel %vm1188_vm3, 0.0, %v5018_v22  ;;  %v5021_v26 = vsel %vm1188_vm3, %v5018_v22, 0.0 }
0x1126   : > { %v5073_v32 = vrot.slane %v5020_v24, 1  ;;  %v5074_v33 = vrot.slane %v5021_v26, 1  ;;  %v5077_v30 = vrot.slane %v5020_v24, 2  ;;  %v5078_v31 = vrot.slane %v5021_v26, 2  ;;  %v5267_v24 = vld [vmem:[#allocation19 + $0x4e0] sm:$0xff]  ;;  %v5268_v26 = vld [vmem:[#allocation19 + $0x4e8] sm:$0xff] }
0x1127   : > { %v9000_v28 = vpack.c.bf16 %v5268_v26, %v5267_v24  ;;  %v5474_v24 = vld [vmem:[#allocation22 + $0x4a8] sm:$0xff] }
0x1128   : > { %v5075_v38 = vsel %vm1021_vm1, %v5073_v32, %v5074_v33  ;;  %v5079_v39 = vsel %vm1026_vm2, %v5077_v30, %v5078_v31  ;;  %v5286_v32 = vld [vmem:[#allocation19 + $0x578] sm:$0xff]  ;;  %v5301_v33 = vld [vmem:[#allocation19 + $0x5f0] sm:$0xff] }
0x1129   : > { %5153 = vmatprep.mubr.f32.mxu0 %v5075_v38  ;;  %7667 = vmatmul.mubr.f32.vlgmr.msra.gmra.mrb[36].mxu1 %v5079_v39  ;;  %v9002_v30 = vpack.c.bf16 %v5286_v32, %v5285_v29  ;;  %v5302_v31 = vld [vmem:[#allocation19 + $0x5f8] sm:$0xff]  ;;  %v5485_v39 = vld [vmem:[#allocation22 + $0x500] sm:$0xff] }
0x112a   : > { %6320 = vmatmul.mubr.msk.f32.vlgmr.msra.gmra.mrb[40].mxu0 %vm10769_vm4, %v5018_v22  ;;  %9008 = vmatpush3.bf16.msra.mxu1 %v9007_v27  ;;  %v5299_v22 = vld [vmem:[#allocation19 + $0x5e0] sm:$0xff]  ;;  %v9028_v37 = vpack.c.bf16 %v5302_v31, %v5301_v33  ;;  %v5507_v32 = vld [vmem:[#allocation22 + $0x5b0] sm:$0xff] }
0x112b   : > { %8977 = vmatpush3.bf16.msra.mxu0 %v8976_v34  ;;  %9009 = vmatprep.subr.bf16.mxu1 %v10063_v0  ;;  %v9025_v27 = vpack.c.bf16 %v5300_v23, %v5299_v22  ;;  %v5269_v34 = vld [vmem:[#allocation19 + $0x4f0] sm:$0xff]  ;;  %v5473_v23 = vld [vmem:[#allocation22 + $0x4a0] sm:$0xff]  ;;  %v5492_v29 = vld [vmem:[#allocation22 + $0x538] sm:$0xff] }
0x112c   : > { %8979 = vmatprep.subr.bf16.mxu0 %v8978_v40  ;;  %7701 = vmatprep.mubr.msk.f32.mxu1 %vm10064_vm0, %v10065_v1  ;;  %v9004_v38 = vpack.c.bf16 %v5270_v35, %v5269_v34  ;;  %v5486_v40 = vld [vmem:[#allocation22 + $0x508] sm:$0xff]  ;;  %v5475_v31 = vld [vmem:[#allocation22 + $0x4b0] sm:$0xff]  ;;  %v5476_v34 = vld [vmem:[#allocation22 + $0x4b8] sm:$0xff] }
0x112d   : > { %v9030_v41 = vpack.c.bf16 %v5486_v40, %v5485_v39  ;;  %v5506_v22 = vld [vmem:[#allocation22 + $0x5a8] sm:$0xff]  ;;  %v5509_v40 = vld [vmem:[#allocation22 + $0x5c0] sm:$0xff] }
0x112e   : > { %9011 = vmatpush3.bf16.msra.mxu1 %v9010_v43  ;;  %v9069_v26 = vpack.c.bf16 %v5506_v22, %v5505_v14  ;;  %v5494_v39 = vld [vmem:[#allocation22 + $0x548] sm:$0xff] }
0x112f   : > { %8981 = vmatpush3.bf16.msra.mxu0 %v8980_v49  ;;  %9012 = vmatprep.subr.bf16.mxu1 %v10063_v0 }
0x1130   : > { %8983 = vmatprep.subr.bf16.mxu0 %v8982_v63 }
0x1132   : > { %9014 = vmatpush3.bf16.msra.mxu1 %v9013_v55  ;;  %v6322_v55 = vld [vmem:[#allocation26 + $0x2] ss:$0 sm:$0xff] }
0x1133   : > { %8985 = vmatpush3.bf16.msra.mxu0 %v8984_v56  ;;  %9015 = vmatprep.subr.bf16.mxu1 %v10063_v0 }
0x1134   : > { %8987 = vmatprep.subr.bf16.mxu0 %v8986_v60  ;;  %v5502_v60 = vld [vmem:[#allocation22 + $0x588] sm:$0xff] }
0x1135   : > { %v9063_v48 = vpack.c.bf16 %v5502_v60, %v5501_v59  ;;  %v5497_v59 = vld [vmem:[#allocation22 + $0x560] sm:$0xff]  ;;  %v5498_v60 = vld [vmem:[#allocation22 + $0x568] sm:$0xff] }
0x1136   : > { %9017 = vmatpush3.bf16.msra.mxu1 %v9016_v50 }
0x1137   : > { %8989 = vmatpush3.bf16.msra.mxu0 %v8988_v7  ;;  %9018 = vmatprep.subr.bf16.mxu1 %v10063_v0 }
0x1138   : > { %8991 = vmatprep.subr.bf16.mxu0 %v8990_v5 }
0x113a   : > { %9020 = vmatpush3.bf16.msra.mxu1 %v9019_v45  ;;  %v9032_v45 = vpack.c.bf16 %v5470_v62, %v5469_v61  ;;  %v9054_v61 = vpack.c.bf16 %v5498_v60, %v5497_v59  ;;  %v5514_v62 = vld [vmem:[#allocation22 + $0x5e8] sm:$0xff]  ;;  %v5705_v60 = vld [vmem:[#allocation28 + $0x28] sm:$0xff] }
0x113b   : > { %8993 = vmatpush3.bf16.msra.mxu0 %v8992_v9  ;;  %9021 = vmatprep.subr.bf16.mxu1 %v10063_v0  ;;  %v5503_v9 = vld [vmem:[#allocation22 + $0x590] sm:$0xff] }
0x113c   : > { %8995 = vmatprep.subr.bf16.mxu0 %v8994_v12  ;;  %v5704_v59 = vld [vmem:[#allocation28 + $0x20] sm:$0xff] }
0x113e   : > { %9023 = vmatpush3.bf16.msra.mxu1 %v9022_v18  ;;  %v5489_v18 = vld [vmem:[#allocation22 + $0x520] sm:$0xff] }
0x113f   : > { %8997 = vmatpush3.bf16.msra.mxu0 %v8996_v20  ;;  %9024 = vmatprep.subr.bf16.mxu1 %v10063_v0  ;;  %v9066_v20 = vpack.c.bf16 %v5504_v10, %v5503_v9  ;;  %v5484_v9 = vld [vmem:[#allocation22 + $0x4f8] sm:$0xff] }
0x1140   : > { %8999 = vmatprep.subr.bf16.mxu0 %v8998_v15  ;;  %v9038_v15 = vpack.c.bf16 %v5490_v19, %v5489_v18 }
0x1142   : > { %9026 = vmatpush3.bf16.msra.mxu1 %v9025_v27  ;;  %v9040_v27 = vpack.c.bf16 %v5474_v24, %v5473_v23 }
0x1143   : > { %9001 = vmatpush3.bf16.msra.mxu0 %v9000_v28  ;;  %9027 = vmatprep.subr.bf16.mxu1 %v10063_v0  ;;  %v5491_v28 = vld [vmem:[#allocation22 + $0x530] sm:$0xff] }
0x1144   : > { %9003 = vmatprep.subr.bf16.mxu0 %v9002_v30  ;;  %v9042_v33 = vpack.c.bf16 %v5492_v29, %v5491_v28  ;;  %v5508_v30 = vld [vmem:[#allocation22 + $0x5b8] sm:$0xff]  ;;  %v5700_v29 = vld [vmem:[#allocation28] sm:$0xff] }
0x1145   : > { %v9072_v35 = vpack.c.bf16 %v5508_v30, %v5507_v32  ;;  %v5701_v32 = vld [vmem:[#allocation28 + $0x8] sm:$0xff] }
0x1146   : > { %9029 = vmatpush3.bf16.msra.mxu1 %v9028_v37  ;;  %v9044_v37 = vpack.c.bf16 %v5476_v34, %v5475_v31  ;;  %v5718_v34 = vld [vmem:[#allocation28 + $0x90] sm:$0xff] }
0x1147   : > { %9005 = vmatpush3.bf16.msra.mxu0 %v9004_v38  ;;  %9062 = vmatprep.subr.bf16.mxu1 %v10063_v0  ;;  %v5493_v38 = vld [vmem:[#allocation22 + $0x540] sm:$0xff] }
0x1148   : > { %9031 = vmatprep.subr.bf16.mxu0 %v9030_v41  ;;  %v9046_v41 = vpack.c.bf16 %v5494_v39, %v5493_v38 }
0x11fc   : > { %v5225_v42 = vpop.f32.mrb[36].mxu1 }
0x11fd   : > { %v7143_v43 = vpop.f32.mrb[40].mxu0  ;;  %v7668_v49 = vpop.f32.mrb[37].mxu1 }
0x11fe   : > { %v7144_v47 = vpop.f32.mrb[41].mxu0  ;;  %v5478_v49 = vld [vmem:[#allocation22 + $0x4c8] sm:$0xff] }
0x11ff   : > { %v7145_v51 = vadd.f32 %v7144_v47, %v7143_v43  ;;  %v5477_v43 = vld [vmem:[#allocation22 + $0x4c0] sm:$0xff] }
0x1200   : > { %v9048_v47 = vpack.c.bf16 %v5478_v49, %v5477_v43  ;;  %v5735_v43 = vld [vmem:[#allocation28 + $0x118] sm:$0xff] }
0x1201   : > { %v5156_v63 = vadd.f32 %v7145_v51, %v6318_v46  ;;  %v5495_v51 = vld [vmem:[#allocation22 + $0x550] sm:$0xff] }
0x1203   : > { %v5226_v52 = vadd.f32 %v5225_v42, %v5156_v63  ;;  %v5510_v42 = vld [vmem:[#allocation22 + $0x5c8] sm:$0xff]  ;;  %v5496_v63 = vld [vmem:[#allocation22 + $0x558] sm:$0xff] }
0x1204   : > { %v9075_v46 = vpack.c.bf16 %v5510_v42, %v5509_v40  ;;  %v5734_v42 = vld [vmem:[#allocation28 + $0x110] sm:$0xff] }
0x1205   : > { %v5229_v54 = vmax.f32 %v5226_v52, 0.0  ;;  %v5511_v52 = vld [vmem:[#allocation22 + $0x5d0] sm:$0xff] }
0x1207   : > { %v5238_v56 = vmul.f32 %v6321_v53, %v5229_v54  ;;  %v9050_v53 = vpack.c.bf16 %v5496_v63, %v5495_v51  ;;  %v5512_v54 = vld [vmem:[#allocation22 + $0x5d8] sm:$0xff]  ;;  %v5703_v63 = vld [vmem:[#allocation28 + $0x18] sm:$0xff] }
0x1208   : > { %v5702_v51 = vld [vmem:[#allocation28 + $0x10] sm:$0xff] }
0x1209   : > { %v5247_v57 = vadd.f32 %v6322_v55, %v5238_v56  ;;  %v5479_v55 = vld [vmem:[#allocation22 + $0x4d0] sm:$0xff]  ;;  %v5480_v56 = vld [vmem:[#allocation22 + $0x4d8] sm:$0xff] }
0x120b   : > { %v5248_v58 = vmul.f32 %v5247_v57, %v10757_v25  ;;  %v9078_v57 = vpack.c.bf16 %v5512_v54, %v5511_v52  ;;  %v9122_v52 = vpack.c.bf16 %v5735_v43, %v5734_v42  ;;  %v5720_v54 = vld [vmem:[#allocation28 + $0xa0] sm:$0xff] }
0x120d   : > { %v5250_v2 = vrot.slane %v5248_v58, 7  ;;  %v9052_v58 = vpack.c.bf16 %v5480_v56, %v5479_v55  ;;  %v5721_v55 = vld [vmem:[#allocation28 + $0xa8] sm:$0xff]  ;;  %v5736_v56 = vld [vmem:[#allocation28 + $0x120] sm:$0xff] }
0x120f   : > { %v5252_v50 = vsel %vm1188_vm3, 0.0, %v5250_v2  ;;  %v5253_v7 = vsel %vm1188_vm3, %v5250_v2, 0.0 }
0x1210   : > { %v5305_v5 = vrot.slane %v5252_v50, 1  ;;  %v5306_v6 = vrot.slane %v5253_v7, 1  ;;  %v5309_v8 = vrot.slane %v5252_v50, 2  ;;  %v5310_v44 = vrot.slane %v5253_v7, 2  ;;  %v5481_v50 = vld [vmem:[#allocation22 + $0x4e0] sm:$0xff]  ;;  %v5482_v7 = vld [vmem:[#allocation22 + $0x4e8] sm:$0xff] }
0x1211   : > { %v9056_v3 = vpack.c.bf16 %v5482_v7, %v5481_v50  ;;  %v5723_v50 = vld [vmem:[#allocation28 + $0xb8] sm:$0xff]  ;;  %v5738_v7 = vld [vmem:[#allocation28 + $0x130] sm:$0xff] }
0x1212   : > { %v5307_v11 = vsel %vm1021_vm1, %v5305_v5, %v5306_v6  ;;  %v5311_v12 = vsel %vm1026_vm2, %v5309_v8, %v5310_v44  ;;  %v5500_v5 = vld [vmem:[#allocation22 + $0x578] sm:$0xff]  ;;  %v5515_v6 = vld [vmem:[#allocation22 + $0x5f0] sm:$0xff] }
0x1213   : > { %5385 = vmatprep.mubr.f32.mxu0 %v5307_v11  ;;  %7702 = vmatmul.mubr.f32.vlgmr.msra.gmra.mrb[38].mxu1 %v5311_v12  ;;  %v9058_v8 = vpack.c.bf16 %v5500_v5, %v5499_v4  ;;  %v5516_v44 = vld [vmem:[#allocation22 + $0x5f8] sm:$0xff]  ;;  %v5716_v12 = vld [vmem:[#allocation28 + $0x80] sm:$0xff]  ;;  %v5707_v4 = vld [vmem:[#allocation28 + $0x38] sm:$0xff] }
0x1214   : > { %6325 = vmatmul.mubr.msk.f32.vlgmr.msra.gmra.mrb[42].mxu0 %vm10769_vm4, %v5250_v2  ;;  %9064 = vmatpush3.bf16.msra.mxu1 %v9063_v48  ;;  %v5513_v2 = vld [vmem:[#allocation22 + $0x5e0] sm:$0xff]  ;;  %v9084_v10 = vpack.c.bf16 %v5516_v44, %v5515_v6  ;;  %v5725_v44 = vld [vmem:[#allocation28 + $0xc8] sm:$0xff] }
0x1215   : > { %9033 = vmatpush3.bf16.msra.mxu0 %v9032_v45  ;;  %9065 = vmatprep.subr.bf16.mxu1 %v10063_v0  ;;  %v9081_v48 = vpack.c.bf16 %v5514_v62, %v5513_v2  ;;  %v5483_v45 = vld [vmem:[#allocation22 + $0x4f0] sm:$0xff]  ;;  %v5722_v62 = vld [vmem:[#allocation28 + $0xb0] sm:$0xff] }
0x1216   : > { %9035 = vmatprep.subr.bf16.mxu0 %v9034_v13  ;;  %7736 = vmatprep.mubr.msk.f32.mxu1 %vm10064_vm0, %v10065_v1  ;;  %v9060_v11 = vpack.c.bf16 %v5484_v9, %v5483_v45  ;;  %v5717_v13 = vld [vmem:[#allocation28 + $0x88] sm:$0xff]  ;;  %v5740_v45 = vld [vmem:[#allocation28 + $0x140] sm:$0xff] }
0x1217   : > { %v9086_v16 = vpack.c.bf16 %v5717_v13, %v5716_v12  ;;  %v5709_v12 = vld [vmem:[#allocation28 + $0x48] sm:$0xff] }
0x1218   : > { %9067 = vmatpush3.bf16.msra.mxu1 %v9066_v20  ;;  %v6323_v20 = vld [vmem:[#allocation20 + $0x3] ss:$0 sm:$0xff] }
0x1219   : > { %9037 = vmatpush3.bf16.msra.mxu0 %v9036_v21  ;;  %9068 = vmatprep.subr.bf16.mxu1 %v10063_v0 }
0x121a   : > { %9039 = vmatprep.subr.bf16.mxu0 %v9038_v15 }
0x121c   : > { %9070 = vmatpush3.bf16.msra.mxu1 %v9069_v26  ;;  %v5732_v26 = vld [vmem:[#allocation28 + $0x100] sm:$0xff] }
0x121d   : > { %9041 = vmatpush3.bf16.msra.mxu0 %v9040_v27  ;;  %9071 = vmatprep.subr.bf16.mxu1 %v10063_v0  ;;  %v5733_v27 = vld [vmem:[#allocation28 + $0x108] sm:$0xff] }
0x121e   : > { %9043 = vmatprep.subr.bf16.mxu0 %v9042_v33  ;;  %v9119_v31 = vpack.c.bf16 %v5733_v27, %v5732_v26  ;;  %v5729_v26 = vld [vmem:[#allocation28 + $0xe8] sm:$0xff]  ;;  %v5744_v27 = vld [vmem:[#allocation28 + $0x160] sm:$0xff] }
0x1220   : > { %9073 = vmatpush3.bf16.msra.mxu1 %v9072_v35  ;;  %v5719_v35 = vld [vmem:[#allocation28 + $0x98] sm:$0xff] }
0x1221   : > { %9045 = vmatpush3.bf16.msra.mxu0 %v9044_v37  ;;  %9074 = vmatprep.subr.bf16.mxu1 %v10063_v0 }
0x1222   : > { %9047 = vmatprep.subr.bf16.mxu0 %v9046_v41  ;;  %v9088_v41 = vpack.c.bf16 %v5701_v32, %v5700_v29  ;;  %v5745_v29 = vld [vmem:[#allocation28 + $0x168] sm:$0xff]  ;;  %v5712_v32 = vld [vmem:[#allocation28 + $0x60] sm:$0xff] }
0x1224   : > { %9076 = vmatpush3.bf16.msra.mxu1 %v9075_v46 }
0x1225   : > { %9049 = vmatpush3.bf16.msra.mxu0 %v9048_v47  ;;  %9077 = vmatprep.subr.bf16.mxu1 %v10063_v0  ;;  %v9090_v47 = vpack.c.bf16 %v5719_v35, %v5718_v34  ;;  %v5730_v34 = vld [vmem:[#allocation28 + $0xf0] sm:$0xff]  ;;  %v5731_v35 = vld [vmem:[#allocation28 + $0xf8] sm:$0xff] }
0x1226   : > { %9051 = vmatprep.subr.bf16.mxu0 %v9050_v53  ;;  %v9092_v53 = vpack.c.bf16 %v5703_v63, %v5702_v51  ;;  %v6326_v51 = vld [vmem:[#allocation23 + $0x3] ss:$0 sm:$0xff] }
0x1228   : > { %9079 = vmatpush3.bf16.msra.mxu1 %v9078_v57  ;;  %v9094_v57 = vpack.c.bf16 %v5721_v55, %v5720_v54  ;;  %v6329_v55 = vld [vmem:[#allocation25 + $0x3] ss:$0 sm:$0xff] }
0x1229   : > { %9053 = vmatpush3.bf16.msra.mxu0 %v9052_v58  ;;  %9080 = vmatprep.subr.bf16.mxu1 %v10063_v0  ;;  %v5737_v58 = vld [vmem:[#allocation28 + $0x128] sm:$0xff] }
0x122a   : > { %9055 = vmatprep.subr.bf16.mxu0 %v9054_v61  ;;  %v9125_v2 = vpack.c.bf16 %v5737_v58, %v5736_v56  ;;  %v9096_v61 = vpack.c.bf16 %v5705_v60, %v5704_v59 }
0x122c   : > { %9082 = vmatpush3.bf16.msra.mxu1 %v9081_v48  ;;  %v5739_v48 = vld [vmem:[#allocation28 + $0x138] sm:$0xff] }
0x122d   : > { %9057 = vmatpush3.bf16.msra.mxu0 %v9056_v3  ;;  %9083 = vmatprep.subr.bf16.mxu1 %v10063_v0  ;;  %v5706_v3 = vld [vmem:[#allocation28 + $0x30] sm:$0xff]  ;;  %v9128_v5 = vpack.c.bf16 %v5739_v48, %v5738_v7 }
0x122e   : > { %9059 = vmatprep.subr.bf16.mxu0 %v9058_v8  ;;  %v9100_v6 = vpack.c.bf16 %v5707_v4, %v5706_v3  ;;  %v5724_v8 = vld [vmem:[#allocation28 + $0xc0] sm:$0xff] }
0x122f   : > { %v9102_v9 = vpack.c.bf16 %v5725_v44, %v5724_v8 }
0x1230   : > { %9085 = vmatpush3.bf16.msra.mxu1 %v9084_v10  ;;  %v5741_v10 = vld [vmem:[#allocation28 + $0x148] sm:$0xff] }
0x1231   : > { %9061 = vmatpush3.bf16.msra.mxu0 %v9060_v11  ;;  %9118 = vmatprep.subr.bf16.mxu1 %v10063_v0  ;;  %v5708_v11 = vld [vmem:[#allocation28 + $0x40] sm:$0xff]  ;;  %v9131_v13 = vpack.c.bf16 %v5741_v10, %v5740_v45 }
0x1232   : > { %9087 = vmatprep.subr.bf16.mxu0 %v9086_v16  ;;  %v9104_v16 = vpack.c.bf16 %v5709_v12, %v5708_v11 }
0x12e6   : > { %v5457_v17 = vpop.f32.mrb[38].mxu1 }
0x12e7   : > { %v7195_v18 = vpop.f32.mrb[42].mxu0  ;;  %v7703_v19 = vpop.f32.mrb[39].mxu1 }
0x12e8   : > { %v7196_v21 = vpop.f32.mrb[43].mxu0 }
0x12e9   : > { %v7197_v14 = vadd.f32 %v7196_v21, %v7195_v18  ;;  %v5727_v18 = vld [vmem:[#allocation28 + $0xd8] sm:$0xff] }
0x12ea   : > { %v5743_v21 = vld [vmem:[#allocation28 + $0x158] sm:$0xff] }
0x12eb   : > { %v5388_v22 = vadd.f32 %v7197_v14, %v6323_v20  ;;  %v5742_v20 = vld [vmem:[#allocation28 + $0x150] sm:$0xff] }
0x12ec   : > { %v5710_v14 = vld [vmem:[#allocation28 + $0x50] sm:$0xff] }
0x12ed   : > { %v5458_v15 = vadd.f32 %v5457_v17, %v5388_v22  ;;  %v5726_v17 = vld [vmem:[#allocation28 + $0xd0] sm:$0xff]  ;;  %v9134_v22 = vpack.c.bf16 %v5743_v21, %v5742_v20 }
0x12ee   : > { %v9106_v19 = vpack.c.bf16 %v5727_v18, %v5726_v17 }
0x12ef   : > { %v5461_v23 = vmax.f32 %v5458_v15, 0.0  ;;  %v5711_v15 = vld [vmem:[#allocation28 + $0x58] sm:$0xff] }
0x12f1   : > { %v5462_v24 = vmul.f32 %v5461_v23, %v10757_v25  ;;  %v9108_v23 = vpack.c.bf16 %v5711_v15, %v5710_v14 }
0x12f3   : > { %v5464_v28 = vrot.slane %v5462_v24, 7  ;;  %v5728_v24 = vld [vmem:[#allocation28 + $0xe0] sm:$0xff] }
0x12f5   : > { %v5466_v33 = vsel %vm1188_vm3, 0.0, %v5464_v28  ;;  %v5467_v30 = vsel %vm1188_vm3, %v5464_v28, 0.0 }
0x12f6   : > { %v5519_v37 = vrot.slane %v5466_v33, 1  ;;  %v5520_v38 = vrot.slane %v5467_v30, 1  ;;  %v5523_v39 = vrot.slane %v5466_v33, 2  ;;  %v5524_v40 = vrot.slane %v5467_v30, 2  ;;  %v5713_v33 = vld [vmem:[#allocation28 + $0x68] sm:$0xff] }
0x12f7   : > { %v9137_v30 = vpack.c.bf16 %v5745_v29, %v5744_v27 }
0x12f8   : > { %v5521_v49 = vsel %vm1021_vm1, %v5519_v37, %v5520_v38  ;;  %v5525_v46 = vsel %vm1026_vm2, %v5523_v39, %v5524_v40  ;;  %v5746_v37 = vld [vmem:[#allocation28 + $0x170] sm:$0xff]  ;;  %v9114_v38 = vpack.c.bf16 %v5731_v35, %v5730_v34  ;;  %v5747_v39 = vld [vmem:[#allocation28 + $0x178] sm:$0xff] }
0x12f9   : > { %5599 = vmatprep.mubr.f32.mxu0 %v5521_v49  ;;  %7737 = vmatmul.mubr.f32.vlgmr.msra.gmra.mrb[40].mxu1 %v5525_v46  ;;  %v5714_v40 = vld [vmem:[#allocation28 + $0x70] sm:$0xff]  ;;  %v9140_v42 = vpack.c.bf16 %v5747_v39, %v5746_v37 }
0x12fa   : > { %6328 = vmatmul.mubr.msk.f32.vlgmr.msra.gmra.mrb[44].mxu0 %vm10769_vm4, %v5464_v28  ;;  %9120 = vmatpush3.bf16.msra.mxu1 %v9119_v31  ;;  %v9110_v28 = vpack.c.bf16 %v5729_v26, %v5728_v24  ;;  %v9112_v31 = vpack.c.bf16 %v5713_v33, %v5712_v32 }
0x12fb   : > { %9089 = vmatpush3.bf16.msra.mxu0 %v9088_v41  ;;  %9121 = vmatprep.subr.bf16.mxu1 %v10063_v0  ;;  %v5715_v41 = vld [vmem:[#allocation28 + $0x78] sm:$0xff] }
0x12fc   : > { %9091 = vmatprep.subr.bf16.mxu0 %v9090_v47  ;;  %7771 = vmatprep.mubr.msk.f32.mxu1 %vm10064_vm0, %v10065_v1  ;;  %v9098_v1 = vpack.c.bf16 %v5723_v50, %v5722_v62  ;;  %v9116_v43 = vpack.c.bf16 %v5715_v41, %v5714_v40 }
0x12fe   : > { %9123 = vmatpush3.bf16.msra.mxu1 %v9122_v52 }
0x12ff   : > { %9093 = vmatpush3.bf16.msra.mxu0 %v9092_v53  ;;  %9124 = vmatprep.subr.bf16.mxu1 %v10063_v0 }
0x1300   : > { %9095 = vmatprep.subr.bf16.mxu0 %v9094_v57  ;;  %v6330_v57 = vld [vmem:[#allocation26 + $0x3] ss:$0 sm:$0xff] }
0x1302   : > { %9126 = vmatpush3.bf16.msra.mxu1 %v9125_v2 }
0x1303   : > { %9097 = vmatpush3.bf16.msra.mxu0 %v9096_v61  ;;  %9127 = vmatprep.subr.bf16.mxu1 %v10063_v0 }
0x1304   : > { %9099 = vmatprep.subr.bf16.mxu0 %v9098_v1 }
0x1306   : > { %9129 = vmatpush3.bf16.msra.mxu1 %v9128_v5 }
0x1307   : > { %9101 = vmatpush3.bf16.msra.mxu0 %v9100_v6  ;;  %9130 = vmatprep.subr.bf16.mxu1 %v10063_v0 }
0x1308   : > { %9103 = vmatprep.subr.bf16.mxu0 %v9102_v9 }
0x130a   : > { %9132 = vmatpush3.bf16.msra.mxu1 %v9131_v13 }
0x130b   : > { %9105 = vmatpush3.bf16.msra.mxu0 %v9104_v16  ;;  %9133 = vmatprep.subr.bf16.mxu1 %v10063_v0 }
0x130c   : > { %9107 = vmatprep.subr.bf16.mxu0 %v9106_v19 }
0x130e   : > { %9135 = vmatpush3.bf16.msra.mxu1 %v9134_v22 }
0x130f   : > { %9109 = vmatpush3.bf16.msra.mxu0 %v9108_v23  ;;  %9136 = vmatprep.subr.bf16.mxu1 %v10063_v0 }
0x1310   : > { %9111 = vmatprep.subr.bf16.mxu0 %v9110_v28 }
0x1312   : > { %9138 = vmatpush3.bf16.msra.mxu1 %v9137_v30 }
0x1313   : > { %9113 = vmatpush3.bf16.msra.mxu0 %v9112_v31  ;;  %9139 = vmatprep.subr.bf16.mxu1 %v10063_v0 }
0x1314   : > { %9115 = vmatprep.subr.bf16.mxu0 %v9114_v38 }
0x1316   : > { %9141 = vmatpush3.bf16.msra.mxu1 %v9140_v42 }
0x1317   : > { %9117 = vmatpush3.bf16.msra.mxu0 %v9116_v43 }
0x13cc   : > { %v5671_v49 = vpop.f32.mrb[40].mxu1 }
0x13cd   : > { %v7247_v46 = vpop.f32.mrb[44].mxu0  ;;  %v7738_v47 = vpop.f32.mrb[41].mxu1 }
0x13ce   : > { %v7248_v63 = vpop.f32.mrb[45].mxu0 }
0x13cf   : > { %v7249_v52 = vadd.f32 %v7248_v63, %v7247_v46 }
0x13d1   : > { %v5602_v53 = vadd.f32 %v7249_v52, %v6326_v51 }
0x13d3   : > { %v5672_v54 = vadd.f32 %v5671_v49, %v5602_v53 }
0x13d5   : > { %v5675_v56 = vmax.f32 %v5672_v54, 0.0 }
0x13d7   : > { %v5684_v58 = vmul.f32 %v6329_v55, %v5675_v56 }
0x13d9   : > { %v5693_v59 = vadd.f32 %v6330_v57, %v5684_v58 }
0x13db   : > { %v5694_v0 = vmul.f32 %v5693_v59, %v10757_v25 }
0x13dd   : > { %v5696_v60 = vrot.slane %v5694_v0, 7 }
0x13df   : > { %v5698_v2 = vsel %vm1188_vm3, 0.0, %v5696_v60  ;;  %v5699_v61 = vsel %vm1188_vm3, %v5696_v60, 0.0 }
0x13e0   : > { %v5750_v62 = vrot.slane %v5698_v2, 1  ;;  %v5751_v50 = vrot.slane %v5699_v61, 1  ;;  %v5754_v7 = vrot.slane %v5698_v2, 2  ;;  %v5755_v1 = vrot.slane %v5699_v61, 2 }
0x13e2   : > { %v5752_v48 = vsel %vm1021_vm1, %v5750_v62, %v5751_v50  ;;  %v5756_v3 = vsel %vm1026_vm2, %v5754_v7, %v5755_v1 }
0x13e3   : > { %5829 = vmatprep.mubr.f32.mxu0 %v5752_v48  ;;  %7772 = vmatmul.mubr.f32.vlgmr.msra.gmra.mrb[42].mxu1 %v5756_v3 }
0x13e4   : > { %6333 = vmatmul.mubr.msk.f32.vlgmr.msra.gmra.mrb[46].mxu0 %vm10769_vm4, %v5696_v60 }
0x13e5   : > { %9948 = shalt.err (!%p9945_p0)
}
0x13e6   : > { %s9949_s22 = scalar_lea.hbm %s11128_s12, 16  ;;  %s9953_s1 = scalar_lea.hbm %s11309_s8, 32 }
0x13e7   : > { %p9950_p10 = scmp.ne.s32.totalorder %s11128_s12, %s9949_s22  ;;  %p9954_p4 = scmp.lt.u32.totalorder %s11128_s12, %s11309_s8 }
0x13e8   : > { %p9955_p12 = scmp.lt.u32.totalorder %s9953_s1, %s9949_s22  ;;  %p9957_p8 = scmp.lt.u32.totalorder %s9949_s22, %s11128_s12 }
0x13e9   : > { %p9951_p2 = pnand %p9950_p10, %p11310_p11 }
0x13ea   : > { %p9956_p7 = por %p9955_p12, %p9954_p4 }
0x13eb   : > { %p9952_p3 = pneg %p9951_p2 }
0x13ec   : > { %p9958_p13 = por %p9957_p8, %p9956_p7 }
0x13ee   : > { %p9959_p1 = pnand %p9958_p13, %p9952_p3 }
0x13f0   : > { %9962 = shalt.err (!%p9959_p1)
}
0x13f1   : > { %9226 = dma.vmem_to_hbm [thread:$0]  (%p11310_p11), %s5939_s4, 16, %s11128_s12, %s5923_s30   ;;  %v6331_v5 = vld [vmem:[#allocation29] ss:$0 sm:$0xff] }
0x13f2   : > { %s11311_s10 = sld [smem:[#allocation66_spill]] }
0x13f8   : > { %s965_s12 = scalar_lea.vmem %s11311_s10, %s6337_s5 }
0x14b6   : > { %v5901_v25 = vpop.f32.mrb[42].mxu1 }
0x14b7   : > { %v7299_v36 = vpop.f32.mrb[46].mxu0  ;;  %v7773_v4 = vpop.f32.mrb[43].mxu1 }
0x14b8   : > { %v7300_v6 = vpop.f32.mrb[47].mxu0 }
0x14b9   : > { %v7301_v8 = vadd.f32 %v7300_v6, %v7299_v36 }
0x14bb   : > { %v5832_v44 = vadd.f32 %v7301_v8, %v6331_v5 }
0x14bd   : > { %v5902_v45 = vadd.f32 %v5901_v25, %v5832_v44 }
0x14bf   : > { %v5905_v9 = vsub.f32 0.0, %v5902_v45 }
0x14c1   : > { %v5906_v10 = vmul.f32 1.442695, %v5905_v9 }
0x14c3   : > { %9399 = vpow2.f32 %v5906_v10 }
0x14cd   : > { %v9400_v11 = vpop.eup %9399 }
0x14ce   : > { %v5908_v12 = vadd.f32 1.0, %v9400_v11 }
0x14d0   : > { %9401 = vrcp.f32 %v5908_v12 }
0x14da   : > { %v9402_v13 = vpop.eup %9401 }
0x14db   : > { %v5911_v16 = vrot.slane %v9402_v13, 7 }
0x14dd   : > { %v5913_v17 = vsel %vm1188_vm3, 0.0, %v5911_v16  ;;  %v5914_v18 = vsel %vm1188_vm3, %v5911_v16, 0.0 }
0x14de   : > { %5915 = vst [vmem:[%s965_s12] sm:$0xff] %v5913_v17  ;;  %5916 = vst [vmem:[%s965_s12 + $0x8] sm:$0x3] %v5914_v18 }
0x14df PF: > { %s11312_s4 = sld [smem:[#allocation47_spill]]  ;;  %s11313_s30 = sld [smem:[#allocation44_spill]] }
0x14e0   : > { %s11314_s27 = sld [smem:[#allocation52_spill]] }
0x14e5   : > { %p9328_p11 = scmp.ge.s32.totalorder %s11312_s4, 2  ;;  %s5958_s6 = sand.u32 1, %s11313_s30  }
0x14e6   : > { %p11315_p6 = scmp.ne.s32.totalorder %s11314_s27, 0  ;;  %s5959_s0 = scalar_lea.sflag [#allocation4], %s5958_s6 }
0x14e8   : > { %p9287_p9 = pnand %p9328_p11, %p11315_p6 }
0x14ea   : > { %10020 = dma.done.wait (!%p9287_p9), %s5959_s0, 16  }
0x14eb   : > { %10022 = vsyncadd (!%p9287_p9), %s5959_s0, 4294967280  ;;  %s11316_s30 = sld [smem:[#allocation49_spill]]  ;;  %s11317_s3 = sld [smem:[#allocation45_spill]] }
0x14ec   : > { %s11318_s28 = sld [smem:[#allocation46_spill]]  ;;  %s11319_s29 = sld [smem:[#allocation50_spill]] }
0x14f1   : > { %p43_p5 = scmp.ge.s32.totalorder %s11316_s30, 4  }
0x14f3   :  { %45 = sbr.rel (!%p43_p5) target bundleno = 28 (0x1c), region = 264 }
0x14fa   :  { %5963 = vsyncpa [#allocation3], 1 }
0x14fb   :  { %5965 = vsyncpa [#allocation3 + $0x1], 1 }
0x14fc   :  { %5966 = vsyncpa [#allocation6], 1 }
0x14fd   :  { %5967 = vsyncpa [#allocation9], 1 }
0x14fe   :  { %5968 = vsyncpa [#allocation12], 1 }
0x14ff   :  { %5969 = vsyncpa [#allocation15], 1 }
0x1500   :  { %5970 = vsyncpa [#allocation18], 1 }
0x1501   :  { %5971 = vsyncpa [#allocation21], 1 }
0x1502   :  { %5972 = vsyncpa [#allocation24], 1 }
0x1503   :  { %5973 = vsyncpa [#allocation27], 1 }
0x1504   :  { %5974 = vsyncpa [#allocation30], 1 }
0x1505   :  { %5975 = vsyncpa [#allocation4], 1 }
0x1506   :  { %5977 = vsyncpa [#allocation4 + $0x1], 1 }

</bundles_post_ra>
